<compile_context>
chip_gen: v6e
topology: v6e:2x2x1
jax: 0.10.0
libtpu: 0.0.40
codegen_flags: <defaults>
</compile_context>

<pallas_src>
import functools

import jax
import jax.numpy as jnp
from jax.experimental import pallas as pl
from jax.experimental.pallas import tpu as pltpu


def _scene_head_kernel(x_ref,
                       w1d_ref, w2_ref, w3_ref, wo_ref,
                       b_ref,
                       out_ref):
    """One (Cin, T) spatial tile of one batch element through the whole forward.

    x_ref:   (1, Cin, T)        f32  channels-first pixel tile (cast to bf16 here)
    w1d_ref: (2*Hid, Cin) bf16  fused [conv1+bn1 ; downsample conv+bn] weight
    w2/w3:   (Hid, Hid)   bf16  conv2+bn2 / conv3+bn3 (BN folded)
    wo:      (L, Hid)     bf16  final 1x1 conv
    b_ref:   (4*Hid+L, 1) f32   concatenated biases [c1d ; c2 ; c3 ; bo]
    out_ref: (1, L, T)    f32
    """
    hid = w2_ref.shape[0]

    # In-kernel f32 -> bf16 cast (tiny (Cin, T) VPU cast; saves a full HBM pass).
    x = x_ref[0].astype(jnp.bfloat16)                       # (Cin, T)

    b = b_ref[...]                                          # (4*Hid+L, 1) f32
    c1d = b[: 2 * hid]                                      # sublane-aligned static slices
    c2 = b[2 * hid: 3 * hid]
    c3 = b[3 * hid: 4 * hid]
    bo = b[4 * hid:]

    # Fused [conv1+bn1 | downsample conv+bn]: one (2*Hid, Cin) @ (Cin, T) matmul.
    hr = jnp.dot(w1d_ref[...], x, preferred_element_type=jnp.float32) + c1d
    h = jnp.maximum(hr[:hid].astype(jnp.bfloat16), 0)       # relu1 (bf16, bit-equivalent)
    r = hr[hid:]                                             # residual path, kept f32

    # conv2 + bn2 + relu
    h = jnp.dot(w2_ref[...], h, preferred_element_type=jnp.float32) + c2
    h = jnp.maximum(h.astype(jnp.bfloat16), 0)

    # conv3 + bn3, residual add, relu
    h = jnp.dot(w3_ref[...], h, preferred_element_type=jnp.float32) + c3
    h = jnp.maximum((h + r).astype(jnp.bfloat16), 0)

    # final 1x1 conv: Hid -> L   (output (L, T) is lane-dense along the spatial axis)
    out_ref[0] = (jnp.dot(wo_ref[...], h, preferred_element_type=jnp.float32)
                  + bo).astype(out_ref.dtype)


def scene_head_v3_pallas(x_nchw, params, *, t_hw=512):
    """x_nchw: (N, Cin, H, W) float32. Returns (N, L, H, W) float32.

    t_hw: target spatial (lane) tile. 512 fits every generation at default scoped VMEM;
    v6e can use 1024 (vmem limit auto-raised below), v7x should stay <= 1024, v5e at 512.
    """
    N, Cin, H, W = x_nchw.shape
    w1d, w2, w3, wo, bias_all = params
    Hid = w2.shape[0]
    L = wo.shape[0]
    HW = H * W

    # channels-first & flatten spatial (free reshape, no transpose); stays f32,
    # the bf16 cast happens in-kernel.
    x3 = x_nchw.reshape(N, Cin, HW)

    # Spatial (lane) tile: full HW when small, otherwise a multiple of 256
    # (v6e/v7x MXU is 256 wide; 256 is also a 128-multiple so v5e is fine).
    if HW <= t_hw:
        t = HW
    else:
        t = max(256, (t_hw // 256) * 256)
    grid_hw = pl.cdiv(HW, t)            # ragged final block handled by Pallas; no jnp.pad
    # v7x has two TensorCores: keep >= 2 "parallel" grid steps when legal.
    if N * grid_hw < 2 and t % 2 == 0 and (t // 2) % 128 == 0:
        t //= 2
        grid_hw = pl.cdiv(HW, t)
    grid = (N, grid_hw)

    # Constant-index weight/bias blocks: single-buffered (no pointless double-buffering).
    def const_spec(shape):
        return pl.BlockSpec(shape, lambda n, j: (0, 0), pipeline_mode=pl.Buffered(1))

    # Advisory cost estimate so XLA can overlap neighboring ops with the custom call.
    flops = 2 * N * HW * (2 * Hid * Cin + 2 * Hid * Hid + L * Hid)
    bytes_accessed = int(
        N * Cin * HW * 4 + N * L * HW * 4
        + (w1d.size + w2.size + w3.size + wo.size) * 2
        + bias_all.size * 4)
    cost = pl.CostEstimate(flops=flops, transcendentals=0,
                           bytes_accessed=bytes_accessed)

    # Rough per-step VMEM footprint; only raise the scoped limit when the default (32 MiB)
    # would be tight, and stay well under v7x's 64 MiB physical VMEM.
    est = ((2 * Hid + 2 * Hid) * t * 4                       # f32 intermediates (hr, h, r)
           + 2 * (Cin + L) * t * 4                           # double-buffered in/out tiles
           + 2 * (2 * Hid * Cin + 2 * Hid * Hid + L * Hid)   # bf16 weights (single-buffered)
           + (4 * Hid + L) * 128 * 4)                        # lane-padded bias buffer
    vmem_limit = None
    if est * 2 > 32 * 1024 * 1024:
        vmem_limit = min(est * 3, 56 * 1024 * 1024)

    out3 = pl.pallas_call(
        _scene_head_kernel,
        out_shape=jax.ShapeDtypeStruct((N, L, HW), jnp.float32),
        grid_spec=pltpu.PrefetchScalarGridSpec(
            num_scalar_prefetch=0,
            grid=grid,
            in_specs=[
                pl.BlockSpec((1, Cin, t), lambda n, j: (n, 0, j)),
                const_spec((2 * Hid, Cin)),
                const_spec((Hid, Hid)),
                const_spec((Hid, Hid)),
                const_spec((L, Hid)),
                const_spec((4 * Hid + L, 1)),
            ],
            out_specs=pl.BlockSpec((1, L, t), lambda n, j: (n, 0, j)),
        ),
        compiler_params=pltpu.CompilerParams(
            dimension_semantics=("parallel", "parallel"),
            vmem_limit_bytes=vmem_limit),
        cost_estimate=cost,
    )(x3, w1d, w2, w3, wo, bias_all)

    return out3.reshape(N, L, H, W)


def _fold_conv_bn(key, cin, cout, eps=1e-5):
    """Deterministic synthetic 1x1-conv + BatchNorm (eval mode, running stats),
    folded into a single (cout, cin) matmul weight and (cout, 1) bias."""
    k = jax.random.split(key, 6)
    w = jax.random.normal(k[0], (cout, cin), jnp.float32) * 0.05
    b = jax.random.normal(k[1], (cout,), jnp.float32) * 0.05
    gamma = 1.0 + 0.1 * jax.random.normal(k[2], (cout,), jnp.float32)
    beta = 0.1 * jax.random.normal(k[3], (cout,), jnp.float32)
    rmean = 0.1 * jax.random.normal(k[4], (cout,), jnp.float32)
    rvar = jax.random.uniform(k[5], (cout,), jnp.float32, 0.5, 1.5)
    scale = gamma / jnp.sqrt(rvar + eps)
    shift = beta - rmean * scale
    w_fold = w * scale[:, None]
    b_fold = b * scale + shift
    return w_fold, b_fold[:, None]


def make_params(key, features, hidden, num_landmarks):
    ks = jax.random.split(key, 6)
    w1, c1 = _fold_conv_bn(ks[0], features, hidden)   # conv1 + bn1
    w2, c2 = _fold_conv_bn(ks[1], hidden, hidden)     # conv2 + bn2
    w3, c3 = _fold_conv_bn(ks[2], hidden, hidden)     # conv3 + bn3
    wd, cd = _fold_conv_bn(ks[3], features, hidden)   # downsample conv + bn
    wo = jax.random.normal(ks[4], (num_landmarks, hidden), jnp.float32) * 0.05
    bo = (jax.random.normal(ks[5], (num_landmarks,), jnp.float32) * 0.05)[:, None]
    # Fuse conv1+bn1 with the downsample conv+bn into one (2*hidden, features) matmul,
    # and pack all biases into a single (4*hidden + L, 1) buffer.
    w1d = jnp.concatenate([w1, wd], axis=0)
    c1d = jnp.concatenate([c1, cd], axis=0)
    bias_all = jnp.concatenate([c1d, c2, c3, bo], axis=0)
    return (w1d.astype(jnp.bfloat16),
            w2.astype(jnp.bfloat16),
            w3.astype(jnp.bfloat16),
            wo.astype(jnp.bfloat16),
            bias_all)


def scene_head_v3_ref(x_nchw, params):
    """Pure-JAX reference (same bf16/f32 mixed-precision math, channels-first)."""
    w1d, w2, w3, wo, bias_all = params
    N, Cin, H, W = x_nchw.shape
    Hid = w2.shape[0]
    L = wo.shape[0]
    c1d = bias_all[: 2 * Hid]
    c2 = bias_all[2 * Hid: 3 * Hid]
    c3 = bias_all[3 * Hid: 4 * Hid]
    bo = bias_all[4 * Hid:]
    x = x_nchw.reshape(N, Cin, H * W).astype(jnp.bfloat16)

    def mm(w, a):
        return jnp.einsum('oc,nct->not', w, a,
                          preferred_element_type=jnp.float32)

    hr = mm(w1d, x) + c1d
    h = jnp.maximum(hr[:, :Hid].astype(jnp.bfloat16), 0)
    r = hr[:, Hid:]
    h = jnp.maximum((mm(w2, h) + c2).astype(jnp.bfloat16), 0)
    h = mm(w3, h) + c3
    h = jnp.maximum((h + r).astype(jnp.bfloat16), 0)
    o = mm(wo, h) + bo
    return o.reshape(N, L, H, W)


if __name__ == "__main__":
    # Small shapes consistent with the module's forward: batch=2, features (in channels)=32,
    # spatial=16x16; internal hidden=512 as hard-coded in the module; num_landmarks=16.
    N, FEATURES, H, W = 2, 32, 16, 16
    HIDDEN, NUM_LANDMARKS = 512, 16

    key = jax.random.PRNGKey(0)
    kx, kp = jax.random.split(key)
    x = jax.random.normal(kx, (N, FEATURES, H, W), jnp.float32)
    params = make_params(kp, FEATURES, HIDDEN, NUM_LANDMARKS)

    # TODO(synk): BatchNorm is implemented in eval mode (running-stat affine folded into
    # the 1x1 convs); PyTorch train-mode batch statistics are not reproduced.

    fn = jax.jit(functools.partial(scene_head_v3_pallas, t_hw=512))
    out = jax.block_until_ready(fn(x, params))

    ref = scene_head_v3_ref(x, params)
    assert out.shape == (N, NUM_LANDMARKS, H, W), out.shape
    max_err = float(jnp.max(jnp.abs(out - ref)))
    assert jnp.allclose(out, ref, atol=2e-2, rtol=2e-2), max_err

    print("KERNEL_OK")
</pallas_src>

<mosaic_0001>
module attributes {stable_mosaic.version = 11 : i64} {
  func.func @_scene_head_kernel(%arg0: i32, %arg1: i32, %arg2: memref<1x32x256xf32, #tpu.memory_space<vmem>>, %arg3: memref<1024x32xbf16, #tpu.memory_space<vmem>>, %arg4: memref<512x512xbf16, #tpu.memory_space<vmem>>, %arg5: memref<512x512xbf16, #tpu.memory_space<vmem>>, %arg6: memref<16x512xbf16, #tpu.memory_space<vmem>>, %arg7: memref<2064x1xf32, #tpu.memory_space<vmem>>, %arg8: memref<1x16x256xf32, #tpu.memory_space<vmem>>) attributes {dimension_semantics = [#tpu.dimension_semantics<parallel>, #tpu.dimension_semantics<parallel>], iteration_bounds = array<i64: 2, 1>, scalar_prefetch = 0 : i64, scratch_operands = 0 : i64, tpu.core_type = #tpu.core_type<tc>, window_params = [{transform_indices = @transform_0, window_bounds = array<i64: 1, 32, 256>}, {pipeline_mode = #tpu.pipeline_mode<synchronous>, transform_indices = @transform_1, window_bounds = array<i64: 1024, 32>}, {pipeline_mode = #tpu.pipeline_mode<synchronous>, transform_indices = @transform_2, window_bounds = array<i64: 512, 512>}, {pipeline_mode = #tpu.pipeline_mode<synchronous>, transform_indices = @transform_3, window_bounds = array<i64: 512, 512>}, {pipeline_mode = #tpu.pipeline_mode<synchronous>, transform_indices = @transform_4, window_bounds = array<i64: 16, 512>}, {pipeline_mode = #tpu.pipeline_mode<synchronous>, transform_indices = @transform_5, window_bounds = array<i64: 2064, 1>}, {transform_indices = @transform_6, window_bounds = array<i64: 1, 16, 256>}]} {
    %c0 = arith.constant 0 : index
    %c0_0 = arith.constant 0 : index
    %c0_1 = arith.constant 0 : index
    %0 = vector.load %arg2[%c0, %c0_0, %c0_1] : memref<1x32x256xf32, #tpu.memory_space<vmem>>, vector<1x32x256xf32>
    %1 = vector.shape_cast %0 : vector<1x32x256xf32> to vector<32x256xf32>
    %2 = arith.truncf %1 : vector<32x256xf32> to vector<32x256xbf16>
    %c0_2 = arith.constant 0 : index
    %c0_3 = arith.constant 0 : index
    %3 = vector.load %arg7[%c0_2, %c0_3] : memref<2064x1xf32, #tpu.memory_space<vmem>>, vector<2064x1xf32>
    %4 = vector.extract_strided_slice %3 {offsets = [0, 0], sizes = [1024, 1], strides = [1, 1]} : vector<2064x1xf32> to vector<1024x1xf32>
    %5 = vector.extract_strided_slice %3 {offsets = [1024, 0], sizes = [512, 1], strides = [1, 1]} : vector<2064x1xf32> to vector<512x1xf32>
    %6 = vector.extract_strided_slice %3 {offsets = [1536, 0], sizes = [512, 1], strides = [1, 1]} : vector<2064x1xf32> to vector<512x1xf32>
    %7 = vector.extract_strided_slice %3 {offsets = [2048, 0], sizes = [16, 1], strides = [1, 1]} : vector<2064x1xf32> to vector<16x1xf32>
    %c0_4 = arith.constant 0 : index
    %c0_5 = arith.constant 0 : index
    %8 = vector.load %arg3[%c0_4, %c0_5] : memref<1024x32xbf16, #tpu.memory_space<vmem>>, vector<1024x32xbf16>
    %cst = arith.constant dense<0.000000e+00> : vector<1024x256xf32>
    %9 = tpu.matmul %8, %2, %cst {dimension_numbers = #tpu.dot_dimension_numbers<[1], [0], [0], [1], [0, 0, 1, 1], [], []>} : vector<1024x32xbf16>, vector<32x256xbf16>, vector<1024x256xf32> -> vector<1024x256xf32>
    %10 = vector.broadcast %4 : vector<1024x1xf32> to vector<1024x256xf32>
    %11 = arith.addf %9, %10 : vector<1024x256xf32>
    %12 = vector.extract_strided_slice %11 {offsets = [0, 0], sizes = [512, 256], strides = [1, 1]} : vector<1024x256xf32> to vector<512x256xf32>
    %13 = arith.truncf %12 : vector<512x256xf32> to vector<512x256xbf16>
    %cst_6 = arith.constant 0.000000e+00 : bf16
    %14 = vector.broadcast %cst_6 : bf16 to vector<512x256xbf16>
    %15 = arith.maximumf %13, %14 : vector<512x256xbf16>
    %16 = vector.extract_strided_slice %11 {offsets = [512, 0], sizes = [512, 256], strides = [1, 1]} : vector<1024x256xf32> to vector<512x256xf32>
    %c0_7 = arith.constant 0 : index
    %c0_8 = arith.constant 0 : index
    %17 = vector.load %arg4[%c0_7, %c0_8] : memref<512x512xbf16, #tpu.memory_space<vmem>>, vector<512x512xbf16>
    %cst_9 = arith.constant dense<0.000000e+00> : vector<512x256xf32>
    %18 = tpu.matmul %17, %15, %cst_9 {dimension_numbers = #tpu.dot_dimension_numbers<[1], [0], [0], [1], [0, 0, 1, 1], [], []>} : vector<512x512xbf16>, vector<512x256xbf16>, vector<512x256xf32> -> vector<512x256xf32>
    %19 = vector.broadcast %5 : vector<512x1xf32> to vector<512x256xf32>
    %20 = arith.addf %18, %19 : vector<512x256xf32>
    %21 = arith.truncf %20 : vector<512x256xf32> to vector<512x256xbf16>
    %cst_10 = arith.constant 0.000000e+00 : bf16
    %22 = vector.broadcast %cst_10 : bf16 to vector<512x256xbf16>
    %23 = arith.maximumf %21, %22 : vector<512x256xbf16>
    %c0_11 = arith.constant 0 : index
    %c0_12 = arith.constant 0 : index
    %24 = vector.load %arg5[%c0_11, %c0_12] : memref<512x512xbf16, #tpu.memory_space<vmem>>, vector<512x512xbf16>
    %cst_13 = arith.constant dense<0.000000e+00> : vector<512x256xf32>
    %25 = tpu.matmul %24, %23, %cst_13 {dimension_numbers = #tpu.dot_dimension_numbers<[1], [0], [0], [1], [0, 0, 1, 1], [], []>} : vector<512x512xbf16>, vector<512x256xbf16>, vector<512x256xf32> -> vector<512x256xf32>
    %26 = vector.broadcast %6 : vector<512x1xf32> to vector<512x256xf32>
    %27 = arith.addf %25, %26 : vector<512x256xf32>
    %28 = arith.addf %27, %16 : vector<512x256xf32>
    %29 = arith.truncf %28 : vector<512x256xf32> to vector<512x256xbf16>
    %cst_14 = arith.constant 0.000000e+00 : bf16
    %30 = vector.broadcast %cst_14 : bf16 to vector<512x256xbf16>
    %31 = arith.maximumf %29, %30 : vector<512x256xbf16>
    %c0_15 = arith.constant 0 : index
    %c0_16 = arith.constant 0 : index
    %32 = vector.load %arg6[%c0_15, %c0_16] : memref<16x512xbf16, #tpu.memory_space<vmem>>, vector<16x512xbf16>
    %cst_17 = arith.constant dense<0.000000e+00> : vector<16x256xf32>
    %33 = tpu.matmul %32, %31, %cst_17 {dimension_numbers = #tpu.dot_dimension_numbers<[1], [0], [0], [1], [0, 0, 1, 1], [], []>} : vector<16x512xbf16>, vector<512x256xbf16>, vector<16x256xf32> -> vector<16x256xf32>
    %34 = vector.broadcast %7 : vector<16x1xf32> to vector<16x256xf32>
    %35 = arith.addf %33, %34 : vector<16x256xf32>
    %c0_18 = arith.constant 0 : index
    %c0_19 = arith.constant 0 : index
    %c0_20 = arith.constant 0 : index
    %36 = vector.load %arg8[%c0_18, %c0_19, %c0_20] : memref<1x16x256xf32, #tpu.memory_space<vmem>>, vector<1x16x256xf32>
    %37 = vector.shape_cast %36 : vector<1x16x256xf32> to vector<16x256xf32>
    %38 = vector.shape_cast %35 : vector<16x256xf32> to vector<1x16x256xf32>
    tpu.vector_store %arg8[%c0_18, %c0_19, %c0_20], %38 {strides = array<i32>} : memref<1x16x256xf32, #tpu.memory_space<vmem>>, vector<1x16x256xf32>,
    return
  }
  func.func @transform_0(%arg0: i32, %arg1: i32) -> (i32, i32, i32) {
    %c0_i32 = arith.constant 0 : i32
    %c0_i32_0 = arith.constant 0 : i32
    return %arg0, %c0_i32, %arg1 : i32, i32, i32
  }
  func.func @transform_1(%arg0: i32, %arg1: i32) -> (i32, i32) {
    %c0_i32 = arith.constant 0 : i32
    %c0_i32_0 = arith.constant 0 : i32
    %c0_i32_1 = arith.constant 0 : i32
    return %c0_i32, %c0_i32_0 : i32, i32
  }
  func.func @transform_2(%arg0: i32, %arg1: i32) -> (i32, i32) {
    %c0_i32 = arith.constant 0 : i32
    %c0_i32_0 = arith.constant 0 : i32
    %c0_i32_1 = arith.constant 0 : i32
    return %c0_i32, %c0_i32_0 : i32, i32
  }
  func.func @transform_3(%arg0: i32, %arg1: i32) -> (i32, i32) {
    %c0_i32 = arith.constant 0 : i32
    %c0_i32_0 = arith.constant 0 : i32
    %c0_i32_1 = arith.constant 0 : i32
    return %c0_i32, %c0_i32_0 : i32, i32
  }
  func.func @transform_4(%arg0: i32, %arg1: i32) -> (i32, i32) {
    %c0_i32 = arith.constant 0 : i32
    %c0_i32_0 = arith.constant 0 : i32
    %c0_i32_1 = arith.constant 0 : i32
    return %c0_i32, %c0_i32_0 : i32, i32
  }
  func.func @transform_5(%arg0: i32, %arg1: i32) -> (i32, i32) {
    %c0_i32 = arith.constant 0 : i32
    %c0_i32_0 = arith.constant 0 : i32
    %c0_i32_1 = arith.constant 0 : i32
    return %c0_i32, %c0_i32_0 : i32, i32
  }
  func.func @transform_6(%arg0: i32, %arg1: i32) -> (i32, i32, i32) {
    %c0_i32 = arith.constant 0 : i32
    %c0_i32_0 = arith.constant 0 : i32
    return %arg0, %c0_i32, %arg1 : i32, i32, i32
  }
}

</mosaic_0001>

<bundles_post_ra>
// kernel: scene_head_v3_pallas.1
= control target key start
LH: loop header
LB: loop body
LE: loop exit
PB: predicated region body
PF: predicated region fallthrough
CT: control target
= control target key end

     0   :  { %s7769_s21 = smov 0   ;;  %s7771_s22 = smov 0   ;;  %s13189_s0 = inlined_call_operand.vmem [shape: f32[2,32,256], index: 0, kind: input, shape index: {}]   ;;  %s13190_s1 = inlined_call_operand.vmem [shape: bf16[1024,32], index: 1, kind: input, shape index: {}]   ;;  %s13191_s2 = inlined_call_operand.vmem [shape: bf16[512,512], index: 2, kind: input, shape index: {}]   ;;  %s13192_s3 = inlined_call_operand.vmem [shape: bf16[512,512], index: 3, kind: input, shape index: {}]   ;;  %s13193_s4 = inlined_call_operand.vmem [shape: bf16[16,512], index: 4, kind: input, shape index: {}]   ;;  %s13194_s5 = inlined_call_operand.vmem [shape: f32[2064,1], index: 5, kind: input, shape index: {}]   ;;  %s13195_s6 = inlined_call_operand.vmem [shape: f32[2,16,256], index: 6, kind: output, shape index: {}]  }
   0x1   :  { %s7773_s23 = smov 0  }
   0x2 LB: > { %s28_s24 = sadd.s32 1, %s7727_s22  ;;  %p6831_p0 = scmp.ge.s32.totalorder %s7731_s23, 1  ;;  %s7731_s23 = sphi %s7773_s23, %s16_s23   ;;  %s7727_s22 = sphi %s7771_s22, %s14651_s22   ;;  %s7723_s21 = sphi %s7769_s21, %s14650_s21  }
   0x3   : > { %p30_p1 = scmp.ge.s32.totalorder %s28_s24, 2  ;;  %p233_p2 = scmp.lt.s32.totalorder %s7731_s23, 3 }
   0x5   : > { %s14653_s24 = smov (%p30_p1, %s28_s24), 0  ;;  %p234_p3 = pnand %p6831_p0, %p233_p2 }
   0x7   : > { %237 = sbr.rel (%p234_p3) target bundleno = 1817 (0x719), region = 44 }
   0xc   : > { %v318_v0 = vld [vmem:[%s13194_s5 + $0x70] sm:$0xff]  ;;  %v316_v1 = vld [vmem:[%s13194_s5 + $0x60] sm:$0xff]  ;;  %p272_p4 = scmp.lt.s32.totalorder %s7723_s21, 1  ;;  %v13196_v2 = vmov 0   ;;  %v319_v3 = vld [vmem:[%s13194_s5 + $0x78] sm:$0xff]  ;;  %vm1650_vm0 = vcmask 261120  }
   0xd   : > { %7254 = vset.pattern.permute.xlu1 %v13196_v2  ;;  %7253 = vset.pattern.permute.xlu0 %v13196_v2  ;;  %v317_v4 = vld [vmem:[%s13194_s5 + $0x68] sm:$0xff]  ;;  %v315_v5 = vld [vmem:[%s13194_s5 + $0x58] sm:$0xff]  ;;  %v314_v6 = vld [vmem:[%s13194_s5 + $0x50] sm:$0xff] }
   0xe   : > { %762 = vperm.xlu0 %7253, %v318_v0   ;;  %752 = vperm.xlu1 %7254, %v316_v1   ;;  %s14655_s21 = smov (!%p272_p4, %s7723_s21), 1  ;;  %v313_v18 = vld [vmem:[%s13194_s5 + $0x48] sm:$0xff]  ;;  %v312_v19 = vld [vmem:[%s13194_s5 + $0x40] sm:$0xff]  ;;  %v311_v22 = vld [vmem:[%s13194_s5 + $0x38] sm:$0xff] }
   0xf   : > { %1875 = vmatprep.mubr.bf16.mxu0 %v13196_v2  ;;  %s7226_s9 = sshll.u32 %s14655_s21, 6  ;;  %v7255_v21 = vld [vmem:[%s13190_s1] sm:$0xff]   ;;  %v310_v23 = vld [vmem:[%s13194_s5 + $0x30] sm:$0xff]  ;;  %v309_v24 = vld [vmem:[%s13194_s5 + $0x28] sm:$0xff] }
  0x10   : > { %s279_s12 = scalar_lea.vmem %s13189_s0, %s7226_s9  ;;  %v308_v25 = vld [vmem:[%s13194_s5 + $0x20] sm:$0xff]  ;;  %v7256_v26 = vld [vmem:[%s13190_s1 + $0x8] sm:$0xff]   ;;  %v307_v27 = vld [vmem:[%s13194_s5 + $0x18] sm:$0xff]  ;;  %s7227_s9 = sshll.u32 %s14655_s21, 5 }
  0x11   : > { %v297_v7 = vld [vmem:[%s279_s12 + $0x28] sm:$0xff]  ;;  %v299_v8 = vld [vmem:[%s279_s12 + $0x38] sm:$0xff]  ;;  %v296_v9 = vld [vmem:[%s279_s12 + $0x20] sm:$0xff] }
  0x12   : > { %767 = vperm.xlu0 %7253, %v319_v3   ;;  %757 = vperm.xlu1 %7254, %v317_v4   ;;  %v303_v10 = vpack.c.bf16 %v299_v8, %v297_v7  ;;  %v298_v11 = vld [vmem:[%s279_s12 + $0x30] sm:$0xff]  ;;  %v293_v12 = vld [vmem:[%s279_s12 + $0x8] sm:$0xff]  ;;  %v295_v13 = vld [vmem:[%s279_s12 + $0x18] sm:$0xff] }
  0x13   : > { %v302_v14 = vpack.c.bf16 %v298_v11, %v296_v9  ;;  %v301_v15 = vpack.c.bf16 %v295_v13, %v293_v12  ;;  %v292_v16 = vld [vmem:[%s279_s12] sm:$0xff]  ;;  %v294_v17 = vld [vmem:[%s279_s12 + $0x10] sm:$0xff]  ;;  %v305_v29 = vld [vmem:[%s13194_s5 + $0x8] sm:$0xff]  ;;  %s289_s12 = scalar_lea.vmem %s13195_s6, %s7227_s9 }
  0x14   : > { %1855 = vmatprep.subr.bf16.mxu0 %v303_v10  ;;  %v300_v20 = vpack.c.bf16 %v294_v17, %v292_v16  ;;  %v306_v28 = vld [vmem:[%s13194_s5 + $0x10] sm:$0xff]  ;;  %v304_v30 = vld [vmem:[%s13194_s5] sm:$0xff]  ;;  %v335_v32 = vld [vmem:[%s13194_s5 + $0xf8] sm:$0xff] }
  0x15   : > { %1856 = vmatpush1.bf16.msra.mxu0 %v302_v14  ;;  %v7257_v31 = vld [vmem:[%s13190_s1 + $0x10] sm:$0xff]   ;;  %v333_v34 = vld [vmem:[%s13194_s5 + $0xe8] sm:$0xff]  ;;  %v332_v35 = vld [vmem:[%s13194_s5 + $0xe0] sm:$0xff] }
  0x16   : > { %747 = vperm.xlu1 %7254, %v315_v5   ;;  %742 = vperm.xlu0 %7253, %v314_v6   ;;  %v334_v33 = vld [vmem:[%s13194_s5 + $0xf0] sm:$0xff]  ;;  %v7258_v36 = vld [vmem:[%s13190_s1 + $0x18] sm:$0xff]   ;;  %v329_v39 = vld [vmem:[%s13194_s5 + $0xc8] sm:$0xff] }
  0x17   : > { %1857 = vmatprep.subr.bf16.mxu0 %v301_v15  ;;  %v331_v37 = vld [vmem:[%s13194_s5 + $0xd8] sm:$0xff]  ;;  %v330_v38 = vld [vmem:[%s13194_s5 + $0xd0] sm:$0xff]  ;;  %v328_v40 = vld [vmem:[%s13194_s5 + $0xc0] sm:$0xff] }
  0x18   : > { %v7259_v41 = vld [vmem:[%s13190_s1 + $0x20] sm:$0xff]   ;;  %v327_v42 = vld [vmem:[%s13194_s5 + $0xb8] sm:$0xff]  ;;  %v326_v43 = vld [vmem:[%s13194_s5 + $0xb0] sm:$0xff] }
  0x19   : > { %1858 = vmatpush1.bf16.msra.mxu0 %v300_v20  ;;  %v325_v44 = vld [vmem:[%s13194_s5 + $0xa8] sm:$0xff]  ;;  %v324_v45 = vld [vmem:[%s13194_s5 + $0xa0] sm:$0xff]  ;;  %v323_v47 = vld [vmem:[%s13194_s5 + $0x98] sm:$0xff] }
  0x1a   : > { %737 = vperm.xlu1 %7254, %v313_v18   ;;  %732 = vperm.xlu0 %7253, %v312_v19   ;;  %v7260_v46 = vld [vmem:[%s13190_s1 + $0x28] sm:$0xff]   ;;  %v322_v48 = vld [vmem:[%s13194_s5 + $0x90] sm:$0xff]  ;;  %v320_v50 = vld [vmem:[%s13194_s5 + $0x80] sm:$0xff] }
  0x1b   : > { %v321_v49 = vld [vmem:[%s13194_s5 + $0x88] sm:$0xff]  ;;  %v7261_v51 = vld [vmem:[%s13190_s1 + $0x30] sm:$0xff]   ;;  %v351_v52 = vld [vmem:[%s13194_s5 + $0x178] sm:$0xff] }
  0x1c   : > { %6900 = vmatmul.mubr.msk.bf16.vlgmr.msra.gmra.mxu0 %vm1650_vm0, %v7255_v21  ;;  %v350_v53 = vld [vmem:[%s13194_s5 + $0x170] sm:$0xff]  ;;  %v349_v54 = vld [vmem:[%s13194_s5 + $0x168] sm:$0xff]  ;;  %v348_v55 = vld [vmem:[%s13194_s5 + $0x160] sm:$0xff] }
  0x1d   : > { %1885 = vmatprep.mubr.bf16.mxu0 %v13196_v2  ;;  %v7262_v56 = vld [vmem:[%s13190_s1 + $0x38] sm:$0xff]   ;;  %v346_v58 = vld [vmem:[%s13194_s5 + $0x150] sm:$0xff]  ;;  %v345_v59 = vld [vmem:[%s13194_s5 + $0x148] sm:$0xff] }
  0x1e   : > { %727 = vperm.xlu1 %7254, %v311_v22   ;;  %722 = vperm.xlu0 %7253, %v310_v23   ;;  %v347_v57 = vld [vmem:[%s13194_s5 + $0x158] sm:$0xff]  ;;  %v344_v60 = vld [vmem:[%s13194_s5 + $0x140] sm:$0xff]  ;;  %v342_v63 = vld [vmem:[%s13194_s5 + $0x130] sm:$0xff] }
  0x1f   : > { %v7263_v61 = vld [vmem:[%s13190_s1 + $0x40] sm:$0xff]   ;;  %v343_v62 = vld [vmem:[%s13194_s5 + $0x138] sm:$0xff]  ;;  %v341_v0 = vld [vmem:[%s13194_s5 + $0x128] sm:$0xff] }
  0x20   : > { %v340_v1 = vld [vmem:[%s13194_s5 + $0x120] sm:$0xff]  ;;  %v7264_v3 = vld [vmem:[%s13190_s1 + $0x48] sm:$0xff]   ;;  %v339_v4 = vld [vmem:[%s13194_s5 + $0x118] sm:$0xff] }
  0x21   : > { %v338_v5 = vld [vmem:[%s13194_s5 + $0x110] sm:$0xff]  ;;  %v337_v6 = vld [vmem:[%s13194_s5 + $0x108] sm:$0xff]  ;;  %v336_v7 = vld [vmem:[%s13194_s5 + $0x100] sm:$0xff] }
  0x22   : > { %717 = vperm.xlu1 %7254, %v309_v24   ;;  %712 = vperm.xlu0 %7253, %v308_v25   ;;  %v7265_v8 = vld [vmem:[%s13190_s1 + $0x50] sm:$0xff]   ;;  %v367_v9 = vld [vmem:[%s13194_s5 + $0x1f8] sm:$0xff]  ;;  %v365_v11 = vld [vmem:[%s13194_s5 + $0x1e8] sm:$0xff] }
  0x23   : > { %v366_v10 = vld [vmem:[%s13194_s5 + $0x1f0] sm:$0xff]  ;;  %v364_v12 = vld [vmem:[%s13194_s5 + $0x1e0] sm:$0xff]  ;;  %v7266_v13 = vld [vmem:[%s13190_s1 + $0x58] sm:$0xff]  }
  0x24   : > { %6901 = vmatmul.mubr.msk.bf16.gmra.mxu0 %vm1650_vm0, %v7256_v26  ;;  %v363_v14 = vld [vmem:[%s13194_s5 + $0x1d8] sm:$0xff]  ;;  %v362_v15 = vld [vmem:[%s13194_s5 + $0x1d0] sm:$0xff]  ;;  %v361_v16 = vld [vmem:[%s13194_s5 + $0x1c8] sm:$0xff] }
  0x25   : > { %1895 = vmatprep.mubr.bf16.mxu0 %v13196_v2  ;;  %v360_v17 = vld [vmem:[%s13194_s5 + $0x1c0] sm:$0xff]  ;;  %v359_v19 = vld [vmem:[%s13194_s5 + $0x1b8] sm:$0xff]  ;;  %v358_v20 = vld [vmem:[%s13194_s5 + $0x1b0] sm:$0xff] }
  0x26   : > { %707 = vperm.xlu1 %7254, %v307_v27   ;;  %702 = vperm.xlu0 %7253, %v306_v28   ;;  %v7267_v18 = vld [vmem:[%s13190_s1 + $0x60] sm:$0xff]   ;;  %v357_v21 = vld [vmem:[%s13194_s5 + $0x1a8] sm:$0xff]  ;;  %v355_v24 = vld [vmem:[%s13194_s5 + $0x198] sm:$0xff] }
  0x27   : > { %v356_v22 = vld [vmem:[%s13194_s5 + $0x1a0] sm:$0xff]  ;;  %v7268_v23 = vld [vmem:[%s13190_s1 + $0x68] sm:$0xff]   ;;  %v354_v25 = vld [vmem:[%s13194_s5 + $0x190] sm:$0xff] }
  0x28   : > { %v353_v26 = vld [vmem:[%s13194_s5 + $0x188] sm:$0xff]  ;;  %v352_v27 = vld [vmem:[%s13194_s5 + $0x180] sm:$0xff] }
  0x2a   : > { %697 = vperm.xlu1 %7254, %v305_v29   ;;  %692 = vperm.xlu0 %7253, %v304_v30   ;;  %v7269_v30 = vld [vmem:[%s13190_s1 + $0x70] sm:$0xff]  }
  0x2c   : > { %6902 = vmatmul.mubr.msk.bf16.gmra.mxu0 %vm1650_vm0, %v7257_v31  ;;  %v447_v31 = vld [vmem:[%s13194_s5 + $0x478] sm:$0xff] }
  0x2d   : > { %1905 = vmatprep.mubr.bf16.mxu0 %v13196_v2 }
  0x2e   : > { %847 = vperm.xlu1 %7254, %v335_v32   ;;  %842 = vperm.xlu0 %7253, %v334_v33   ;;  %v446_v32 = vld [vmem:[%s13194_s5 + $0x470] sm:$0xff] }
  0x32   : > { %837 = vperm.xlu1 %7254, %v333_v34   ;;  %832 = vperm.xlu0 %7253, %v332_v35   ;;  %v479_v35 = vld [vmem:[%s13194_s5 + $0x578] sm:$0xff] }
  0x34   : > { %6903 = vmatmul.mubr.msk.bf16.gmra.mxu0 %vm1650_vm0, %v7258_v36  ;;  %v478_v36 = vld [vmem:[%s13194_s5 + $0x570] sm:$0xff] }
  0x35   : > { %1915 = vmatprep.mubr.bf16.mxu0 %v13196_v2 }
  0x36   : > { %827 = vperm.xlu1 %7254, %v331_v37   ;;  %822 = vperm.xlu0 %7253, %v330_v38  }
  0x3a   : > { %817 = vperm.xlu1 %7254, %v329_v39   ;;  %812 = vperm.xlu0 %7253, %v328_v40   ;;  %v7270_v39 = vld [vmem:[%s13190_s1 + $0x78] sm:$0xff]   ;;  %v445_v40 = vld [vmem:[%s13194_s5 + $0x468] sm:$0xff] }
  0x3c   : > { %6904 = vmatmul.mubr.msk.bf16.gmra.mxu0 %vm1650_vm0, %v7259_v41  ;;  %v444_v41 = vld [vmem:[%s13194_s5 + $0x460] sm:$0xff] }
  0x3d   : > { %1925 = vmatprep.mubr.bf16.mxu0 %v13196_v2 }
  0x3e   : > { %807 = vperm.xlu1 %7254, %v327_v42   ;;  %802 = vperm.xlu0 %7253, %v326_v43  }
  0x42   : > { %797 = vperm.xlu1 %7254, %v325_v44   ;;  %792 = vperm.xlu0 %7253, %v324_v45   ;;  %v477_v44 = vld [vmem:[%s13194_s5 + $0x568] sm:$0xff]  ;;  %v476_v45 = vld [vmem:[%s13194_s5 + $0x560] sm:$0xff] }
  0x44   : > { %6905 = vmatmul.mubr.msk.bf16.gmra.mxu0 %vm1650_vm0, %v7260_v46 }
  0x45   : > { %1935 = vmatprep.mubr.bf16.mxu0 %v13196_v2 }
  0x46   : > { %787 = vperm.xlu1 %7254, %v323_v47   ;;  %782 = vperm.xlu0 %7253, %v322_v48   ;;  %v7271_v48 = vld [vmem:[%s13190_s1 + $0x80] sm:$0xff]  }
  0x4a   : > { %777 = vperm.xlu1 %7254, %v321_v49   ;;  %772 = vperm.xlu0 %7253, %v320_v50   ;;  %v443_v49 = vld [vmem:[%s13194_s5 + $0x458] sm:$0xff]  ;;  %v442_v50 = vld [vmem:[%s13194_s5 + $0x450] sm:$0xff] }
  0x4c   : > { %6906 = vmatmul.mubr.msk.bf16.gmra.mxu0 %vm1650_vm0, %v7261_v51 }
  0x4d   : > { %1945 = vmatprep.mubr.bf16.mxu0 %v13196_v2 }
  0x4e   : > { %927 = vperm.xlu1 %7254, %v351_v52   ;;  %922 = vperm.xlu0 %7253, %v350_v53   ;;  %v475_v53 = vld [vmem:[%s13194_s5 + $0x558] sm:$0xff] }
  0x52   : > { %917 = vperm.xlu1 %7254, %v349_v54   ;;  %912 = vperm.xlu0 %7253, %v348_v55   ;;  %v474_v54 = vld [vmem:[%s13194_s5 + $0x550] sm:$0xff] }
  0x54   : > { %6907 = vmatmul.mubr.msk.bf16.gmra.mxu0 %vm1650_vm0, %v7262_v56 }
  0x55   : > { %1955 = vmatprep.mubr.bf16.mxu0 %v13196_v2 }
  0x56   : > { %907 = vperm.xlu1 %7254, %v347_v57   ;;  %902 = vperm.xlu0 %7253, %v346_v58   ;;  %v7272_v57 = vld [vmem:[%s13190_s1 + $0x88] sm:$0xff]  }
  0x57   : > { %v441_v58 = vld [vmem:[%s13194_s5 + $0x448] sm:$0xff] }
  0x5a   : > { %897 = vperm.xlu1 %7254, %v345_v59   ;;  %892 = vperm.xlu0 %7253, %v344_v60   ;;  %v440_v59 = vld [vmem:[%s13194_s5 + $0x440] sm:$0xff] }
  0x5c   : > { %6908 = vmatmul.mubr.msk.bf16.gmra.mxu0 %vm1650_vm0, %v7263_v61 }
  0x5d   : > { %1965 = vmatprep.mubr.bf16.mxu0 %v13196_v2 }
  0x5e   : > { %887 = vperm.xlu1 %7254, %v343_v62   ;;  %882 = vperm.xlu0 %7253, %v342_v63   ;;  %v473_v62 = vld [vmem:[%s13194_s5 + $0x548] sm:$0xff]  ;;  %v472_v63 = vld [vmem:[%s13194_s5 + $0x540] sm:$0xff] }
  0x62   : > { %877 = vperm.xlu1 %7254, %v341_v0   ;;  %872 = vperm.xlu0 %7253, %v340_v1  }
  0x64   : > { %6909 = vmatmul.mubr.msk.bf16.gmra.mxu0 %vm1650_vm0, %v7264_v3  ;;  %v7273_v3 = vld [vmem:[%s13190_s1 + $0x90] sm:$0xff]  }
  0x65   : > { %1975 = vmatprep.mubr.bf16.mxu0 %v13196_v2 }
  0x66   : > { %867 = vperm.xlu1 %7254, %v339_v4   ;;  %862 = vperm.xlu0 %7253, %v338_v5   ;;  %v439_v4 = vld [vmem:[%s13194_s5 + $0x438] sm:$0xff]  ;;  %v438_v5 = vld [vmem:[%s13194_s5 + $0x430] sm:$0xff] }
  0x6a   : > { %857 = vperm.xlu1 %7254, %v337_v6   ;;  %852 = vperm.xlu0 %7253, %v336_v7  }
  0x6c   : > { %6910 = vmatmul.mubr.msk.bf16.gmra.mxu0 %vm1650_vm0, %v7265_v8  ;;  %v471_v8 = vld [vmem:[%s13194_s5 + $0x538] sm:$0xff] }
  0x6d   : > { %1985 = vmatprep.mubr.bf16.mxu0 %v13196_v2 }
  0x6e   : > { %1007 = vperm.xlu1 %7254, %v367_v9   ;;  %1002 = vperm.xlu0 %7253, %v366_v10   ;;  %v470_v9 = vld [vmem:[%s13194_s5 + $0x530] sm:$0xff] }
  0x72   : > { %997 = vperm.xlu1 %7254, %v365_v11   ;;  %992 = vperm.xlu0 %7253, %v364_v12   ;;  %v7274_v12 = vld [vmem:[%s13190_s1 + $0x98] sm:$0xff]  }
  0x74   : > { %6911 = vmatmul.mubr.msk.bf16.gmra.mxu0 %vm1650_vm0, %v7266_v13  ;;  %v437_v13 = vld [vmem:[%s13194_s5 + $0x428] sm:$0xff] }
  0x75   : > { %1995 = vmatprep.mubr.bf16.mxu0 %v13196_v2 }
  0x76   : > { %987 = vperm.xlu1 %7254, %v363_v14   ;;  %982 = vperm.xlu0 %7253, %v362_v15   ;;  %v436_v14 = vld [vmem:[%s13194_s5 + $0x420] sm:$0xff] }
  0x7a   : > { %977 = vperm.xlu1 %7254, %v361_v16   ;;  %972 = vperm.xlu0 %7253, %v360_v17   ;;  %v469_v17 = vld [vmem:[%s13194_s5 + $0x528] sm:$0xff] }
  0x7c   : > { %6912 = vmatmul.mubr.msk.bf16.gmra.mxu0 %vm1650_vm0, %v7267_v18  ;;  %v468_v18 = vld [vmem:[%s13194_s5 + $0x520] sm:$0xff] }
  0x7d   : > { %2005 = vmatprep.mubr.bf16.mxu0 %v13196_v2 }
  0x7e   : > { %967 = vperm.xlu1 %7254, %v359_v19   ;;  %962 = vperm.xlu0 %7253, %v358_v20  }
  0x82   : > { %957 = vperm.xlu1 %7254, %v357_v21   ;;  %952 = vperm.xlu0 %7253, %v356_v22   ;;  %v7275_v21 = vld [vmem:[%s13190_s1 + $0xa0] sm:$0xff]   ;;  %v435_v22 = vld [vmem:[%s13194_s5 + $0x418] sm:$0xff] }
  0x84   : > { %6913 = vmatmul.mubr.msk.bf16.gmra.mxu0 %vm1650_vm0, %v7268_v23  ;;  %v434_v23 = vld [vmem:[%s13194_s5 + $0x410] sm:$0xff] }
  0x85   : > { %2015 = vmatprep.mubr.bf16.mxu0 %v13196_v2 }
  0x86   : > { %947 = vperm.xlu1 %7254, %v355_v24   ;;  %942 = vperm.xlu0 %7253, %v354_v25  }
  0x89   : > { %v8058_v28 = vpop.permute.xlu0 %762  ;;  %v8060_v29 = vpop.permute.xlu1 %752 }
  0x8a   : > { %937 = vperm.xlu1 %7254, %v353_v26   ;;  %932 = vperm.xlu0 %7253, %v352_v27   ;;  %v467_v26 = vld [vmem:[%s13194_s5 + $0x518] sm:$0xff]  ;;  %v466_v27 = vld [vmem:[%s13194_s5 + $0x510] sm:$0xff] }
  0x8c   : > { %6914 = vmatmul.mubr.msk.bf16.gmra.mxu0 %vm1650_vm0, %v7269_v30 }
  0x8d   : > { %v8071_v33 = vpop.permute.xlu0 %767  ;;  %v8073_v34 = vpop.permute.xlu1 %757  ;;  %2025 = vmatprep.mubr.bf16.mxu0 %v13196_v2 }
  0x8e   : > { %2849 = vperm.xlu1 %7254, %v447_v31   ;;  %2844 = vperm.xlu0 %7253, %v446_v32   ;;  %v7276_v32 = vld [vmem:[%s13190_s1 + $0xa8] sm:$0xff]  }
  0x91   : > { %v8083_v37 = vpop.permute.xlu1 %747  ;;  %v8085_v38 = vpop.permute.xlu0 %742 }
  0x92   : > { %3009 = vperm.xlu1 %7254, %v479_v35   ;;  %3004 = vperm.xlu0 %7253, %v478_v36   ;;  %v433_v35 = vld [vmem:[%s13194_s5 + $0x408] sm:$0xff]  ;;  %v432_v36 = vld [vmem:[%s13194_s5 + $0x400] sm:$0xff] }
  0x94   : > { %6915 = vmatmul.mubr.msk.bf16.gmra.mxu0 %vm1650_vm0, %v7270_v39 }
  0x95   : > { %v8096_v42 = vpop.permute.xlu1 %737  ;;  %v8098_v43 = vpop.permute.xlu0 %732  ;;  %2035 = vmatprep.mubr.bf16.mxu0 %v13196_v2 }
  0x96   : > { %2839 = vperm.xlu1 %7254, %v445_v40   ;;  %2834 = vperm.xlu0 %7253, %v444_v41   ;;  %v465_v41 = vld [vmem:[%s13194_s5 + $0x508] sm:$0xff] }
  0x99   : > { %v8108_v46 = vpop.permute.xlu1 %727  ;;  %v8110_v47 = vpop.permute.xlu0 %722 }
  0x9a   : > { %2999 = vperm.xlu1 %7254, %v477_v44   ;;  %2994 = vperm.xlu0 %7253, %v476_v45   ;;  %v464_v44 = vld [vmem:[%s13194_s5 + $0x500] sm:$0xff] }
  0x9c   : > { %6916 = vmatmul.mubr.msk.bf16.gmra.mxu0 %vm1650_vm0, %v7271_v48 }
  0x9d   : > { %v8121_v51 = vpop.permute.xlu1 %717  ;;  %v8123_v52 = vpop.permute.xlu0 %712  ;;  %2045 = vmatprep.mubr.bf16.mxu0 %v13196_v2 }
  0x9e   : > { %2829 = vperm.xlu1 %7254, %v443_v49   ;;  %2824 = vperm.xlu0 %7253, %v442_v50   ;;  %v7277_v49 = vld [vmem:[%s13190_s1 + $0xb0] sm:$0xff]   ;;  %v463_v50 = vld [vmem:[%s13194_s5 + $0x4f8] sm:$0xff] }
  0xa1   : > { %v8133_v55 = vpop.permute.xlu1 %707  ;;  %v8135_v56 = vpop.permute.xlu0 %702 }
  0xa2   : > { %2989 = vperm.xlu1 %7254, %v475_v53   ;;  %2984 = vperm.xlu0 %7253, %v474_v54   ;;  %v462_v53 = vld [vmem:[%s13194_s5 + $0x4f0] sm:$0xff] }
  0xa4   : > { %6917 = vmatmul.mubr.msk.bf16.gmra.mxu0 %vm1650_vm0, %v7272_v57 }
  0xa5   : > { %v8146_v60 = vpop.permute.xlu1 %697  ;;  %v8148_v61 = vpop.permute.xlu0 %692  ;;  %2055 = vmatprep.mubr.bf16.mxu0 %v13196_v2 }
  0xa6   : > { %2819 = vperm.xlu1 %7254, %v441_v58   ;;  %2814 = vperm.xlu0 %7253, %v440_v59   ;;  %v495_v58 = vld [vmem:[%s13194_s5 + $0x5f8] sm:$0xff]  ;;  %v494_v59 = vld [vmem:[%s13194_s5 + $0x5f0] sm:$0xff] }
  0xa9   : > { %v8158_v0 = vpop.permute.xlu1 %847  ;;  %v8160_v1 = vpop.permute.xlu0 %842 }
  0xaa   : > { %13471 = vst [vmem:[#allocation2_spill] sm:$0xff] %v8160_v1  ;;  %2979 = vperm.xlu1 %7254, %v473_v62   ;;  %2974 = vperm.xlu0 %7253, %v472_v63  }
  0xac   : > { %6918 = vmatmul.mubr.msk.bf16.gmra.mxu0 %vm1650_vm0, %v7273_v3  ;;  %v7278_v3 = vld [vmem:[%s13190_s1 + $0xb8] sm:$0xff]  }
  0xad   : > { %v8171_v6 = vpop.permute.xlu1 %837  ;;  %v8173_v7 = vpop.permute.xlu0 %832  ;;  %2065 = vmatprep.mubr.bf16.mxu0 %v13196_v2 }
  0xae   : > { %13472 = vst [vmem:[#allocation3_spill] sm:$0xff] %v8173_v7  ;;  %2809 = vperm.xlu1 %7254, %v439_v4   ;;  %2804 = vperm.xlu0 %7253, %v438_v5   ;;  %v461_v4 = vld [vmem:[%s13194_s5 + $0x4e8] sm:$0xff]  ;;  %v460_v5 = vld [vmem:[%s13194_s5 + $0x4e0] sm:$0xff] }
  0xb1   : > { %v8183_v10 = vpop.permute.xlu1 %827  ;;  %v8185_v11 = vpop.permute.xlu0 %822 }
  0xb2   : > { %13473 = vst [vmem:[#allocation4_spill] sm:$0xff] %v8183_v10  ;;  %13474 = vst [vmem:[#allocation5_spill] sm:$0xff] %v8185_v11  ;;  %2969 = vperm.xlu1 %7254, %v471_v8   ;;  %2964 = vperm.xlu0 %7253, %v470_v9  }
  0xb4   : > { %6919 = vmatmul.mubr.msk.bf16.gmra.mxu0 %vm1650_vm0, %v7274_v12  ;;  %v493_v12 = vld [vmem:[%s13194_s5 + $0x5e8] sm:$0xff] }
  0xb5   : > { %v8196_v15 = vpop.permute.xlu1 %817  ;;  %v8198_v16 = vpop.permute.xlu0 %812  ;;  %2075 = vmatprep.mubr.bf16.mxu0 %v13196_v2 }
  0xb6   : > { %13475 = vst [vmem:[#allocation6_spill] sm:$0xff] %v8196_v15  ;;  %13476 = vst [vmem:[#allocation7_spill] sm:$0xff] %v8198_v16  ;;  %2799 = vperm.xlu1 %7254, %v437_v13   ;;  %2794 = vperm.xlu0 %7253, %v436_v14   ;;  %v492_v13 = vld [vmem:[%s13194_s5 + $0x5e0] sm:$0xff]  ;;  %v374_v16 = vld [vmem:[%s13194_s5 + $0x230] sm:$0xff] }
  0xb9   : > { %v8208_v19 = vpop.permute.xlu1 %807  ;;  %v8210_v20 = vpop.permute.xlu0 %802 }
  0xba   : > { %13477 = vst [vmem:[#allocation8_spill] sm:$0xff] %v8208_v19  ;;  %13478 = vst [vmem:[#allocation9_spill] sm:$0xff] %v8210_v20  ;;  %2959 = vperm.xlu1 %7254, %v469_v17   ;;  %2954 = vperm.xlu0 %7253, %v468_v18   ;;  %v7279_v18 = vld [vmem:[%s13190_s1 + $0xc0] sm:$0xff]  }
  0xbc   : > { %6920 = vmatmul.mubr.msk.bf16.gmra.mxu0 %vm1650_vm0, %v7275_v21  ;;  %v459_v21 = vld [vmem:[%s13194_s5 + $0x4d8] sm:$0xff] }
  0xbd   : > { %v8221_v24 = vpop.permute.xlu1 %797  ;;  %v8223_v25 = vpop.permute.xlu0 %792  ;;  %2085 = vmatprep.mubr.bf16.mxu0 %v13196_v2 }
  0xbe   : > { %13479 = vst [vmem:[#allocation10_spill] sm:$0xff] %v8221_v24  ;;  %13480 = vst [vmem:[#allocation11_spill] sm:$0xff] %v8223_v25  ;;  %2789 = vperm.xlu1 %7254, %v435_v22   ;;  %2784 = vperm.xlu0 %7253, %v434_v23   ;;  %v458_v22 = vld [vmem:[%s13194_s5 + $0x4d0] sm:$0xff]  ;;  %v372_v24 = vld [vmem:[%s13194_s5 + $0x220] sm:$0xff] }
  0xc1   : > { %v8233_v30 = vpop.permute.xlu1 %787  ;;  %v8235_v31 = vpop.permute.xlu0 %782 }
  0xc2   : > { %2949 = vperm.xlu1 %7254, %v467_v26   ;;  %2944 = vperm.xlu0 %7253, %v466_v27  }
  0xc4   : > { %6921 = vmatmul.mubr.msk.bf16.gmra.mxu0 %vm1650_vm0, %v7276_v32  ;;  %v491_v32 = vld [vmem:[%s13194_s5 + $0x5d8] sm:$0xff] }
  0xc5   : > { %v8246_v39 = vpop.permute.xlu1 %777  ;;  %v8248_v40 = vpop.permute.xlu0 %772  ;;  %2095 = vmatprep.mubr.bf16.mxu0 %v13196_v2 }
  0xc6   : > { %2779 = vperm.xlu1 %7254, %v433_v35   ;;  %2774 = vperm.xlu0 %7253, %v432_v36   ;;  %v490_v36 = vld [vmem:[%s13194_s5 + $0x5d0] sm:$0xff] }
  0xc9   : > { %v8258_v45 = vpop.permute.xlu1 %927  ;;  %v8260_v48 = vpop.permute.xlu0 %922 }
  0xca   : > { %13481 = vst [vmem:[#allocation12_spill] sm:$0xff] %v8258_v45  ;;  %13482 = vst [vmem:[#allocation13_spill] sm:$0xff] %v8260_v48  ;;  %2939 = vperm.xlu1 %7254, %v465_v41   ;;  %2934 = vperm.xlu0 %7253, %v464_v44   ;;  %v368_v45 = vld [vmem:[%s13194_s5 + $0x200] sm:$0xff] }
  0xcc   : > { %6922 = vmatmul.mubr.msk.bf16.gmra.mxu0 %vm1650_vm0, %v7277_v49 }
  0xcd   : > { %v8271_v54 = vpop.permute.xlu1 %917  ;;  %v8273_v57 = vpop.permute.xlu0 %912  ;;  %2105 = vmatprep.mubr.bf16.mxu0 %v13196_v2 }
  0xce   : > { %13483 = vst [vmem:[#allocation14_spill] sm:$0xff] %v8271_v54  ;;  %13484 = vst [vmem:[#allocation15_spill] sm:$0xff] %v8273_v57  ;;  %2929 = vperm.xlu1 %7254, %v463_v50   ;;  %2924 = vperm.xlu0 %7253, %v462_v53   ;;  %v7280_v50 = vld [vmem:[%s13190_s1 + $0xc8] sm:$0xff]  }
  0xd1   : > { %v8283_v62 = vpop.permute.xlu1 %907  ;;  %v8285_v63 = vpop.permute.xlu0 %902 }
  0xd2   : > { %13485 = vst [vmem:[#allocation16_spill] sm:$0xff] %v8283_v62  ;;  %13486 = vst [vmem:[#allocation17_spill] sm:$0xff] %v8285_v63  ;;  %3089 = vperm.xlu1 %7254, %v495_v58   ;;  %3084 = vperm.xlu0 %7253, %v494_v59   ;;  %v457_v59 = vld [vmem:[%s13194_s5 + $0x4c8] sm:$0xff] }
  0xd3   : > { %v449_v63 = vld [vmem:[%s13194_s5 + $0x488] sm:$0xff] }
  0xd4   : > { %6923 = vmatmul.mubr.msk.bf16.gmra.mxu0 %vm1650_vm0, %v7278_v3 }
  0xd5   : > { %v8296_v8 = vpop.permute.xlu1 %897  ;;  %v8298_v9 = vpop.permute.xlu0 %892  ;;  %2115 = vmatprep.mubr.bf16.mxu0 %v13196_v2 }
  0xd6   : > { %13487 = vst [vmem:[#allocation18_spill] sm:$0xff] %v8296_v8  ;;  %13488 = vst [vmem:[#allocation19_spill] sm:$0xff] %v8298_v9  ;;  %2919 = vperm.xlu1 %7254, %v461_v4   ;;  %2914 = vperm.xlu0 %7253, %v460_v5   ;;  %v456_v4 = vld [vmem:[%s13194_s5 + $0x4c0] sm:$0xff] }
  0xd9   : > { %v8308_v14 = vpop.permute.xlu1 %887  ;;  %v8310_v17 = vpop.permute.xlu0 %882 }
  0xda   : > { %13489 = vst [vmem:[#allocation20_spill] sm:$0xff] %v8308_v14  ;;  %13490 = vst [vmem:[#allocation21_spill] sm:$0xff] %v8310_v17  ;;  %3079 = vperm.xlu1 %7254, %v493_v12   ;;  %3074 = vperm.xlu0 %7253, %v492_v13  }
  0xdc   : > { %v1877_v27 = vpop.f32.mrf.mxu0  ;;  %6924 = vmatmul.mubr.msk.bf16.gmra.mxu0 %vm1650_vm0, %v7279_v18 }
  0xdd   : > { %v8321_v23 = vpop.permute.xlu1 %877  ;;  %v8323_v26 = vpop.permute.xlu0 %872  ;;  %2125 = vmatprep.mubr.bf16.mxu0 %v13196_v2  ;;  %v8341_v53 = vadd.f32 %v1877_v27, %v8148_v61 }
  0xde   : > { %13491 = vst [vmem:[#allocation22_spill] sm:$0xff] %v8321_v23  ;;  %13492 = vst [vmem:[#allocation23_spill] sm:$0xff] %v8323_v26  ;;  %2909 = vperm.xlu1 %7254, %v459_v21   ;;  %2904 = vperm.xlu0 %7253, %v458_v22   ;;  %v1879_v35 = vpop.f32.mrf.mxu0 }
  0xdf   : > { %v8353_v5 = vadd.f32 %v1879_v35, %v8148_v61  ;;  %v489_v61 = vld [vmem:[%s13194_s5 + $0x5c8] sm:$0xff] }
  0xe0   : > { %v1881_v49 = vpop.f32.mrf.mxu0 }
  0xe1   : > { %v8333_v41 = vpop.permute.xlu1 %867  ;;  %v8335_v44 = vpop.permute.xlu0 %862  ;;  %v8344_v58 = vadd.f32 %v1881_v49, %v8146_v60 }
  0xe2   : > { %13493 = vst [vmem:[#allocation24_spill] sm:$0xff] %v8333_v41  ;;  %13494 = vst [vmem:[#allocation25_spill] sm:$0xff] %v8335_v44  ;;  %3069 = vperm.xlu1 %7254, %v491_v32   ;;  %3064 = vperm.xlu0 %7253, %v490_v36   ;;  %v1883_v3 = vpop.f32.mrf.mxu0  ;;  %v488_v32 = vld [vmem:[%s13194_s5 + $0x5c0] sm:$0xff]  ;;  %v370_v41 = vld [vmem:[%s13194_s5 + $0x210] sm:$0xff] }
  0xe3   : > { %v8358_v13 = vadd.f32 %v1883_v3, %v8146_v60 }
  0xe4   : > { %v1887_v22 = vpop.f32.mrf.mxu0  ;;  %6925 = vmatmul.mubr.msk.bf16.gmra.mxu0 %vm1650_vm0, %v7280_v50  ;;  %v7281_v50 = vld [vmem:[%s13190_s1 + $0xd0] sm:$0xff]  }
  0xe5   : > { %v8360_v18 = vpop.permute.xlu1 %857  ;;  %v8362_v21 = vpop.permute.xlu0 %852  ;;  %2135 = vmatprep.mubr.bf16.mxu0 %v13196_v2 }
  0xe6   : > { %13495 = vst [vmem:[#allocation26_spill] sm:$0xff] %v8360_v18  ;;  %13496 = vst [vmem:[#allocation27_spill] sm:$0xff] %v8362_v21  ;;  %2899 = vperm.xlu1 %7254, %v457_v59   ;;  %2894 = vperm.xlu0 %7253, %v456_v4   ;;  %v1889_v60 = vpop.f32.mrf.mxu0  ;;  %v8382_v59 = vadd.f32 %v1887_v22, %v8135_v56  ;;  %v455_v4 = vld [vmem:[%s13194_s5 + $0x4b8] sm:$0xff]  ;;  %v377_v18 = vld [vmem:[%s13194_s5 + $0x248] sm:$0xff] }
  0xe7   : > { %v8394_v27 = vadd.f32 %v1889_v60, %v8135_v56  ;;  %v487_v56 = vld [vmem:[%s13194_s5 + $0x5b8] sm:$0xff]  ;;  %v13501_v60 = vmov 0  }
  0xe8   : > { %v1891_v49 = vpop.f32.mrf.mxu0 }
  0xe9   : > { %v8374_v35 = vpop.permute.xlu1 %1007  ;;  %v8376_v36 = vpop.permute.xlu0 %1002  ;;  %v8385_v3 = vadd.f32 %v1891_v49, %v8133_v55 }
  0xea   : > { %13497 = vst [vmem:[#allocation28_spill] sm:$0xff] %v8374_v35  ;;  %13498 = vst [vmem:[#allocation29_spill] sm:$0xff] %v8376_v36  ;;  %3059 = vperm.xlu1 %7254, %v489_v61   ;;  %3054 = vperm.xlu0 %7253, %v488_v32   ;;  %v1893_v12 = vpop.f32.mrf.mxu0  ;;  %v454_v61 = vld [vmem:[%s13194_s5 + $0x4b0] sm:$0xff]  ;;  %v453_v35 = vld [vmem:[%s13194_s5 + $0x4a8] sm:$0xff] }
  0xeb   : > { %v8399_v2 = vadd.f32 %v1893_v12, %v8133_v55  ;;  %v486_v12 = vld [vmem:[%s13194_s5 + $0x5b0] sm:$0xff] }
  0xec   : > { %v8405_v36 = vpop.f32.mrf.mxu0  ;;  %6926 = vmatmul.mubr.msk.bf16.gmra.mxu0 %vm1650_vm0, %v7281_v50 }
  0xed   : > { %v8401_v49 = vpop.permute.xlu1 %997  ;;  %v8403_v32 = vpop.permute.xlu0 %992  ;;  %2145 = vmatprep.mubr.bf16.mxu0 %v13501_v60 }
  0xee   : > { %13499 = vst [vmem:[#allocation30_spill] sm:$0xff] %v8401_v49  ;;  %13500 = vst [vmem:[#allocation31_spill] sm:$0xff] %v8403_v32  ;;  %2889 = vperm.xlu1 %7254, %v455_v4   ;;  %2884 = vperm.xlu0 %7253, %v454_v61   ;;  %v8414_v55 = vpop.f32.mrf.mxu0  ;;  %v7282_v61 = vld [vmem:[%s13190_s1 + $0xd8] sm:$0xff]  }
  0xf0   : > { %v8423_v4 = vpop.f32.mrf.mxu0 }
  0xf1   : > { %v8419_v22 = vpop.permute.xlu1 %987  ;;  %v8421_v50 = vpop.permute.xlu0 %982 }
  0xf2   : > { %13502 = vst [vmem:[#allocation32_spill] sm:$0xff] %v8419_v22  ;;  %13503 = vst [vmem:[#allocation33_spill] sm:$0xff] %v8421_v50  ;;  %3049 = vperm.xlu1 %7254, %v487_v56   ;;  %3044 = vperm.xlu0 %7253, %v486_v12   ;;  %v8431_v32 = vpop.f32.mrf.mxu0  ;;  %v452_v22 = vld [vmem:[%s13194_s5 + $0x4a0] sm:$0xff]  ;;  %v485_v12 = vld [vmem:[%s13194_s5 + $0x5a8] sm:$0xff] }
  0xf4   : > { %v8440_v56 = vpop.f32.mrf.mxu0  ;;  %6927 = vmatmul.mubr.msk.bf16.gmra.mxu0 %vm1650_vm0, %v7282_v61 }
  0xf5   : > { %v8436_v49 = vpop.permute.xlu1 %977  ;;  %v8438_v50 = vpop.permute.xlu0 %972  ;;  %2155 = vmatprep.mubr.bf16.mxu0 %v13501_v60 }
  0xf6   : > { %13504 = vst [vmem:[#allocation34_spill] sm:$0xff] %v8436_v49  ;;  %13505 = vst [vmem:[#allocation35_spill] sm:$0xff] %v8438_v50  ;;  %2879 = vperm.xlu1 %7254, %v453_v35   ;;  %2874 = vperm.xlu0 %7253, %v452_v22   ;;  %v8447_v26 = vpop.f32.mrf.mxu0  ;;  %v484_v49 = vld [vmem:[%s13194_s5 + $0x5a0] sm:$0xff]  ;;  %v451_v22 = vld [vmem:[%s13194_s5 + $0x498] sm:$0xff] }
  0xf7   : > { %v7283_v35 = vld [vmem:[%s13190_s1 + $0xe0] sm:$0xff]  }
  0xf8   : > { %v8456_v17 = vpop.f32.mrf.mxu0 }
  0xf9   : > { %v8452_v23 = vpop.permute.xlu1 %967  ;;  %v8454_v50 = vpop.permute.xlu0 %962 }
  0xfa   : > { %13506 = vst [vmem:[#allocation36_spill] sm:$0xff] %v8452_v23  ;;  %13507 = vst [vmem:[#allocation37_spill] sm:$0xff] %v8454_v50  ;;  %3039 = vperm.xlu1 %7254, %v485_v12   ;;  %3034 = vperm.xlu0 %7253, %v484_v49   ;;  %v8464_v61 = vpop.f32.mrf.mxu0  ;;  %v450_v23 = vld [vmem:[%s13194_s5 + $0x490] sm:$0xff]  ;;  %v483_v49 = vld [vmem:[%s13194_s5 + $0x598] sm:$0xff] }
  0xfc   : > { %v8473_v12 = vpop.f32.mrf.mxu0  ;;  %6928 = vmatmul.mubr.msk.bf16.gmra.mxu0 %vm1650_vm0, %v7283_v35 }
  0xfd   : > { %v8469_v14 = vpop.permute.xlu1 %957  ;;  %v8471_v50 = vpop.permute.xlu0 %952  ;;  %2165 = vmatprep.mubr.bf16.mxu0 %v13501_v60 }
  0xfe   : > { %13508 = vst [vmem:[#allocation38_spill] sm:$0xff] %v8469_v14  ;;  %13509 = vst [vmem:[#allocation39_spill] sm:$0xff] %v8471_v50  ;;  %2869 = vperm.xlu1 %7254, %v451_v22   ;;  %2864 = vperm.xlu0 %7253, %v450_v23   ;;  %v8480_v9 = vpop.f32.mrf.mxu0  ;;  %v482_v14 = vld [vmem:[%s13194_s5 + $0x590] sm:$0xff]  ;;  %v7284_v22 = vld [vmem:[%s13190_s1 + $0xe8] sm:$0xff]  }
  0xff   : > { %v7302_v50 = vld [vmem:[%s13191_s2 + $0x4] ss:$16 sps:$4 sm:$0xff]  }
 0x100   : > { %v8492_v23 = vpop.f32.mrf.mxu0  ;;  %3764 = vmatprep.mubr.bf16.mxu1 %v7302_v50 }
 0x101   : > { %v8488_v8 = vpop.permute.xlu1 %947  ;;  %v8490_v35 = vpop.permute.xlu0 %942 }
 0x102   : > { %13510 = vst [vmem:[#allocation40_spill] sm:$0xff] %v8488_v8  ;;  %13511 = vst [vmem:[#allocation41_spill] sm:$0xff] %v8490_v35  ;;  %3029 = vperm.xlu1 %7254, %v483_v49   ;;  %3024 = vperm.xlu0 %7253, %v482_v14   ;;  %v8500_v62 = vpop.f32.mrf.mxu0  ;;  %v448_v8 = vld [vmem:[%s13194_s5 + $0x480] sm:$0xff]  ;;  %v481_v14 = vld [vmem:[%s13194_s5 + $0x588] sm:$0xff] }
 0x104   : > { %v8509_v49 = vpop.f32.mrf.mxu0  ;;  %6929 = vmatmul.mubr.msk.bf16.gmra.mxu0 %vm1650_vm0, %v7284_v22 }
 0x105   : > { %v8505_v35 = vpop.permute.xlu1 %937  ;;  %v8507_v57 = vpop.permute.xlu0 %932  ;;  %2175 = vmatprep.mubr.bf16.mxu0 %v13501_v60 }
 0x106   : > { %13512 = vst [vmem:[#allocation42_spill] sm:$0xff] %v8505_v35  ;;  %13513 = vst [vmem:[#allocation43_spill] sm:$0xff] %v8507_v57  ;;  %2859 = vperm.xlu1 %7254, %v449_v63   ;;  %2854 = vperm.xlu0 %7253, %v448_v8   ;;  %v8516_v50 = vpop.f32.mrf.mxu0  ;;  %v480_v35 = vld [vmem:[%s13194_s5 + $0x580] sm:$0xff]  ;;  %v7285_v63 = vld [vmem:[%s13190_s1 + $0xf0] sm:$0xff]  }
 0x107   : > { %v369_v8 = vld [vmem:[%s13194_s5 + $0x208] sm:$0xff] }
 0x108   : > { %v8525_v54 = vpop.f32.mrf.mxu0 }
 0x109   : > { %v8521_v48 = vpop.permute.xlu1 %2849  ;;  %v8523_v57 = vpop.permute.xlu0 %2844 }
 0x10a   : > { %13514 = vst [vmem:[#allocation44_spill] sm:$0xff] %v8521_v48  ;;  %13515 = vst [vmem:[#allocation45_spill] sm:$0xff] %v8523_v57  ;;  %3019 = vperm.xlu1 %7254, %v481_v14   ;;  %3014 = vperm.xlu0 %7253, %v480_v35   ;;  %v1933_v22 = vpop.f32.mrf.mxu0  ;;  %v371_v35 = vld [vmem:[%s13194_s5 + $0x218] sm:$0xff] }
 0x10c   : > { %v1937_v25 = vpop.f32.mrf.mxu0  ;;  %6930 = vmatmul.mubr.msk.bf16.gmra.mxu0 %vm1650_vm0, %v7285_v63  ;;  %v373_v63 = vld [vmem:[%s13194_s5 + $0x228] sm:$0xff] }
 0x10d   : > { %v8536_v48 = vpop.permute.xlu1 %3009  ;;  %v8538_v57 = vpop.permute.xlu0 %3004  ;;  %2185 = vmatprep.mubr.bf16.mxu0 %v13501_v60 }
 0x10e   : > { %13516 = vst [vmem:[#allocation46_spill] sm:$0xff] %v8536_v48  ;;  %13517 = vst [vmem:[#allocation47_spill] sm:$0xff] %v8538_v57  ;;  %1017 = vperm.xlu1 %7254, %v369_v8   ;;  %1012 = vperm.xlu0 %7253, %v368_v45   ;;  %v1939_v14 = vpop.f32.mrf.mxu0  ;;  %v7286_v45 = vld [vmem:[%s13190_s1 + $0xf8] sm:$0xff]  }
 0x110   : > { %v1941_v57 = vpop.f32.mrf.mxu0 }
 0x111   : > { %v8548_v44 = vpop.permute.xlu1 %2839  ;;  %v8550_v48 = vpop.permute.xlu0 %2834 }
 0x112   : > { %13518 = vst [vmem:[#allocation48_spill] sm:$0xff] %v8548_v44  ;;  %13519 = vst [vmem:[#allocation49_spill] sm:$0xff] %v8550_v48  ;;  %1027 = vperm.xlu1 %7254, %v371_v35   ;;  %1022 = vperm.xlu0 %7253, %v370_v41   ;;  %v1943_v8 = vpop.f32.mrf.mxu0  ;;  %v375_v41 = vld [vmem:[%s13194_s5 + $0x238] sm:$0xff] }
 0x114   : > { %v1947_v48 = vpop.f32.mrf.mxu0  ;;  %6931 = vmatmul.mubr.msk.bf16.gmra.mxu0 %vm1650_vm0, %v7286_v45  ;;  %v1944_v45 = vadd.f32 %v1943_v8, %v8073_v34 }
 0x115   : > { %v8561_v20 = vpop.permute.xlu1 %2999  ;;  %v8563_v44 = vpop.permute.xlu0 %2994  ;;  %2195 = vmatprep.mubr.bf16.mxu0 %v13501_v60  ;;  %v1948_v21 = vadd.f32 %v1947_v48, %v8058_v28 }
 0x116   : > { %13520 = vst [vmem:[#allocation50_spill] sm:$0xff] %v8561_v20  ;;  %13521 = vst [vmem:[#allocation51_spill] sm:$0xff] %v8563_v44  ;;  %1037 = vperm.xlu1 %7254, %v373_v63   ;;  %1032 = vperm.xlu0 %7253, %v372_v24   ;;  %v1949_v35 = vpop.f32.mrf.mxu0  ;;  %v7287_v24 = vld [vmem:[%s13190_s1 + $0x100] sm:$0xff]  }
 0x117   : > { %v1950_v15 = vadd.f32 %v1949_v35, %v8058_v28  ;;  %v379_v28 = vld [vmem:[%s13194_s5 + $0x258] sm:$0xff] }
 0x118   : > { %v1951_v44 = vpop.f32.mrf.mxu0 }
 0x119   : > { %v8573_v19 = vpop.permute.xlu1 %2829  ;;  %v8575_v20 = vpop.permute.xlu0 %2824  ;;  %v1952_v63 = vadd.f32 %v1951_v44, %v8071_v33  ;;  %v1942_v44 = vadd.f32 %v1941_v57, %v8073_v34  ;;  %v1938_v34 = vadd.f32 %v1937_v25, %v8060_v29 }
 0x11a   : > { %13522 = vst [vmem:[#allocation52_spill] sm:$0xff] %v8573_v19  ;;  %13523 = vst [vmem:[#allocation53_spill] sm:$0xff] %v8575_v20  ;;  %1047 = vperm.xlu1 %7254, %v375_v41   ;;  %1042 = vperm.xlu0 %7253, %v374_v16   ;;  %v1953_v19 = vpop.f32.mrf.mxu0  ;;  %v376_v41 = vld [vmem:[%s13194_s5 + $0x240] sm:$0xff]  ;;  %v1940_v20 = vadd.f32 %v1939_v14, %v8060_v29  ;;  %v1934_v16 = vadd.f32 %v1933_v22, %v8083_v37 }
 0x11b   : > { %v1954_v8 = vadd.f32 %v1953_v19, %v8071_v33  ;;  %v2530_v10 = vpack.c.bf16 %v1952_v63, %v1948_v21  ;;  %v1930_v19 = vadd.f32 %v8516_v50, %v8085_v38  ;;  %v378_v21 = vld [vmem:[%s13194_s5 + $0x250] sm:$0xff]  ;;  %v2528_v35 = vpack.c.bf16 %v1942_v44, %v1938_v34 }
 0x11c   : > { %v1957_v48 = vpop.f32.mrf.mxu0  ;;  %6932 = vmatmul.mubr.msk.bf16.gmra.mxu0 %vm1650_vm0, %v7287_v24  ;;  %v2529_v1 = vpack.c.bf16 %v1944_v45, %v1940_v20  ;;  %v1924_v20 = vadd.f32 %v8500_v62, %v8096_v42  ;;  %v7288_v24 = vld [vmem:[%s13190_s1 + $0x108] sm:$0xff]   ;;  %v1928_v63 = vadd.f32 %v8509_v49, %v8085_v38  ;;  %v1922_v49 = vadd.f32 %v8492_v23, %v8096_v42  ;;  %v383_v42 = vld [vmem:[%s13194_s5 + $0x278] sm:$0xff] }
 0x11d   : > { %v8592_v11 = vpop.permute.xlu1 %2989  ;;  %v8596_v7 = vpop.permute.xlu0 %2984  ;;  %v2531_v33 = vpack.c.bf16 %v1954_v8, %v1950_v15  ;;  %2205 = vmatprep.mubr.bf16.mxu0 %v13501_v60  ;;  %v1932_v15 = vadd.f32 %v8525_v54, %v8083_v37  ;;  %v2527_v14 = vpack.c.bf16 %v1934_v16, %v1930_v19  ;;  %v2594_v25 = vmax.bf16 %v13501_v60, %v2530_v10  ;;  %v381_v54 = vld [vmem:[%s13194_s5 + $0x268] sm:$0xff]  ;;  %v380_v8 = vld [vmem:[%s13194_s5 + $0x260] sm:$0xff] }
 0x11e   : > { %13524 = vst [vmem:[#allocation54_spill] sm:$0xff] %v8592_v11  ;;  %13525 = vst [vmem:[#allocation55_spill] sm:$0xff] %v8596_v7  ;;  %1057 = vperm.xlu1 %7254, %v377_v18   ;;  %1052 = vperm.xlu0 %7253, %v376_v41   ;;  %v1959_v57 = vpop.f32.mrf.mxu0  ;;  %v8623_v62 = vadd.f32 %v1957_v48, %v8248_v40  ;;  %v2593_v37 = vmax.bf16 %v13501_v60, %v2529_v1  ;;  %v406_v7 = vld [vmem:[%s13194_s5 + $0x330] sm:$0xff] }
 0x11f   : > { %v2595_v22 = vmax.bf16 %v13501_v60, %v2531_v33  ;;  %v8634_v10 = vadd.f32 %v8464_v61, %v8108_v46  ;;  %v1920_v1 = vadd.f32 %v8480_v9, %v8098_v43  ;;  %v8644_v16 = vadd.f32 %v1959_v57, %v8248_v40  ;;  %v382_v57 = vld [vmem:[%s13194_s5 + $0x270] sm:$0xff] }
 0x120   : > { %v1961_v29 = vpop.f32.mrf.mxu0  ;;  %v2526_v48 = vpack.c.bf16 %v1932_v15, %v1928_v63  ;;  %v2592_v40 = vmax.bf16 %v13501_v60, %v2528_v35  ;;  %v2591_v19 = vmax.bf16 %v13501_v60, %v2527_v14  ;;  %v1918_v23 = vadd.f32 %v8473_v12, %v8098_v43 }
 0x121   : > { %v8611_v18 = vpop.permute.xlu1 %2819  ;;  %v8616_v50 = vpop.permute.xlu0 %2814  ;;  %v8626_v45 = vadd.f32 %v1961_v29, %v8246_v39  ;;  %3732 = vmatprep.subr.bf16.mxu1 %v2595_v22  ;;  %v2525_v9 = vpack.c.bf16 %v1924_v20, %v1920_v1  ;;  %v1904_v22 = vadd.f32 %v8431_v32, %v8121_v51  ;;  %v1912_v15 = vadd.f32 %v8456_v17, %v8108_v46  ;;  %v385_v17 = vld [vmem:[%s13194_s5 + $0x288] sm:$0xff] }
 0x122   : > { %1067 = vperm.xlu1 %7254, %v379_v28   ;;  %1062 = vperm.xlu0 %7253, %v378_v21   ;;  %v1963_v41 = vpop.f32.mrf.mxu0  ;;  %v1910_v21 = vadd.f32 %v8447_v26, %v8110_v47  ;;  %v2524_v14 = vpack.c.bf16 %v1922_v49, %v1918_v23  ;;  %v2590_v35 = vmax.bf16 %v13501_v60, %v2526_v48  ;;  %v7289_v26 = vld [vmem:[%s13190_s1 + $0x110] sm:$0xff]  }
 0x123   : > { %3733 = vmatpush1.bf16.msra.mxu1 %v2594_v25  ;;  %v8649_v61 = vadd.f32 %v1963_v41, %v8246_v39  ;;  %v2589_v46 = vmax.bf16 %v13501_v60, %v2525_v9  ;;  %v386_v9 = vld [vmem:[%s13194_s5 + $0x290] sm:$0xff] }
 0x124   : > { %3734 = vmatprep.subr.bf16.mxu1 %v2593_v37  ;;  %v1967_v33 = vpop.f32.mrf.mxu0  ;;  %6933 = vmatmul.mubr.msk.bf16.gmra.mxu0 %vm1650_vm0, %v7288_v24  ;;  %v2523_v29 = vpack.c.bf16 %v8634_v10, %v1910_v21  ;;  %v1908_v24 = vadd.f32 %v8440_v56, %v8110_v47  ;;  %v1900_v10 = vadd.f32 %v8414_v55, %v8123_v52  ;;  %v389_v21 = vld [vmem:[%s13194_s5 + $0x2a8] sm:$0xff] }
 0x125   : > { %v8651_v38 = vpop.permute.xlu1 %2979  ;;  %v8655_v28 = vpop.permute.xlu0 %2974  ;;  %2215 = vmatprep.mubr.bf16.mxu0 %v13501_v60  ;;  %v8687_v25 = vadd.f32 %v1967_v33, %v8235_v31  ;;  %v1902_v56 = vadd.f32 %v8423_v4, %v8121_v51  ;;  %v387_v51 = vld [vmem:[%s13194_s5 + $0x298] sm:$0xff]  ;;  %v1898_v4 = vadd.f32 %v8405_v36, %v8123_v52 }
 0x126   : > { %13526 = vst [vmem:[#allocation56_spill] sm:$0xff] %v8651_v38  ;;  %13527 = vst [vmem:[#allocation57_spill] sm:$0xff] %v8655_v28  ;;  %1077 = vperm.xlu1 %7254, %v381_v54   ;;  %1072 = vperm.xlu0 %7253, %v380_v8   ;;  %v1969_v34 = vpop.f32.mrf.mxu0  ;;  %v384_v54 = vld [vmem:[%s13194_s5 + $0x280] sm:$0xff]  ;;  %v2522_v1 = vpack.c.bf16 %v1912_v15, %v1908_v24  ;;  %v2521_v55 = vpack.c.bf16 %v1904_v22, %v1900_v10  ;;  %v7290_v52 = vld [vmem:[%s13190_s1 + $0x118] sm:$0xff]  }
 0x127   : > { %3735 = vmatpush1.bf16.msra.mxu1 %v2592_v40  ;;  %v8704_v63 = vadd.f32 %v1969_v34, %v8235_v31  ;;  %v2588_v31 = vmax.bf16 %v13501_v60, %v2524_v14  ;;  %v2587_v33 = vmax.bf16 %v13501_v60, %v2523_v29  ;;  %v388_v15 = vld [vmem:[%s13194_s5 + $0x2a0] sm:$0xff]  ;;  %v13532_v29 = vpack.c.bf16 %v8399_v2, %v8394_v27  ;;  %v409_v28 = vld [vmem:[%s13194_s5 + $0x348] sm:$0xff] }
 0x128   : > { %3736 = vmatprep.subr.bf16.mxu1 %v2591_v19  ;;  %v1971_v12 = vpop.f32.mrf.mxu0  ;;  %v2585_v36 = vmax.bf16 %v13501_v60, %v2521_v55  ;;  %v13533_v27 = vpack.c.bf16 %v8385_v3, %v8382_v59  ;;  %v392_v59 = vld [vmem:[%s13194_s5 + $0x2c0] sm:$0xff] }
 0x129   : > { %v8673_v20 = vpop.permute.xlu1 %2809  ;;  %v8679_v43 = vpop.permute.xlu0 %2804  ;;  %v8690_v32 = vadd.f32 %v1971_v12, %v8233_v30 }
 0x12a   : > { %1087 = vperm.xlu1 %7254, %v383_v42   ;;  %1082 = vperm.xlu0 %7253, %v382_v57   ;;  %v1973_v37 = vpop.f32.mrf.mxu0  ;;  %v2520_v42 = vpack.c.bf16 %v1902_v56, %v1898_v4  ;;  %v2586_v57 = vmax.bf16 %v13501_v60, %v2522_v1  ;;  %v2582_v56 = vmax.bf16 %v13501_v60, %v13533_v27  ;;  %v7291_v1 = vld [vmem:[%s13190_s1 + $0x120] sm:$0xff]   ;;  %v399_v27 = vld [vmem:[%s13194_s5 + $0x2f8] sm:$0xff] }
 0x12b   : > { %3737 = vmatpush1.bf16.msra.mxu1 %v2590_v35  ;;  %v8709_v8 = vadd.f32 %v1973_v37, %v8233_v30  ;;  %v390_v37 = vld [vmem:[%s13194_s5 + $0x2b0] sm:$0xff]  ;;  %v404_v30 = vld [vmem:[%s13194_s5 + $0x320] sm:$0xff] }
 0x12c   : > { %3738 = vmatprep.subr.bf16.mxu1 %v2589_v46  ;;  %v8717_v48 = vpop.f32.mrf.mxu0  ;;  %6934 = vmatmul.mubr.msk.bf16.gmra.mxu0 %vm1650_vm0, %v7289_v26  ;;  %v2584_v26 = vmax.bf16 %v13501_v60, %v2520_v42  ;;  %v2583_v46 = vmax.bf16 %v13501_v60, %v13532_v29  ;;  %v395_v42 = vld [vmem:[%s13194_s5 + $0x2d8] sm:$0xff]  ;;  %v396_v29 = vld [vmem:[%s13194_s5 + $0x2e0] sm:$0xff] }
 0x12d   : > { %v8711_v47 = vpop.permute.xlu1 %2969  ;;  %v8715_v49 = vpop.permute.xlu0 %2964  ;;  %2225 = vmatprep.mubr.bf16.mxu0 %v13501_v60 }
 0x12e   : > { %13528 = vst [vmem:[#allocation58_spill] sm:$0xff] %v8711_v47  ;;  %13529 = vst [vmem:[#allocation59_spill] sm:$0xff] %v8715_v49  ;;  %1097 = vperm.xlu1 %7254, %v385_v17   ;;  %1092 = vperm.xlu0 %7253, %v384_v54   ;;  %v8730_v40 = vpop.f32.mrf.mxu0  ;;  %v391_v17 = vld [vmem:[%s13194_s5 + $0x2b8] sm:$0xff]  ;;  %v13550_v47 = vld [vmem:[#allocation2_spill] sm:$0xff] }
 0x12f   : > { %3739 = vmatpush1.bf16.msra.mxu1 %v2588_v31  ;;  %v13534_v31 = vpack.c.bf16 %v8358_v13, %v8353_v5  ;;  %v13537_v5 = vpack.c.bf16 %v8344_v58, %v8341_v53  ;;  %v7292_v58 = vld [vmem:[%s13190_s1 + $0x128] sm:$0xff]  }
 0x130   : > { %3740 = vmatprep.subr.bf16.mxu1 %v2587_v33  ;;  %v8739_v34 = vpop.f32.mrf.mxu0  ;;  %v393_v33 = vld [vmem:[%s13194_s5 + $0x2c8] sm:$0xff] }
 0x131   : > { %v8735_v19 = vpop.permute.xlu1 %2799  ;;  %v8737_v23 = vpop.permute.xlu0 %2794  ;;  %v2581_v55 = vmax.bf16 %v13501_v60, %v13534_v31  ;;  %v2580_v13 = vmax.bf16 %v13501_v60, %v13537_v5  ;;  %v401_v5 = vld [vmem:[%s13194_s5 + $0x308] sm:$0xff] }
 0x132   : > { %1107 = vperm.xlu1 %7254, %v387_v51   ;;  %1102 = vperm.xlu0 %7253, %v386_v9   ;;  %v8749_v22 = vpop.f32.mrf.mxu0 }
 0x133   : > { %3741 = vmatpush1.bf16.msra.mxu1 %v2586_v57 }
 0x134   : > { %3742 = vmatprep.subr.bf16.mxu1 %v2585_v36  ;;  %v8758_v35 = vpop.f32.mrf.mxu0  ;;  %6935 = vmatmul.mubr.msk.bf16.gmra.mxu0 %vm1650_vm0, %v7290_v52  ;;  %v394_v52 = vld [vmem:[%s13194_s5 + $0x2d0] sm:$0xff] }
 0x135   : > { %v8754_v14 = vpop.permute.xlu1 %2959  ;;  %v8756_v12 = vpop.permute.xlu0 %2954  ;;  %2235 = vmatprep.mubr.bf16.mxu0 %v13501_v60 }
 0x136   : > { %13530 = vst [vmem:[#allocation60_spill] sm:$0xff] %v8754_v14  ;;  %13531 = vst [vmem:[#allocation61_spill] sm:$0xff] %v8756_v12  ;;  %1117 = vperm.xlu1 %7254, %v389_v21   ;;  %1112 = vperm.xlu0 %7253, %v388_v15   ;;  %v8770_v24 = vpop.f32.mrf.mxu0  ;;  %v397_v15 = vld [vmem:[%s13194_s5 + $0x2e8] sm:$0xff] }
 0x137   : > { %3743 = vmatpush1.bf16.msra.mxu1 %v2584_v26  ;;  %v13551_v12 = vld [vmem:[#allocation3_spill] sm:$0xff] }
 0x138   : > { %3744 = vmatprep.subr.bf16.mxu1 %v2583_v46  ;;  %v8779_v2 = vpop.f32.mrf.mxu0 }
 0x139   : > { %v8775_v54 = vpop.permute.xlu1 %2789  ;;  %v8777_v10 = vpop.permute.xlu0 %2784 }
 0x13a   : > { %1127 = vperm.xlu1 %7254, %v391_v17   ;;  %1122 = vperm.xlu0 %7253, %v390_v37   ;;  %v8795_v51 = vpop.f32.mrf.mxu0 }
 0x13b   : > { %3745 = vmatpush1.bf16.msra.mxu1 %v2582_v56 }
 0x13c   : > { %3746 = vmatprep.subr.bf16.mxu1 %v2581_v55  ;;  %v8804_v9 = vpop.f32.mrf.mxu0  ;;  %6936 = vmatmul.mubr.msk.bf16.gmra.mxu0 %vm1650_vm0, %v7291_v1  ;;  %v398_v1 = vld [vmem:[%s13194_s5 + $0x2f0] sm:$0xff] }
 0x13d   : > { %v8800_v3 = vpop.permute.xlu1 %2949  ;;  %v8802_v4 = vpop.permute.xlu0 %2944  ;;  %2245 = vmatprep.mubr.bf16.mxu0 %v13501_v60 }
 0x13e   : > { %13535 = vst [vmem:[#allocation62_spill] sm:$0xff] %v8800_v3  ;;  %13536 = vst [vmem:[#allocation63_spill] sm:$0xff] %v8802_v4  ;;  %1137 = vperm.xlu1 %7254, %v393_v33   ;;  %1132 = vperm.xlu0 %7253, %v392_v59   ;;  %v8815_v57 = vpop.f32.mrf.mxu0  ;;  %v7293_v59 = vld [vmem:[%s13190_s1 + $0x130] sm:$0xff]  }
 0x13f   : > { %3747 = vmatpush1.bf16.msra.mxu1 %v2580_v13 }
 0x140   : > { %v8824_v53 = vpop.f32.mrf.mxu0 }
 0x141   : > { %v8820_v36 = vpop.permute.xlu1 %2779  ;;  %v8822_v21 = vpop.permute.xlu0 %2774 }
 0x142   : > { %1147 = vperm.xlu1 %7254, %v395_v42   ;;  %1142 = vperm.xlu0 %7253, %v394_v52   ;;  %v8832_v26 = vpop.f32.mrf.mxu0  ;;  %v400_v42 = vld [vmem:[%s13194_s5 + $0x300] sm:$0xff] }
 0x144   : > { %v8841_v37 = vpop.f32.mrf.mxu0  ;;  %6937 = vmatmul.mubr.msk.bf16.gmra.mxu0 %vm1650_vm0, %v7292_v58 }
 0x145   : > { %v8837_v46 = vpop.permute.xlu1 %2939  ;;  %v8839_v17 = vpop.permute.xlu0 %2934  ;;  %2255 = vmatprep.mubr.bf16.mxu0 %v13501_v60 }
 0x146   : > { %13538 = vst [vmem:[#allocation64_spill] sm:$0xff] %v8837_v46  ;;  %13539 = vst [vmem:[#allocation65_spill] sm:$0xff] %v8839_v17  ;;  %1157 = vperm.xlu1 %7254, %v397_v15   ;;  %1152 = vperm.xlu0 %7253, %v396_v29   ;;  %v8848_v56 = vpop.f32.mrf.mxu0  ;;  %v403_v29 = vld [vmem:[%s13194_s5 + $0x318] sm:$0xff] }
 0x148   : > { %v8857_v33 = vpop.f32.mrf.mxu0 }
 0x149   : > { %v8853_v31 = vpop.permute.xlu1 %2929  ;;  %v8855_v55 = vpop.permute.xlu0 %2924 }
 0x14a   : > { %13540 = vst [vmem:[#allocation66_spill] sm:$0xff] %v8853_v31  ;;  %13541 = vst [vmem:[#allocation67_spill] sm:$0xff] %v8855_v55  ;;  %1167 = vperm.xlu1 %7254, %v399_v27   ;;  %1162 = vperm.xlu0 %7253, %v398_v1   ;;  %v2013_v13 = vpop.f32.mrf.mxu0  ;;  %v402_v1 = vld [vmem:[%s13194_s5 + $0x310] sm:$0xff] }
 0x14c   : > { %v2017_v15 = vpop.f32.mrf.mxu0  ;;  %6938 = vmatmul.mubr.msk.bf16.gmra.mxu0 %vm1650_vm0, %v7293_v59  ;;  %v7294_v59 = vld [vmem:[%s13190_s1 + $0x138] sm:$0xff]  }
 0x14d   : > { %v8868_v52 = vpop.permute.xlu1 %3089  ;;  %v8870_v58 = vpop.permute.xlu0 %3084  ;;  %2265 = vmatprep.mubr.bf16.mxu0 %v13501_v60 }
 0x14e   : > { %13542 = vst [vmem:[#allocation68_spill] sm:$0xff] %v8868_v52  ;;  %13543 = vst [vmem:[#allocation69_spill] sm:$0xff] %v8870_v58  ;;  %1177 = vperm.xlu1 %7254, %v401_v5   ;;  %1172 = vperm.xlu0 %7253, %v400_v42   ;;  %v2019_v27 = vpop.f32.mrf.mxu0  ;;  %v405_v5 = vld [vmem:[%s13194_s5 + $0x328] sm:$0xff] }
 0x14f   : > { %v2020_v3 = vadd.f32 %v2019_v27, %v13551_v12 }
 0x150   : > { %v2021_v41 = vpop.f32.mrf.mxu0 }
 0x151   : > { %v8880_v44 = vpop.permute.xlu1 %2919  ;;  %v8882_v39 = vpop.permute.xlu0 %2914  ;;  %v2022_v17 = vadd.f32 %v2021_v41, %v8171_v6 }
 0x152   : > { %13544 = vst [vmem:[#allocation70_spill] sm:$0xff] %v8880_v44  ;;  %13545 = vst [vmem:[#allocation71_spill] sm:$0xff] %v8882_v39  ;;  %1187 = vperm.xlu1 %7254, %v403_v29   ;;  %1182 = vperm.xlu0 %7253, %v402_v1   ;;  %v2023_v42 = vpop.f32.mrf.mxu0  ;;  %v407_v29 = vld [vmem:[%s13194_s5 + $0x338] sm:$0xff] }
 0x154   : > { %v2027_v11 = vpop.f32.mrf.mxu0  ;;  %6939 = vmatmul.mubr.msk.bf16.gmra.mxu0 %vm1650_vm0, %v7294_v59  ;;  %v2024_v59 = vadd.f32 %v2023_v42, %v8171_v6  ;;  %v2018_v6 = vadd.f32 %v2017_v15, %v13551_v12 }
 0x155   : > { %v8893_v52 = vpop.permute.xlu1 %3079  ;;  %v8895_v58 = vpop.permute.xlu0 %3074  ;;  %2275 = vmatprep.mubr.bf16.mxu0 %v13501_v60  ;;  %v2028_v49 = vadd.f32 %v2027_v11, %v13550_v47 }
 0x156   : > { %13546 = vst [vmem:[#allocation72_spill] sm:$0xff] %v8893_v52  ;;  %13547 = vst [vmem:[#allocation73_spill] sm:$0xff] %v8895_v58  ;;  %1197 = vperm.xlu1 %7254, %v405_v5   ;;  %1192 = vperm.xlu0 %7253, %v404_v30   ;;  %v2029_v1 = vpop.f32.mrf.mxu0  ;;  %v7295_v30 = vld [vmem:[%s13190_s1 + $0x140] sm:$0xff]   ;;  %v2545_v44 = vpack.c.bf16 %v2024_v59, %v2020_v3  ;;  %v7296_v59 = vld [vmem:[%s13190_s1 + $0x148] sm:$0xff]  }
 0x157   : > { %v2030_v4 = vadd.f32 %v2029_v1, %v13550_v47  ;;  %v13555_v47 = vld [vmem:[#allocation5_spill] sm:$0xff] }
 0x158   : > { %v2031_v58 = vpop.f32.mrf.mxu0 }
 0x159   : > { %v8905_v38 = vpop.permute.xlu1 %2909  ;;  %v8907_v52 = vpop.permute.xlu0 %2904  ;;  %v2032_v5 = vadd.f32 %v2031_v58, %v8158_v0 }
 0x15a   : > { %13548 = vst [vmem:[#allocation74_spill] sm:$0xff] %v8905_v38  ;;  %13549 = vst [vmem:[#allocation75_spill] sm:$0xff] %v8907_v52  ;;  %1207 = vperm.xlu1 %7254, %v407_v29   ;;  %1202 = vperm.xlu0 %7253, %v406_v7   ;;  %v2033_v14 = vpop.f32.mrf.mxu0  ;;  %v408_v29 = vld [vmem:[%s13194_s5 + $0x340] sm:$0xff]  ;;  %v13553_v7 = vld [vmem:[#allocation4_spill] sm:$0xff] }
 0x15b   : > { %v2034_v42 = vadd.f32 %v2033_v14, %v8158_v0  ;;  %v2014_v58 = vadd.f32 %v2013_v13, %v13553_v7  ;;  %v2546_v31 = vpack.c.bf16 %v2032_v5, %v2028_v49  ;;  %v411_v0 = vld [vmem:[%s13194_s5 + $0x358] sm:$0xff]  ;;  %v2010_v14 = vadd.f32 %v8848_v56, %v13555_v47  ;;  %v410_v49 = vld [vmem:[%s13194_s5 + $0x350] sm:$0xff]  ;;  %v13599_v38 = vld [vmem:[#allocation14_spill] sm:$0xff] }
 0x15c   : > { %v2037_v11 = vpop.f32.mrf.mxu0  ;;  %6940 = vmatmul.mubr.msk.bf16.gmra.mxu0 %vm1650_vm0, %v7295_v30  ;;  %v2012_v27 = vadd.f32 %v8857_v33, %v13553_v7  ;;  %v2544_v30 = vpack.c.bf16 %v2022_v17, %v2018_v6  ;;  %v2609_v17 = vmax.bf16 %v13501_v60, %v2545_v44  ;;  %v510_v33 = vld [vmem:[%s13194_s5 + $0x670] sm:$0xff]  ;;  %v2008_v7 = vadd.f32 %v8841_v37, %v13555_v47 }
 0x15d   : > { %v8924_v46 = vpop.permute.xlu1 %3069  ;;  %v8928_v55 = vpop.permute.xlu0 %3064  ;;  %v2547_v39 = vpack.c.bf16 %v2034_v42, %v2030_v4  ;;  %2285 = vmatprep.mubr.bf16.mxu0 %v13501_v60  ;;  %v2543_v1 = vpack.c.bf16 %v2014_v58, %v2010_v14  ;;  %v2610_v15 = vmax.bf16 %v13501_v60, %v2546_v31  ;;  %v13561_v42 = vld [vmem:[#allocation8_spill] sm:$0xff] }
 0x15e   : > { %13552 = vst [vmem:[#allocation2_spill] sm:$0xff] %v8924_v46  ;;  %13554 = vst [vmem:[#allocation3_spill] sm:$0xff] %v8928_v55  ;;  %1217 = vperm.xlu1 %7254, %v409_v28   ;;  %1212 = vperm.xlu0 %7253, %v408_v29   ;;  %v2039_v41 = vpop.f32.mrf.mxu0  ;;  %v13556_v28 = vld [vmem:[#allocation6_spill] sm:$0xff]  ;;  %v8966_v31 = vadd.f32 %v8795_v51, %v13561_v42  ;;  %v7307_v46 = vld [vmem:[%s13190_s1 + $0x170] sm:$0xff]  }
 0x15f   : > { %v2004_v3 = vadd.f32 %v8832_v26, %v13556_v28  ;;  %v2611_v13 = vmax.bf16 %v13501_v60, %v2547_v39  ;;  %v13559_v26 = vld [vmem:[#allocation27_spill] sm:$0xff]  ;;  %v13560_v29 = vld [vmem:[#allocation26_spill] sm:$0xff]  ;;  %v2002_v47 = vadd.f32 %v8824_v53, %v13556_v28  ;;  %v542_v53 = vld [vmem:[%s13194_s5 + $0x770] sm:$0xff] }
 0x160   : > { %v2041_v12 = vpop.f32.mrf.mxu0  ;;  %v8955_v5 = vadd.f32 %v2037_v11, %v13559_v26  ;;  %v412_v11 = vld [vmem:[%s13194_s5 + $0x360] sm:$0xff]  ;;  %v8976_v14 = vadd.f32 %v2039_v41, %v13559_v26  ;;  %v2607_v26 = vmax.bf16 %v13501_v60, %v2543_v1  ;;  %v503_v55 = vld [vmem:[%s13194_s5 + $0x638] sm:$0xff] }
 0x161   : > { %v8943_v4 = vpop.permute.xlu1 %2899  ;;  %v8948_v56 = vpop.permute.xlu0 %2894  ;;  %v8958_v39 = vadd.f32 %v2041_v12, %v13560_v29  ;;  %3748 = vmatprep.subr.bf16.mxu1 %v2611_v13 }
 0x162   : > { %13557 = vst [vmem:[#allocation4_spill] sm:$0xff] %v8943_v4  ;;  %13558 = vst [vmem:[#allocation5_spill] sm:$0xff] %v8948_v56  ;;  %1227 = vperm.xlu1 %7254, %v411_v0   ;;  %1222 = vperm.xlu0 %7253, %v410_v49   ;;  %v2043_v58 = vpop.f32.mrf.mxu0  ;;  %v13562_v0 = vld [vmem:[#allocation7_spill] sm:$0xff]  ;;  %v2542_v49 = vpack.c.bf16 %v2012_v27, %v2008_v7 }
 0x163   : > { %3749 = vmatpush2.bf16.msra.mxu1 %v2610_v15  ;;  %v2000_v44 = vadd.f32 %v8815_v57, %v13562_v0  ;;  %v8981_v51 = vadd.f32 %v2043_v58, %v13560_v29  ;;  %v2608_v57 = vmax.bf16 %v13501_v60, %v2544_v30  ;;  %v1998_v28 = vadd.f32 %v8804_v9, %v13562_v0  ;;  %v13565_v30 = vld [vmem:[#allocation9_spill] sm:$0xff]  ;;  %v13567_v29 = vld [vmem:[#allocation10_spill] sm:$0xff] }
 0x164   : > { %3750 = vmatprep.subr.bf16.mxu1 %v2609_v17  ;;  %v2047_v12 = vpop.f32.mrf.mxu0  ;;  %6941 = vmatmul.mubr.msk.bf16.gmra.mxu0 %vm1650_vm0, %v7296_v59  ;;  %v1990_v59 = vadd.f32 %v8770_v24, %v13565_v30  ;;  %v1984_v17 = vadd.f32 %v8749_v22, %v13567_v29  ;;  %v7297_v24 = vld [vmem:[%s13190_s1 + $0x150] sm:$0xff]  }
 0x165   : > { %v8983_v37 = vpop.permute.xlu1 %3059  ;;  %v8987_v13 = vpop.permute.xlu0 %3054  ;;  %v2541_v41 = vpack.c.bf16 %v2004_v3, %v2000_v44  ;;  %2295 = vmatprep.mubr.bf16.mxu0 %v13501_v60  ;;  %v511_v3 = vld [vmem:[%s13194_s5 + $0x678] sm:$0xff]  ;;  %v2540_v7 = vpack.c.bf16 %v2002_v47, %v1998_v28  ;;  %v13570_v22 = vld [vmem:[#allocation24_spill] sm:$0xff]  ;;  %v1988_v47 = vadd.f32 %v8758_v35, %v13565_v30  ;;  %v1982_v30 = vadd.f32 %v8739_v34, %v13567_v29  ;;  %v508_v34 = vld [vmem:[%s13194_s5 + $0x660] sm:$0xff] }
 0x166   : > { %13563 = vst [vmem:[#allocation6_spill] sm:$0xff] %v8983_v37  ;;  %13564 = vst [vmem:[#allocation27_spill] sm:$0xff] %v8987_v13  ;;  %4766 = vperm.xlu1 %7254, %v510_v33   ;;  %1232 = vperm.xlu0 %7253, %v412_v11   ;;  %v2049_v27 = vpop.f32.mrf.mxu0  ;;  %v1992_v33 = vadd.f32 %v8779_v2, %v13561_v42  ;;  %v2606_v11 = vmax.bf16 %v13501_v60, %v2542_v49  ;;  %v13569_v44 = vld [vmem:[#allocation25_spill] sm:$0xff]  ;;  %v414_v42 = vld [vmem:[%s13194_s5 + $0x370] sm:$0xff] }
 0x167   : > { %3751 = vmatpush2.bf16.msra.mxu1 %v2608_v57  ;;  %v2539_v0 = vpack.c.bf16 %v8966_v31, %v1990_v59  ;;  %v9019_v57 = vadd.f32 %v2047_v12, %v13569_v44  ;;  %v2605_v2 = vmax.bf16 %v13501_v60, %v2541_v41  ;;  %v543_v31 = vld [vmem:[%s13194_s5 + $0x778] sm:$0xff]  ;;  %v13571_v12 = vld [vmem:[#allocation11_spill] sm:$0xff]  ;;  %v9036_v28 = vadd.f32 %v2049_v27, %v13569_v44  ;;  %v536_v41 = vld [vmem:[%s13194_s5 + $0x740] sm:$0xff] }
 0x168   : > { %3752 = vmatprep.subr.bf16.mxu1 %v2607_v26  ;;  %v2051_v58 = vpop.f32.mrf.mxu0  ;;  %v2538_v59 = vpack.c.bf16 %v1992_v33, %v1988_v47  ;;  %v1978_v29 = vadd.f32 %v8717_v48, %v13571_v12  ;;  %v7298_v48 = vld [vmem:[%s13190_s1 + $0x158] sm:$0xff]  }
 0x169   : > { %v9005_v1 = vpop.permute.xlu1 %2889  ;;  %v9011_v9 = vpop.permute.xlu0 %2884  ;;  %v9022_v26 = vadd.f32 %v2051_v58, %v13570_v22 }
 0x16a   : > { %13566 = vst [vmem:[#allocation26_spill] sm:$0xff] %v9005_v1  ;;  %13568 = vst [vmem:[#allocation8_spill] sm:$0xff] %v9011_v9  ;;  %4926 = vperm.xlu1 %7254, %v542_v53   ;;  %4771 = vperm.xlu0 %7253, %v511_v3   ;;  %v2053_v49 = vpop.f32.mrf.mxu0  ;;  %v1980_v53 = vadd.f32 %v8730_v40, %v13571_v12  ;;  %v2604_v40 = vmax.bf16 %v13501_v60, %v2540_v7  ;;  %v509_v12 = vld [vmem:[%s13194_s5 + $0x668] sm:$0xff] }
 0x16b   : > { %3753 = vmatpush2.bf16.msra.mxu1 %v2606_v11  ;;  %v9041_v3 = vadd.f32 %v2053_v49, %v13570_v22  ;;  %v2603_v22 = vmax.bf16 %v13501_v60, %v2539_v0  ;;  %v540_v49 = vld [vmem:[%s13194_s5 + $0x760] sm:$0xff] }
 0x16c   : > { %3754 = vmatprep.subr.bf16.mxu1 %v2605_v2  ;;  %v9049_v11 = vpop.f32.mrf.mxu0  ;;  %6942 = vmatmul.mubr.msk.bf16.gmra.mxu0 %vm1650_vm0, %v7297_v24  ;;  %v2537_v27 = vpack.c.bf16 %v1984_v17, %v1980_v53  ;;  %v415_v17 = vld [vmem:[%s13194_s5 + $0x378] sm:$0xff]  ;;  %v2536_v24 = vpack.c.bf16 %v1982_v30, %v1978_v29 }
 0x16d   : > { %v9043_v35 = vpop.permute.xlu1 %3049  ;;  %v9047_v58 = vpop.permute.xlu0 %3044  ;;  %2305 = vmatprep.mubr.bf16.mxu0 %v13501_v60 }
 0x16e   : > { %13572 = vst [vmem:[#allocation7_spill] sm:$0xff] %v9043_v35  ;;  %13573 = vst [vmem:[#allocation9_spill] sm:$0xff] %v9047_v58  ;;  %1242 = vperm.xlu1 %7254, %v414_v42   ;;  %4931 = vperm.xlu0 %7253, %v543_v31   ;;  %v9062_v33 = vpop.f32.mrf.mxu0  ;;  %v2602_v42 = vmax.bf16 %v13501_v60, %v2538_v59  ;;  %v2601_v47 = vmax.bf16 %v13501_v60, %v2537_v27  ;;  %v7311_v35 = vld [vmem:[%s13190_s1 + $0x178] sm:$0xff]   ;;  %v501_v58 = vld [vmem:[%s13194_s5 + $0x628] sm:$0xff] }
 0x16f   : > { %3755 = vmatpush2.bf16.msra.mxu1 %v2604_v40  ;;  %v2600_v40 = vmax.bf16 %v13501_v60, %v2536_v24  ;;  %v13578_v27 = vpack.c.bf16 %v8709_v8, %v8704_v63  ;;  %v13581_v8 = vpack.c.bf16 %v8690_v32, %v8687_v25  ;;  %v506_v25 = vld [vmem:[%s13194_s5 + $0x650] sm:$0xff] }
 0x170   : > { %3756 = vmatprep.subr.bf16.mxu1 %v2603_v22  ;;  %v9071_v2 = vpop.f32.mrf.mxu0 }
 0x171   : > { %v9067_v7 = vpop.permute.xlu1 %2879  ;;  %v9069_v0 = vpop.permute.xlu0 %2874  ;;  %v2599_v22 = vmax.bf16 %v13501_v60, %v13578_v27 }
 0x172   : > { %13574 = vst [vmem:[#allocation10_spill] sm:$0xff] %v9067_v7  ;;  %13575 = vst [vmem:[#allocation25_spill] sm:$0xff] %v9069_v0  ;;  %4756 = vperm.xlu1 %7254, %v508_v34   ;;  %1247 = vperm.xlu0 %7253, %v415_v17   ;;  %v9081_v31 = vpop.f32.mrf.mxu0  ;;  %v413_v34 = vld [vmem:[%s13194_s5 + $0x368] sm:$0xff] }
 0x173   : > { %3757 = vmatpush2.bf16.msra.mxu1 %v2602_v42  ;;  %v541_v17 = vld [vmem:[%s13194_s5 + $0x768] sm:$0xff] }
 0x174   : > { %3758 = vmatprep.subr.bf16.mxu1 %v2601_v47  ;;  %v9090_v59 = vpop.f32.mrf.mxu0  ;;  %6943 = vmatmul.mubr.msk.bf16.gmra.mxu0 %vm1650_vm0, %v7298_v48  ;;  %v2598_v48 = vmax.bf16 %v13501_v60, %v13581_v8  ;;  %v7299_v47 = vld [vmem:[%s13190_s1 + $0x160] sm:$0xff]   ;;  %v539_v8 = vld [vmem:[%s13194_s5 + $0x758] sm:$0xff] }
 0x175   : > { %v9086_v53 = vpop.permute.xlu1 %3039  ;;  %v9088_v30 = vpop.permute.xlu0 %3034  ;;  %2315 = vmatprep.mubr.bf16.mxu0 %v13501_v60 }
 0x176   : > { %13576 = vst [vmem:[#allocation24_spill] sm:$0xff] %v9086_v53  ;;  %13577 = vst [vmem:[#allocation11_spill] sm:$0xff] %v9088_v30  ;;  %4916 = vperm.xlu1 %7254, %v540_v49   ;;  %4761 = vperm.xlu0 %7253, %v509_v12   ;;  %v9102_v29 = vpop.f32.mrf.mxu0  ;;  %v13582_v49 = vpack.c.bf16 %v8649_v61, %v8644_v16  ;;  %v13585_v16 = vpack.c.bf16 %v8626_v45, %v8623_v62  ;;  %v538_v62 = vld [vmem:[%s13194_s5 + $0x750] sm:$0xff]  ;;  %v500_v30 = vld [vmem:[%s13194_s5 + $0x620] sm:$0xff] }
 0x177   : > { %3759 = vmatpush2.bf16.msra.mxu1 %v2600_v40  ;;  %v507_v40 = vld [vmem:[%s13194_s5 + $0x658] sm:$0xff]  ;;  %v7304_v45 = vld [vmem:[%s13191_s2 + $0x24] ss:$16 sps:$4 sm:$0xff]  }
 0x178   : > { %3760 = vmatprep.subr.bf16.mxu1 %v2599_v22  ;;  %v9111_v63 = vpop.f32.mrf.mxu0  ;;  %v2597_v12 = vmax.bf16 %v13501_v60, %v13582_v49  ;;  %v2596_v61 = vmax.bf16 %v13501_v60, %v13585_v16 }
 0x179   : > { %v9107_v24 = vpop.permute.xlu1 %2869  ;;  %v9109_v42 = vpop.permute.xlu0 %2864 }
 0x17a   : > { %13579 = vst [vmem:[#allocation76_spill] sm:$0xff] %v9107_v24  ;;  %13580 = vst [vmem:[#allocation77_spill] sm:$0xff] %v9109_v42  ;;  %1237 = vperm.xlu1 %7254, %v413_v34   ;;  %4921 = vperm.xlu0 %7253, %v541_v17   ;;  %v9127_v27 = vpop.f32.mrf.mxu0  ;;  %v7300_v17 = vld [vmem:[%s13191_s2] ss:$16 sps:$4 sm:$0xff]  }
 0x17b   : > { %3761 = vmatpush2.bf16.msra.mxu1 %v2598_v48 }
 0x17c   : > { %3762 = vmatprep.subr.bf16.mxu1 %v2597_v12  ;;  %v9136_v34 = vpop.f32.mrf.mxu0  ;;  %6944 = vmatmul.mubr.msk.bf16.gmra.mxu0 %vm1650_vm0, %v7299_v47 }
 0x17d   : > { %v9132_v32 = vpop.permute.xlu1 %3029  ;;  %v9134_v22 = vpop.permute.xlu0 %3024  ;;  %2325 = vmatprep.mubr.bf16.mxu0 %v13501_v60 }
 0x17e   : > { %13583 = vst [vmem:[#allocation78_spill] sm:$0xff] %v9132_v32  ;;  %13584 = vst [vmem:[#allocation79_spill] sm:$0xff] %v9134_v22  ;;  %4751 = vperm.xlu1 %7254, %v507_v40   ;;  %4746 = vperm.xlu0 %7253, %v506_v25   ;;  %v9150_v48 = vpop.f32.mrf.mxu0  ;;  %v7303_v40 = vld [vmem:[%s13190_s1 + $0x168] sm:$0xff]   ;;  %v7315_v32 = vld [vmem:[%s13190_s1 + $0x180] sm:$0xff]  }
 0x17f   : > { %3763 = vmatpush2.bf16.msra.mxu1 %v2596_v61  ;;  %v505_v25 = vld [vmem:[%s13194_s5 + $0x648] sm:$0xff]  ;;  %v504_v61 = vld [vmem:[%s13194_s5 + $0x640] sm:$0xff]  ;;  %v13598_v22 = vld [vmem:[#allocation12_spill] sm:$0xff] }
 0x180   : > { %v9162_v12 = vpop.f32.mrf.mxu0 }
 0x181   : > { %v9158_v47 = vpop.permute.xlu1 %2859  ;;  %v9160_v49 = vpop.permute.xlu0 %2854 }
 0x182   : > { %4911 = vperm.xlu1 %7254, %v539_v8   ;;  %4906 = vperm.xlu0 %7253, %v538_v62   ;;  %v9170_v16 = vpop.f32.mrf.mxu0  ;;  %v7306_v62 = vld [vmem:[%s13191_s2 + $0x20] ss:$16 sps:$4 sm:$0xff]  }
 0x183   : > { %3765 = vmatmul.mubr.bf16.vlgmr.msra.gmra.mxu1 %v7300_v17  ;;  %v537_v17 = vld [vmem:[%s13194_s5 + $0x748] sm:$0xff] }
 0x184   : > { %3774 = vmatprep.mubr.bf16.mxu1 %v7304_v45  ;;  %v9179_v15 = vpop.f32.mrf.mxu0  ;;  %6945 = vmatmul.mubr.msk.bf16.gmra.mxu0 %vm1650_vm0, %v7303_v40  ;;  %v7308_v40 = vld [vmem:[%s13191_s2 + $0x44] ss:$16 sps:$4 sm:$0xff]  }
 0x185   : > { %v9175_v6 = vpop.permute.xlu1 %3019  ;;  %v9177_v8 = vpop.permute.xlu0 %3014  ;;  %2335 = vmatprep.mubr.bf16.mxu0 %v13501_v60 }
 0x186   : > { %13586 = vst [vmem:[#allocation80_spill] sm:$0xff] %v9175_v6  ;;  %13587 = vst [vmem:[#allocation81_spill] sm:$0xff] %v9177_v8  ;;  %4741 = vperm.xlu1 %7254, %v505_v25   ;;  %4736 = vperm.xlu0 %7253, %v504_v61   ;;  %v9189_v45 = vpop.f32.mrf.mxu0  ;;  %v499_v8 = vld [vmem:[%s13194_s5 + $0x618] sm:$0xff] }
 0x188   : > { %v9201_v44 = vpop.f32.mrf.mxu0 }
 0x189   : > { %v9197_v25 = vpop.permute.xlu1 %1017  ;;  %v9199_v61 = vpop.permute.xlu0 %1012 }
 0x18a   : > { %13588 = vst [vmem:[#allocation82_spill] sm:$0xff] %v9197_v25  ;;  %13589 = vst [vmem:[#allocation83_spill] sm:$0xff] %v9199_v61  ;;  %4901 = vperm.xlu1 %7254, %v537_v17   ;;  %4896 = vperm.xlu0 %7253, %v536_v41   ;;  %v9209_v37 = vpop.f32.mrf.mxu0  ;;  %v502_v25 = vld [vmem:[%s13194_s5 + $0x630] sm:$0xff]  ;;  %v535_v41 = vld [vmem:[%s13194_s5 + $0x738] sm:$0xff] }
 0x18b   : > { %3775 = vmatmul.mubr.bf16.gmra.mxu1 %v7306_v62  ;;  %v7310_v62 = vld [vmem:[%s13191_s2 + $0x40] ss:$16 sps:$4 sm:$0xff]  }
 0x18c   : > { %3784 = vmatprep.mubr.bf16.mxu1 %v7308_v40  ;;  %v9218_v13 = vpop.f32.mrf.mxu0  ;;  %6946 = vmatmul.mubr.msk.bf16.gmra.mxu0 %vm1650_vm0, %v7307_v46  ;;  %v7312_v46 = vld [vmem:[%s13191_s2 + $0x64] ss:$16 sps:$4 sm:$0xff]  }
 0x18d   : > { %v9214_v61 = vpop.permute.xlu1 %1027  ;;  %v9216_v17 = vpop.permute.xlu0 %1022  ;;  %2345 = vmatprep.mubr.bf16.mxu0 %v13501_v60 }
 0x18e   : > { %13590 = vst [vmem:[#allocation84_spill] sm:$0xff] %v9214_v61  ;;  %13591 = vst [vmem:[#allocation85_spill] sm:$0xff] %v9216_v17  ;;  %4731 = vperm.xlu1 %7254, %v503_v55   ;;  %4726 = vperm.xlu0 %7253, %v502_v25   ;;  %v2099_v40 = vpop.f32.mrf.mxu0  ;;  %v534_v61 = vld [vmem:[%s13194_s5 + $0x730] sm:$0xff] }
 0x190   : > { %v2101_v17 = vpop.f32.mrf.mxu0 }
 0x191   : > { %v9234_v55 = vpop.permute.xlu1 %1037  ;;  %v9236_v25 = vpop.permute.xlu0 %1032  ;;  %v2102_v9 = vadd.f32 %v2101_v17, %v13599_v38  ;;  %v7320_v17 = vld [vmem:[%s13191_s2 + $0xa4] ss:$16 sps:$4 sm:$0xff]  }
 0x192   : > { %13592 = vst [vmem:[#allocation86_spill] sm:$0xff] %v9234_v55  ;;  %13593 = vst [vmem:[#allocation87_spill] sm:$0xff] %v9236_v25  ;;  %4891 = vperm.xlu1 %7254, %v535_v41   ;;  %4886 = vperm.xlu0 %7253, %v534_v61   ;;  %v2103_v53 = vpop.f32.mrf.mxu0  ;;  %v533_v61 = vld [vmem:[%s13194_s5 + $0x728] sm:$0xff] }
 0x193   : > { %3785 = vmatmul.mubr.bf16.gmra.mxu1 %v7310_v62  ;;  %v7314_v62 = vld [vmem:[%s13191_s2 + $0x60] ss:$16 sps:$4 sm:$0xff]   ;;  %v2104_v52 = vadd.f32 %v2103_v53, %v13599_v38 }
 0x194   : > { %3794 = vmatprep.mubr.bf16.mxu1 %v7312_v46  ;;  %v2107_v41 = vpop.f32.mrf.mxu0  ;;  %6947 = vmatmul.mubr.msk.bf16.gmra.mxu0 %vm1650_vm0, %v7311_v35  ;;  %v7316_v35 = vld [vmem:[%s13191_s2 + $0x84] ss:$16 sps:$4 sm:$0xff]  }
 0x195   : > { %v9247_v55 = vpop.permute.xlu1 %1047  ;;  %v9249_v25 = vpop.permute.xlu0 %1042  ;;  %2355 = vmatprep.mubr.bf16.mxu0 %v13501_v60  ;;  %v13604_v38 = vld [vmem:[#allocation16_spill] sm:$0xff] }
 0x196   : > { %13594 = vst [vmem:[#allocation88_spill] sm:$0xff] %v9247_v55  ;;  %13595 = vst [vmem:[#allocation89_spill] sm:$0xff] %v9249_v25  ;;  %4721 = vperm.xlu1 %7254, %v501_v58   ;;  %4716 = vperm.xlu0 %7253, %v500_v30   ;;  %v2109_v46 = vpop.f32.mrf.mxu0  ;;  %v532_v55 = vld [vmem:[%s13194_s5 + $0x720] sm:$0xff] }
 0x198   : > { %v2111_v25 = vpop.f32.mrf.mxu0 }
 0x199   : > { %v9265_v58 = vpop.permute.xlu1 %1057  ;;  %v9267_v30 = vpop.permute.xlu0 %1052  ;;  %v2112_v6 = vadd.f32 %v2111_v25, %v13598_v22 }
 0x19a   : > { %13596 = vst [vmem:[#allocation90_spill] sm:$0xff] %v9265_v58  ;;  %13597 = vst [vmem:[#allocation91_spill] sm:$0xff] %v9267_v30  ;;  %4881 = vperm.xlu1 %7254, %v533_v61   ;;  %4876 = vperm.xlu0 %7253, %v532_v55   ;;  %v2113_v4 = vpop.f32.mrf.mxu0  ;;  %v498_v58 = vld [vmem:[%s13194_s5 + $0x610] sm:$0xff]  ;;  %v13600_v61 = vld [vmem:[#allocation13_spill] sm:$0xff] }
 0x19b   : > { %3795 = vmatmul.mubr.bf16.gmra.mxu1 %v7314_v62  ;;  %v2108_v30 = vadd.f32 %v2107_v41, %v13600_v61  ;;  %v2110_v56 = vadd.f32 %v2109_v46, %v13600_v61  ;;  %v2114_v25 = vadd.f32 %v2113_v4, %v13598_v22  ;;  %v13602_v62 = vld [vmem:[#allocation15_spill] sm:$0xff]  ;;  %v531_v41 = vld [vmem:[%s13194_s5 + $0x718] sm:$0xff]  ;;  %v7318_v4 = vld [vmem:[%s13191_s2 + $0x80] ss:$16 sps:$4 sm:$0xff]   ;;  %v2094_v22 = vadd.f32 %v9209_v37, %v13604_v38 }
 0x19c   : > { %3804 = vmatprep.mubr.bf16.mxu1 %v7316_v35  ;;  %v2100_v1 = vadd.f32 %v2099_v40, %v13602_v62  ;;  %v2117_v53 = vpop.f32.mrf.mxu0  ;;  %6948 = vmatmul.mubr.msk.bf16.gmra.mxu0 %vm1650_vm0, %v7315_v32  ;;  %v2098_v32 = vadd.f32 %v9218_v13, %v13602_v62  ;;  %v2092_v13 = vadd.f32 %v9201_v44, %v13604_v38  ;;  %v7319_v61 = vld [vmem:[%s13190_s1 + $0x188] sm:$0xff]   ;;  %v13610_v44 = vld [vmem:[#allocation18_spill] sm:$0xff] }
 0x19d   : > { %v9283_v55 = vpop.permute.xlu1 %1067  ;;  %v9287_v7 = vpop.permute.xlu0 %1062  ;;  %v2562_v0 = vpack.c.bf16 %v2112_v6, %v2108_v30  ;;  %v2563_v35 = vpack.c.bf16 %v2114_v25, %v2110_v56  ;;  %2365 = vmatprep.mubr.bf16.mxu0 %v13501_v60  ;;  %v530_v56 = vld [vmem:[%s13194_s5 + $0x710] sm:$0xff]  ;;  %v13608_v62 = vld [vmem:[#allocation43_spill] sm:$0xff] }
 0x19e   : > { %13601 = vst [vmem:[#allocation12_spill] sm:$0xff] %v9283_v55  ;;  %13603 = vst [vmem:[#allocation14_spill] sm:$0xff] %v9287_v7  ;;  %4711 = vperm.xlu1 %7254, %v499_v8   ;;  %4706 = vperm.xlu0 %7253, %v498_v58   ;;  %v2561_v8 = vpack.c.bf16 %v2104_v52, %v2100_v1  ;;  %v2119_v6 = vpop.f32.mrf.mxu0  ;;  %v13606_v58 = vld [vmem:[#allocation17_spill] sm:$0xff]  ;;  %v2560_v52 = vpack.c.bf16 %v2102_v9, %v2098_v32 }
 0x19f   : > { %v2627_v46 = vmax.bf16 %v13501_v60, %v2563_v35  ;;  %v2090_v37 = vadd.f32 %v9189_v45, %v13606_v58  ;;  %v2626_v25 = vmax.bf16 %v13501_v60, %v2562_v0  ;;  %v13609_v35 = vld [vmem:[#allocation42_spill] sm:$0xff]  ;;  %v2084_v9 = vadd.f32 %v9170_v16, %v13610_v44  ;;  %v497_v0 = vld [vmem:[%s13194_s5 + $0x608] sm:$0xff]  ;;  %v13619_v16 = vld [vmem:[#allocation40_spill] sm:$0xff] }
 0x1a0   : > { %v2121_v30 = vpop.f32.mrf.mxu0  ;;  %v2625_v38 = vmax.bf16 %v13501_v60, %v2561_v8  ;;  %v9338_v32 = vadd.f32 %v2119_v6, %v13608_v62 }
 0x1a1   : > { %v9307_v40 = vpop.permute.xlu1 %1077  ;;  %v9314_v1 = vpop.permute.xlu0 %1072  ;;  %v9324_v55 = vadd.f32 %v2121_v30, %v13609_v35  ;;  %v2559_v45 = vpack.c.bf16 %v2094_v22, %v2090_v37  ;;  %4085 = vmatprep.subr.bf16.mxu1 %v2627_v46  ;;  %v2624_v37 = vmax.bf16 %v13501_v60, %v2560_v52  ;;  %v528_v52 = vld [vmem:[%s13194_s5 + $0x700] sm:$0xff] }
 0x1a2   : > { %13605 = vst [vmem:[#allocation13_spill] sm:$0xff] %v9307_v40  ;;  %13607 = vst [vmem:[#allocation15_spill] sm:$0xff] %v9314_v1  ;;  %4871 = vperm.xlu1 %7254, %v531_v41   ;;  %v9321_v40 = vadd.f32 %v2117_v53, %v13608_v62  ;;  %4866 = vperm.xlu0 %7253, %v530_v56   ;;  %v2123_v41 = vpop.f32.mrf.mxu0  ;;  %v496_v53 = vld [vmem:[%s13194_s5 + $0x600] sm:$0xff]  ;;  %v13612_v56 = vld [vmem:[#allocation19_spill] sm:$0xff] }
 0x1a3   : > { %3805 = vmatmul.mubr.bf16.gmra.mxu1 %v7318_v4  ;;  %v2088_v4 = vadd.f32 %v9179_v15, %v13606_v58  ;;  %v9343_v22 = vadd.f32 %v2123_v41, %v13609_v35  ;;  %v2080_v46 = vadd.f32 %v9150_v48, %v13612_v56 }
 0x1a4   : > { %3814 = vmatprep.mubr.bf16.mxu1 %v7320_v17  ;;  %4086 = vmatpush1.bf16.msra.mxu1 %v2626_v25  ;;  %v2082_v17 = vadd.f32 %v9162_v12, %v13610_v44  ;;  %v2127_v6 = vpop.f32.mrf.mxu0  ;;  %v13614_v25 = vld [vmem:[#allocation20_spill] sm:$0xff]  ;;  %v2078_v12 = vadd.f32 %v9136_v34, %v13612_v56  ;;  %v2623_v44 = vmax.bf16 %v13501_v60, %v2559_v45 }
 0x1a5   : > { %v9345_v8 = vpop.permute.xlu1 %1087  ;;  %4087 = vmatprep.subr.bf16.mxu1 %v2625_v38  ;;  %v9351_v15 = vpop.permute.xlu0 %1082  ;;  %6949 = vmatmul.mubr.msk.bf16.gmra.mxu0 %vm1650_vm0, %v7319_v61  ;;  %v2558_v58 = vpack.c.bf16 %v2092_v13, %v2088_v4  ;;  %v2074_v48 = vadd.f32 %v9127_v27, %v13614_v25  ;;  %v2557_v62 = vpack.c.bf16 %v2084_v9, %v2080_v46  ;;  %v529_v13 = vld [vmem:[%s13194_s5 + $0x708] sm:$0xff]  ;;  %v7322_v61 = vld [vmem:[%s13191_s2 + $0xa0] ss:$16 sps:$4 sm:$0xff]   ;;  %v7324_v34 = vld [vmem:[%s13191_s2 + $0xc4] ss:$16 sps:$4 sm:$0xff]  }
 0x1a6   : > { %13611 = vst [vmem:[#allocation16_spill] sm:$0xff] %v9345_v8  ;;  %13613 = vst [vmem:[#allocation17_spill] sm:$0xff] %v9351_v15  ;;  %4701 = vperm.xlu1 %7254, %v497_v0   ;;  %4696 = vperm.xlu0 %7253, %v496_v53   ;;  %v2129_v35 = vpop.f32.mrf.mxu0  ;;  %v13616_v9 = vld [vmem:[#allocation21_spill] sm:$0xff]  ;;  %v2072_v41 = vadd.f32 %v9111_v63, %v13614_v25  ;;  %v2556_v38 = vpack.c.bf16 %v2082_v17, %v2078_v12  ;;  %v7323_v4 = vld [vmem:[%s13190_s1 + $0x190] sm:$0xff]  }
 0x1a7   : > { %2375 = vmatprep.mubr.bf16.mxu0 %v13501_v60  ;;  %v2070_v45 = vadd.f32 %v9102_v29, %v13616_v9  ;;  %v2622_v56 = vmax.bf16 %v13501_v60, %v2558_v58  ;;  %v13618_v46 = vld [vmem:[#allocation41_spill] sm:$0xff]  ;;  %v13620_v29 = vld [vmem:[#allocation22_spill] sm:$0xff]  ;;  %v2068_v17 = vadd.f32 %v9090_v59, %v13616_v9  ;;  %v526_v58 = vld [vmem:[%s13194_s5 + $0x6f0] sm:$0xff] }
 0x1a8   : > { %4088 = vmatpush1.bf16.msra.mxu1 %v2624_v37  ;;  %v2131_v53 = vpop.f32.mrf.mxu0  ;;  %v9388_v37 = vadd.f32 %v2127_v6, %v13618_v46  ;;  %v2064_v63 = vadd.f32 %v9081_v31, %v13620_v29  ;;  %v527_v6 = vld [vmem:[%s13194_s5 + $0x6f8] sm:$0xff] }
 0x1a9   : > { %v9372_v27 = vpop.permute.xlu1 %1097  ;;  %4089 = vmatprep.subr.bf16.mxu1 %v2623_v44  ;;  %v9381_v0 = vpop.permute.xlu0 %1092  ;;  %v9391_v30 = vadd.f32 %v2131_v53, %v13619_v16  ;;  %v2555_v25 = vpack.c.bf16 %v2074_v48, %v2070_v45  ;;  %v2621_v44 = vmax.bf16 %v13501_v60, %v2557_v62  ;;  %v13622_v62 = vld [vmem:[#allocation23_spill] sm:$0xff]  ;;  %v2554_v45 = vpack.c.bf16 %v2072_v41, %v2068_v17  ;;  %v558_v41 = vld [vmem:[%s13194_s5 + $0x7f0] sm:$0xff] }
 0x1aa   : > { %13615 = vst [vmem:[#allocation43_spill] sm:$0xff] %v9372_v27  ;;  %13617 = vst [vmem:[#allocation42_spill] sm:$0xff] %v9381_v0  ;;  %4861 = vperm.xlu1 %7254, %v529_v13   ;;  %4856 = vperm.xlu0 %7253, %v528_v52   ;;  %v2133_v12 = vpop.f32.mrf.mxu0  ;;  %v9405_v13 = vadd.f32 %v2129_v35, %v13618_v46  ;;  %v2060_v52 = vadd.f32 %v9062_v33, %v13622_v62  ;;  %v13652_v27 = vld [vmem:[#allocation29_spill] sm:$0xff] }
 0x1ab   : > { %3815 = vmatmul.mubr.bf16.gmra.mxu1 %v7322_v61  ;;  %v9410_v59 = vadd.f32 %v2133_v12, %v13619_v16  ;;  %v2062_v61 = vadd.f32 %v9071_v2, %v13620_v29  ;;  %v2620_v16 = vmax.bf16 %v13501_v60, %v2556_v38  ;;  %v2619_v2 = vmax.bf16 %v13501_v60, %v2555_v25  ;;  %v7326_v38 = vld [vmem:[%s13191_s2 + $0xc0] ss:$16 sps:$4 sm:$0xff]   ;;  %v7328_v29 = vld [vmem:[%s13191_s2 + $0xe4] ss:$16 sps:$4 sm:$0xff]   ;;  %v7327_v25 = vld [vmem:[%s13190_s1 + $0x198] sm:$0xff]  }
 0x1ac   : > { %4090 = vmatpush1.bf16.msra.mxu1 %v2622_v56  ;;  %3824 = vmatprep.mubr.bf16.mxu1 %v7324_v34  ;;  %v9420_v35 = vpop.f32.mrf.mxu0  ;;  %v2553_v34 = vpack.c.bf16 %v2064_v63, %v2060_v52  ;;  %v559_v56 = vld [vmem:[%s13194_s5 + $0x7f8] sm:$0xff] }
 0x1ad   : > { %v9412_v48 = vpop.permute.xlu1 %1107  ;;  %4091 = vmatprep.subr.bf16.mxu1 %v2621_v44  ;;  %v9418_v9 = vpop.permute.xlu0 %1102  ;;  %6950 = vmatmul.mubr.msk.bf16.gmra.mxu0 %vm1650_vm0, %v7323_v4  ;;  %v2058_v4 = vadd.f32 %v9049_v11, %v13622_v62  ;;  %v2618_v44 = vmax.bf16 %v13501_v60, %v2554_v45  ;;  %v430_v62 = vld [vmem:[%s13194_s5 + $0x3f0] sm:$0xff] }
 0x1ae   : > { %13621 = vst [vmem:[#allocation18_spill] sm:$0xff] %v9412_v48  ;;  %13623 = vst [vmem:[#allocation19_spill] sm:$0xff] %v9418_v9  ;;  %4851 = vperm.xlu1 %7254, %v527_v6   ;;  %4846 = vperm.xlu0 %7253, %v526_v58   ;;  %v9426_v33 = vpop.f32.mrf.mxu0  ;;  %v2617_v6 = vmax.bf16 %v13501_v60, %v2553_v34  ;;  %v431_v58 = vld [vmem:[%s13194_s5 + $0x3f8] sm:$0xff] }
 0x1af   : > { %2385 = vmatprep.mubr.bf16.mxu0 %v13501_v60  ;;  %v2552_v12 = vpack.c.bf16 %v2062_v61, %v2058_v4  ;;  %v7330_v4 = vld [vmem:[%s13191_s2 + $0xe0] ss:$16 sps:$4 sm:$0xff]  }
 0x1b0   : > { %4092 = vmatpush1.bf16.msra.mxu1 %v2620_v16  ;;  %v9448_v17 = vpop.f32.mrf.mxu0 }
 0x1b1   : > { %v9441_v46 = vpop.permute.xlu1 %1117  ;;  %4093 = vmatprep.subr.bf16.mxu1 %v2619_v2  ;;  %v9446_v63 = vpop.permute.xlu0 %1112  ;;  %v2616_v16 = vmax.bf16 %v13501_v60, %v2552_v12  ;;  %v13628_v2 = vpack.c.bf16 %v9041_v3, %v9036_v28  ;;  %v7332_v28 = vld [vmem:[%s13191_s2 + $0x104] ss:$16 sps:$4 sm:$0xff]  }
 0x1b2   : > { %13624 = vst [vmem:[#allocation20_spill] sm:$0xff] %v9441_v46  ;;  %13625 = vst [vmem:[#allocation21_spill] sm:$0xff] %v9446_v63  ;;  %5011 = vperm.xlu1 %7254, %v559_v56   ;;  %5006 = vperm.xlu0 %7253, %v558_v41   ;;  %v9454_v11 = vpop.f32.mrf.mxu0  ;;  %v525_v41 = vld [vmem:[%s13194_s5 + $0x6e8] sm:$0xff]  ;;  %v7331_v12 = vld [vmem:[%s13190_s1 + $0x1a0] sm:$0xff]  }
 0x1b3   : > { %3825 = vmatmul.mubr.bf16.gmra.mxu1 %v7326_v38  ;;  %v2615_v56 = vmax.bf16 %v13501_v60, %v13628_v2  ;;  %v524_v38 = vld [vmem:[%s13194_s5 + $0x6e0] sm:$0xff]  ;;  %v557_v2 = vld [vmem:[%s13194_s5 + $0x7e8] sm:$0xff] }
 0x1b4   : > { %4094 = vmatpush1.bf16.msra.mxu1 %v2618_v44  ;;  %3834 = vmatprep.mubr.bf16.mxu1 %v7328_v29  ;;  %v9467_v45 = vpop.f32.mrf.mxu0  ;;  %v13631_v44 = vpack.c.bf16 %v9022_v26, %v9019_v57  ;;  %v556_v57 = vld [vmem:[%s13194_s5 + $0x7e0] sm:$0xff] }
 0x1b5   : > { %v9463_v52 = vpop.permute.xlu1 %1127  ;;  %4095 = vmatprep.subr.bf16.mxu1 %v2617_v6  ;;  %v9465_v61 = vpop.permute.xlu0 %1122  ;;  %6951 = vmatmul.mubr.msk.bf16.gmra.mxu0 %vm1650_vm0, %v7327_v25  ;;  %v13651_v63 = vld [vmem:[#allocation30_spill] sm:$0xff] }
 0x1b6   : > { %13626 = vst [vmem:[#allocation41_spill] sm:$0xff] %v9463_v52  ;;  %13627 = vst [vmem:[#allocation40_spill] sm:$0xff] %v9465_v61  ;;  %1327 = vperm.xlu1 %7254, %v431_v58   ;;  %1322 = vperm.xlu0 %7253, %v430_v62   ;;  %v9471_v34 = vpop.f32.mrf.mxu0  ;;  %v2614_v6 = vmax.bf16 %v13501_v60, %v13631_v44  ;;  %v13632_v62 = vpack.c.bf16 %v8981_v51, %v8976_v14  ;;  %v13650_v61 = vld [vmem:[#allocation28_spill] sm:$0xff] }
 0x1b7   : > { %2395 = vmatprep.mubr.bf16.mxu0 %v13501_v60  ;;  %v13635_v14 = vpack.c.bf16 %v8958_v39, %v8955_v5  ;;  %v7336_v39 = vld [vmem:[%s13191_s2 + $0x124] ss:$16 sps:$4 sm:$0xff]  }
 0x1b8   : > { %4096 = vmatpush1.bf16.msra.mxu1 %v2616_v16  ;;  %v9494_v25 = vpop.f32.mrf.mxu0  ;;  %v2613_v16 = vmax.bf16 %v13501_v60, %v13632_v62  ;;  %v7335_v62 = vld [vmem:[%s13190_s1 + $0x1a8] sm:$0xff]  }
 0x1b9   : > { %v9487_v29 = vpop.permute.xlu1 %1137  ;;  %4097 = vmatprep.subr.bf16.mxu1 %v2615_v56  ;;  %v9492_v3 = vpop.permute.xlu0 %1132  ;;  %v2612_v51 = vmax.bf16 %v13501_v60, %v13635_v14 }
 0x1ba   : > { %13629 = vst [vmem:[#allocation22_spill] sm:$0xff] %v9487_v29  ;;  %13630 = vst [vmem:[#allocation23_spill] sm:$0xff] %v9492_v3  ;;  %4841 = vperm.xlu1 %7254, %v525_v41   ;;  %4836 = vperm.xlu0 %7253, %v524_v38   ;;  %v9503_v58 = vpop.f32.mrf.mxu0  ;;  %v553_v29 = vld [vmem:[%s13194_s5 + $0x7c8] sm:$0xff] }
 0x1bb   : > { %3835 = vmatmul.mubr.bf16.gmra.mxu1 %v7330_v4  ;;  %v429_v4 = vld [vmem:[%s13194_s5 + $0x3e8] sm:$0xff] }
 0x1bc   : > { %4098 = vmatpush1.bf16.msra.mxu1 %v2614_v6  ;;  %3844 = vmatprep.mubr.bf16.mxu1 %v7332_v28  ;;  %v9519_v41 = vpop.f32.mrf.mxu0  ;;  %v428_v28 = vld [vmem:[%s13194_s5 + $0x3e0] sm:$0xff] }
 0x1bd   : > { %v9515_v26 = vpop.permute.xlu1 %1147  ;;  %4099 = vmatprep.subr.bf16.mxu1 %v2613_v16  ;;  %v9517_v56 = vpop.permute.xlu0 %1142  ;;  %6952 = vmatmul.mubr.msk.bf16.gmra.mxu0 %vm1650_vm0, %v7331_v12  ;;  %v7334_v12 = vld [vmem:[%s13191_s2 + $0x100] ss:$16 sps:$4 sm:$0xff]  }
 0x1be   : > { %13633 = vst [vmem:[#allocation92_spill] sm:$0xff] %v9515_v26  ;;  %13634 = vst [vmem:[#allocation93_spill] sm:$0xff] %v9517_v56  ;;  %5001 = vperm.xlu1 %7254, %v557_v2   ;;  %4996 = vperm.xlu0 %7253, %v556_v57   ;;  %v9526_v38 = vpop.f32.mrf.mxu0  ;;  %v523_v2 = vld [vmem:[%s13194_s5 + $0x6d8] sm:$0xff]  ;;  %v522_v57 = vld [vmem:[%s13194_s5 + $0x6d0] sm:$0xff] }
 0x1bf   : > { %2405 = vmatprep.mubr.bf16.mxu0 %v13501_v60 }
 0x1c0   : > { %4100 = vmatpush1.bf16.msra.mxu1 %v2612_v51  ;;  %v9545_v6 = vpop.f32.mrf.mxu0 }
 0x1c1   : > { %v9538_v5 = vpop.permute.xlu1 %1157  ;;  %v9543_v44 = vpop.permute.xlu0 %1152 }
 0x1c2   : > { %13636 = vst [vmem:[#allocation94_spill] sm:$0xff] %v9538_v5  ;;  %13637 = vst [vmem:[#allocation95_spill] sm:$0xff] %v9543_v44  ;;  %1317 = vperm.xlu1 %7254, %v429_v4   ;;  %1312 = vperm.xlu0 %7253, %v428_v28   ;;  %v9550_v16 = vpop.f32.mrf.mxu0  ;;  %v555_v28 = vld [vmem:[%s13194_s5 + $0x7d8] sm:$0xff]  ;;  %v426_v5 = vld [vmem:[%s13194_s5 + $0x3d0] sm:$0xff] }
 0x1c3   : > { %3845 = vmatmul.mubr.bf16.gmra.mxu1 %v7334_v12  ;;  %v554_v12 = vld [vmem:[%s13194_s5 + $0x7d0] sm:$0xff] }
 0x1c4   : > { %3854 = vmatprep.mubr.bf16.mxu1 %v7336_v39  ;;  %v9562_v31 = vpop.f32.mrf.mxu0  ;;  %v7338_v39 = vld [vmem:[%s13191_s2 + $0x120] ss:$16 sps:$4 sm:$0xff]  }
 0x1c5   : > { %v9558_v14 = vpop.permute.xlu1 %1167  ;;  %v9560_v51 = vpop.permute.xlu0 %1162  ;;  %6953 = vmatmul.mubr.msk.bf16.gmra.mxu0 %vm1650_vm0, %v7335_v62  ;;  %v7340_v62 = vld [vmem:[%s13191_s2 + $0x144] ss:$16 sps:$4 sm:$0xff]  }
 0x1c6   : > { %13638 = vst [vmem:[#allocation96_spill] sm:$0xff] %v9558_v14  ;;  %13639 = vst [vmem:[#allocation97_spill] sm:$0xff] %v9560_v51  ;;  %4831 = vperm.xlu1 %7254, %v523_v2   ;;  %4826 = vperm.xlu0 %7253, %v522_v57   ;;  %v9565_v4 = vpop.f32.mrf.mxu0  ;;  %v7339_v14 = vld [vmem:[%s13190_s1 + $0x1b0] sm:$0xff]  }
 0x1c7   : > { %2415 = vmatprep.mubr.bf16.mxu0 %v13501_v60 }
 0x1c8   : > { %v9584_v57 = vpop.f32.mrf.mxu0 }
 0x1c9   : > { %v9577_v53 = vpop.permute.xlu1 %1177  ;;  %v9582_v2 = vpop.permute.xlu0 %1172 }
 0x1ca   : > { %13640 = vst [vmem:[#allocation98_spill] sm:$0xff] %v9577_v53  ;;  %13641 = vst [vmem:[#allocation99_spill] sm:$0xff] %v9582_v2  ;;  %4991 = vperm.xlu1 %7254, %v555_v28   ;;  %4986 = vperm.xlu0 %7253, %v554_v12   ;;  %v9589_v51 = vpop.f32.mrf.mxu0  ;;  %v427_v53 = vld [vmem:[%s13194_s5 + $0x3d8] sm:$0xff]  ;;  %v521_v12 = vld [vmem:[%s13194_s5 + $0x6c8] sm:$0xff] }
 0x1cb   : > { %3855 = vmatmul.mubr.bf16.gmra.mxu1 %v7338_v39  ;;  %v520_v39 = vld [vmem:[%s13194_s5 + $0x6c0] sm:$0xff] }
 0x1cc   : > { %3864 = vmatprep.mubr.bf16.mxu1 %v7340_v62  ;;  %v9601_v26 = vpop.f32.mrf.mxu0  ;;  %v7342_v62 = vld [vmem:[%s13191_s2 + $0x140] ss:$16 sps:$4 sm:$0xff]  }
 0x1cd   : > { %v9597_v2 = vpop.permute.xlu1 %1187  ;;  %v9599_v44 = vpop.permute.xlu0 %1182  ;;  %6954 = vmatmul.mubr.msk.bf16.gmra.mxu0 %vm1650_vm0, %v7339_v14 }
 0x1ce   : > { %13642 = vst [vmem:[#allocation100_spill] sm:$0xff] %v9597_v2  ;;  %13643 = vst [vmem:[#allocation101_spill] sm:$0xff] %v9599_v44  ;;  %1307 = vperm.xlu1 %7254, %v427_v53   ;;  %1302 = vperm.xlu0 %7253, %v426_v5   ;;  %v2179_v28 = vpop.f32.mrf.mxu0  ;;  %v7344_v53 = vld [vmem:[%s13191_s2 + $0x164] ss:$16 sps:$4 sm:$0xff]   ;;  %v7343_v44 = vld [vmem:[%s13190_s1 + $0x1b8] sm:$0xff]  }
 0x1cf   : > { %2425 = vmatprep.mubr.bf16.mxu0 %v13501_v60 }
 0x1d0   : > { %v2181_v14 = vpop.f32.mrf.mxu0 }
 0x1d1   : > { %v9614_v2 = vpop.permute.xlu1 %1197  ;;  %v9619_v5 = vpop.permute.xlu0 %1192  ;;  %v2182_v1 = vadd.f32 %v2181_v14, %v13651_v63 }
 0x1d2   : > { %13644 = vst [vmem:[#allocation102_spill] sm:$0xff] %v9614_v2  ;;  %13645 = vst [vmem:[#allocation103_spill] sm:$0xff] %v9619_v5  ;;  %4821 = vperm.xlu1 %7254, %v521_v12   ;;  %4816 = vperm.xlu0 %7253, %v520_v39   ;;  %v2183_v56 = vpop.f32.mrf.mxu0  ;;  %v552_v2 = vld [vmem:[%s13194_s5 + $0x7c0] sm:$0xff]  ;;  %v425_v39 = vld [vmem:[%s13194_s5 + $0x3c8] sm:$0xff] }
 0x1d3   : > { %3865 = vmatmul.mubr.bf16.gmra.mxu1 %v7342_v62  ;;  %v424_v62 = vld [vmem:[%s13194_s5 + $0x3c0] sm:$0xff]  ;;  %v2184_v48 = vadd.f32 %v2183_v56, %v13651_v63  ;;  %v13654_v56 = vld [vmem:[#allocation31_spill] sm:$0xff] }
 0x1d4   : > { %3874 = vmatprep.mubr.bf16.mxu1 %v7344_v53  ;;  %v2187_v52 = vpop.f32.mrf.mxu0  ;;  %v7346_v53 = vld [vmem:[%s13191_s2 + $0x160] ss:$16 sps:$4 sm:$0xff]   ;;  %v7352_v63 = vld [vmem:[%s13191_s2 + $0x1a4] ss:$16 sps:$4 sm:$0xff]  }
 0x1d5   : > { %v9630_v3 = vpop.permute.xlu1 %1207  ;;  %v9632_v5 = vpop.permute.xlu0 %1202  ;;  %6955 = vmatmul.mubr.msk.bf16.gmra.mxu0 %vm1650_vm0, %v7343_v44  ;;  %v2188_v0 = vadd.f32 %v2187_v52, %v13652_v27 }
 0x1d6   : > { %13646 = vst [vmem:[#allocation104_spill] sm:$0xff] %v9630_v3  ;;  %13647 = vst [vmem:[#allocation105_spill] sm:$0xff] %v9632_v5  ;;  %4981 = vperm.xlu1 %7254, %v553_v29   ;;  %4976 = vperm.xlu0 %7253, %v552_v2   ;;  %v2189_v12 = vpop.f32.mrf.mxu0  ;;  %v7348_v29 = vld [vmem:[%s13191_s2 + $0x184] ss:$16 sps:$4 sm:$0xff]  }
 0x1d7   : > { %2435 = vmatprep.mubr.bf16.mxu0 %v13501_v60  ;;  %v7347_v5 = vld [vmem:[%s13190_s1 + $0x1c0] sm:$0xff]   ;;  %v2190_v8 = vadd.f32 %v2189_v12, %v13652_v27  ;;  %v13657_v27 = vld [vmem:[#allocation32_spill] sm:$0xff] }
 0x1d8   : > { %v2191_v2 = vpop.f32.mrf.mxu0 }
 0x1d9   : > { %v9645_v3 = vpop.permute.xlu1 %1217  ;;  %v9650_v44 = vpop.permute.xlu0 %1212  ;;  %v2192_v46 = vadd.f32 %v2191_v2, %v13650_v61 }
 0x1da   : > { %13648 = vst [vmem:[#allocation106_spill] sm:$0xff] %v9645_v3  ;;  %13649 = vst [vmem:[#allocation107_spill] sm:$0xff] %v9650_v44  ;;  %1297 = vperm.xlu1 %7254, %v425_v39   ;;  %1292 = vperm.xlu0 %7253, %v424_v62   ;;  %v2193_v9 = vpop.f32.mrf.mxu0  ;;  %v519_v3 = vld [vmem:[%s13194_s5 + $0x6b8] sm:$0xff]  ;;  %v518_v44 = vld [vmem:[%s13194_s5 + $0x6b0] sm:$0xff]  ;;  %v2180_v62 = vadd.f32 %v2179_v28, %v13654_v56 }
 0x1db   : > { %3875 = vmatmul.mubr.bf16.gmra.mxu1 %v7346_v53  ;;  %v2194_v2 = vadd.f32 %v2193_v9, %v13650_v61  ;;  %v2578_v7 = vpack.c.bf16 %v2192_v46, %v2188_v0  ;;  %v2174_v9 = vadd.f32 %v9589_v51, %v13657_v27  ;;  %v551_v28 = vld [vmem:[%s13194_s5 + $0x7b8] sm:$0xff]  ;;  %v2178_v0 = vadd.f32 %v9601_v26, %v13654_v56 }
 0x1dc   : > { %3884 = vmatprep.mubr.bf16.mxu1 %v7348_v29  ;;  %v9671_v15 = vpop.f32.mrf.mxu0  ;;  %v2577_v52 = vpack.c.bf16 %v2184_v48, %v2180_v62  ;;  %v7351_v29 = vld [vmem:[%s13190_s1 + $0x1c8] sm:$0xff]   ;;  %v2172_v26 = vadd.f32 %v9584_v57, %v13657_v27 }
 0x1dd   : > { %v9666_v39 = vpop.permute.xlu1 %1227  ;;  %v9669_v53 = vpop.permute.xlu0 %1222  ;;  %13656 = vst [vmem:[#allocation29_spill] sm:$0xff] %v9671_v15  ;;  %6956 = vmatmul.mubr.msk.bf16.gmra.mxu0 %vm1650_vm0, %v7347_v5  ;;  %v2579_v24 = vpack.c.bf16 %v2194_v2, %v2190_v8  ;;  %v550_v5 = vld [vmem:[%s13194_s5 + $0x7b0] sm:$0xff]  ;;  %v13663_v2 = vld [vmem:[#allocation34_spill] sm:$0xff]  ;;  %v13666_v57 = vld [vmem:[#allocation35_spill] sm:$0xff] }
 0x1de   : > { %13653 = vst [vmem:[#allocation28_spill] sm:$0xff] %v9666_v39  ;;  %13655 = vst [vmem:[#allocation30_spill] sm:$0xff] %v9669_v53  ;;  %4811 = vperm.xlu1 %7254, %v519_v3   ;;  %4806 = vperm.xlu0 %7253, %v518_v44   ;;  %v9677_v61 = vpop.f32.mrf.mxu0  ;;  %v7350_v8 = vld [vmem:[%s13191_s2 + $0x180] ss:$16 sps:$4 sm:$0xff]   ;;  %v13660_v3 = vld [vmem:[#allocation33_spill] sm:$0xff]  ;;  %v2576_v44 = vpack.c.bf16 %v2182_v1, %v2178_v0  ;;  %v2164_v56 = vadd.f32 %v9550_v16, %v13663_v2 }
 0x1df   : > { %13658 = vst [vmem:[#allocation31_spill] sm:$0xff] %v9677_v61  ;;  %2445 = vmatprep.mubr.bf16.mxu0 %v13501_v60  ;;  %v2643_v46 = vmax.bf16 %v13501_v60, %v2579_v24  ;;  %v2170_v51 = vadd.f32 %v9565_v4, %v13660_v3  ;;  %v2642_v24 = vmax.bf16 %v13501_v60, %v2578_v7  ;;  %v423_v39 = vld [vmem:[%s13194_s5 + $0x3b8] sm:$0xff]  ;;  %v422_v7 = vld [vmem:[%s13194_s5 + $0x3b0] sm:$0xff] }
 0x1e0   : > { %v9701_v12 = vpop.f32.mrf.mxu0  ;;  %v2168_v1 = vadd.f32 %v9562_v31, %v13660_v3  ;;  %v2160_v27 = vadd.f32 %v9526_v38, %v13666_v57  ;;  %v2640_v31 = vmax.bf16 %v13501_v60, %v2576_v44  ;;  %v517_v3 = vld [vmem:[%s13194_s5 + $0x6a8] sm:$0xff] }
 0x1e1   : > { %v9691_v48 = vpop.permute.xlu1 %4766  ;;  %v9699_v14 = vpop.permute.xlu0 %1232  ;;  %13662 = vst [vmem:[#allocation108_spill] sm:$0xff] %v9701_v12  ;;  %v2575_v4 = vpack.c.bf16 %v2174_v9, %v2170_v51  ;;  %4101 = vmatprep.subr.bf16.mxu1 %v2643_v46 }
 0x1e2   : > { %13659 = vst [vmem:[#allocation32_spill] sm:$0xff] %v9691_v48  ;;  %13661 = vst [vmem:[#allocation33_spill] sm:$0xff] %v9699_v14  ;;  %4971 = vperm.xlu1 %7254, %v551_v28   ;;  %4966 = vperm.xlu0 %7253, %v550_v5   ;;  %v9711_v62 = vpop.f32.mrf.mxu0  ;;  %v2641_v14 = vmax.bf16 %v13501_v60, %v2577_v52  ;;  %v2162_v28 = vadd.f32 %v9545_v6, %v13663_v2  ;;  %v516_v6 = vld [vmem:[%s13194_s5 + $0x6a0] sm:$0xff]  ;;  %v7355_v2 = vld [vmem:[%s13190_s1 + $0x1d0] sm:$0xff]  }
 0x1e3   : > { %3885 = vmatmul.mubr.bf16.gmra.mxu1 %v7350_v8  ;;  %13664 = vst [vmem:[#allocation34_spill] sm:$0xff] %v9711_v62  ;;  %v2574_v5 = vpack.c.bf16 %v2172_v26, %v2168_v1  ;;  %v13669_v8 = vld [vmem:[#allocation36_spill] sm:$0xff]  ;;  %v2573_v46 = vpack.c.bf16 %v2164_v56, %v2160_v27 }
 0x1e4   : > { %4102 = vmatpush2.bf16.msra.mxu1 %v2642_v24  ;;  %3894 = vmatprep.mubr.bf16.mxu1 %v7352_v63  ;;  %v9728_v52 = vpop.f32.mrf.mxu0  ;;  %v2154_v0 = vadd.f32 %v9503_v58, %v13669_v8  ;;  %v2639_v63 = vmax.bf16 %v13501_v60, %v2575_v4  ;;  %v2158_v58 = vadd.f32 %v9519_v41, %v13666_v57 }
 0x1e5   : > { %v9722_v16 = vpop.permute.xlu1 %4926  ;;  %4103 = vmatprep.subr.bf16.mxu1 %v2641_v14  ;;  %v9726_v9 = vpop.permute.xlu0 %4771  ;;  %13668 = vst [vmem:[#allocation110_spill] sm:$0xff] %v9728_v52  ;;  %6957 = vmatmul.mubr.msk.bf16.gmra.mxu0 %vm1650_vm0, %v7351_v29  ;;  %v7356_v14 = vld [vmem:[%s13191_s2 + $0x1c4] ss:$16 sps:$4 sm:$0xff]   ;;  %v13672_v29 = vld [vmem:[#allocation37_spill] sm:$0xff]  ;;  %v2152_v41 = vadd.f32 %v9494_v25, %v13669_v8  ;;  %v2638_v4 = vmax.bf16 %v13501_v60, %v2574_v5 }
 0x1e6   : > { %13665 = vst [vmem:[#allocation109_spill] sm:$0xff] %v9722_v16  ;;  %13667 = vst [vmem:[#allocation35_spill] sm:$0xff] %v9726_v9  ;;  %1287 = vperm.xlu1 %7254, %v423_v39   ;;  %1282 = vperm.xlu0 %7253, %v422_v7   ;;  %v9736_v38 = vpop.f32.mrf.mxu0  ;;  %v7354_v39 = vld [vmem:[%s13191_s2 + $0x1a0] ss:$16 sps:$4 sm:$0xff]   ;;  %v2150_v26 = vadd.f32 %v9471_v34, %v13672_v29  ;;  %v2572_v56 = vpack.c.bf16 %v2162_v28, %v2158_v58  ;;  %v421_v58 = vld [vmem:[%s13194_s5 + $0x3a8] sm:$0xff] }
 0x1e7   : > { %13670 = vst [vmem:[#allocation36_spill] sm:$0xff] %v9736_v38  ;;  %2455 = vmatprep.mubr.bf16.mxu0 %v13501_v60  ;;  %v13675_v7 = vld [vmem:[#allocation38_spill] sm:$0xff]  ;;  %v2637_v27 = vmax.bf16 %v13501_v60, %v2573_v46  ;;  %v2148_v28 = vadd.f32 %v9467_v45, %v13672_v29 }
 0x1e8   : > { %4104 = vmatpush2.bf16.msra.mxu1 %v2640_v31  ;;  %v9760_v24 = vpop.f32.mrf.mxu0  ;;  %v2144_v34 = vadd.f32 %v9454_v11, %v13675_v7  ;;  %v2571_v1 = vpack.c.bf16 %v2154_v0, %v2150_v26  ;;  %v549_v31 = vld [vmem:[%s13194_s5 + $0x7a8] sm:$0xff]  ;;  %v548_v25 = vld [vmem:[%s13194_s5 + $0x7a0] sm:$0xff]  ;;  %v2636_v45 = vmax.bf16 %v13501_v60, %v2572_v56 }
 0x1e9   : > { %v9751_v51 = vpop.permute.xlu1 %1242  ;;  %4105 = vmatprep.subr.bf16.mxu1 %v2639_v63  ;;  %v9758_v44 = vpop.permute.xlu0 %4931  ;;  %13674 = vst [vmem:[#allocation112_spill] sm:$0xff] %v9760_v24  ;;  %v13678_v11 = vld [vmem:[#allocation39_spill] sm:$0xff]  ;;  %v2142_v63 = vadd.f32 %v9448_v17, %v13675_v7  ;;  %v7358_v17 = vld [vmem:[%s13191_s2 + $0x1c0] ss:$16 sps:$4 sm:$0xff]  }
 0x1ea   : > { %13671 = vst [vmem:[#allocation111_spill] sm:$0xff] %v9751_v51  ;;  %13673 = vst [vmem:[#allocation37_spill] sm:$0xff] %v9758_v44  ;;  %4801 = vperm.xlu1 %7254, %v517_v3   ;;  %4796 = vperm.xlu0 %7253, %v516_v6   ;;  %v9770_v57 = vpop.f32.mrf.mxu0  ;;  %v2140_v8 = vadd.f32 %v9426_v33, %v13678_v11  ;;  %v2570_v3 = vpack.c.bf16 %v2152_v41, %v2148_v28  ;;  %v560_v16 = vld [vmem:[%s13194_s5 + $0x800] sm:$0xff] }
 0x1eb   : > { %3895 = vmatmul.mubr.bf16.gmra.mxu1 %v7354_v39  ;;  %13676 = vst [vmem:[#allocation38_spill] sm:$0xff] %v9770_v57  ;;  %v2635_v33 = vmax.bf16 %v13501_v60, %v2571_v1  ;;  %v2138_v29 = vadd.f32 %v9420_v35, %v13678_v11  ;;  %v7381_v9 = vld [vmem:[%s13191_s2 + $0x280] ss:$16 sps:$4 sm:$0xff]  }
 0x1ec   : > { %4106 = vmatpush2.bf16.msra.mxu1 %v2638_v4  ;;  %3904 = vmatprep.mubr.bf16.mxu1 %v7356_v14  ;;  %v9787_v46 = vpop.f32.mrf.mxu0  ;;  %v2569_v6 = vpack.c.bf16 %v2144_v34, %v2140_v8  ;;  %v420_v14 = vld [vmem:[%s13194_s5 + $0x3a0] sm:$0xff]  ;;  %v7359_v4 = vld [vmem:[%s13190_s1 + $0x1d8] sm:$0xff]   ;;  %v2634_v34 = vmax.bf16 %v13501_v60, %v2570_v3  ;;  %v13690_v3 = vpack.c.bf16 %v9410_v59, %v9405_v13 }
 0x1ed   : > { %v9781_v5 = vpop.permute.xlu1 %4756  ;;  %4107 = vmatprep.subr.bf16.mxu1 %v2637_v27  ;;  %v9785_v0 = vpop.permute.xlu0 %1247  ;;  %13680 = vst [vmem:[#allocation114_spill] sm:$0xff] %v9787_v46  ;;  %6958 = vmatmul.mubr.msk.bf16.gmra.mxu0 %vm1650_vm0, %v7355_v2  ;;  %v7360_v2 = vld [vmem:[%s13191_s2 + $0x1e4] ss:$16 sps:$4 sm:$0xff]   ;;  %v2568_v7 = vpack.c.bf16 %v2142_v63, %v2138_v29  ;;  %v515_v27 = vld [vmem:[%s13194_s5 + $0x698] sm:$0xff] }
 0x1ee   : > { %13677 = vst [vmem:[#allocation113_spill] sm:$0xff] %v9781_v5  ;;  %13679 = vst [vmem:[#allocation39_spill] sm:$0xff] %v9785_v0  ;;  %4961 = vperm.xlu1 %7254, %v549_v31   ;;  %4956 = vperm.xlu0 %7253, %v548_v25   ;;  %v9793_v39 = vpop.f32.mrf.mxu0  ;;  %v2633_v1 = vmax.bf16 %v13501_v60, %v2569_v6  ;;  %v514_v31 = vld [vmem:[%s13194_s5 + $0x690] sm:$0xff]  ;;  %v547_v6 = vld [vmem:[%s13194_s5 + $0x798] sm:$0xff] }
 0x1ef   : > { %13681 = vst [vmem:[#allocation115_spill] sm:$0xff] %v9793_v39  ;;  %2465 = vmatprep.mubr.bf16.mxu0 %v13501_v60  ;;  %v2632_v8 = vmax.bf16 %v13501_v60, %v2568_v7  ;;  %v7364_v13 = vld [vmem:[%s13191_s2 + $0x204] ss:$16 sps:$4 sm:$0xff]   ;;  %v561_v0 = vld [vmem:[%s13194_s5 + $0x808] sm:$0xff] }
 0x1f0   : > { %4108 = vmatpush2.bf16.msra.mxu1 %v2636_v45  ;;  %v9815_v56 = vpop.f32.mrf.mxu0  ;;  %v2631_v45 = vmax.bf16 %v13501_v60, %v13690_v3  ;;  %v7363_v29 = vld [vmem:[%s13190_s1 + $0x1e0] sm:$0xff]  }
 0x1f1   : > { %v9808_v26 = vpop.permute.xlu1 %4916  ;;  %4109 = vmatprep.subr.bf16.mxu1 %v2635_v33  ;;  %v9813_v41 = vpop.permute.xlu0 %4761  ;;  %13684 = vst [vmem:[#allocation118_spill] sm:$0xff] %v9815_v56  ;;  %v546_v33 = vld [vmem:[%s13194_s5 + $0x790] sm:$0xff] }
 0x1f2   : > { %13682 = vst [vmem:[#allocation116_spill] sm:$0xff] %v9808_v26  ;;  %13683 = vst [vmem:[#allocation117_spill] sm:$0xff] %v9813_v41  ;;  %1277 = vperm.xlu1 %7254, %v421_v58   ;;  %1272 = vperm.xlu0 %7253, %v420_v14   ;;  %v9821_v35 = vpop.f32.mrf.mxu0  ;;  %v7362_v58 = vld [vmem:[%s13191_s2 + $0x1e0] ss:$16 sps:$4 sm:$0xff]  }
 0x1f3   : > { %3905 = vmatmul.mubr.bf16.gmra.mxu1 %v7358_v17  ;;  %13685 = vst [vmem:[#allocation119_spill] sm:$0xff] %v9821_v35 }
 0x1f4   : > { %4110 = vmatpush2.bf16.msra.mxu1 %v2634_v34  ;;  %3914 = vmatprep.mubr.bf16.mxu1 %v7360_v2  ;;  %v9834_v11 = vpop.f32.mrf.mxu0  ;;  %v13694_v2 = vpack.c.bf16 %v9391_v30, %v9388_v37  ;;  %v13696_v34 = vpack.c.bf16 %v9343_v22, %v9338_v32  ;;  %v418_v30 = vld [vmem:[%s13194_s5 + $0x390] sm:$0xff]  ;;  %v13700_v32 = vpack.c.bf16 %v9324_v55, %v9321_v40 }
 0x1f5   : > { %v9830_v25 = vpop.permute.xlu1 %1237  ;;  %4111 = vmatprep.subr.bf16.mxu1 %v2633_v1  ;;  %v9832_v28 = vpop.permute.xlu0 %4921  ;;  %13688 = vst [vmem:[#allocation122_spill] sm:$0xff] %v9834_v11  ;;  %6959 = vmatmul.mubr.msk.bf16.gmra.mxu0 %vm1650_vm0, %v7359_v4  ;;  %v7368_v40 = vld [vmem:[%s13191_s2 + $0x224] ss:$16 sps:$4 sm:$0xff]  }
 0x1f6   : > { %13686 = vst [vmem:[#allocation120_spill] sm:$0xff] %v9830_v25  ;;  %13687 = vst [vmem:[#allocation121_spill] sm:$0xff] %v9832_v28  ;;  %4791 = vperm.xlu1 %7254, %v515_v27   ;;  %4786 = vperm.xlu0 %7253, %v514_v31   ;;  %v9838_v63 = vpop.f32.mrf.mxu0  ;;  %v2630_v4 = vmax.bf16 %v13501_v60, %v13694_v2  ;;  %v2629_v1 = vmax.bf16 %v13501_v60, %v13696_v34  ;;  %v419_v27 = vld [vmem:[%s13194_s5 + $0x398] sm:$0xff]  ;;  %v544_v34 = vld [vmem:[%s13194_s5 + $0x780] sm:$0xff] }
 0x1f7   : > { %13689 = vst [vmem:[#allocation123_spill] sm:$0xff] %v9838_v63  ;;  %2475 = vmatprep.mubr.bf16.mxu0 %v13501_v60  ;;  %v2628_v22 = vmax.bf16 %v13501_v60, %v13700_v32 }
 0x1f8   : > { %4112 = vmatpush2.bf16.msra.mxu1 %v2632_v8  ;;  %v9861_v17 = vpop.f32.mrf.mxu0 }
 0x1f9   : > { %v9854_v14 = vpop.permute.xlu1 %4751  ;;  %4113 = vmatprep.subr.bf16.mxu1 %v2631_v45  ;;  %v9859_v59 = vpop.permute.xlu0 %4746  ;;  %13693 = vst [vmem:[#allocation126_spill] sm:$0xff] %v9861_v17  ;;  %v513_v45 = vld [vmem:[%s13194_s5 + $0x688] sm:$0xff] }
 0x1fa   : > { %13691 = vst [vmem:[#allocation124_spill] sm:$0xff] %v9854_v14  ;;  %13692 = vst [vmem:[#allocation125_spill] sm:$0xff] %v9859_v59  ;;  %4951 = vperm.xlu1 %7254, %v547_v6   ;;  %4946 = vperm.xlu0 %7253, %v546_v33   ;;  %v9870_v7 = vpop.f32.mrf.mxu0  ;;  %v512_v6 = vld [vmem:[%s13194_s5 + $0x680] sm:$0xff] }
 0x1fb   : > { %3915 = vmatmul.mubr.bf16.gmra.mxu1 %v7362_v58  ;;  %13695 = vst [vmem:[#allocation127_spill] sm:$0xff] %v9870_v7  ;;  %v7366_v33 = vld [vmem:[%s13191_s2 + $0x200] ss:$16 sps:$4 sm:$0xff]  }
 0x1fc   : > { %4114 = vmatpush2.bf16.msra.mxu1 %v2630_v4  ;;  %3924 = vmatprep.mubr.bf16.mxu1 %v7364_v13  ;;  %v9886_v8 = vpop.f32.mrf.mxu0  ;;  %v545_v4 = vld [vmem:[%s13194_s5 + $0x788] sm:$0xff] }
 0x1fd   : > { %v9882_v37 = vpop.permute.xlu1 %4911  ;;  %4115 = vmatprep.subr.bf16.mxu1 %v2629_v1  ;;  %v9884_v31 = vpop.permute.xlu0 %4906  ;;  %13699 = vst [vmem:[#allocation130_spill] sm:$0xff] %v9886_v8  ;;  %6960 = vmatmul.mubr.msk.bf16.gmra.mxu0 %vm1650_vm0, %v7363_v29  ;;  %v7367_v29 = vld [vmem:[%s13190_s1 + $0x1e8] sm:$0xff]  }
 0x1fe   : > { %13697 = vst [vmem:[#allocation128_spill] sm:$0xff] %v9882_v37  ;;  %13698 = vst [vmem:[#allocation129_spill] sm:$0xff] %v9884_v31  ;;  %1267 = vperm.xlu1 %7254, %v419_v27   ;;  %1262 = vperm.xlu0 %7253, %v418_v30   ;;  %v9893_v3 = vpop.f32.mrf.mxu0 }
 0x1ff   : > { %13701 = vst [vmem:[#allocation131_spill] sm:$0xff] %v9893_v3  ;;  %2485 = vmatprep.mubr.bf16.mxu0 %v13501_v60 }
 0x200   : > { %4116 = vmatpush2.bf16.msra.mxu1 %v2628_v22  ;;  %v9912_v13 = vpop.f32.mrf.mxu0  ;;  %v417_v22 = vld [vmem:[%s13194_s5 + $0x388] sm:$0xff] }
 0x201   : > { %v9905_v55 = vpop.permute.xlu1 %4741  ;;  %v9910_v58 = vpop.permute.xlu0 %4736  ;;  %13704 = vst [vmem:[#allocation134_spill] sm:$0xff] %v9912_v13 }
 0x202   : > { %13702 = vst [vmem:[#allocation132_spill] sm:$0xff] %v9905_v55  ;;  %13703 = vst [vmem:[#allocation133_spill] sm:$0xff] %v9910_v58  ;;  %4781 = vperm.xlu1 %7254, %v513_v45   ;;  %4776 = vperm.xlu0 %7253, %v512_v6   ;;  %v9917_v2 = vpop.f32.mrf.mxu0  ;;  %v416_v45 = vld [vmem:[%s13194_s5 + $0x380] sm:$0xff] }
 0x203   : > { %3925 = vmatmul.mubr.bf16.gmra.mxu1 %v7366_v33  ;;  %13705 = vst [vmem:[#allocation135_spill] sm:$0xff] %v9917_v2  ;;  %v7370_v6 = vld [vmem:[%s13191_s2 + $0x220] ss:$16 sps:$4 sm:$0xff]  }
 0x204   : > { %3934 = vmatprep.mubr.bf16.mxu1 %v7368_v40  ;;  %v9929_v30 = vpop.f32.mrf.mxu0  ;;  %v7372_v40 = vld [vmem:[%s13191_s2 + $0x244] ss:$16 sps:$4 sm:$0xff]  }
 0x205   : > { %v9925_v1 = vpop.permute.xlu1 %4901  ;;  %v9927_v27 = vpop.permute.xlu0 %4896  ;;  %13708 = vst [vmem:[#allocation138_spill] sm:$0xff] %v9929_v30  ;;  %6961 = vmatmul.mubr.msk.bf16.gmra.mxu0 %vm1650_vm0, %v7367_v29 }
 0x206   : > { %13706 = vst [vmem:[#allocation136_spill] sm:$0xff] %v9925_v1  ;;  %13707 = vst [vmem:[#allocation137_spill] sm:$0xff] %v9927_v27  ;;  %4941 = vperm.xlu1 %7254, %v545_v4   ;;  %4936 = vperm.xlu0 %7253, %v544_v34   ;;  %v9932_v32 = vpop.f32.mrf.mxu0  ;;  %v7371_v34 = vld [vmem:[%s13190_s1 + $0x1f0] sm:$0xff]  }
 0x207   : > { %13709 = vst [vmem:[#allocation139_spill] sm:$0xff] %v9932_v32  ;;  %2495 = vmatprep.mubr.bf16.mxu0 %v13501_v60  ;;  %v7378_v27 = vld [vmem:[%s13191_s2 + $0x260] ss:$16 sps:$4 sm:$0xff]  }
 0x208   : > { %v9951_v4 = vpop.f32.mrf.mxu0 }
 0x209   : > { %v9944_v33 = vpop.permute.xlu1 %4731  ;;  %v9949_v29 = vpop.permute.xlu0 %4726  ;;  %13712 = vst [vmem:[#allocation142_spill] sm:$0xff] %v9951_v4 }
 0x20a   : > { %13710 = vst [vmem:[#allocation140_spill] sm:$0xff] %v9944_v33  ;;  %13711 = vst [vmem:[#allocation141_spill] sm:$0xff] %v9949_v29  ;;  %1257 = vperm.xlu1 %7254, %v417_v22   ;;  %1252 = vperm.xlu0 %7253, %v416_v45   ;;  %v9956_v44 = vpop.f32.mrf.mxu0  ;;  %v7374_v45 = vld [vmem:[%s13191_s2 + $0x240] ss:$16 sps:$4 sm:$0xff]  }
 0x20b   : > { %3935 = vmatmul.mubr.bf16.gmra.mxu1 %v7370_v6  ;;  %13713 = vst [vmem:[#allocation143_spill] sm:$0xff] %v9956_v44 }
 0x20c   : > { %3944 = vmatprep.mubr.bf16.mxu1 %v7372_v40  ;;  %v9968_v28 = vpop.f32.mrf.mxu0  ;;  %v7376_v40 = vld [vmem:[%s13191_s2 + $0x264] ss:$16 sps:$4 sm:$0xff]  }
 0x20d   : > { %v9964_v51 = vpop.permute.xlu1 %4891  ;;  %v9966_v25 = vpop.permute.xlu0 %4886  ;;  %13716 = vst [vmem:[#allocation146_spill] sm:$0xff] %v9968_v28  ;;  %6962 = vmatmul.mubr.msk.bf16.gmra.mxu0 %vm1650_vm0, %v7371_v34 }
 0x20e   : > { %13714 = vst [vmem:[#allocation144_spill] sm:$0xff] %v9964_v51  ;;  %13715 = vst [vmem:[#allocation145_spill] sm:$0xff] %v9966_v25  ;;  %6627 = vperm.xlu1 %7254, %v561_v0   ;;  %6622 = vperm.xlu0 %7253, %v560_v16   ;;  %v9971_v22 = vpop.f32.mrf.mxu0  ;;  %v7375_v16 = vld [vmem:[%s13190_s1 + $0x1f8] sm:$0xff]  }
 0x20f   : > { %13717 = vst [vmem:[#allocation147_spill] sm:$0xff] %v9971_v22  ;;  %2505 = vmatprep.mubr.bf16.mxu0 %v13501_v60 }
 0x210   : > { %v9984_v53 = vpop.f32.mrf.mxu0 }
 0x211   : > { %v9977_v6 = vpop.permute.xlu1 %4721  ;;  %v9982_v26 = vpop.permute.xlu0 %4716  ;;  %13720 = vst [vmem:[#allocation150_spill] sm:$0xff] %v9984_v53 }
 0x212   : > { %13718 = vst [vmem:[#allocation148_spill] sm:$0xff] %v9977_v6  ;;  %13719 = vst [vmem:[#allocation149_spill] sm:$0xff] %v9982_v26  ;;  %v9989_v0 = vpop.f32.mrf.mxu0 }
 0x213   : > { %3945 = vmatmul.mubr.bf16.gmra.mxu1 %v7374_v45  ;;  %13721 = vst [vmem:[#allocation151_spill] sm:$0xff] %v9989_v0  ;;  %v7379_v45 = vld [vmem:[%s13191_s2 + $0x284] ss:$16 sps:$4 sm:$0xff]  }
 0x214   : > { %3954 = vmatprep.mubr.bf16.mxu1 %v7376_v40  ;;  %v9995_v31 = vpop.f32.mrf.mxu0 }
 0x215   : > { %v9991_v34 = vpop.permute.xlu1 %4881  ;;  %v9993_v37 = vpop.permute.xlu0 %4876  ;;  %13724 = vst [vmem:[#allocation154_spill] sm:$0xff] %v9995_v31  ;;  %6963 = vmatmul.mubr.msk.bf16.gmra.mxu0 %vm1650_vm0, %v7375_v16 }
 0x216   : > { %13722 = vst [vmem:[#allocation152_spill] sm:$0xff] %v9991_v34  ;;  %13723 = vst [vmem:[#allocation153_spill] sm:$0xff] %v9993_v37  ;;  %v9998_v1 = vpop.f32.mrf.mxu0 }
 0x217   : > { %13725 = vst [vmem:[#allocation155_spill] sm:$0xff] %v9998_v1 }
 0x218   : > { %v10010_v40 = vpop.f32.mrf.mxu0 }
 0x219   : > { %v10003_v51 = vpop.permute.xlu1 %4711  ;;  %v10008_v25 = vpop.permute.xlu0 %4706  ;;  %13728 = vst [vmem:[#allocation158_spill] sm:$0xff] %v10010_v40  ;;  %v7382_v40 = vld [vmem:[%s13191_s2 + $0x2a4] ss:$16 sps:$4 sm:$0xff]  }
 0x21a   : > { %13726 = vst [vmem:[#allocation156_spill] sm:$0xff] %v10003_v51  ;;  %13727 = vst [vmem:[#allocation157_spill] sm:$0xff] %v10008_v25  ;;  %v10012_v34 = vpop.f32.mrf.mxu0 }
 0x21b   : > { %3955 = vmatmul.mubr.bf16.gmra.mxu1 %v7378_v27  ;;  %13729 = vst [vmem:[#allocation159_spill] sm:$0xff] %v10012_v34 }
 0x21c   : > { %3964 = vmatprep.mubr.bf16.mxu1 %v7379_v45  ;;  %v10016_v37 = vpop.f32.mrf.mxu0 }
 0x21d   : > { %v10014_v16 = vpop.permute.xlu0 %4866  ;;  %13731 = vst [vmem:[#allocation161_spill] sm:$0xff] %v10016_v37  ;;  %v10018_v1 = vpop.permute.xlu1 %4871  ;;  %v7384_v37 = vld [vmem:[%s13191_s2 + $0x2a0] ss:$16 sps:$4 sm:$0xff]  }
 0x21e   : > { %13730 = vst [vmem:[#allocation160_spill] sm:$0xff] %v10014_v16  ;;  %13732 = vst [vmem:[#allocation162_spill] sm:$0xff] %v10018_v1  ;;  %v10020_v0 = vpop.f32.mrf.mxu0 }
 0x21f   : > { %13733 = vst [vmem:[#allocation163_spill] sm:$0xff] %v10020_v0 }
 0x220   : > { %v10030_v34 = vpop.f32.mrf.mxu0 }
 0x221   : > { %v10028_v27 = vpop.permute.xlu0 %4696  ;;  %13735 = vst [vmem:[#allocation165_spill] sm:$0xff] %v10030_v34  ;;  %v10034_v16 = vpop.permute.xlu1 %4701  ;;  %v7385_v34 = vld [vmem:[%s13191_s2 + $0x2c4] ss:$16 sps:$4 sm:$0xff]  }
 0x222   : > { %13734 = vst [vmem:[#allocation164_spill] sm:$0xff] %v10028_v27  ;;  %v10032_v45 = vpop.f32.mrf.mxu0  ;;  %13737 = vst [vmem:[#allocation167_spill] sm:$0xff] %v10034_v16 }
 0x223   : > { %3965 = vmatmul.mubr.bf16.gmra.mxu1 %v7381_v9  ;;  %13736 = vst [vmem:[#allocation166_spill] sm:$0xff] %v10032_v45 }
 0x224   : > { %3974 = vmatprep.mubr.bf16.mxu1 %v7382_v40  ;;  %v10036_v1 = vpop.f32.mrf.mxu0 }
 0x225   : > { %13738 = vst [vmem:[#allocation168_spill] sm:$0xff] %v10036_v1  ;;  %v10038_v0 = vpop.permute.xlu0 %4856  ;;  %v10050_v45 = vpop.permute.xlu1 %4861 }
 0x226   : > { %13739 = vst [vmem:[#allocation169_spill] sm:$0xff] %v10038_v0  ;;  %v10043_v22 = vpop.f32.mrf.mxu0  ;;  %13742 = vst [vmem:[#allocation172_spill] sm:$0xff] %v10050_v45 }
 0x227   : > { %13740 = vst [vmem:[#allocation170_spill] sm:$0xff] %v10043_v22  ;;  %v7387_v22 = vld [vmem:[%s13191_s2 + $0x2c0] ss:$16 sps:$4 sm:$0xff]  }
 0x228   : > { %v10048_v9 = vpop.f32.mrf.mxu0 }
 0x229   : > { %13741 = vst [vmem:[#allocation171_spill] sm:$0xff] %v10048_v9  ;;  %v10054_v1 = vpop.permute.xlu0 %4846  ;;  %v7388_v9 = vld [vmem:[%s13191_s2 + $0x2e4] ss:$16 sps:$4 sm:$0xff]   ;;  %v10066_v32 = vpop.permute.xlu1 %4851 }
 0x22a   : > { %v10052_v40 = vpop.f32.mrf.mxu0  ;;  %13744 = vst [vmem:[#allocation174_spill] sm:$0xff] %v10054_v1  ;;  %13747 = vst [vmem:[#allocation177_spill] sm:$0xff] %v10066_v32  ;;  %v7391_v32 = vld [vmem:[%s13191_s2 + $0x304] ss:$16 sps:$4 sm:$0xff]  }
 0x22b   : > { %3975 = vmatmul.mubr.bf16.gmra.mxu1 %v7384_v37  ;;  %13743 = vst [vmem:[#allocation173_spill] sm:$0xff] %v10052_v40 }
 0x22c   : > { %3984 = vmatprep.mubr.bf16.mxu1 %v7385_v34  ;;  %v10056_v0 = vpop.f32.mrf.mxu0 }
 0x22d   : > { %13745 = vst [vmem:[#allocation175_spill] sm:$0xff] %v10056_v0  ;;  %v10070_v45 = vpop.permute.xlu0 %5006  ;;  %v10076_v0 = vpop.permute.xlu1 %5011 }
 0x22e   : > { %v10061_v44 = vpop.f32.mrf.mxu0  ;;  %13749 = vst [vmem:[#allocation179_spill] sm:$0xff] %v10070_v45  ;;  %13752 = vst [vmem:[#allocation182_spill] sm:$0xff] %v10076_v0 }
 0x22f   : > { %13746 = vst [vmem:[#allocation176_spill] sm:$0xff] %v10061_v44  ;;  %v7390_v44 = vld [vmem:[%s13191_s2 + $0x2e0] ss:$16 sps:$4 sm:$0xff]  }
 0x230   : > { %v10068_v37 = vpop.f32.mrf.mxu0 }
 0x231   : > { %13748 = vst [vmem:[#allocation178_spill] sm:$0xff] %v10068_v37  ;;  %v10086_v37 = vpop.permute.xlu0 %1322  ;;  %v10092_v45 = vpop.permute.xlu1 %1327 }
 0x232   : > { %v10072_v34 = vpop.f32.mrf.mxu0  ;;  %13754 = vst [vmem:[#allocation184_spill] sm:$0xff] %v10086_v37  ;;  %13757 = vst [vmem:[#allocation187_spill] sm:$0xff] %v10092_v45  ;;  %v7394_v37 = vld [vmem:[%s13191_s2 + $0x324] ss:$16 sps:$4 sm:$0xff]  }
 0x233   : > { %3985 = vmatmul.mubr.bf16.gmra.mxu1 %v7387_v22  ;;  %13750 = vst [vmem:[#allocation180_spill] sm:$0xff] %v10072_v34 }
 0x234   : > { %3994 = vmatprep.mubr.bf16.mxu1 %v7388_v9  ;;  %v10074_v1 = vpop.f32.mrf.mxu0 }
 0x235   : > { %13751 = vst [vmem:[#allocation181_spill] sm:$0xff] %v10074_v1  ;;  %v10096_v34 = vpop.permute.xlu0 %4836 }
 0x236   : > { %v10081_v40 = vpop.f32.mrf.mxu0  ;;  %13759 = vst [vmem:[#allocation189_spill] sm:$0xff] %v10096_v34 }
 0x237   : > { %13753 = vst [vmem:[#allocation183_spill] sm:$0xff] %v10081_v40  ;;  %v7393_v40 = vld [vmem:[%s13191_s2 + $0x300] ss:$16 sps:$4 sm:$0xff]  }
 0x238   : > { %v10088_v22 = vpop.f32.mrf.mxu0 }
 0x239   : > { %13755 = vst [vmem:[#allocation185_spill] sm:$0xff] %v10088_v22 }
 0x23a   : > { %v10090_v9 = vpop.f32.mrf.mxu0 }
 0x23b   : > { %3995 = vmatmul.mubr.bf16.gmra.mxu1 %v7390_v44  ;;  %13756 = vst [vmem:[#allocation186_spill] sm:$0xff] %v10090_v9 }
 0x23c   : > { %4004 = vmatprep.mubr.bf16.mxu1 %v7391_v32  ;;  %v10094_v0 = vpop.f32.mrf.mxu0  ;;  %v10110_v32 = vpop.permute.xlu1 %4841 }
 0x23d   : > { %13758 = vst [vmem:[#allocation188_spill] sm:$0xff] %v10094_v0  ;;  %13762 = vst [vmem:[#allocation192_spill] sm:$0xff] %v10110_v32  ;;  %v10116_v0 = vpop.permute.xlu0 %4996 }
 0x23e   : > { %v10101_v1 = vpop.f32.mrf.mxu0  ;;  %13764 = vst [vmem:[#allocation194_spill] sm:$0xff] %v10116_v0 }
 0x23f   : > { %13760 = vst [vmem:[#allocation190_spill] sm:$0xff] %v10101_v1 }
 0x240   : > { %v10106_v44 = vpop.f32.mrf.mxu0 }
 0x241   : > { %13761 = vst [vmem:[#allocation191_spill] sm:$0xff] %v10106_v44  ;;  %v7396_v44 = vld [vmem:[%s13191_s2 + $0x320] ss:$16 sps:$4 sm:$0xff]   ;;  %v10138_v32 = vpop.permute.xlu0 %1312 }
 0x242   : > { %v10112_v45 = vpop.f32.mrf.mxu0  ;;  %13769 = vst [vmem:[#allocation199_spill] sm:$0xff] %v10138_v32 }
 0x243   : > { %v10108_v9 = vpop.f32.mrf.mxu1  ;;  %4005 = vmatmul.mubr.bf16.gmra.mxu1 %v7393_v40  ;;  %13763 = vst [vmem:[#allocation193_spill] sm:$0xff] %v10112_v45  ;;  %v7397_v40 = vld [vmem:[%s13191_s2 + $0x344] ss:$16 sps:$4 sm:$0xff]   ;;  %v10132_v45 = vpop.permute.xlu1 %5001 }
 0x244   : > { %4014 = vmatprep.mubr.bf16.mxu1 %v7394_v37  ;;  %v10118_v22 = vpop.f32.mrf.mxu0  ;;  %13767 = vst [vmem:[#allocation197_spill] sm:$0xff] %v10132_v45  ;;  %v7399_v45 = vld [vmem:[%s13191_s2 + $0x340] ss:$16 sps:$4 sm:$0xff]  }
 0x245   : > { %v10114_v34 = vpop.f32.mrf.mxu1  ;;  %13765 = vst [vmem:[#allocation195_spill] sm:$0xff] %v10118_v22  ;;  %v10160_v32 = vpop.permute.xlu0 %4826 }
 0x246   : > { %v10125_v31 = vpop.f32.mrf.mxu0  ;;  %13774 = vst [vmem:[#allocation204_spill] sm:$0xff] %v10160_v32 }
 0x247   : > { %v10120_v1 = vpop.f32.mrf.mxu1  ;;  %13766 = vst [vmem:[#allocation196_spill] sm:$0xff] %v10125_v31  ;;  %v10148_v53 = vpop.permute.xlu1 %1317 }
 0x248   : > { %v10134_v37 = vpop.f32.mrf.mxu0  ;;  %13772 = vst [vmem:[#allocation202_spill] sm:$0xff] %v10148_v53 }
 0x249   : > { %v10127_v2 = vpop.f32.mrf.mxu1  ;;  %13768 = vst [vmem:[#allocation198_spill] sm:$0xff] %v10134_v37  ;;  %v10176_v4 = vpop.permute.xlu0 %4986 }
 0x24a   : > { %v10140_v22 = vpop.f32.mrf.mxu0  ;;  %13779 = vst [vmem:[#allocation209_spill] sm:$0xff] %v10176_v4 }
 0x24b   : > { %v10136_v0 = vpop.f32.mrf.mxu1  ;;  %4015 = vmatmul.mubr.bf16.gmra.mxu1 %v7396_v44  ;;  %13770 = vst [vmem:[#allocation200_spill] sm:$0xff] %v10140_v22  ;;  %v7400_v44 = vld [vmem:[%s13191_s2 + $0x364] ss:$16 sps:$4 sm:$0xff]   ;;  %v10170_v41 = vpop.permute.xlu1 %4831 }
 0x24c   : > { %4024 = vmatprep.mubr.bf16.mxu1 %v7397_v40  ;;  %v10144_v31 = vpop.f32.mrf.mxu0  ;;  %13777 = vst [vmem:[#allocation207_spill] sm:$0xff] %v10170_v41 }
 0x24d   : > { %v10142_v3 = vpop.f32.mrf.mxu1  ;;  %13771 = vst [vmem:[#allocation201_spill] sm:$0xff] %v10144_v31  ;;  %v10198_v14 = vpop.permute.xlu0 %1302 }
 0x24e   : > { %v10153_v37 = vpop.f32.mrf.mxu0  ;;  %13784 = vst [vmem:[#allocation214_spill] sm:$0xff] %v10198_v14 }
 0x24f   : > { %v10146_v48 = vpop.f32.mrf.mxu1  ;;  %13773 = vst [vmem:[#allocation203_spill] sm:$0xff] %v10153_v37 }
 0x250   : > { %v10162_v40 = vpop.f32.mrf.mxu0 }
 0x251   : > { %v10155_v28 = vpop.f32.mrf.mxu1  ;;  %13775 = vst [vmem:[#allocation205_spill] sm:$0xff] %v10162_v40  ;;  %v7402_v40 = vld [vmem:[%s13191_s2 + $0x360] ss:$16 sps:$4 sm:$0xff]  }
 0x252   : > { %v10166_v53 = vpop.f32.mrf.mxu0 }
 0x253   : > { %v10164_v22 = vpop.f32.mrf.mxu1  ;;  %4025 = vmatmul.mubr.bf16.gmra.mxu1 %v7399_v45  ;;  %13776 = vst [vmem:[#allocation206_spill] sm:$0xff] %v10166_v53 }
 0x254   : > { %4034 = vmatprep.mubr.bf16.mxu1 %v7400_v44  ;;  %v10172_v37 = vpop.f32.mrf.mxu0  ;;  %v7405_v44 = vld [vmem:[%s13191_s2 + $0x384] ss:$16 sps:$4 sm:$0xff]  }
 0x255   : > { %v10168_v31 = vpop.f32.mrf.mxu1  ;;  %13778 = vst [vmem:[#allocation208_spill] sm:$0xff] %v10172_v37  ;;  %v10192_v37 = vpop.permute.xlu1 %4991 }
 0x256   : > { %v10181_v32 = vpop.f32.mrf.mxu0  ;;  %13782 = vst [vmem:[#allocation212_spill] sm:$0xff] %v10192_v37 }
 0x257   : > { %v10174_v5 = vpop.f32.mrf.mxu1  ;;  %13780 = vst [vmem:[#allocation210_spill] sm:$0xff] %v10181_v32 }
 0x258   : > { %v10188_v53 = vpop.f32.mrf.mxu0 }
 0x259   : > { %v10183_v45 = vpop.f32.mrf.mxu1  ;;  %13781 = vst [vmem:[#allocation211_spill] sm:$0xff] %v10188_v53  ;;  %v7403_v53 = vld [vmem:[%s13191_s2 + $0x380] ss:$16 sps:$4 sm:$0xff]   ;;  %v10214_v37 = vpop.permute.xlu1 %1307 }
 0x25a   : > { %v10194_v4 = vpop.f32.mrf.mxu0  ;;  %13787 = vst [vmem:[#allocation217_spill] sm:$0xff] %v10214_v37  ;;  %v7406_v37 = vld [vmem:[%s13191_s2 + $0x3a0] ss:$16 sps:$4 sm:$0xff]  }
 0x25b   : > { %v10190_v41 = vpop.f32.mrf.mxu1  ;;  %4035 = vmatmul.mubr.bf16.gmra.mxu1 %v7402_v40  ;;  %13783 = vst [vmem:[#allocation213_spill] sm:$0xff] %v10194_v4  ;;  %v7408_v40 = vld [vmem:[%s13191_s2 + $0x3a4] ss:$16 sps:$4 sm:$0xff]  }
 0x25c   : > { %4044 = vmatprep.mubr.bf16.mxu1 %v7405_v44  ;;  %v10200_v32 = vpop.f32.mrf.mxu0 }
 0x25d   : > { %v10196_v30 = vpop.f32.mrf.mxu1  ;;  %13785 = vst [vmem:[#allocation215_spill] sm:$0xff] %v10200_v32  ;;  %v10220_v32 = vpop.permute.xlu0 %4816 }
 0x25e   : > { %v10207_v13 = vpop.f32.mrf.mxu0  ;;  %13789 = vst [vmem:[#allocation219_spill] sm:$0xff] %v10220_v32  ;;  %v10230_v7 = vpop.permute.xlu1 %4821 }
 0x25f   : > { %v10202_v59 = vpop.f32.mrf.mxu1  ;;  %13786 = vst [vmem:[#allocation216_spill] sm:$0xff] %v10207_v13  ;;  %13792 = vst [vmem:[#allocation222_spill] sm:$0xff] %v10230_v7 }
 0x260   : > { %v10216_v44 = vpop.f32.mrf.mxu0 }
 0x261   : > { %v10209_v8 = vpop.f32.mrf.mxu1  ;;  %13788 = vst [vmem:[#allocation218_spill] sm:$0xff] %v10216_v44 }
 0x262   : > { %v10222_v4 = vpop.f32.mrf.mxu0  ;;  %v10252_v63 = vpop.permute.xlu1 %4981 }
 0x263   : > { %v10218_v14 = vpop.f32.mrf.mxu1  ;;  %4045 = vmatmul.mubr.bf16.gmra.mxu1 %v7403_v53  ;;  %13790 = vst [vmem:[#allocation220_spill] sm:$0xff] %v10222_v4  ;;  %v7411_v53 = vld [vmem:[%s13191_s2 + $0x3c4] ss:$16 sps:$4 sm:$0xff]   ;;  %v10242_v4 = vpop.permute.xlu0 %4976  ;;  %13797 = vst [vmem:[#allocation227_spill] sm:$0xff] %v10252_v63 }
 0x264   : > { %4054 = vmatprep.mubr.bf16.mxu1 %v7408_v40  ;;  %13794 = vst [vmem:[#allocation224_spill] sm:$0xff] %v10242_v4  ;;  %v7409_v4 = vld [vmem:[%s13191_s2 + $0x3c0] ss:$16 sps:$4 sm:$0xff]  }
 0x265   : > { %v10224_v55 = vpop.f32.mrf.mxu1  ;;  %v10226_v13 = vpop.f32.mrf.mxu0 }
 0x266   : > { %13791 = vst [vmem:[#allocation221_spill] sm:$0xff] %v10226_v13 }
 0x267   : > { %v10228_v58 = vpop.f32.mrf.mxu1  ;;  %v10235_v44 = vpop.f32.mrf.mxu0 }
 0x268   : > { %13793 = vst [vmem:[#allocation223_spill] sm:$0xff] %v10235_v44  ;;  %v10261_v11 = vpop.permute.xlu0 %1292 }
 0x269   : > { %v10237_v17 = vpop.f32.mrf.mxu1  ;;  %v10244_v40 = vpop.f32.mrf.mxu0  ;;  %13799 = vst [vmem:[#allocation229_spill] sm:$0xff] %v10261_v11 }
 0x26a   : > { %13795 = vst [vmem:[#allocation225_spill] sm:$0xff] %v10244_v40 }
 0x26b   : > { %v10246_v13 = vpop.f32.mrf.mxu1  ;;  %4055 = vmatmul.mubr.bf16.gmra.mxu1 %v7406_v37  ;;  %v10248_v7 = vpop.f32.mrf.mxu0  ;;  %v7414_v37 = vld [vmem:[%s13191_s2 + $0x3e4] ss:$16 sps:$4 sm:$0xff]  }
 0x26c   : > { %13796 = vst [vmem:[#allocation226_spill] sm:$0xff] %v10248_v7  ;;  %4064 = vmatprep.mubr.bf16.mxu1 %v7411_v53  ;;  %v10280_v11 = vpop.permute.xlu0 %4806 }
 0x26d   : > { %v10250_v32 = vpop.f32.mrf.mxu1  ;;  %v10254_v44 = vpop.f32.mrf.mxu0  ;;  %13804 = vst [vmem:[#allocation234_spill] sm:$0xff] %v10280_v11 }
 0x26e   : > { %13798 = vst [vmem:[#allocation228_spill] sm:$0xff] %v10254_v44  ;;  %v10274_v44 = vpop.permute.xlu1 %1297 }
 0x26f   : > { %v10256_v33 = vpop.f32.mrf.mxu1  ;;  %v10263_v40 = vpop.f32.mrf.mxu0  ;;  %13802 = vst [vmem:[#allocation232_spill] sm:$0xff] %v10274_v44 }
 0x270   : > { %13800 = vst [vmem:[#allocation230_spill] sm:$0xff] %v10263_v40 }
 0x271   : > { %v10268_v53 = vpop.f32.mrf.mxu1  ;;  %v10270_v7 = vpop.f32.mrf.mxu0 }
 0x272   : > { %13801 = vst [vmem:[#allocation231_spill] sm:$0xff] %v10270_v7  ;;  %v7412_v7 = vld [vmem:[%s13191_s2 + $0x3e0] ss:$16 sps:$4 sm:$0xff]  }
 0x273   : > { %v10272_v63 = vpop.f32.mrf.mxu1  ;;  %4065 = vmatmul.mubr.bf16.gmra.mxu1 %v7409_v4  ;;  %v10276_v29 = vpop.f32.mrf.mxu0  ;;  %v7417_v4 = vld [vmem:[%s13191_s2 + $0xc] ss:$16 sps:$4 sm:$0xff]  }
 0x274   : > { %13803 = vst [vmem:[#allocation233_spill] sm:$0xff] %v10276_v29  ;;  %4074 = vmatprep.mubr.bf16.mxu1 %v7414_v37  ;;  %v10296_v37 = vpop.permute.xlu1 %4811 }
 0x275   : > { %v10278_v35 = vpop.f32.mrf.mxu1  ;;  %v10282_v40 = vpop.f32.mrf.mxu0  ;;  %13807 = vst [vmem:[#allocation237_spill] sm:$0xff] %v10296_v37  ;;  %v7415_v37 = vld [vmem:[%s13191_s2 + $0x8] ss:$16 sps:$4 sm:$0xff]  }
 0x276   : > { %13805 = vst [vmem:[#allocation235_spill] sm:$0xff] %v10282_v40  ;;  %v10302_v40 = vpop.permute.xlu0 %4966 }
 0x277   : > { %v10284_v56 = vpop.f32.mrf.mxu1  ;;  %v10289_v39 = vpop.f32.mrf.mxu0  ;;  %13809 = vst [vmem:[#allocation239_spill] sm:$0xff] %v10302_v40 }
 0x278   : > { %13806 = vst [vmem:[#allocation236_spill] sm:$0xff] %v10289_v39  ;;  %v10315_v57 = vpop.permute.xlu1 %4971 }
 0x279   : > { %v10294_v44 = vpop.f32.mrf.mxu1  ;;  %v10298_v29 = vpop.f32.mrf.mxu0  ;;  %13812 = vst [vmem:[#allocation242_spill] sm:$0xff] %v10315_v57 }
 0x27a   : > { %13808 = vst [vmem:[#allocation238_spill] sm:$0xff] %v10298_v29 }
 0x27b   : > { %v10300_v11 = vpop.f32.mrf.mxu1  ;;  %4075 = vmatmul.mubr.bf16.gmra.mxu1 %v7412_v7  ;;  %v10304_v6 = vpop.f32.mrf.mxu0  ;;  %v7420_v7 = vld [vmem:[%s13191_s2 + $0x2c] ss:$16 sps:$4 sm:$0xff]  }
 0x27c   : > { %13810 = vst [vmem:[#allocation240_spill] sm:$0xff] %v10304_v6  ;;  %4117 = vmatprep.mubr.bf16.mxu1 %v7417_v4  ;;  %v10324_v4 = vpop.permute.xlu0 %1282  ;;  %v10334_v57 = vpop.permute.xlu1 %1287 }
 0x27d   : > { %v10306_v46 = vpop.f32.mrf.mxu1  ;;  %v10308_v39 = vpop.f32.mrf.mxu0  ;;  %13814 = vst [vmem:[#allocation244_spill] sm:$0xff] %v10324_v4  ;;  %13817 = vst [vmem:[#allocation247_spill] sm:$0xff] %v10334_v57  ;;  %v7418_v4 = vld [vmem:[%s13191_s2 + $0x28] ss:$16 sps:$4 sm:$0xff]  }
 0x27e   : > { %13811 = vst [vmem:[#allocation241_spill] sm:$0xff] %v10308_v39 }
 0x27f   : > { %v10310_v26 = vpop.f32.mrf.mxu1  ;;  %v10317_v29 = vpop.f32.mrf.mxu0 }
 0x280   : > { %13813 = vst [vmem:[#allocation243_spill] sm:$0xff] %v10317_v29  ;;  %v10343_v52 = vpop.permute.xlu0 %4796 }
 0x281   : > { %v10322_v40 = vpop.f32.mrf.mxu1  ;;  %v10326_v6 = vpop.f32.mrf.mxu0  ;;  %13819 = vst [vmem:[#allocation249_spill] sm:$0xff] %v10343_v52 }
 0x282   : > { %13815 = vst [vmem:[#allocation245_spill] sm:$0xff] %v10326_v6 }
 0x283   : > { %v10328_v39 = vpop.f32.mrf.mxu1  ;;  %4118 = vmatmul.mubr.bf16.vlgmr.msra.gmra.mxu1 %v7415_v37  ;;  %v10330_v24 = vpop.f32.mrf.mxu0  ;;  %v7423_v37 = vld [vmem:[%s13191_s2 + $0x4c] ss:$16 sps:$4 sm:$0xff]  }
 0x284   : > { %13816 = vst [vmem:[#allocation246_spill] sm:$0xff] %v10330_v24  ;;  %4127 = vmatprep.mubr.bf16.mxu1 %v7420_v7  ;;  %v10362_v52 = vpop.permute.xlu0 %4956 }
 0x285   : > { %v10332_v38 = vpop.f32.mrf.mxu1  ;;  %v10336_v29 = vpop.f32.mrf.mxu0  ;;  %13826 = vst [vmem:[#allocation256_spill] sm:$0xff] %v10362_v52 }
 0x286   : > { %13818 = vst [vmem:[#allocation248_spill] sm:$0xff] %v10336_v29  ;;  %v10356_v29 = vpop.permute.xlu1 %4801 }
 0x287   : > { %v10338_v51 = vpop.f32.mrf.mxu1  ;;  %v10345_v6 = vpop.f32.mrf.mxu0  ;;  %13823 = vst [vmem:[#allocation253_spill] sm:$0xff] %v10356_v29 }
 0x288   : > { %13820 = vst [vmem:[#allocation250_spill] sm:$0xff] %v10345_v6 }
 0x289   : > { %v10350_v7 = vpop.f32.mrf.mxu1  ;;  %v10352_v24 = vpop.f32.mrf.mxu0 }
 0x28a   : > { %13821 = vst [vmem:[#allocation251_spill] sm:$0xff] %v10352_v24  ;;  %v7421_v24 = vld [vmem:[%s13191_s2 + $0x48] ss:$16 sps:$4 sm:$0xff]  }
 0x28b   : > { %v10354_v57 = vpop.f32.mrf.mxu1  ;;  %4128 = vmatmul.mubr.bf16.gmra.mxu1 %v7418_v4  ;;  %v10358_v25 = vpop.f32.mrf.mxu0  ;;  %v7426_v4 = vld [vmem:[%s13191_s2 + $0x6c] ss:$16 sps:$4 sm:$0xff]  }
 0x28c   : > { %13822 = vst [vmem:[#allocation252_spill] sm:$0xff] %v10354_v57  ;;  %13824 = vst [vmem:[#allocation254_spill] sm:$0xff] %v10358_v25  ;;  %4137 = vmatprep.mubr.bf16.mxu1 %v7423_v37  ;;  %v10378_v37 = vpop.permute.xlu1 %4961 }
 0x28d   : > { %v10360_v62 = vpop.f32.mrf.mxu1  ;;  %v10364_v6 = vpop.f32.mrf.mxu0  ;;  %13831 = vst [vmem:[#allocation261_spill] sm:$0xff] %v10378_v37 }
 0x28e   : > { %13825 = vst [vmem:[#allocation255_spill] sm:$0xff] %v10360_v62  ;;  %13827 = vst [vmem:[#allocation257_spill] sm:$0xff] %v10364_v6  ;;  %v1273_v6 = vpop.permute.xlu0 %1272 }
 0x28f   : > { %v10366_v12 = vpop.f32.mrf.mxu1  ;;  %v10371_v16 = vpop.f32.mrf.mxu0 }
 0x290   : > { %13828 = vst [vmem:[#allocation258_spill] sm:$0xff] %v10366_v12  ;;  %13829 = vst [vmem:[#allocation259_spill] sm:$0xff] %v10371_v16  ;;  %v10395_v37 = vpop.permute.xlu1 %1277 }
 0x291   : > { %v10376_v25 = vpop.f32.mrf.mxu1  ;;  %v10380_v29 = vpop.f32.mrf.mxu0  ;;  %13838 = vst [vmem:[#allocation268_spill] sm:$0xff] %v10395_v37 }
 0x292   : > { %13830 = vst [vmem:[#allocation260_spill] sm:$0xff] %v10376_v25  ;;  %13832 = vst [vmem:[#allocation262_spill] sm:$0xff] %v10380_v29  ;;  %v7424_v25 = vld [vmem:[%s13191_s2 + $0x68] ss:$16 sps:$4 sm:$0xff]  }
 0x293   : > { %v10382_v52 = vpop.f32.mrf.mxu1  ;;  %4138 = vmatmul.mubr.bf16.gmra.mxu1 %v7421_v24  ;;  %v10384_v61 = vpop.f32.mrf.mxu0  ;;  %v7429_v24 = vld [vmem:[%s13191_s2 + $0x8c] ss:$16 sps:$4 sm:$0xff]  }
 0x294   : > { %13833 = vst [vmem:[#allocation263_spill] sm:$0xff] %v10382_v52  ;;  %13834 = vst [vmem:[#allocation264_spill] sm:$0xff] %v10384_v61  ;;  %4147 = vmatprep.mubr.bf16.mxu1 %v7426_v4  ;;  %v10404_v4 = vpop.permute.xlu0 %4786  ;;  %v10414_v37 = vpop.permute.xlu1 %4791 }
 0x295   : > { %v10386_v15 = vpop.f32.mrf.mxu1  ;;  %v10388_v16 = vpop.f32.mrf.mxu0  ;;  %13841 = vst [vmem:[#allocation271_spill] sm:$0xff] %v10404_v4  ;;  %13846 = vst [vmem:[#allocation276_spill] sm:$0xff] %v10414_v37  ;;  %v7427_v4 = vld [vmem:[%s13191_s2 + $0x88] ss:$16 sps:$4 sm:$0xff]  }
 0x296   : > { %13835 = vst [vmem:[#allocation265_spill] sm:$0xff] %v10386_v15  ;;  %13836 = vst [vmem:[#allocation266_spill] sm:$0xff] %v10388_v16 }
 0x297   : > { %v10390_v27 = vpop.f32.mrf.mxu1  ;;  %v10397_v29 = vpop.f32.mrf.mxu0 }
 0x298   : > { %13837 = vst [vmem:[#allocation267_spill] sm:$0xff] %v10390_v27  ;;  %13839 = vst [vmem:[#allocation269_spill] sm:$0xff] %v10397_v29 }
 0x299   : > { %v10402_v61 = vpop.f32.mrf.mxu1  ;;  %v10406_v15 = vpop.f32.mrf.mxu0 }
 0x29a   : > { %13840 = vst [vmem:[#allocation270_spill] sm:$0xff] %v10402_v61  ;;  %13842 = vst [vmem:[#allocation272_spill] sm:$0xff] %v10406_v15  ;;  %v10423_v61 = vpop.permute.xlu0 %4946 }
 0x29b   : > { %v10408_v16 = vpop.f32.mrf.mxu1  ;;  %4148 = vmatmul.mubr.bf16.gmra.mxu1 %v7424_v25  ;;  %v10410_v27 = vpop.f32.mrf.mxu0  ;;  %13849 = vst [vmem:[#allocation279_spill] sm:$0xff] %v10423_v61  ;;  %v7432_v25 = vld [vmem:[%s13191_s2 + $0xac] ss:$16 sps:$4 sm:$0xff]  }
 0x29c   : > { %13843 = vst [vmem:[#allocation273_spill] sm:$0xff] %v10408_v16  ;;  %13844 = vst [vmem:[#allocation274_spill] sm:$0xff] %v10410_v27  ;;  %4157 = vmatprep.mubr.bf16.mxu1 %v7429_v24 }
 0x29d   : > { %v10412_v52 = vpop.f32.mrf.mxu1  ;;  %v10416_v29 = vpop.f32.mrf.mxu0 }
 0x29e   : > { %13845 = vst [vmem:[#allocation275_spill] sm:$0xff] %v10412_v52  ;;  %13847 = vst [vmem:[#allocation277_spill] sm:$0xff] %v10416_v29  ;;  %v10436_v29 = vpop.permute.xlu1 %4951  ;;  %v1263_v61 = vpop.permute.xlu0 %1262 }
 0x29f   : > { %v10418_v12 = vpop.f32.mrf.mxu1  ;;  %v10425_v15 = vpop.f32.mrf.mxu0  ;;  %13854 = vst [vmem:[#allocation284_spill] sm:$0xff] %v10436_v29 }
 0x2a0   : > { %13848 = vst [vmem:[#allocation278_spill] sm:$0xff] %v10418_v12  ;;  %13850 = vst [vmem:[#allocation280_spill] sm:$0xff] %v10425_v15 }
 0x2a1   : > { %v10430_v24 = vpop.f32.mrf.mxu1  ;;  %v10432_v27 = vpop.f32.mrf.mxu0 }
 0x2a2   : > { %13851 = vst [vmem:[#allocation281_spill] sm:$0xff] %v10430_v24  ;;  %13852 = vst [vmem:[#allocation282_spill] sm:$0xff] %v10432_v27  ;;  %v7430_v27 = vld [vmem:[%s13191_s2 + $0xa8] ss:$16 sps:$4 sm:$0xff]  }
 0x2a3   : > { %v10434_v37 = vpop.f32.mrf.mxu1  ;;  %4158 = vmatmul.mubr.bf16.gmra.mxu1 %v7427_v4  ;;  %v10438_v52 = vpop.f32.mrf.mxu0  ;;  %v7435_v4 = vld [vmem:[%s13191_s2 + $0xcc] ss:$16 sps:$4 sm:$0xff]  }
 0x2a4   : > { %13853 = vst [vmem:[#allocation283_spill] sm:$0xff] %v10434_v37  ;;  %13855 = vst [vmem:[#allocation285_spill] sm:$0xff] %v10438_v52  ;;  %4167 = vmatprep.mubr.bf16.mxu1 %v7432_v25  ;;  %v10456_v52 = vpop.permute.xlu1 %1267 }
 0x2a5   : > { %v10440_v12 = vpop.f32.mrf.mxu1  ;;  %v2447_v15 = vpop.f32.mrf.mxu0  ;;  %13860 = vst [vmem:[#allocation290_spill] sm:$0xff] %v10456_v52 }
 0x2a6   : > { %13856 = vst [vmem:[#allocation286_spill] sm:$0xff] %v10440_v12  ;;  %v10442_v16 = vadd.f32 %v2447_v15, %v1263_v61 }
 0x2a7   : > { %v10444_v62 = vpop.f32.mrf.mxu1  ;;  %v2449_v24 = vpop.f32.mrf.mxu0 }
 0x2a8   : > { %13857 = vst [vmem:[#allocation287_spill] sm:$0xff] %v10442_v16  ;;  %13858 = vst [vmem:[#allocation288_spill] sm:$0xff] %v10444_v62  ;;  %v10452_v29 = vadd.f32 %v2449_v24, %v1263_v61  ;;  %v7433_v24 = vld [vmem:[%s13191_s2 + $0xc8] ss:$16 sps:$4 sm:$0xff]  }
 0x2a9   : > { %v10454_v25 = vpop.f32.mrf.mxu1  ;;  %v2451_v12 = vpop.f32.mrf.mxu0 }
 0x2aa   : > { %13859 = vst [vmem:[#allocation289_spill] sm:$0xff] %v10452_v29  ;;  %v10459_v15 = vadd.f32 %v2451_v12, %v10456_v52  ;;  %v7438_v12 = vld [vmem:[%s13191_s2 + $0xec] ss:$16 sps:$4 sm:$0xff]  }
 0x2ab   : > { %v10461_v16 = vpop.f32.mrf.mxu1  ;;  %4168 = vmatmul.mubr.bf16.gmra.mxu1 %v7430_v27  ;;  %v10463_v62 = vpop.f32.mrf.mxu0  ;;  %v7441_v52 = vld [vmem:[%s13191_s2 + $0x10c] ss:$16 sps:$4 sm:$0xff]  }
 0x2ac   : > { %13861 = vst [vmem:[#allocation291_spill] sm:$0xff] %v10459_v15  ;;  %13862 = vst [vmem:[#allocation292_spill] sm:$0xff] %v10463_v62  ;;  %4177 = vmatprep.mubr.bf16.mxu1 %v7435_v4  ;;  %v7436_v62 = vld [vmem:[%s13191_s2 + $0xe8] ss:$16 sps:$4 sm:$0xff]  }
 0x2ad   : > { %v10465_v37 = vpop.f32.mrf.mxu1  ;;  %v2457_v57 = vpop.f32.mrf.mxu0 }
 0x2ae   : > { %v10467_v42 = vadd.f32 %v2457_v57, %v1273_v6 }
 0x2af   : > { %v10469_v61 = vpop.f32.mrf.mxu1  ;;  %v2459_v29 = vpop.f32.mrf.mxu0 }
 0x2b0   : > { %13863 = vst [vmem:[#allocation293_spill] sm:$0xff] %v10467_v42  ;;  %v10477_v27 = vadd.f32 %v2459_v29, %v1273_v6 }
 0x2b1   : > { %v10479_v15 = vpop.f32.mrf.mxu1 }
 0x2b2   : > { %13864 = vst [vmem:[#allocation294_spill] sm:$0xff] %v10477_v27  ;;  %13865 = vst [vmem:[#allocation295_spill] sm:$0xff] %v10479_v15  ;;  %v7439_v27 = vld [vmem:[%s13191_s2 + $0x108] ss:$16 sps:$4 sm:$0xff]  }
 0x2b3   : > { %v10481_v4 = vpop.f32.mrf.mxu1  ;;  %4178 = vmatmul.mubr.bf16.gmra.mxu1 %v7433_v24 }
 0x2b4   : > { %13866 = vst [vmem:[#allocation296_spill] sm:$0xff] %v10481_v4  ;;  %4187 = vmatprep.mubr.bf16.mxu1 %v7438_v12 }
 0x2b5   : > { %v10483_v57 = vpop.f32.mrf.mxu1 }
 0x2b6   : > { %13867 = vst [vmem:[#allocation297_spill] sm:$0xff] %v10483_v57  ;;  %v7444_v57 = vld [vmem:[%s13191_s2 + $0x12c] ss:$16 sps:$4 sm:$0xff]  }
 0x2b7   : > { %v10485_v42 = vpop.f32.mrf.mxu1 }
 0x2b8   : > { %13868 = vst [vmem:[#allocation298_spill] sm:$0xff] %v10485_v42 }
 0x2b9   : > { %v10493_v29 = vpop.f32.mrf.mxu1 }
 0x2ba   : > { %13869 = vst [vmem:[#allocation299_spill] sm:$0xff] %v10493_v29 }
 0x2bb   : > { %v10495_v6 = vpop.f32.mrf.mxu1  ;;  %4188 = vmatmul.mubr.bf16.gmra.mxu1 %v7436_v62 }
 0x2bc   : > { %13870 = vst [vmem:[#allocation300_spill] sm:$0xff] %v10495_v6  ;;  %4197 = vmatprep.mubr.bf16.mxu1 %v7441_v52 }
 0x2bd   : > { %v10497_v24 = vpop.f32.mrf.mxu1 }
 0x2be   : > { %13871 = vst [vmem:[#allocation301_spill] sm:$0xff] %v10497_v24  ;;  %v7442_v24 = vld [vmem:[%s13191_s2 + $0x128] ss:$16 sps:$4 sm:$0xff]  }
 0x2bf   : > { %v10499_v12 = vpop.f32.mrf.mxu1 }
 0x2c0   : > { %13872 = vst [vmem:[#allocation302_spill] sm:$0xff] %v10499_v12  ;;  %v7447_v12 = vld [vmem:[%s13191_s2 + $0x14c] ss:$16 sps:$4 sm:$0xff]  }
 0x2c1   : > { %v10507_v42 = vpop.f32.mrf.mxu1 }
 0x2c2   : > { %13873 = vst [vmem:[#allocation303_spill] sm:$0xff] %v10507_v42 }
 0x2c3   : > { %v10509_v4 = vpop.f32.mrf.mxu1  ;;  %4198 = vmatmul.mubr.bf16.gmra.mxu1 %v7439_v27 }
 0x2c4   : > { %13874 = vst [vmem:[#allocation304_spill] sm:$0xff] %v10509_v4  ;;  %4207 = vmatprep.mubr.bf16.mxu1 %v7444_v57 }
 0x2c5   : > { %v10511_v62 = vpop.f32.mrf.mxu1 }
 0x2c6   : > { %13875 = vst [vmem:[#allocation305_spill] sm:$0xff] %v10511_v62  ;;  %v7450_v62 = vld [vmem:[%s13191_s2 + $0x16c] ss:$16 sps:$4 sm:$0xff]  }
 0x2c7   : > { %v10513_v52 = vpop.f32.mrf.mxu1 }
 0x2c8   : > { %13876 = vst [vmem:[#allocation306_spill] sm:$0xff] %v10513_v52  ;;  %v7445_v52 = vld [vmem:[%s13191_s2 + $0x148] ss:$16 sps:$4 sm:$0xff]  }
 0x2c9   : > { %v10521_v6 = vpop.f32.mrf.mxu1 }
 0x2ca   : > { %13877 = vst [vmem:[#allocation307_spill] sm:$0xff] %v10521_v6 }
 0x2cb   : > { %v10523_v29 = vpop.f32.mrf.mxu1  ;;  %4208 = vmatmul.mubr.bf16.gmra.mxu1 %v7442_v24 }
 0x2cc   : > { %13878 = vst [vmem:[#allocation308_spill] sm:$0xff] %v10523_v29  ;;  %4217 = vmatprep.mubr.bf16.mxu1 %v7447_v12 }
 0x2cd   : > { %v10525_v27 = vpop.f32.mrf.mxu1 }
 0x2ce   : > { %13879 = vst [vmem:[#allocation309_spill] sm:$0xff] %v10525_v27  ;;  %v7453_v27 = vld [vmem:[%s13191_s2 + $0x18c] ss:$16 sps:$4 sm:$0xff]  }
 0x2cf   : > { %v10527_v57 = vpop.f32.mrf.mxu1 }
 0x2d0   : > { %13880 = vst [vmem:[#allocation310_spill] sm:$0xff] %v10527_v57  ;;  %v7448_v57 = vld [vmem:[%s13191_s2 + $0x168] ss:$16 sps:$4 sm:$0xff]  }
 0x2d1   : > { %v10535_v4 = vpop.f32.mrf.mxu1 }
 0x2d2   : > { %13881 = vst [vmem:[#allocation311_spill] sm:$0xff] %v10535_v4 }
 0x2d3   : > { %v10537_v42 = vpop.f32.mrf.mxu1  ;;  %4218 = vmatmul.mubr.bf16.gmra.mxu1 %v7445_v52 }
 0x2d4   : > { %13882 = vst [vmem:[#allocation312_spill] sm:$0xff] %v10537_v42  ;;  %4227 = vmatprep.mubr.bf16.mxu1 %v7450_v62 }
 0x2d5   : > { %v10539_v24 = vpop.f32.mrf.mxu1 }
 0x2d6   : > { %13883 = vst [vmem:[#allocation313_spill] sm:$0xff] %v10539_v24  ;;  %v7451_v24 = vld [vmem:[%s13191_s2 + $0x188] ss:$16 sps:$4 sm:$0xff]  }
 0x2d7   : > { %v10541_v12 = vpop.f32.mrf.mxu1 }
 0x2d8   : > { %13884 = vst [vmem:[#allocation314_spill] sm:$0xff] %v10541_v12  ;;  %v7456_v12 = vld [vmem:[%s13191_s2 + $0x1ac] ss:$16 sps:$4 sm:$0xff]  }
 0x2d9   : > { %v10549_v29 = vpop.f32.mrf.mxu1 }
 0x2da   : > { %13885 = vst [vmem:[#allocation315_spill] sm:$0xff] %v10549_v29 }
 0x2db   : > { %v10551_v6 = vpop.f32.mrf.mxu1  ;;  %4228 = vmatmul.mubr.bf16.gmra.mxu1 %v7448_v57 }
 0x2dc   : > { %13886 = vst [vmem:[#allocation316_spill] sm:$0xff] %v10551_v6  ;;  %4237 = vmatprep.mubr.bf16.mxu1 %v7453_v27 }
 0x2dd   : > { %v10553_v52 = vpop.f32.mrf.mxu1 }
 0x2de   : > { %13887 = vst [vmem:[#allocation317_spill] sm:$0xff] %v10553_v52  ;;  %v7454_v52 = vld [vmem:[%s13191_s2 + $0x1a8] ss:$16 sps:$4 sm:$0xff]  }
 0x2df   : > { %v10555_v62 = vpop.f32.mrf.mxu1 }
 0x2e0   : > { %13888 = vst [vmem:[#allocation318_spill] sm:$0xff] %v10555_v62  ;;  %v7459_v62 = vld [vmem:[%s13191_s2 + $0x1cc] ss:$16 sps:$4 sm:$0xff]  }
 0x2e1   : > { %v10563_v42 = vpop.f32.mrf.mxu1 }
 0x2e2   : > { %13889 = vst [vmem:[#allocation319_spill] sm:$0xff] %v10563_v42 }
 0x2e3   : > { %v10565_v4 = vpop.f32.mrf.mxu1  ;;  %4238 = vmatmul.mubr.bf16.gmra.mxu1 %v7451_v24 }
 0x2e4   : > { %13890 = vst [vmem:[#allocation320_spill] sm:$0xff] %v10565_v4  ;;  %4247 = vmatprep.mubr.bf16.mxu1 %v7456_v12 }
 0x2e5   : > { %v10567_v57 = vpop.f32.mrf.mxu1 }
 0x2e6   : > { %13891 = vst [vmem:[#allocation321_spill] sm:$0xff] %v10567_v57  ;;  %v7457_v57 = vld [vmem:[%s13191_s2 + $0x1c8] ss:$16 sps:$4 sm:$0xff]  }
 0x2e7   : > { %v10569_v27 = vpop.f32.mrf.mxu1 }
 0x2e8   : > { %13892 = vst [vmem:[#allocation322_spill] sm:$0xff] %v10569_v27  ;;  %v7462_v27 = vld [vmem:[%s13191_s2 + $0x1ec] ss:$16 sps:$4 sm:$0xff]  }
 0x2e9   : > { %v10577_v6 = vpop.f32.mrf.mxu1 }
 0x2ea   : > { %13893 = vst [vmem:[#allocation323_spill] sm:$0xff] %v10577_v6 }
 0x2eb   : > { %v10579_v29 = vpop.f32.mrf.mxu1  ;;  %4248 = vmatmul.mubr.bf16.gmra.mxu1 %v7454_v52 }
 0x2ec   : > { %13894 = vst [vmem:[#allocation324_spill] sm:$0xff] %v10579_v29  ;;  %4257 = vmatprep.mubr.bf16.mxu1 %v7459_v62 }
 0x2ed   : > { %v10581_v24 = vpop.f32.mrf.mxu1 }
 0x2ee   : > { %13895 = vst [vmem:[#allocation325_spill] sm:$0xff] %v10581_v24  ;;  %v7460_v24 = vld [vmem:[%s13191_s2 + $0x1e8] ss:$16 sps:$4 sm:$0xff]  }
 0x2ef   : > { %v10583_v12 = vpop.f32.mrf.mxu1 }
 0x2f0   : > { %13896 = vst [vmem:[#allocation326_spill] sm:$0xff] %v10583_v12  ;;  %v7465_v12 = vld [vmem:[%s13191_s2 + $0x20c] ss:$16 sps:$4 sm:$0xff]  }
 0x2f1   : > { %v10591_v4 = vpop.f32.mrf.mxu1 }
 0x2f2   : > { %13897 = vst [vmem:[#allocation327_spill] sm:$0xff] %v10591_v4 }
 0x2f3   : > { %v10593_v42 = vpop.f32.mrf.mxu1  ;;  %4258 = vmatmul.mubr.bf16.gmra.mxu1 %v7457_v57 }
 0x2f4   : > { %13898 = vst [vmem:[#allocation328_spill] sm:$0xff] %v10593_v42  ;;  %4267 = vmatprep.mubr.bf16.mxu1 %v7462_v27 }
 0x2f5   : > { %v10595_v52 = vpop.f32.mrf.mxu1 }
 0x2f6   : > { %13899 = vst [vmem:[#allocation329_spill] sm:$0xff] %v10595_v52  ;;  %v7463_v52 = vld [vmem:[%s13191_s2 + $0x208] ss:$16 sps:$4 sm:$0xff]  }
 0x2f7   : > { %v10597_v62 = vpop.f32.mrf.mxu1 }
 0x2f8   : > { %13900 = vst [vmem:[#allocation330_spill] sm:$0xff] %v10597_v62  ;;  %v7468_v62 = vld [vmem:[%s13191_s2 + $0x22c] ss:$16 sps:$4 sm:$0xff]  }
 0x2f9   : > { %v10605_v29 = vpop.f32.mrf.mxu1 }
 0x2fa   : > { %13901 = vst [vmem:[#allocation331_spill] sm:$0xff] %v10605_v29 }
 0x2fb   : > { %v10607_v6 = vpop.f32.mrf.mxu1  ;;  %4268 = vmatmul.mubr.bf16.gmra.mxu1 %v7460_v24 }
 0x2fc   : > { %13902 = vst [vmem:[#allocation332_spill] sm:$0xff] %v10607_v6  ;;  %4277 = vmatprep.mubr.bf16.mxu1 %v7465_v12 }
 0x2fd   : > { %v10609_v57 = vpop.f32.mrf.mxu1 }
 0x2fe   : > { %13903 = vst [vmem:[#allocation333_spill] sm:$0xff] %v10609_v57  ;;  %v7466_v57 = vld [vmem:[%s13191_s2 + $0x228] ss:$16 sps:$4 sm:$0xff]  }
 0x2ff   : > { %v10611_v27 = vpop.f32.mrf.mxu1 }
 0x300   : > { %13904 = vst [vmem:[#allocation334_spill] sm:$0xff] %v10611_v27  ;;  %v7471_v27 = vld [vmem:[%s13191_s2 + $0x24c] ss:$16 sps:$4 sm:$0xff]  }
 0x301   : > { %v10619_v42 = vpop.f32.mrf.mxu1 }
 0x302   : > { %13905 = vst [vmem:[#allocation335_spill] sm:$0xff] %v10619_v42 }
 0x303   : > { %v10621_v4 = vpop.f32.mrf.mxu1  ;;  %4278 = vmatmul.mubr.bf16.gmra.mxu1 %v7463_v52 }
 0x304   : > { %13906 = vst [vmem:[#allocation336_spill] sm:$0xff] %v10621_v4  ;;  %4287 = vmatprep.mubr.bf16.mxu1 %v7468_v62 }
 0x305   : > { %v10623_v24 = vpop.f32.mrf.mxu1 }
 0x306   : > { %13907 = vst [vmem:[#allocation337_spill] sm:$0xff] %v10623_v24  ;;  %v7474_v24 = vld [vmem:[%s13191_s2 + $0x26c] ss:$16 sps:$4 sm:$0xff]  }
 0x307   : > { %v10625_v12 = vpop.f32.mrf.mxu1 }
 0x308   : > { %13908 = vst [vmem:[#allocation338_spill] sm:$0xff] %v10625_v12  ;;  %v7469_v12 = vld [vmem:[%s13191_s2 + $0x248] ss:$16 sps:$4 sm:$0xff]  }
 0x309   : > { %v10633_v6 = vpop.f32.mrf.mxu1 }
 0x30a   : > { %13909 = vst [vmem:[#allocation339_spill] sm:$0xff] %v10633_v6 }
 0x30b   : > { %v10635_v29 = vpop.f32.mrf.mxu1  ;;  %4288 = vmatmul.mubr.bf16.gmra.mxu1 %v7466_v57 }
 0x30c   : > { %13910 = vst [vmem:[#allocation340_spill] sm:$0xff] %v10635_v29  ;;  %4297 = vmatprep.mubr.bf16.mxu1 %v7471_v27 }
 0x30d   : > { %v10637_v52 = vpop.f32.mrf.mxu1 }
 0x30e   : > { %13911 = vst [vmem:[#allocation341_spill] sm:$0xff] %v10637_v52  ;;  %v7477_v52 = vld [vmem:[%s13191_s2 + $0x28c] ss:$16 sps:$4 sm:$0xff]  }
 0x30f   : > { %v10639_v62 = vpop.f32.mrf.mxu1 }
 0x310   : > { %13912 = vst [vmem:[#allocation342_spill] sm:$0xff] %v10639_v62  ;;  %v7472_v62 = vld [vmem:[%s13191_s2 + $0x268] ss:$16 sps:$4 sm:$0xff]  }
 0x311   : > { %v10647_v4 = vpop.f32.mrf.mxu1 }
 0x312   : > { %13913 = vst [vmem:[#allocation343_spill] sm:$0xff] %v10647_v4 }
 0x313   : > { %v10649_v42 = vpop.f32.mrf.mxu1  ;;  %4298 = vmatmul.mubr.bf16.gmra.mxu1 %v7469_v12 }
 0x314   : > { %13914 = vst [vmem:[#allocation344_spill] sm:$0xff] %v10649_v42  ;;  %4307 = vmatprep.mubr.bf16.mxu1 %v7474_v24 }
 0x315   : > { %v10651_v57 = vpop.f32.mrf.mxu1 }
 0x316   : > { %13915 = vst [vmem:[#allocation345_spill] sm:$0xff] %v10651_v57  ;;  %v7475_v57 = vld [vmem:[%s13191_s2 + $0x288] ss:$16 sps:$4 sm:$0xff]  }
 0x317   : > { %v10653_v27 = vpop.f32.mrf.mxu1 }
 0x318   : > { %13916 = vst [vmem:[#allocation346_spill] sm:$0xff] %v10653_v27  ;;  %v7480_v27 = vld [vmem:[%s13191_s2 + $0x2ac] ss:$16 sps:$4 sm:$0xff]  }
 0x319   : > { %v10661_v29 = vpop.f32.mrf.mxu1 }
 0x31a   : > { %13917 = vst [vmem:[#allocation347_spill] sm:$0xff] %v10661_v29 }
 0x31b   : > { %v10663_v6 = vpop.f32.mrf.mxu1  ;;  %4308 = vmatmul.mubr.bf16.gmra.mxu1 %v7472_v62 }
 0x31c   : > { %13918 = vst [vmem:[#allocation348_spill] sm:$0xff] %v10663_v6  ;;  %4317 = vmatprep.mubr.bf16.mxu1 %v7477_v52 }
 0x31d   : > { %v10665_v12 = vpop.f32.mrf.mxu1 }
 0x31e   : > { %13919 = vst [vmem:[#allocation349_spill] sm:$0xff] %v10665_v12  ;;  %v7478_v12 = vld [vmem:[%s13191_s2 + $0x2a8] ss:$16 sps:$4 sm:$0xff]  }
 0x31f   : > { %v10667_v24 = vpop.f32.mrf.mxu1 }
 0x320   : > { %13920 = vst [vmem:[#allocation350_spill] sm:$0xff] %v10667_v24  ;;  %v7483_v24 = vld [vmem:[%s13191_s2 + $0x2cc] ss:$16 sps:$4 sm:$0xff]  }
 0x321   : > { %v10675_v42 = vpop.f32.mrf.mxu1 }
 0x322   : > { %13921 = vst [vmem:[#allocation351_spill] sm:$0xff] %v10675_v42 }
 0x323   : > { %v10677_v4 = vpop.f32.mrf.mxu1  ;;  %4318 = vmatmul.mubr.bf16.gmra.mxu1 %v7475_v57 }
 0x324   : > { %13922 = vst [vmem:[#allocation352_spill] sm:$0xff] %v10677_v4  ;;  %4327 = vmatprep.mubr.bf16.mxu1 %v7480_v27 }
 0x325   : > { %v10679_v62 = vpop.f32.mrf.mxu1 }
 0x326   : > { %13923 = vst [vmem:[#allocation353_spill] sm:$0xff] %v10679_v62  ;;  %v7481_v62 = vld [vmem:[%s13191_s2 + $0x2c8] ss:$16 sps:$4 sm:$0xff]  }
 0x327   : > { %v10681_v52 = vpop.f32.mrf.mxu1 }
 0x328   : > { %13924 = vst [vmem:[#allocation354_spill] sm:$0xff] %v10681_v52  ;;  %v7486_v52 = vld [vmem:[%s13191_s2 + $0x2ec] ss:$16 sps:$4 sm:$0xff]  }
 0x329   : > { %v10689_v6 = vpop.f32.mrf.mxu1 }
 0x32a   : > { %13925 = vst [vmem:[#allocation355_spill] sm:$0xff] %v10689_v6 }
 0x32b   : > { %v10691_v29 = vpop.f32.mrf.mxu1  ;;  %4328 = vmatmul.mubr.bf16.gmra.mxu1 %v7478_v12 }
 0x32c   : > { %13926 = vst [vmem:[#allocation356_spill] sm:$0xff] %v10691_v29  ;;  %4337 = vmatprep.mubr.bf16.mxu1 %v7483_v24 }
 0x32d   : > { %v10693_v57 = vpop.f32.mrf.mxu1 }
 0x32e   : > { %13927 = vst [vmem:[#allocation357_spill] sm:$0xff] %v10693_v57  ;;  %v7484_v57 = vld [vmem:[%s13191_s2 + $0x2e8] ss:$16 sps:$4 sm:$0xff]  }
 0x32f   : > { %v10695_v27 = vpop.f32.mrf.mxu1 }
 0x330   : > { %13928 = vst [vmem:[#allocation358_spill] sm:$0xff] %v10695_v27  ;;  %v7489_v27 = vld [vmem:[%s13191_s2 + $0x30c] ss:$16 sps:$4 sm:$0xff]  }
 0x331   : > { %v10703_v4 = vpop.f32.mrf.mxu1 }
 0x332   : > { %13929 = vst [vmem:[#allocation359_spill] sm:$0xff] %v10703_v4 }
 0x333   : > { %v10705_v42 = vpop.f32.mrf.mxu1  ;;  %4338 = vmatmul.mubr.bf16.gmra.mxu1 %v7481_v62 }
 0x334   : > { %13930 = vst [vmem:[#allocation360_spill] sm:$0xff] %v10705_v42  ;;  %4347 = vmatprep.mubr.bf16.mxu1 %v7486_v52 }
 0x335   : > { %v10707_v12 = vpop.f32.mrf.mxu1 }
 0x336   : > { %13931 = vst [vmem:[#allocation361_spill] sm:$0xff] %v10707_v12  ;;  %v7487_v12 = vld [vmem:[%s13191_s2 + $0x308] ss:$16 sps:$4 sm:$0xff]  }
 0x337   : > { %v10709_v24 = vpop.f32.mrf.mxu1 }
 0x338   : > { %13932 = vst [vmem:[#allocation362_spill] sm:$0xff] %v10709_v24  ;;  %v7492_v24 = vld [vmem:[%s13191_s2 + $0x32c] ss:$16 sps:$4 sm:$0xff]  }
 0x339   : > { %v10717_v29 = vpop.f32.mrf.mxu1 }
 0x33a   : > { %13933 = vst [vmem:[#allocation363_spill] sm:$0xff] %v10717_v29  ;;  %v3767_v29 = vadd.f32 %v10108_v9, %v8822_v21  ;;  %v3773_v9 = vadd.f32 %v10127_v2, %v8820_v36 }
 0x33b   : > { %v10719_v6 = vpop.f32.mrf.mxu1  ;;  %4348 = vmatmul.mubr.bf16.gmra.mxu1 %v7484_v57  ;;  %v3769_v57 = vadd.f32 %v10114_v34, %v8822_v21  ;;  %v7495_v21 = vld [vmem:[%s13191_s2 + $0x34c] ss:$16 sps:$4 sm:$0xff]  }
 0x33c   : > { %13934 = vst [vmem:[#allocation364_spill] sm:$0xff] %v10719_v6  ;;  %4357 = vmatprep.mubr.bf16.mxu1 %v7489_v27 }
 0x33d   : > { %v10721_v62 = vpop.f32.mrf.mxu1 }
 0x33e   : > { %13935 = vst [vmem:[#allocation365_spill] sm:$0xff] %v10721_v62 }
 0x33f   : > { %v10723_v52 = vpop.f32.mrf.mxu1 }
 0x340   : > { %13936 = vst [vmem:[#allocation366_spill] sm:$0xff] %v10723_v52  ;;  %v3771_v52 = vadd.f32 %v10120_v1, %v8820_v36  ;;  %v3777_v1 = vadd.f32 %v10136_v0, %v8777_v10  ;;  %v3779_v36 = vadd.f32 %v10142_v3, %v8777_v10  ;;  %v3781_v0 = vadd.f32 %v10146_v48, %v8775_v54 }
 0x341   : > { %v10731_v42 = vpop.f32.mrf.mxu1  ;;  %v3783_v10 = vadd.f32 %v10155_v28, %v8775_v54  ;;  %v3787_v48 = vadd.f32 %v10164_v22, %v8737_v23  ;;  %v7496_v22 = vld [vmem:[%s13191_s2 + $0x368] ss:$16 sps:$4 sm:$0xff]  }
 0x342   : > { %13937 = vst [vmem:[#allocation367_spill] sm:$0xff] %v10731_v42  ;;  %v7490_v42 = vld [vmem:[%s13191_s2 + $0x328] ss:$16 sps:$4 sm:$0xff]  }
 0x343   : > { %v4119_v6 = vpop.f32.mrf.mxu1  ;;  %4358 = vmatmul.mubr.bf16.gmra.mxu1 %v7487_v12 }
 0x344   : > { %v10737_v27 = vadd.f32 %v4119_v6, %v3767_v29  ;;  %4367 = vmatprep.mubr.bf16.mxu1 %v7492_v24 }
 0x345   : > { %v4121_v62 = vpop.f32.mrf.mxu1 }
 0x346   : > { %v10741_v4 = vadd.f32 %v4121_v62, %v3769_v57 }
 0x347   : > { %v4123_v15 = vpop.f32.mrf.mxu1 }
 0x348   : > { %v10748_v12 = vadd.f32 %v4123_v15, %v3771_v52 }
 0x349   : > { %v4125_v34 = vpop.f32.mrf.mxu1 }
 0x34a   : > { %v10757_v6 = vadd.f32 %v4125_v34, %v3773_v9  ;;  %v7498_v9 = vld [vmem:[%s13191_s2 + $0x36c] ss:$16 sps:$4 sm:$0xff]  }
 0x34b   : > { %v4129_v24 = vpop.f32.mrf.mxu1  ;;  %4368 = vmatmul.mubr.bf16.gmra.mxu1 %v7490_v42  ;;  %v7493_v42 = vld [vmem:[%s13191_s2 + $0x348] ss:$16 sps:$4 sm:$0xff]  }
 0x34c   : > { %v10763_v15 = vadd.f32 %v4129_v24, %v3777_v1  ;;  %4377 = vmatprep.mubr.bf16.mxu1 %v7495_v21 }
 0x34d   : > { %v4131_v62 = vpop.f32.mrf.mxu1 }
 0x34e   : > { %v10767_v52 = vadd.f32 %v4131_v62, %v3779_v36  ;;  %v3791_v62 = vadd.f32 %v10174_v5, %v8735_v19 }
 0x34f   : > { %v4133_v57 = vpop.f32.mrf.mxu1 }
 0x350   : > { %v10774_v3 = vadd.f32 %v4133_v57, %v3781_v0  ;;  %v3789_v57 = vadd.f32 %v10168_v31, %v8737_v23  ;;  %v3797_v31 = vadd.f32 %v10190_v41, %v8679_v43  ;;  %v7504_v41 = vld [vmem:[%s13191_s2 + $0x3ac] ss:$16 sps:$4 sm:$0xff]  }
 0x351   : > { %v4135_v21 = vpop.f32.mrf.mxu1 }
 0x352   : > { %v10783_v1 = vadd.f32 %v4135_v21, %v3783_v10 }
 0x353   : > { %v4139_v24 = vpop.f32.mrf.mxu1  ;;  %4378 = vmatmul.mubr.bf16.gmra.mxu1 %v7493_v42  ;;  %v3793_v42 = vadd.f32 %v10183_v45, %v8735_v19  ;;  %v3801_v45 = vadd.f32 %v10202_v59, %v8673_v20 }
 0x354   : > { %v10787_v28 = vadd.f32 %v4139_v24, %v3787_v48  ;;  %4387 = vmatprep.mubr.bf16.mxu1 %v7498_v9  ;;  %v7501_v9 = vld [vmem:[%s13191_s2 + $0x38c] ss:$16 sps:$4 sm:$0xff]  }
 0x355   : > { %v4141_v36 = vpop.f32.mrf.mxu1 }
 0x356   : > { %v10803_v48 = vadd.f32 %v4141_v36, %v3789_v57 }
 0x357   : > { %v4143_v0 = vpop.f32.mrf.mxu1 }
 0x358   : > { %v10798_v10 = vadd.f32 %v4143_v0, %v3791_v62  ;;  %v7499_v62 = vld [vmem:[%s13191_s2 + $0x388] ss:$16 sps:$4 sm:$0xff]   ;;  %v3799_v0 = vadd.f32 %v10196_v30, %v8679_v43  ;;  %v7513_v30 = vld [vmem:[%s13192_s3 + $0x4] ss:$16 sps:$4 sm:$0xff]  }
 0x359   : > { %v4145_v21 = vpop.f32.mrf.mxu1  ;;  %5686 = vmatprep.mubr.bf16.mxu0 %v7513_v30 }
 0x35a   : > { %v10807_v24 = vadd.f32 %v4145_v21, %v3793_v42  ;;  %v13942_v21 = vld [vmem:[#allocation45_spill] sm:$0xff] }
 0x35b   : > { %v4149_v29 = vpop.f32.mrf.mxu1  ;;  %4388 = vmatmul.mubr.bf16.gmra.mxu1 %v7496_v22  ;;  %v3803_v22 = vadd.f32 %v10209_v8, %v8673_v20  ;;  %v3837_v20 = vadd.f32 %v10300_v11, %v13942_v21 }
 0x35c   : > { %4397 = vmatprep.mubr.bf16.mxu1 %v7501_v9  ;;  %v10822_v57 = vadd.f32 %v4149_v29, %v3797_v31  ;;  %v3807_v29 = vadd.f32 %v10218_v14, %v8616_v50  ;;  %v7507_v14 = vld [vmem:[%s13191_s2 + $0x3cc] ss:$16 sps:$4 sm:$0xff]  }
 0x35d   : > { %v4151_v19 = vpop.f32.mrf.mxu1 }
 0x35e   : > { %v10829_v9 = vadd.f32 %v4151_v19, %v3799_v0  ;;  %v3811_v19 = vadd.f32 %v10228_v58, %v8611_v18 }
 0x35f   : > { %v4153_v36 = vpop.f32.mrf.mxu1 }
 0x360   : > { %v10824_v42 = vadd.f32 %v4153_v36, %v3801_v45  ;;  %v7502_v45 = vld [vmem:[%s13191_s2 + $0x3a8] ss:$16 sps:$4 sm:$0xff]   ;;  %v3809_v36 = vadd.f32 %v10224_v55, %v8616_v50 }
 0x361   : > { %v4155_v59 = vpop.f32.mrf.mxu1  ;;  %v13938_v55 = vld [vmem:[#allocation53_spill] sm:$0xff] }
 0x362   : > { %v10833_v2 = vadd.f32 %v4155_v59, %v3803_v22  ;;  %v13943_v59 = vld [vmem:[#allocation44_spill] sm:$0xff] }
 0x363   : > { %v4159_v43 = vpop.f32.mrf.mxu1  ;;  %4398 = vmatmul.mubr.bf16.gmra.mxu1 %v7499_v62  ;;  %v3813_v62 = vadd.f32 %v10237_v17, %v8611_v18  ;;  %v3841_v18 = vadd.f32 %v10310_v26, %v13943_v59  ;;  %v3849_v26 = vadd.f32 %v10332_v38, %v9160_v49 }
 0x364   : > { %4407 = vmatprep.mubr.bf16.mxu1 %v7504_v41  ;;  %v10851_v0 = vadd.f32 %v4159_v43, %v3807_v29  ;;  %v3817_v43 = vadd.f32 %v10246_v13, %v13938_v55  ;;  %v13939_v29 = vld [vmem:[#allocation52_spill] sm:$0xff]  ;;  %v7510_v13 = vld [vmem:[%s13191_s2 + $0x3ec] ss:$16 sps:$4 sm:$0xff]  }
 0x365   : > { %v4161_v8 = vpop.f32.mrf.mxu1 }
 0x366   : > { %v10858_v41 = vadd.f32 %v4161_v8, %v3809_v36  ;;  %v3819_v36 = vadd.f32 %v10250_v32, %v13938_v55 }
 0x367   : > { %v4163_v31 = vpop.f32.mrf.mxu1 }
 0x368   : > { %v10853_v22 = vadd.f32 %v4163_v31, %v3811_v19  ;;  %v3821_v19 = vadd.f32 %v10256_v33, %v13939_v29  ;;  %v7505_v31 = vld [vmem:[%s13191_s2 + $0x3c8] ss:$16 sps:$4 sm:$0xff]  }
 0x369   : > { %v4165_v58 = vpop.f32.mrf.mxu1 }
 0x36a   : > { %v10862_v30 = vadd.f32 %v4165_v58, %v3813_v62 }
 0x36b   : > { %v4169_v50 = vpop.f32.mrf.mxu1  ;;  %4408 = vmatmul.mubr.bf16.gmra.mxu1 %v7502_v45  ;;  %v3823_v45 = vadd.f32 %v10268_v53, %v13939_v29  ;;  %v13940_v53 = vld [vmem:[#allocation49_spill] sm:$0xff] }
 0x36c   : > { %4417 = vmatprep.mubr.bf16.mxu1 %v7507_v14  ;;  %v10877_v62 = vadd.f32 %v4169_v50, %v3817_v43  ;;  %v3827_v50 = vadd.f32 %v10272_v63, %v13940_v53  ;;  %v13941_v43 = vld [vmem:[#allocation48_spill] sm:$0xff] }
 0x36d   : > { %v4171_v17 = vpop.f32.mrf.mxu1  ;;  %v3831_v29 = vadd.f32 %v10284_v56, %v13941_v43 }
 0x36e   : > { %v4172_v58 = vadd.f32 %v4171_v17, %v3819_v36  ;;  %v7508_v17 = vld [vmem:[%s13191_s2 + $0x3e8] ss:$16 sps:$4 sm:$0xff]  }
 0x36f   : > { %v4173_v8 = vpop.f32.mrf.mxu1 }
 0x370   : > { %v10879_v14 = vadd.f32 %v4173_v8, %v3821_v19  ;;  %v3829_v8 = vadd.f32 %v10278_v35, %v13940_v53 }
 0x371   : > { %v4175_v33 = vpop.f32.mrf.mxu1 }
 0x372   : > { %v4448_v34 = vpack.c.bf16 %v10879_v14, %v10877_v62  ;;  %v4176_v54 = vadd.f32 %v4175_v33, %v3823_v45  ;;  %v13953_v14 = vpack.c.bf16 %v10853_v22, %v10851_v0  ;;  %v13957_v0 = vpack.c.bf16 %v10824_v42, %v10822_v57 }
 0x373   : > { %v4179_v5 = vpop.f32.mrf.mxu1  ;;  %4418 = vmatmul.mubr.bf16.gmra.mxu1 %v7505_v31  ;;  %v3833_v31 = vadd.f32 %v10294_v44, %v13941_v43  ;;  %v3839_v44 = vadd.f32 %v10306_v46, %v13942_v21  ;;  %v3847_v43 = vadd.f32 %v10328_v39, %v9160_v49 }
 0x374   : > { %v4449_v32 = vpack.c.bf16 %v4176_v54, %v4172_v58  ;;  %4427 = vmatprep.mubr.bf16.mxu1 %v7510_v13  ;;  %v4180_v54 = vadd.f32 %v4179_v5, %v3827_v50  ;;  %v3843_v5 = vadd.f32 %v10322_v40, %v13943_v59  ;;  %v3851_v40 = vadd.f32 %v10338_v51, %v9158_v47 }
 0x375   : > { %v4181_v55 = vpop.f32.mrf.mxu1  ;;  %v3853_v59 = vadd.f32 %v10350_v7, %v9158_v47  ;;  %v13946_v47 = vld [vmem:[#allocation255_spill] sm:$0xff]  ;;  %v4508_v22 = vmax.bf16 %v13501_v60, %v13957_v0  ;;  %v13971_v0 = vpack.c.bf16 %v10748_v12, %v10737_v27 }
 0x376   : > { %v4182_v13 = vadd.f32 %v4181_v55, %v3829_v8 }
 0x377   : > { %v4183_v19 = vpop.f32.mrf.mxu1 }
 0x378   : > { %v4184_v36 = vadd.f32 %v4183_v19, %v3831_v29 }
 0x379   : > { %v4185_v45 = vpop.f32.mrf.mxu1 }
 0x37a   : > { %v4450_v33 = vpack.c.bf16 %v4184_v36, %v4180_v54  ;;  %v4186_v63 = vadd.f32 %v4185_v45, %v3833_v31  ;;  %v13944_v54 = vld [vmem:[#allocation77_spill] sm:$0xff]  ;;  %v13945_v36 = vld [vmem:[#allocation252_spill] sm:$0xff] }
 0x37b   : > { %v4189_v58 = vpop.f32.mrf.mxu1  ;;  %4428 = vmatmul.mubr.bf16.gmra.mxu1 %v7508_v17  ;;  %v3857_v51 = vadd.f32 %v13945_v36, %v13944_v54  ;;  %v3859_v7 = vadd.f32 %v13946_v47, %v13944_v54  ;;  %v13955_v54 = vld [vmem:[#allocation10_spill] sm:$0xff]  ;;  %v13956_v36 = vld [vmem:[#allocation267_spill] sm:$0xff] }
 0x37c   : > { %v4451_v56 = vpack.c.bf16 %v4186_v63, %v4182_v13  ;;  %v4190_v55 = vadd.f32 %v4189_v58, %v3837_v20  ;;  %v4514_v63 = vmax.bf16 %v13501_v60, %v4450_v33  ;;  %v4512_v33 = vmax.bf16 %v13501_v60, %v4448_v34 }
 0x37d   : > { %v4191_v23 = vpop.f32.mrf.mxu1 }
 0x37e   : > { %v4192_v29 = vadd.f32 %v4191_v23, %v3839_v44  ;;  %v4515_v49 = vmax.bf16 %v13501_v60, %v4451_v56  ;;  %v4513_v44 = vmax.bf16 %v13501_v60, %v4449_v32  ;;  %v13950_v32 = vpack.c.bf16 %v10862_v30, %v10858_v41 }
 0x37f   : > { %v4193_v35 = vpop.f32.mrf.mxu1 }
 0x380   : > { %v4194_v53 = vadd.f32 %v4193_v35, %v3841_v18 }
 0x381   : > { %v4195_v50 = vpop.f32.mrf.mxu1 }
 0x382   : > { %v4452_v19 = vpack.c.bf16 %v4194_v53, %v4190_v55  ;;  %v4196_v17 = vadd.f32 %v4195_v50, %v3843_v5  ;;  %v13947_v55 = vld [vmem:[#allocation76_spill] sm:$0xff]  ;;  %v13948_v53 = vld [vmem:[#allocation258_spill] sm:$0xff] }
 0x383   : > { %v4199_v11 = vpop.f32.mrf.mxu1  ;;  %v3861_v50 = vadd.f32 %v13948_v53, %v13947_v55 }
 0x384   : > { %v4453_v8 = vpack.c.bf16 %v4196_v17, %v4192_v29  ;;  %v10909_v31 = vadd.f32 %v4199_v11, %v3847_v43  ;;  %v4516_v39 = vmax.bf16 %v13501_v60, %v4452_v19  ;;  %v13949_v19 = vld [vmem:[#allocation260_spill] sm:$0xff] }
 0x385   : > { %v4201_v46 = vpop.f32.mrf.mxu1  ;;  %v3863_v17 = vadd.f32 %v13949_v19, %v13947_v55 }
 0x386   : > { %v10913_v21 = vadd.f32 %v4201_v46, %v3849_v26  ;;  %v4517_v20 = vmax.bf16 %v13501_v60, %v4453_v8  ;;  %v4511_v26 = vmax.bf16 %v13501_v60, %v13950_v32  ;;  %v13951_v46 = vld [vmem:[#allocation25_spill] sm:$0xff]  ;;  %v13963_v32 = vld [vmem:[#allocation8_spill] sm:$0xff] }
 0x387   : > { %v4203_v23 = vpop.f32.mrf.mxu1 }
 0x388   : > { %v10919_v18 = vadd.f32 %v4203_v23, %v3851_v40  ;;  %5654 = vmatprep.subr.bf16.mxu0 %v4517_v20  ;;  %v13952_v40 = vld [vmem:[#allocation263_spill] sm:$0xff] }
 0x389   : > { %v4205_v38 = vpop.f32.mrf.mxu1  ;;  %5655 = vmatpush1.bf16.msra.mxu0 %v4516_v39  ;;  %v3867_v20 = vadd.f32 %v13952_v40, %v13951_v46  ;;  %v4510_v39 = vmax.bf16 %v13501_v60, %v13953_v14  ;;  %v13966_v40 = vld [vmem:[#allocation278_spill] sm:$0xff]  ;;  %v13968_v14 = vpack.c.bf16 %v10774_v3, %v10763_v15 }
 0x38a   : > { %v4454_v45 = vpack.c.bf16 %v10919_v18, %v10909_v31  ;;  %v10926_v13 = vadd.f32 %v4205_v38, %v3853_v59  ;;  %5656 = vmatprep.subr.bf16.mxu0 %v4515_v49  ;;  %v13954_v59 = vpack.c.bf16 %v10833_v2, %v10829_v9  ;;  %v14018_v31 = vld [vmem:[#allocation56_spill] sm:$0xff]  ;;  %v14019_v18 = vld [vmem:[#allocation322_spill] sm:$0xff] }
 0x38b   : > { %v4209_v58 = vpop.f32.mrf.mxu1 }
 0x38c   : > { %v4455_v56 = vpack.c.bf16 %v10926_v13, %v10913_v21  ;;  %v10933_v35 = vadd.f32 %v4209_v58, %v3857_v51  ;;  %v4509_v49 = vmax.bf16 %v13501_v60, %v13954_v59  ;;  %v3871_v51 = vadd.f32 %v13956_v36, %v13955_v54  ;;  %v13958_v58 = vld [vmem:[#allocation265_spill] sm:$0xff]  ;;  %v7511_v13 = vld [vmem:[%s13192_s3] ss:$16 sps:$4 sm:$0xff]  }
 0x38d   : > { %v4211_v5 = vpop.f32.mrf.mxu1  ;;  %5657 = vmatpush1.bf16.msra.mxu0 %v4514_v63  ;;  %v3869_v47 = vadd.f32 %v13958_v58, %v13951_v46  ;;  %v13965_v46 = vld [vmem:[#allocation26_spill] sm:$0xff]  ;;  %v13972_v58 = vld [vmem:[#allocation5_spill] sm:$0xff] }
 0x38e   : > { %v10938_v43 = vadd.f32 %v4211_v5, %v3859_v7  ;;  %5658 = vmatprep.subr.bf16.mxu0 %v4513_v44  ;;  %v13959_v7 = vld [vmem:[#allocation270_spill] sm:$0xff]  ;;  %v13960_v44 = vpack.c.bf16 %v10807_v24, %v10803_v48  ;;  %v13962_v24 = vpack.c.bf16 %v10783_v1, %v10767_v52  ;;  %v13969_v1 = vld [vmem:[#allocation281_spill] sm:$0xff] }
 0x38f   : > { %v4213_v29 = vpop.f32.mrf.mxu1  ;;  %v3873_v2 = vadd.f32 %v13959_v7, %v13955_v54 }
 0x390   : > { %v10946_v11 = vadd.f32 %v4213_v29, %v3861_v50  ;;  %v4507_v5 = vmax.bf16 %v13501_v60, %v13960_v44  ;;  %v13961_v50 = vpack.c.bf16 %v10798_v10, %v10787_v28  ;;  %v4505_v19 = vmax.bf16 %v13501_v60, %v13962_v24  ;;  %v13967_v28 = vld [vmem:[#allocation275_spill] sm:$0xff]  ;;  %v13975_v44 = vld [vmem:[#allocation288_spill] sm:$0xff] }
 0x391   : > { %v4215_v8 = vpop.f32.mrf.mxu1  ;;  %5659 = vmatpush1.bf16.msra.mxu0 %v4512_v33  ;;  %v3879_v10 = vadd.f32 %v13967_v28, %v13963_v32 }
 0x392   : > { %v4456_v62 = vpack.c.bf16 %v10946_v11, %v10933_v35  ;;  %v10956_v34 = vadd.f32 %v4215_v8, %v3863_v17  ;;  %5660 = vmatprep.subr.bf16.mxu0 %v4511_v26  ;;  %v4506_v33 = vmax.bf16 %v13501_v60, %v13961_v50  ;;  %v13964_v26 = vld [vmem:[#allocation273_spill] sm:$0xff]  ;;  %v13976_v50 = vld [vmem:[#allocation286_spill] sm:$0xff] }
 0x393   : > { %v4219_v23 = vpop.f32.mrf.mxu1  ;;  %v3877_v8 = vadd.f32 %v13964_v26, %v13963_v32 }
 0x394   : > { %v4457_v41 = vpack.c.bf16 %v10956_v34, %v10938_v43  ;;  %v10964_v30 = vadd.f32 %v4219_v23, %v3867_v20  ;;  %v3881_v20 = vadd.f32 %v13966_v40, %v13965_v46  ;;  %v3883_v23 = vadd.f32 %v13969_v1, %v13965_v46  ;;  %v13977_v40 = vld [vmem:[#allocation75_spill] sm:$0xff] }
 0x395   : > { %v4221_v38 = vpop.f32.mrf.mxu1  ;;  %5661 = vmatpush1.bf16.msra.mxu0 %v4510_v39  ;;  %v4504_v39 = vmax.bf16 %v13501_v60, %v13968_v14  ;;  %v3899_v14 = vadd.f32 %v10465_v37, %v13977_v40  ;;  %v13982_v37 = vld [vmem:[#allocation70_spill] sm:$0xff]  ;;  %v14015_v34 = vld [vmem:[#allocation319_spill] sm:$0xff] }
 0x396   : > { %5662 = vmatprep.subr.bf16.mxu0 %v4509_v49  ;;  %v10986_v53 = vadd.f32 %v4221_v38, %v3869_v47  ;;  %v13970_v38 = vpack.c.bf16 %v10757_v6, %v10741_v4  ;;  %v13973_v47 = vld [vmem:[#allocation283_spill] sm:$0xff] }
 0x397   : > { %v4223_v63 = vpop.f32.mrf.mxu1  ;;  %v3887_v7 = vadd.f32 %v13973_v47, %v13972_v58  ;;  %v13983_v47 = vld [vmem:[#allocation298_spill] sm:$0xff] }
 0x398   : > { %v10980_v9 = vadd.f32 %v4223_v63, %v3871_v51  ;;  %v4503_v54 = vmax.bf16 %v13501_v60, %v13970_v38 }
 0x399   : > { %v4225_v55 = vpop.f32.mrf.mxu1  ;;  %5663 = vmatpush1.bf16.msra.mxu0 %v4508_v22  ;;  %v4502_v22 = vmax.bf16 %v13501_v60, %v13971_v0 }
 0x39a   : > { %v4458_v57 = vpack.c.bf16 %v10980_v9, %v10964_v30  ;;  %v10990_v42 = vadd.f32 %v4225_v55, %v3873_v2  ;;  %5664 = vmatprep.subr.bf16.mxu0 %v4507_v5  ;;  %v13974_v2 = vld [vmem:[#allocation4_spill] sm:$0xff]  ;;  %v14014_v30 = vld [vmem:[#allocation317_spill] sm:$0xff] }
 0x39b   : > { %v4229_v29 = vpop.f32.mrf.mxu1  ;;  %v3891_v5 = vadd.f32 %v13975_v44, %v13974_v2  ;;  %v3893_v27 = vadd.f32 %v10454_v25, %v13974_v2  ;;  %v3897_v25 = vadd.f32 %v10461_v16, %v13977_v40  ;;  %v13984_v44 = vld [vmem:[#allocation297_spill] sm:$0xff] }
 0x39c   : > { %v4459_v48 = vpack.c.bf16 %v10990_v42, %v10986_v53  ;;  %v11014_v59 = vadd.f32 %v4229_v29, %v3877_v8  ;;  %v4521_v42 = vmax.bf16 %v13501_v60, %v4457_v41 }
 0x39d   : > { %v4231_v17 = vpop.f32.mrf.mxu1  ;;  %5665 = vmatpush1.bf16.msra.mxu0 %v4506_v33  ;;  %v3889_v33 = vadd.f32 %v13976_v50, %v13972_v58 }
 0x39e   : > { %5666 = vmatprep.subr.bf16.mxu0 %v4505_v19  ;;  %v11022_v51 = vadd.f32 %v4231_v17, %v3879_v10 }
 0x39f   : > { %v4233_v52 = vpop.f32.mrf.mxu1 }
 0x3a0   : > { %v11016_v49 = vadd.f32 %v4233_v52, %v3881_v20  ;;  %v13978_v20 = vld [vmem:[#allocation74_spill] sm:$0xff] }
 0x3a1   : > { %v4235_v36 = vpop.f32.mrf.mxu1  ;;  %5667 = vmatpush1.bf16.msra.mxu0 %v4504_v39  ;;  %v3901_v28 = vadd.f32 %v10469_v61, %v13978_v20  ;;  %v13979_v39 = vld [vmem:[#allocation295_spill] sm:$0xff] }
 0x3a2   : > { %v4460_v15 = vpack.c.bf16 %v11016_v49, %v11014_v59  ;;  %v11026_v3 = vadd.f32 %v4235_v36, %v3883_v23  ;;  %5668 = vmatprep.subr.bf16.mxu0 %v4503_v54  ;;  %v3903_v52 = vadd.f32 %v13979_v39, %v13978_v20 }
 0x3a3   : > { %v4239_v63 = vpop.f32.mrf.mxu1 }
 0x3a4   : > { %v4461_v4 = vpack.c.bf16 %v11026_v3, %v11022_v51  ;;  %v11042_v12 = vadd.f32 %v4239_v63, %v3887_v7  ;;  %v13980_v63 = vld [vmem:[#allocation71_spill] sm:$0xff]  ;;  %v3911_v7 = vadd.f32 %v13983_v47, %v13982_v37  ;;  %v13993_v47 = vld [vmem:[#allocation304_spill] sm:$0xff] }
 0x3a5   : > { %v4241_v6 = vpop.f32.mrf.mxu1  ;;  %5669 = vmatpush1.bf16.msra.mxu0 %v4502_v22 }
 0x3a6   : > { %v11046_v19 = vadd.f32 %v4241_v6, %v3889_v33  ;;  %v13981_v6 = vld [vmem:[#allocation296_spill] sm:$0xff] }
 0x3a7   : > { %v4243_v55 = vpop.f32.mrf.mxu1  ;;  %v3907_v58 = vadd.f32 %v13981_v6, %v13980_v63 }
 0x3a8   : > { %v11044_v29 = vadd.f32 %v4243_v55, %v3891_v5  ;;  %v3909_v5 = vadd.f32 %v13984_v44, %v13980_v63  ;;  %v13985_v55 = vld [vmem:[#allocation299_spill] sm:$0xff] }
 0x3a9   : > { %v4245_v24 = vpop.f32.mrf.mxu1  ;;  %v3913_v50 = vadd.f32 %v13985_v55, %v13982_v37  ;;  %v13992_v37 = vld [vmem:[#allocation65_spill] sm:$0xff] }
 0x3aa   : > { %v4462_v17 = vpack.c.bf16 %v11044_v29, %v11042_v12  ;;  %v11050_v32 = vadd.f32 %v4245_v24, %v3893_v27  ;;  %v4524_v12 = vmax.bf16 %v13501_v60, %v4460_v15  ;;  %v4522_v15 = vmax.bf16 %v13501_v60, %v4458_v57 }
 0x3ab   : > { %v4249_v26 = vpop.f32.mrf.mxu1  ;;  %v4520_v57 = vmax.bf16 %v13501_v60, %v4456_v62  ;;  %v4518_v62 = vmax.bf16 %v13501_v60, %v4454_v45  ;;  %v3971_v45 = vadd.f32 %v14019_v18, %v14018_v31 }
 0x3ac   : > { %v4463_v8 = vpack.c.bf16 %v11050_v32, %v11046_v19  ;;  %v11062_v1 = vadd.f32 %v4249_v26, %v3897_v25 }
 0x3ad   : > { %v4251_v46 = vpop.f32.mrf.mxu1 }
 0x3ae   : > { %v4252_v54 = vadd.f32 %v4251_v46, %v3899_v14  ;;  %v13987_v14 = vld [vmem:[#allocation300_spill] sm:$0xff] }
 0x3af   : > { %v4253_v10 = vpop.f32.mrf.mxu1 }
 0x3b0   : > { %v11064_v23 = vadd.f32 %v4253_v10, %v3901_v28  ;;  %v13986_v10 = vld [vmem:[#allocation67_spill] sm:$0xff] }
 0x3b1   : > { %v4255_v38 = vpop.f32.mrf.mxu1  ;;  %v3917_v39 = vadd.f32 %v13987_v14, %v13986_v10 }
 0x3b2   : > { %v4464_v36 = vpack.c.bf16 %v11064_v23, %v11062_v1  ;;  %v4256_v16 = vadd.f32 %v4255_v38, %v3903_v52  ;;  %v13988_v52 = vld [vmem:[#allocation66_spill] sm:$0xff] }
 0x3b3   : > { %v4259_v0 = vpop.f32.mrf.mxu1  ;;  %v13989_v1 = vld [vmem:[#allocation302_spill] sm:$0xff] }
 0x3b4   : > { %v4465_v22 = vpack.c.bf16 %v4256_v16, %v4252_v54  ;;  %v4260_v33 = vadd.f32 %v4259_v0, %v3907_v58  ;;  %v3921_v23 = vadd.f32 %v13989_v1, %v13988_v52  ;;  %v13990_v54 = vld [vmem:[#allocation301_spill] sm:$0xff]  ;;  %v13991_v0 = vld [vmem:[#allocation303_spill] sm:$0xff] }
 0x3b5   : > { %v4261_v61 = vpop.f32.mrf.mxu1  ;;  %v3919_v16 = vadd.f32 %v13990_v54, %v13986_v10  ;;  %v3923_v63 = vadd.f32 %v13991_v0, %v13988_v52  ;;  %v13996_v10 = vld [vmem:[#allocation306_spill] sm:$0xff]  ;;  %v13997_v1 = vld [vmem:[#allocation307_spill] sm:$0xff] }
 0x3b6   : > { %v4262_v26 = vadd.f32 %v4261_v61, %v3909_v5  ;;  %v13998_v0 = vld [vmem:[#allocation63_spill] sm:$0xff] }
 0x3b7   : > { %v4263_v2 = vpop.f32.mrf.mxu1 }
 0x3b8   : > { %v4264_v27 = vadd.f32 %v4263_v2, %v3911_v7  ;;  %v3927_v7 = vadd.f32 %v13993_v47, %v13992_v37 }
 0x3b9   : > { %v4265_v24 = vpop.f32.mrf.mxu1 }
 0x3ba   : > { %v4466_v46 = vpack.c.bf16 %v4264_v27, %v4260_v33  ;;  %v4266_v40 = vadd.f32 %v4265_v24, %v3913_v50  ;;  %v13994_v50 = vld [vmem:[#allocation305_spill] sm:$0xff] }
 0x3bb   : > { %v4269_v25 = vpop.f32.mrf.mxu1  ;;  %v3929_v33 = vadd.f32 %v13994_v50, %v13992_v37  ;;  %v14001_v50 = vld [vmem:[#allocation62_spill] sm:$0xff] }
 0x3bc   : > { %v4467_v20 = vpack.c.bf16 %v4266_v40, %v4262_v26  ;;  %v4270_v6 = vadd.f32 %v4269_v25, %v3917_v39  ;;  %v13995_v40 = vld [vmem:[#allocation64_spill] sm:$0xff]  ;;  %v4530_v37 = vmax.bf16 %v13501_v60, %v4466_v46  ;;  %v4528_v46 = vmax.bf16 %v13501_v60, %v4464_v36 }
 0x3bd   : > { %v4271_v28 = vpop.f32.mrf.mxu1  ;;  %v3931_v14 = vadd.f32 %v13996_v10, %v13995_v40  ;;  %v14003_v10 = vld [vmem:[#allocation311_spill] sm:$0xff] }
 0x3be   : > { %v4272_v2 = vadd.f32 %v4271_v28, %v3919_v16  ;;  %v4531_v54 = vmax.bf16 %v13501_v60, %v4467_v20 }
 0x3bf   : > { %v4273_v38 = vpop.f32.mrf.mxu1 }
 0x3c0   : > { %v4274_v61 = vadd.f32 %v4273_v38, %v3921_v23  ;;  %v3933_v23 = vadd.f32 %v13997_v1, %v13995_v40  ;;  %v14005_v1 = vld [vmem:[#allocation312_spill] sm:$0xff] }
 0x3c1   : > { %v4275_v58 = vpop.f32.mrf.mxu1 }
 0x3c2   : > { %v4468_v44 = vpack.c.bf16 %v4274_v61, %v4270_v6  ;;  %v4276_v5 = vadd.f32 %v4275_v58, %v3923_v63  ;;  %v13999_v63 = vld [vmem:[#allocation308_spill] sm:$0xff] }
 0x3c3   : > { %v4279_v55 = vpop.f32.mrf.mxu1  ;;  %v3937_v6 = vadd.f32 %v13999_v63, %v13998_v0 }
 0x3c4   : > { %v4469_v27 = vpack.c.bf16 %v4276_v5, %v4272_v2  ;;  %v11088_v24 = vadd.f32 %v4279_v55, %v3927_v7  ;;  %v4532_v52 = vmax.bf16 %v13501_v60, %v4468_v44  ;;  %v14000_v7 = vld [vmem:[#allocation309_spill] sm:$0xff]  ;;  %v4529_v5 = vmax.bf16 %v13501_v60, %v4465_v22 }
 0x3c5   : > { %v4281_v26 = vpop.f32.mrf.mxu1  ;;  %v3939_v2 = vadd.f32 %v14000_v7, %v13998_v0  ;;  %v4527_v22 = vmax.bf16 %v13501_v60, %v4463_v8  ;;  %v4525_v8 = vmax.bf16 %v13501_v60, %v4461_v4  ;;  %v4523_v4 = vmax.bf16 %v13501_v60, %v4459_v48 }
 0x3c6   : > { %v11092_v25 = vadd.f32 %v4281_v26, %v3929_v33  ;;  %v4533_v39 = vmax.bf16 %v13501_v60, %v4469_v27  ;;  %v14002_v33 = vld [vmem:[#allocation310_spill] sm:$0xff] }
 0x3c7   : > { %v4283_v28 = vpop.f32.mrf.mxu1  ;;  %v3941_v27 = vadd.f32 %v14002_v33, %v14001_v50  ;;  %v14010_v33 = vld [vmem:[#allocation59_spill] sm:$0xff] }
 0x3c8   : > { %v11098_v38 = vadd.f32 %v4283_v28, %v3931_v14  ;;  %5670 = vmatprep.subr.bf16.mxu0 %v4533_v39  ;;  %v3943_v14 = vadd.f32 %v14003_v10, %v14001_v50  ;;  %v14004_v28 = vld [vmem:[#allocation61_spill] sm:$0xff]  ;;  %v14013_v10 = vld [vmem:[#allocation318_spill] sm:$0xff]  ;;  %v3959_v9 = vadd.f32 %v14014_v30, %v14010_v33 }
 0x3c9   : > { %v4285_v16 = vpop.f32.mrf.mxu1  ;;  %5671 = vmatpush2.bf16.msra.mxu0 %v4532_v52  ;;  %v14024_v30 = vld [vmem:[#allocation54_spill] sm:$0xff] }
 0x3ca   : > { %v11105_v58 = vadd.f32 %v4285_v16, %v3933_v23  ;;  %5672 = vmatprep.subr.bf16.mxu0 %v4531_v54  ;;  %v3947_v23 = vadd.f32 %v14005_v1, %v14004_v28  ;;  %v4526_v16 = vmax.bf16 %v13501_v60, %v4462_v17  ;;  %v14008_v17 = vld [vmem:[#allocation313_spill] sm:$0xff] }
 0x3cb   : > { %v4289_v47 = vpop.f32.mrf.mxu1  ;;  %v3949_v7 = vadd.f32 %v14008_v17, %v14004_v28  ;;  %v4519_v28 = vmax.bf16 %v13501_v60, %v4455_v56  ;;  %v14021_v17 = vld [vmem:[#allocation323_spill] sm:$0xff] }
 0x3cc   : > { %v4471_v20 = vpack.c.bf16 %v11105_v58, %v11092_v25  ;;  %v11112_v44 = vadd.f32 %v4289_v47, %v3937_v6  ;;  %v14006_v6 = vld [vmem:[#allocation60_spill] sm:$0xff] }
 0x3cd   : > { %v4291_v55 = vpop.f32.mrf.mxu1  ;;  %5673 = vmatpush2.bf16.msra.mxu0 %v4530_v37  ;;  %v14007_v37 = vld [vmem:[#allocation314_spill] sm:$0xff] }
 0x3ce   : > { %v11117_v26 = vadd.f32 %v4291_v55, %v3939_v2  ;;  %5674 = vmatprep.subr.bf16.mxu0 %v4529_v5  ;;  %v3951_v47 = vadd.f32 %v14007_v37, %v14006_v6  ;;  %v14009_v2 = vld [vmem:[#allocation315_spill] sm:$0xff]  ;;  %v7535_v58 = vld [vmem:[%s13192_s3 + $0x100] ss:$16 sps:$4 sm:$0xff]  }
 0x3cf   : > { %v4293_v40 = vpop.f32.mrf.mxu1  ;;  %v3953_v51 = vadd.f32 %v14009_v2, %v14006_v6  ;;  %v7564_v37 = vld [vmem:[%s13192_s3 + $0xc] ss:$16 sps:$4 sm:$0xff]  }
 0x3d0   : > { %v11122_v39 = vadd.f32 %v4293_v40, %v3941_v27  ;;  %v14011_v27 = vld [vmem:[#allocation316_spill] sm:$0xff]  ;;  %v14012_v40 = vld [vmem:[#allocation58_spill] sm:$0xff]  ;;  %6039 = vmatprep.mubr.bf16.mxu1 %v7564_v37  ;;  %v14028_v37 = vld [vmem:[#allocation51_spill] sm:$0xff] }
 0x3d1   : > { %v4295_v52 = vpop.f32.mrf.mxu1  ;;  %5675 = vmatpush2.bf16.msra.mxu0 %v4528_v46  ;;  %v3957_v46 = vadd.f32 %v14011_v27, %v14010_v33  ;;  %v3963_v41 = vadd.f32 %v14015_v34, %v14012_v40  ;;  %v7514_v33 = vld [vmem:[%s13192_s3 + $0x20] ss:$16 sps:$4 sm:$0xff]   ;;  %v14026_v34 = vld [vmem:[#allocation325_spill] sm:$0xff] }
 0x3d2   : > { %v4472_v54 = vpack.c.bf16 %v11122_v39, %v11112_v44  ;;  %v11132_v36 = vadd.f32 %v4295_v52, %v3943_v14  ;;  %5676 = vmatprep.subr.bf16.mxu0 %v4527_v22  ;;  %v3961_v14 = vadd.f32 %v14013_v10, %v14012_v40  ;;  %v14022_v40 = vld [vmem:[#allocation55_spill] sm:$0xff]  ;;  %v14023_v10 = vld [vmem:[#allocation324_spill] sm:$0xff] }
 0x3d3   : > { %v4299_v0 = vpop.f32.mrf.mxu1 }
 0x3d4   : > { %v4473_v19 = vpack.c.bf16 %v11132_v36, %v11117_v26  ;;  %v11140_v32 = vadd.f32 %v4299_v0, %v3947_v23  ;;  %v7516_v0 = vld [vmem:[%s13192_s3 + $0x24] ss:$16 sps:$4 sm:$0xff]   ;;  %v14062_v26 = vld [vmem:[#allocation349_spill] sm:$0xff] }
 0x3d5   : > { %v4301_v63 = vpop.f32.mrf.mxu1  ;;  %5677 = vmatpush2.bf16.msra.mxu0 %v4526_v16 }
 0x3d6   : > { %5678 = vmatprep.subr.bf16.mxu0 %v4525_v8  ;;  %v11162_v55 = vadd.f32 %v4301_v63, %v3949_v7  ;;  %v14016_v8 = vld [vmem:[#allocation57_spill] sm:$0xff]  ;;  %v14017_v63 = vld [vmem:[#allocation320_spill] sm:$0xff]  ;;  %v3973_v7 = vadd.f32 %v14021_v17, %v14018_v31  ;;  %v14031_v17 = vld [vmem:[#allocation330_spill] sm:$0xff] }
 0x3d7   : > { %v4303_v29 = vpop.f32.mrf.mxu1  ;;  %v3967_v6 = vadd.f32 %v14017_v63, %v14016_v8  ;;  %v7517_v31 = vld [vmem:[%s13192_s3 + $0x40] ss:$16 sps:$4 sm:$0xff]  }
 0x3d8   : > { %v11156_v3 = vadd.f32 %v4303_v29, %v3951_v47  ;;  %v14020_v47 = vld [vmem:[#allocation321_spill] sm:$0xff] }
 0x3d9   : > { %v4305_v5 = vpop.f32.mrf.mxu1  ;;  %5679 = vmatpush2.bf16.msra.mxu0 %v4524_v12  ;;  %v3969_v12 = vadd.f32 %v14020_v47, %v14016_v8  ;;  %v14029_v47 = vld [vmem:[#allocation328_spill] sm:$0xff] }
 0x3da   : > { %v4474_v59 = vpack.c.bf16 %v11156_v3, %v11140_v32  ;;  %v11166_v49 = vadd.f32 %v4305_v5, %v3953_v51  ;;  %5680 = vmatprep.subr.bf16.mxu0 %v4523_v4  ;;  %v7537_v32 = vld [vmem:[%s13192_s3 + $0x104] ss:$16 sps:$4 sm:$0xff]   ;;  %v14058_v3 = vld [vmem:[#allocation9_spill] sm:$0xff] }
 0x3db   : > { %v4309_v50 = vpop.f32.mrf.mxu1  ;;  %v4039_v36 = vadd.f32 %v14062_v26, %v14058_v3  ;;  %v14073_v26 = vld [vmem:[#allocation2_spill] sm:$0xff] }
 0x3dc   : > { %v4475_v53 = vpack.c.bf16 %v11166_v49, %v11162_v55  ;;  %v11190_v22 = vadd.f32 %v4309_v50, %v3957_v46  ;;  %v7519_v46 = vld [vmem:[%s13192_s3 + $0x44] ss:$16 sps:$4 sm:$0xff]   ;;  %v4537_v49 = vmax.bf16 %v13501_v60, %v4473_v19  ;;  %v4536_v19 = vmax.bf16 %v13501_v60, %v4472_v54 }
 0x3dd   : > { %v4311_v48 = vpop.f32.mrf.mxu1  ;;  %5681 = vmatpush2.bf16.msra.mxu0 %v4522_v15 }
 0x3de   : > { %5682 = vmatprep.subr.bf16.mxu0 %v4521_v42  ;;  %v11198_v23 = vadd.f32 %v4311_v48, %v3959_v9  ;;  %v14025_v9 = vld [vmem:[#allocation326_spill] sm:$0xff] }
 0x3df   : > { %v4313_v43 = vpop.f32.mrf.mxu1 }
 0x3e0   : > { %v11192_v52 = vadd.f32 %v4313_v43, %v3961_v14  ;;  %v3977_v14 = vadd.f32 %v14023_v10, %v14022_v40 }
 0x3e1   : > { %v4315_v1 = vpop.f32.mrf.mxu1  ;;  %5683 = vmatpush2.bf16.msra.mxu0 %v4520_v57  ;;  %v3981_v57 = vadd.f32 %v14025_v9, %v14024_v30 }
 0x3e2   : > { %v4476_v35 = vpack.c.bf16 %v11192_v52, %v11190_v22  ;;  %v11202_v11 = vadd.f32 %v4315_v1, %v3963_v41  ;;  %5684 = vmatprep.subr.bf16.mxu0 %v4519_v28  ;;  %v3979_v41 = vadd.f32 %v14026_v34, %v14022_v40  ;;  %v14027_v28 = vld [vmem:[#allocation327_spill] sm:$0xff] }
 0x3e3   : > { %v4319_v16 = vpop.f32.mrf.mxu1  ;;  %v3983_v1 = vadd.f32 %v14027_v28, %v14024_v30 }
 0x3e4   : > { %v4477_v21 = vpack.c.bf16 %v11202_v11, %v11198_v23  ;;  %v11227_v2 = vadd.f32 %v4319_v16, %v3967_v6  ;;  %v4540_v23 = vmax.bf16 %v13501_v60, %v4476_v35 }
 0x3e5   : > { %v4321_v56 = vpop.f32.mrf.mxu1  ;;  %5685 = vmatpush2.bf16.msra.mxu0 %v4518_v62 }
 0x3e6   : > { %v11231_v5 = vadd.f32 %v4321_v56, %v3969_v12  ;;  %v3987_v12 = vadd.f32 %v14029_v47, %v14028_v37  ;;  %v14037_v47 = vld [vmem:[#allocation334_spill] sm:$0xff] }
 0x3e7   : > { %v4323_v29 = vpop.f32.mrf.mxu1 }
 0x3e8   : > { %v11229_v51 = vadd.f32 %v4323_v29, %v3971_v45  ;;  %5687 = vmatmul.mubr.bf16.vlgmr.msra.gmra.mxu0 %v7511_v13  ;;  %v7522_v45 = vld [vmem:[%s13192_s3 + $0x64] ss:$16 sps:$4 sm:$0xff]  }
 0x3e9   : > { %v4325_v4 = vpop.f32.mrf.mxu1  ;;  %5696 = vmatprep.mubr.bf16.mxu0 %v7516_v0  ;;  %v14030_v29 = vld [vmem:[#allocation50_spill] sm:$0xff] }
 0x3ea   : > { %v4478_v15 = vpack.c.bf16 %v11229_v51, %v11227_v2  ;;  %v11235_v50 = vadd.f32 %v4325_v4, %v3973_v7  ;;  %v3991_v7 = vadd.f32 %v14031_v17, %v14030_v29  ;;  %v14039_v17 = vld [vmem:[#allocation335_spill] sm:$0xff]  ;;  %v7534_v2 = vld [vmem:[%s13192_s3 + $0xe4] ss:$16 sps:$4 sm:$0xff]  }
 0x3eb   : > { %v4329_v42 = vpop.f32.mrf.mxu1  ;;  %v14054_v51 = vld [vmem:[#allocation24_spill] sm:$0xff] }
 0x3ec   : > { %v4479_v48 = vpack.c.bf16 %v11235_v50, %v11231_v5  ;;  %v11253_v62 = vadd.f32 %v4329_v42, %v3977_v14  ;;  %v14032_v42 = vld [vmem:[#allocation329_spill] sm:$0xff] }
 0x3ed   : > { %v4331_v27 = vpop.f32.mrf.mxu1 }
 0x3ee   : > { %v11257_v56 = vadd.f32 %v4331_v27, %v3979_v41  ;;  %v14033_v27 = vld [vmem:[#allocation331_spill] sm:$0xff]  ;;  %v7520_v41 = vld [vmem:[%s13192_s3 + $0x60] ss:$16 sps:$4 sm:$0xff]  }
 0x3ef   : > { %v4333_v43 = vpop.f32.mrf.mxu1 }
 0x3f0   : > { %v11255_v16 = vadd.f32 %v4333_v43, %v3981_v57  ;;  %5697 = vmatmul.mubr.bf16.gmra.mxu0 %v7514_v33  ;;  %v3989_v33 = vadd.f32 %v14032_v42, %v14028_v37 }
 0x3f1   : > { %v4335_v13 = vpop.f32.mrf.mxu1  ;;  %5706 = vmatprep.mubr.bf16.mxu0 %v7519_v46  ;;  %v3993_v46 = vadd.f32 %v14033_v27, %v14030_v29  ;;  %v14040_v27 = vld [vmem:[#allocation81_spill] sm:$0xff] }
 0x3f2   : > { %v4480_v0 = vpack.c.bf16 %v11255_v16, %v11253_v62  ;;  %v11261_v8 = vadd.f32 %v4335_v13, %v3983_v1  ;;  %v7525_v1 = vld [vmem:[%s13192_s3 + $0x84] ss:$16 sps:$4 sm:$0xff]   ;;  %v14034_v13 = vld [vmem:[#allocation47_spill] sm:$0xff] }
 0x3f3   : > { %v4339_v63 = vpop.f32.mrf.mxu1 }
 0x3f4   : > { %v4481_v6 = vpack.c.bf16 %v11261_v8, %v11257_v56  ;;  %v4340_v40 = vadd.f32 %v4339_v63, %v3987_v12  ;;  %v14035_v63 = vld [vmem:[#allocation332_spill] sm:$0xff]  ;;  %v14038_v12 = vld [vmem:[#allocation333_spill] sm:$0xff]  ;;  %v4544_v56 = vmax.bf16 %v13501_v60, %v4480_v0 }
 0x3f5   : > { %v4341_v18 = vpop.f32.mrf.mxu1  ;;  %v3997_v37 = vadd.f32 %v14035_v63, %v14034_v13  ;;  %v3999_v29 = vadd.f32 %v14038_v12, %v14034_v13  ;;  %v14042_v63 = vld [vmem:[#allocation337_spill] sm:$0xff] }
 0x3f6   : > { %v4342_v30 = vadd.f32 %v4341_v18, %v3989_v33 }
 0x3f7   : > { %v4343_v4 = vpop.f32.mrf.mxu1 }
 0x3f8   : > { %v4344_v10 = vadd.f32 %v4343_v4, %v3991_v7  ;;  %5707 = vmatmul.mubr.bf16.gmra.mxu0 %v7517_v31  ;;  %v14036_v31 = vld [vmem:[#allocation46_spill] sm:$0xff] }
 0x3f9   : > { %v4345_v14 = vpop.f32.mrf.mxu1  ;;  %5716 = vmatprep.mubr.bf16.mxu0 %v7522_v45  ;;  %v4001_v45 = vadd.f32 %v14037_v47, %v14036_v31  ;;  %v4003_v7 = vadd.f32 %v14039_v17, %v14036_v31  ;;  %v4009_v47 = vadd.f32 %v14042_v63, %v14040_v27  ;;  %v14045_v17 = vld [vmem:[#allocation339_spill] sm:$0xff] }
 0x3fa   : > { %v4482_v9 = vpack.c.bf16 %v4344_v10, %v4340_v40  ;;  %v4346_v57 = vadd.f32 %v4345_v14, %v3993_v46  ;;  %v14041_v46 = vld [vmem:[#allocation336_spill] sm:$0xff] }
 0x3fb   : > { %v4349_v43 = vpop.f32.mrf.mxu1  ;;  %v4007_v40 = vadd.f32 %v14041_v46, %v14040_v27  ;;  %v14046_v27 = vld [vmem:[#allocation79_spill] sm:$0xff]  ;;  %v14047_v46 = vld [vmem:[#allocation340_spill] sm:$0xff] }
 0x3fc   : > { %v4483_v34 = vpack.c.bf16 %v4346_v57, %v4342_v30  ;;  %v4350_v4 = vadd.f32 %v4349_v43, %v3997_v37  ;;  %v7523_v43 = vld [vmem:[%s13192_s3 + $0x80] ss:$16 sps:$4 sm:$0xff]  }
 0x3fd   : > { %v4351_v28 = vpop.f32.mrf.mxu1  ;;  %v14043_v37 = vld [vmem:[#allocation80_spill] sm:$0xff] }
 0x3fe   : > { %v4352_v10 = vadd.f32 %v4351_v28, %v3999_v29  ;;  %v14044_v28 = vld [vmem:[#allocation338_spill] sm:$0xff] }
 0x3ff   : > { %v4353_v18 = vpop.f32.mrf.mxu1  ;;  %v4011_v31 = vadd.f32 %v14044_v28, %v14043_v37  ;;  %v14050_v28 = vld [vmem:[#allocation342_spill] sm:$0xff] }
 0x400   : > { %v4354_v42 = vadd.f32 %v4353_v18, %v4001_v45  ;;  %5717 = vmatmul.mubr.bf16.gmra.mxu0 %v7520_v41 }
 0x401   : > { %v4355_v33 = vpop.f32.mrf.mxu1  ;;  %5726 = vmatprep.mubr.bf16.mxu0 %v7525_v1  ;;  %v7528_v1 = vld [vmem:[%s13192_s3 + $0xa4] ss:$16 sps:$4 sm:$0xff]  }
 0x402   : > { %v4484_v14 = vpack.c.bf16 %v4354_v42, %v4350_v4  ;;  %v4356_v30 = vadd.f32 %v4355_v33, %v4003_v7  ;;  %v4013_v7 = vadd.f32 %v14045_v17, %v14043_v37  ;;  %v4547_v42 = vmax.bf16 %v13501_v60, %v4483_v34  ;;  %v14049_v37 = vld [vmem:[#allocation78_spill] sm:$0xff] }
 0x403   : > { %v4359_v57 = vpop.f32.mrf.mxu1  ;;  %v4543_v17 = vmax.bf16 %v13501_v60, %v4479_v48 }
 0x404   : > { %v4485_v61 = vpack.c.bf16 %v4356_v30, %v4352_v10  ;;  %v11297_v13 = vadd.f32 %v4359_v57, %v4007_v40  ;;  %v4548_v12 = vmax.bf16 %v13501_v60, %v4484_v14  ;;  %v4017_v40 = vadd.f32 %v14047_v46, %v14046_v27  ;;  %v14048_v57 = vld [vmem:[#allocation341_spill] sm:$0xff] }
 0x405   : > { %v4361_v41 = vpop.f32.mrf.mxu1  ;;  %v4546_v14 = vmax.bf16 %v13501_v60, %v4482_v9  ;;  %v4019_v63 = vadd.f32 %v14048_v57, %v14046_v27  ;;  %v7531_v9 = vld [vmem:[%s13192_s3 + $0xc4] ss:$16 sps:$4 sm:$0xff]   ;;  %v4542_v27 = vmax.bf16 %v13501_v60, %v4478_v15  ;;  %v4541_v46 = vmax.bf16 %v13501_v60, %v4477_v21  ;;  %v14056_v21 = vld [vmem:[#allocation345_spill] sm:$0xff] }
 0x406   : > { %v11307_v45 = vadd.f32 %v4361_v41, %v4009_v47  ;;  %v4549_v18 = vmax.bf16 %v13501_v60, %v4485_v61  ;;  %v7526_v41 = vld [vmem:[%s13192_s3 + $0xa0] ss:$16 sps:$4 sm:$0xff]  }
 0x407   : > { %v4363_v29 = vpop.f32.mrf.mxu1  ;;  %v14055_v15 = vld [vmem:[#allocation346_spill] sm:$0xff] }
 0x408   : > { %v11313_v4 = vadd.f32 %v4363_v29, %v4011_v31  ;;  %5727 = vmatmul.mubr.bf16.gmra.mxu0 %v7523_v43  ;;  %6007 = vmatprep.subr.bf16.mxu1 %v4549_v18  ;;  %v4545_v43 = vmax.bf16 %v13501_v60, %v4481_v6  ;;  %v4021_v31 = vadd.f32 %v14050_v28, %v14049_v37  ;;  %v14051_v6 = vld [vmem:[#allocation343_spill] sm:$0xff] }
 0x409   : > { %v4365_v33 = vpop.f32.mrf.mxu1  ;;  %6008 = vmatpush1.bf16.msra.mxu1 %v4548_v12  ;;  %5736 = vmatprep.mubr.bf16.mxu0 %v7528_v1  ;;  %v4023_v12 = vadd.f32 %v14051_v6, %v14049_v37  ;;  %v4538_v37 = vmax.bf16 %v13501_v60, %v4474_v59  ;;  %v14059_v59 = vld [vmem:[#allocation348_spill] sm:$0xff]  ;;  %v14061_v6 = vld [vmem:[#allocation350_spill] sm:$0xff] }
 0x40a   : > { %v4486_v61 = vpack.c.bf16 %v11313_v4, %v11297_v13  ;;  %v11320_v10 = vadd.f32 %v4365_v33, %v4013_v7  ;;  %6009 = vmatprep.subr.bf16.mxu1 %v4547_v42  ;;  %v14052_v42 = vld [vmem:[#allocation11_spill] sm:$0xff]  ;;  %v14053_v33 = vld [vmem:[#allocation344_spill] sm:$0xff] }
 0x40b   : > { %v4369_v30 = vpop.f32.mrf.mxu1  ;;  %v4027_v62 = vadd.f32 %v14053_v33, %v14052_v42  ;;  %v4029_v57 = vadd.f32 %v14056_v21, %v14052_v42  ;;  %v14069_v21 = vld [vmem:[#allocation353_spill] sm:$0xff] }
 0x40c   : > { %v4487_v34 = vpack.c.bf16 %v11320_v10, %v11307_v45  ;;  %v11327_v47 = vadd.f32 %v4369_v30, %v4017_v40  ;;  %v7529_v40 = vld [vmem:[%s13192_s3 + $0xc0] ss:$16 sps:$4 sm:$0xff]   ;;  %v4031_v30 = vadd.f32 %v14055_v15, %v14054_v51  ;;  %v7562_v45 = vld [vmem:[%s13192_s3 + $0x8] ss:$16 sps:$4 sm:$0xff]   ;;  %v7567_v10 = vld [vmem:[%s13192_s3 + $0x224] ss:$16 sps:$4 sm:$0xff]  }
 0x40d   : > { %v4371_v1 = vpop.f32.mrf.mxu1  ;;  %6010 = vmatpush1.bf16.msra.mxu1 %v4546_v14  ;;  %v14066_v15 = vld [vmem:[#allocation352_spill] sm:$0xff] }
 0x40e   : > { %v11341_v18 = vadd.f32 %v4371_v1, %v4019_v63  ;;  %6011 = vmatprep.subr.bf16.mxu1 %v4545_v43  ;;  %v14057_v63 = vld [vmem:[#allocation347_spill] sm:$0xff]  ;;  %v4539_v1 = vmax.bf16 %v13501_v60, %v4475_v53  ;;  %v7532_v53 = vld [vmem:[%s13192_s3 + $0xe0] ss:$16 sps:$4 sm:$0xff]  }
 0x40f   : > { %v4373_v8 = vpop.f32.mrf.mxu1  ;;  %v4033_v43 = vadd.f32 %v14057_v63, %v14054_v51  ;;  %v14065_v51 = vld [vmem:[#allocation27_spill] sm:$0xff] }
 0x410   : > { %v11349_v29 = vadd.f32 %v4373_v8, %v4021_v31  ;;  %5737 = vmatmul.mubr.bf16.gmra.mxu0 %v7526_v41  ;;  %v14060_v8 = vld [vmem:[#allocation7_spill] sm:$0xff] }
 0x411   : > { %v4375_v7 = vpop.f32.mrf.mxu1  ;;  %6012 = vmatpush1.bf16.msra.mxu1 %v4544_v56  ;;  %5746 = vmatprep.mubr.bf16.mxu0 %v7531_v9  ;;  %v4037_v56 = vadd.f32 %v14059_v59, %v14058_v3  ;;  %v14070_v63 = vld [vmem:[#allocation355_spill] sm:$0xff]  ;;  %v7538_v3 = vld [vmem:[%s13192_s3 + $0x120] ss:$16 sps:$4 sm:$0xff]  }
 0x412   : > { %v4488_v16 = vpack.c.bf16 %v11349_v29, %v11327_v47  ;;  %v11359_v0 = vadd.f32 %v4375_v7, %v4023_v12  ;;  %6013 = vmatprep.subr.bf16.mxu1 %v4543_v17  ;;  %v4041_v12 = vadd.f32 %v14061_v6, %v14060_v8  ;;  %v14063_v7 = vld [vmem:[#allocation351_spill] sm:$0xff]  ;;  %v14072_v6 = vld [vmem:[#allocation356_spill] sm:$0xff] }
 0x413   : > { %v4379_v5 = vpop.f32.mrf.mxu1  ;;  %v4043_v42 = vadd.f32 %v14063_v7, %v14060_v8  ;;  %v14071_v8 = vld [vmem:[#allocation3_spill] sm:$0xff]  ;;  %v14075_v7 = vld [vmem:[#allocation357_spill] sm:$0xff]  ;;  %v7559_v47 = vld [vmem:[%s13192_s3 + $0x200] ss:$16 sps:$4 sm:$0xff]  }
 0x414   : > { %v4489_v50 = vpack.c.bf16 %v11359_v0, %v11341_v18  ;;  %v11367_v48 = vadd.f32 %v4379_v5, %v4027_v62  ;;  %v4551_v18 = vmax.bf16 %v13501_v60, %v4487_v34  ;;  %v7570_v34 = vld [vmem:[%s13192_s3 + $0x2c] ss:$16 sps:$4 sm:$0xff]   ;;  %v7568_v29 = vld [vmem:[%s13192_s3 + $0x28] ss:$16 sps:$4 sm:$0xff]  }
 0x415   : > { %v4381_v14 = vpop.f32.mrf.mxu1  ;;  %6014 = vmatpush1.bf16.msra.mxu1 %v4542_v27  ;;  %v4535_v27 = vmax.bf16 %v13501_v60, %v4471_v20 }
 0x416   : > { %6015 = vmatprep.subr.bf16.mxu1 %v4541_v46  ;;  %v11395_v22 = vadd.f32 %v4381_v14, %v4029_v57  ;;  %v14064_v46 = vpack.c.bf16 %v11098_v38, %v11088_v24  ;;  %v14067_v24 = vld [vmem:[#allocation6_spill] sm:$0xff]  ;;  %v4049_v57 = vadd.f32 %v14069_v21, %v14065_v51 }
 0x417   : > { %v4383_v11 = vpop.f32.mrf.mxu1  ;;  %v14068_v38 = vld [vmem:[#allocation354_spill] sm:$0xff] }
 0x418   : > { %v11389_v41 = vadd.f32 %v4383_v11, %v4031_v30  ;;  %5747 = vmatmul.mubr.bf16.gmra.mxu0 %v7529_v40  ;;  %v4534_v40 = vmax.bf16 %v13501_v60, %v14064_v46  ;;  %v4047_v30 = vadd.f32 %v14066_v15, %v14065_v51 }
 0x419   : > { %v4385_v9 = vpop.f32.mrf.mxu1  ;;  %6016 = vmatpush1.bf16.msra.mxu1 %v4540_v23  ;;  %5756 = vmatprep.mubr.bf16.mxu0 %v7534_v2  ;;  %v7540_v2 = vld [vmem:[%s13192_s3 + $0x124] ss:$16 sps:$4 sm:$0xff]   ;;  %v4051_v23 = vadd.f32 %v14068_v38, %v14067_v24 }
 0x41a   : > { %v4490_v52 = vpack.c.bf16 %v11389_v41, %v11367_v48  ;;  %v11399_v35 = vadd.f32 %v4385_v9, %v4033_v43  ;;  %6017 = vmatprep.subr.bf16.mxu1 %v4539_v1  ;;  %v4053_v43 = vadd.f32 %v14070_v63, %v14067_v24  ;;  %v7546_v38 = vld [vmem:[%s13192_s3 + $0x164] ss:$16 sps:$4 sm:$0xff]   ;;  %v4552_v48 = vmax.bf16 %v13501_v60, %v4488_v16  ;;  %v7576_v41 = vld [vmem:[%s13192_s3 + $0x4c] ss:$16 sps:$4 sm:$0xff]  }
 0x41b   : > { %v4389_v28 = vpop.f32.mrf.mxu1  ;;  %v14080_v63 = vld [vmem:[#allocation362_spill] sm:$0xff] }
 0x41c   : > { %v4491_v55 = vpack.c.bf16 %v11399_v35, %v11395_v22  ;;  %v11429_v33 = vadd.f32 %v4389_v28, %v4037_v56  ;;  %v7543_v56 = vld [vmem:[%s13192_s3 + $0x144] ss:$16 sps:$4 sm:$0xff]   ;;  %v7556_v22 = vld [vmem:[%s13192_s3 + $0x1e0] ss:$16 sps:$4 sm:$0xff]  }
 0x41d   : > { %v4391_v31 = vpop.f32.mrf.mxu1  ;;  %6018 = vmatpush1.bf16.msra.mxu1 %v4538_v37  ;;  %v7561_v35 = vld [vmem:[%s13192_s3 + $0x204] ss:$16 sps:$4 sm:$0xff]  }
 0x41e   : > { %6019 = vmatprep.subr.bf16.mxu1 %v4537_v49  ;;  %v11437_v44 = vadd.f32 %v4391_v31, %v4039_v36  ;;  %v14074_v36 = vld [vmem:[#allocation358_spill] sm:$0xff] }
 0x41f   : > { %v4393_v17 = vpop.f32.mrf.mxu1  ;;  %v7573_v16 = vld [vmem:[%s13192_s3 + $0x244] ss:$16 sps:$4 sm:$0xff]  }
 0x420   : > { %v11431_v62 = vadd.f32 %v4393_v17, %v4041_v12  ;;  %5757 = vmatmul.mubr.bf16.gmra.mxu0 %v7532_v53  ;;  %v4057_v12 = vadd.f32 %v14072_v6, %v14071_v8 }
 0x421   : > { %v4395_v5 = vpop.f32.mrf.mxu1  ;;  %6020 = vmatpush1.bf16.msra.mxu1 %v4536_v19  ;;  %5766 = vmatprep.mubr.bf16.mxu0 %v7537_v32  ;;  %v4061_v19 = vadd.f32 %v14074_v36, %v14073_v26 }
 0x422   : > { %v4492_v39 = vpack.c.bf16 %v11431_v62, %v11429_v33  ;;  %v11441_v54 = vadd.f32 %v4395_v5, %v4043_v42  ;;  %6021 = vmatprep.subr.bf16.mxu1 %v4535_v27  ;;  %v4059_v42 = vadd.f32 %v14075_v7, %v14071_v8  ;;  %v14076_v27 = vld [vmem:[#allocation359_spill] sm:$0xff]  ;;  %v4553_v33 = vmax.bf16 %v13501_v60, %v4489_v50 }
 0x423   : > { %v4399_v14 = vpop.f32.mrf.mxu1  ;;  %v4063_v5 = vadd.f32 %v14076_v27, %v14073_v26  ;;  %v4550_v50 = vmax.bf16 %v13501_v60, %v4486_v61  ;;  %v7565_v61 = vld [vmem:[%s13192_s3 + $0x220] ss:$16 sps:$4 sm:$0xff]  }
 0x424   : > { %v4493_v25 = vpack.c.bf16 %v11441_v54, %v11437_v44  ;;  %v11463_v1 = vadd.f32 %v4399_v14, %v4047_v30  ;;  %v7541_v30 = vld [vmem:[%s13192_s3 + $0x140] ss:$16 sps:$4 sm:$0xff]   ;;  %v4555_v44 = vmax.bf16 %v13501_v60, %v4491_v55 }
 0x425   : > { %v4401_v20 = vpop.f32.mrf.mxu1  ;;  %6022 = vmatpush1.bf16.msra.mxu1 %v4534_v40 }
 0x426   : > { %v11467_v28 = vadd.f32 %v4401_v20, %v4049_v57  ;;  %v14079_v57 = vld [vmem:[#allocation72_spill] sm:$0xff] }
 0x427   : > { %v4403_v11 = vpop.f32.mrf.mxu1 }
 0x428   : > { %v11465_v9 = vadd.f32 %v4403_v11, %v4051_v23  ;;  %5767 = vmatmul.mubr.bf16.gmra.mxu0 %v7535_v58  ;;  %v14077_v23 = vld [vmem:[#allocation73_spill] sm:$0xff]  ;;  %v14078_v11 = vld [vmem:[#allocation360_spill] sm:$0xff] }
 0x429   : > { %v4405_v37 = vpop.f32.mrf.mxu1  ;;  %5776 = vmatprep.mubr.bf16.mxu0 %v7540_v2  ;;  %v4067_v21 = vadd.f32 %v14078_v11, %v14077_v23 }
 0x42a   : > { %v4494_v49 = vpack.c.bf16 %v11465_v9, %v11463_v1  ;;  %v11471_v53 = vadd.f32 %v4405_v37, %v4053_v43  ;;  %v4071_v43 = vadd.f32 %v14080_v63, %v14079_v57  ;;  %v4556_v1 = vmax.bf16 %v13501_v60, %v4492_v39  ;;  %v7571_v39 = vld [vmem:[%s13192_s3 + $0x240] ss:$16 sps:$4 sm:$0xff]   ;;  %v7574_v9 = vld [vmem:[%s13192_s3 + $0x48] ss:$16 sps:$4 sm:$0xff]  }
 0x42b   : > { %v4409_v31 = vpop.f32.mrf.mxu1 }
 0x42c   : > { %v4495_v32 = vpack.c.bf16 %v11471_v53, %v11467_v28  ;;  %v4410_v46 = vadd.f32 %v4409_v31, %v4057_v12  ;;  %v14081_v31 = vld [vmem:[#allocation361_spill] sm:$0xff]  ;;  %v7553_v28 = vld [vmem:[%s13192_s3 + $0x1c0] ss:$16 sps:$4 sm:$0xff]   ;;  %v7558_v53 = vld [vmem:[%s13192_s3 + $0x1e4] ss:$16 sps:$4 sm:$0xff]  }
 0x42d   : > { %v4411_v59 = vpop.f32.mrf.mxu1 }
 0x42e   : > { %v4412_v58 = vadd.f32 %v4411_v59, %v4059_v42  ;;  %v14082_v59 = vld [vmem:[#allocation363_spill] sm:$0xff]  ;;  %v7544_v42 = vld [vmem:[%s13192_s3 + $0x160] ss:$16 sps:$4 sm:$0xff]  }
 0x42f   : > { %v4413_v17 = vpop.f32.mrf.mxu1 }
 0x430   : > { %v4414_v40 = vadd.f32 %v4413_v17, %v4061_v19  ;;  %5777 = vmatmul.mubr.bf16.gmra.mxu0 %v7538_v3  ;;  %v4069_v3 = vadd.f32 %v14081_v31, %v14077_v23  ;;  %v14088_v23 = vld [vmem:[#allocation367_spill] sm:$0xff] }
 0x431   : > { %v4415_v14 = vpop.f32.mrf.mxu1  ;;  %5786 = vmatprep.mubr.bf16.mxu0 %v7543_v56  ;;  %v4073_v56 = vadd.f32 %v14082_v59, %v14079_v57  ;;  %v7547_v59 = vld [vmem:[%s13192_s3 + $0x180] ss:$16 sps:$4 sm:$0xff]  }
 0x432   : > { %v4496_v20 = vpack.c.bf16 %v4414_v40, %v4410_v46  ;;  %v4416_v2 = vadd.f32 %v4415_v14, %v4063_v5  ;;  %v7549_v5 = vld [vmem:[%s13192_s3 + $0x184] ss:$16 sps:$4 sm:$0xff]   ;;  %v14083_v46 = vld [vmem:[#allocation69_spill] sm:$0xff] }
 0x433   : > { %v4419_v51 = vpop.f32.mrf.mxu1  ;;  %v14084_v40 = vld [vmem:[#allocation364_spill] sm:$0xff] }
 0x434   : > { %v4497_v15 = vpack.c.bf16 %v4416_v2, %v4412_v58  ;;  %v4420_v8 = vadd.f32 %v4419_v51, %v4067_v21  ;;  %v4077_v14 = vadd.f32 %v14084_v40, %v14083_v46  ;;  %v14085_v58 = vld [vmem:[#allocation68_spill] sm:$0xff]  ;;  %v14086_v2 = vld [vmem:[#allocation366_spill] sm:$0xff] }
 0x435   : > { %v4421_v24 = vpop.f32.mrf.mxu1  ;;  %v4081_v51 = vadd.f32 %v14086_v2, %v14085_v58  ;;  %v4083_v11 = vadd.f32 %v14088_v23, %v14085_v58  ;;  %v7580_v58 = vld [vmem:[%s13192_s3 + $0x68] ss:$16 sps:$4 sm:$0xff]   ;;  %v7585_v2 = vld [vmem:[%s13192_s3 + $0x284] ss:$16 sps:$4 sm:$0xff]  }
 0x436   : > { %v4422_v26 = vadd.f32 %v4421_v24, %v4069_v3  ;;  %v14087_v24 = vld [vmem:[#allocation365_spill] sm:$0xff] }
 0x437   : > { %v4423_v37 = vpop.f32.mrf.mxu1  ;;  %v7586_v23 = vld [vmem:[%s13192_s3 + $0x88] ss:$16 sps:$4 sm:$0xff]  }
 0x438   : > { %v4424_v6 = vadd.f32 %v4423_v37, %v4071_v43  ;;  %5787 = vmatmul.mubr.bf16.gmra.mxu0 %v7541_v30 }
 0x439   : > { %v4425_v12 = vpop.f32.mrf.mxu1  ;;  %5796 = vmatprep.mubr.bf16.mxu0 %v7546_v38  ;;  %v4079_v38 = vadd.f32 %v14087_v24, %v14083_v46 }
 0x43a   : > { %v4498_v36 = vpack.c.bf16 %v4424_v6, %v4420_v8  ;;  %v4426_v19 = vadd.f32 %v4425_v12, %v4073_v56  ;;  %v7552_v56 = vld [vmem:[%s13192_s3 + $0x1a4] ss:$16 sps:$4 sm:$0xff]  }
 0x43b   : > { %v4429_v17 = vpop.f32.mrf.mxu1 }
 0x43c   : > { %v4499_v7 = vpack.c.bf16 %v4426_v19, %v4422_v26  ;;  %v4430_v21 = vadd.f32 %v4429_v17, %v4077_v14  ;;  %v4562_v26 = vmax.bf16 %v13501_v60, %v4498_v36  ;;  %v4561_v19 = vmax.bf16 %v13501_v60, %v4497_v15  ;;  %v7550_v17 = vld [vmem:[%s13192_s3 + $0x1a0] ss:$16 sps:$4 sm:$0xff]   ;;  %v11539_v15 = vpop.f32.mrf.mxu0 }
 0x43d   : > { %v4431_v27 = vpop.f32.mrf.mxu1  ;;  %v4559_v36 = vmax.bf16 %v13501_v60, %v4495_v32  ;;  %14089 = vst [vmem:[#allocation53_spill] sm:$0xff] %v11539_v15  ;;  %v7577_v14 = vld [vmem:[%s13192_s3 + $0x260] ss:$16 sps:$4 sm:$0xff]   ;;  %v7681_v15 = vld [vmem:[%s13192_s3 + $0x30c] ss:$16 sps:$4 sm:$0xff]  }
 0x43e   : > { %v4432_v43 = vadd.f32 %v4431_v27, %v4079_v38  ;;  %v4563_v12 = vmax.bf16 %v13501_v60, %v4499_v7  ;;  %v4560_v27 = vmax.bf16 %v13501_v60, %v4496_v20  ;;  %v4558_v7 = vmax.bf16 %v13501_v60, %v4494_v49  ;;  %v11555_v32 = vpop.f32.mrf.mxu0  ;;  %v7579_v49 = vld [vmem:[%s13192_s3 + $0x264] ss:$16 sps:$4 sm:$0xff]   ;;  %v7583_v38 = vld [vmem:[%s13192_s3 + $0x280] ss:$16 sps:$4 sm:$0xff]  }
 0x43f   : > { %v4433_v30 = vpop.f32.mrf.mxu1  ;;  %v4557_v20 = vmax.bf16 %v13501_v60, %v4493_v25  ;;  %14090 = vst [vmem:[#allocation52_spill] sm:$0xff] %v11555_v32  ;;  %v4554_v25 = vmax.bf16 %v13501_v60, %v4490_v52  ;;  %v7661_v32 = vld [vmem:[%s13192_s3 + $0x248] ss:$16 sps:$4 sm:$0xff]  }
 0x440   : > { %v4434_v57 = vadd.f32 %v4433_v30, %v4081_v51  ;;  %5797 = vmatmul.mubr.bf16.gmra.mxu0 %v7544_v42  ;;  %v7555_v42 = vld [vmem:[%s13192_s3 + $0x1c4] ss:$16 sps:$4 sm:$0xff]   ;;  %v11565_v54 = vpop.f32.mrf.mxu0  ;;  %v7588_v51 = vld [vmem:[%s13192_s3 + $0x8c] ss:$16 sps:$4 sm:$0xff]  }
 0x441   : > { %v4435_v63 = vpop.f32.mrf.mxu1  ;;  %5806 = vmatprep.mubr.bf16.mxu0 %v7549_v5  ;;  %14091 = vst [vmem:[#allocation49_spill] sm:$0xff] %v11565_v54  ;;  %v7582_v5 = vld [vmem:[%s13192_s3 + $0x6c] ss:$16 sps:$4 sm:$0xff]   ;;  %v7676_v54 = vld [vmem:[%s13192_s3 + $0x2e8] ss:$16 sps:$4 sm:$0xff]  }
 0x442   : > { %v4500_v37 = vpack.c.bf16 %v4434_v57, %v4430_v21  ;;  %v4436_v31 = vadd.f32 %v4435_v63, %v4083_v11  ;;  %v11581_v55 = vpop.f32.mrf.mxu0  ;;  %v7591_v11 = vld [vmem:[%s13192_s3 + $0x2a4] ss:$16 sps:$4 sm:$0xff]   ;;  %v7594_v21 = vld [vmem:[%s13192_s3 + $0xac] ss:$16 sps:$4 sm:$0xff]  }
 0x443   : > { %14092 = vst [vmem:[#allocation48_spill] sm:$0xff] %v11581_v55  ;;  %v7666_v55 = vld [vmem:[%s13192_s3 + $0x26c] ss:$16 sps:$4 sm:$0xff]  }
 0x444   : > { %v4501_v3 = vpack.c.bf16 %v4436_v31, %v4432_v43  ;;  %v4564_v6 = vmax.bf16 %v13501_v60, %v4500_v37  ;;  %v11591_v0 = vpop.f32.mrf.mxu0  ;;  %v7589_v43 = vld [vmem:[%s13192_s3 + $0x2a0] ss:$16 sps:$4 sm:$0xff]   ;;  %v7592_v37 = vld [vmem:[%s13192_s3 + $0xa8] ss:$16 sps:$4 sm:$0xff]   ;;  %v7597_v31 = vld [vmem:[%s13192_s3 + $0x2c4] ss:$16 sps:$4 sm:$0xff]  }
 0x445   : > { %14093 = vst [vmem:[#allocation45_spill] sm:$0xff] %v11591_v0 }
 0x446   : > { %v4565_v8 = vmax.bf16 %v13501_v60, %v4501_v3  ;;  %v11609_v13 = vpop.f32.mrf.mxu0  ;;  %v7600_v3 = vld [vmem:[%s13192_s3 + $0xcc] ss:$16 sps:$4 sm:$0xff]  }
 0x447   : > { %14094 = vst [vmem:[#allocation44_spill] sm:$0xff] %v11609_v13 }
 0x448   : > { %5807 = vmatmul.mubr.bf16.gmra.mxu0 %v7547_v59  ;;  %6023 = vmatprep.subr.bf16.mxu1 %v4565_v8  ;;  %v11611_v4 = vpop.f32.mrf.mxu0  ;;  %v7595_v8 = vld [vmem:[%s13192_s3 + $0x2c0] ss:$16 sps:$4 sm:$0xff]  }
 0x449   : > { %6024 = vmatpush2.bf16.msra.mxu1 %v4564_v6  ;;  %5816 = vmatprep.mubr.bf16.mxu0 %v7552_v56  ;;  %14095 = vst [vmem:[#allocation77_spill] sm:$0xff] %v11611_v4  ;;  %v7598_v6 = vld [vmem:[%s13192_s3 + $0xc8] ss:$16 sps:$4 sm:$0xff]  }
 0x44a   : > { %6025 = vmatprep.subr.bf16.mxu1 %v4563_v12  ;;  %v11625_v52 = vpop.f32.mrf.mxu0  ;;  %v7603_v12 = vld [vmem:[%s13192_s3 + $0x2e4] ss:$16 sps:$4 sm:$0xff]  }
 0x44b   : > { %14096 = vst [vmem:[#allocation252_spill] sm:$0xff] %v11625_v52 }
 0x44c   : > { %v11627_v62 = vpop.f32.mrf.mxu0 }
 0x44d   : > { %6026 = vmatpush2.bf16.msra.mxu1 %v4562_v26  ;;  %14097 = vst [vmem:[#allocation255_spill] sm:$0xff] %v11627_v62  ;;  %v7606_v26 = vld [vmem:[%s13192_s3 + $0xec] ss:$16 sps:$4 sm:$0xff]  }
 0x44e   : > { %6027 = vmatprep.subr.bf16.mxu1 %v4561_v19  ;;  %v11641_v46 = vpop.f32.mrf.mxu0  ;;  %v7678_v62 = vld [vmem:[%s13192_s3 + $0x2ec] ss:$16 sps:$4 sm:$0xff]  }
 0x44f   : > { %14098 = vst [vmem:[#allocation76_spill] sm:$0xff] %v11641_v46  ;;  %v7664_v46 = vld [vmem:[%s13192_s3 + $0x268] ss:$16 sps:$4 sm:$0xff]  }
 0x450   : > { %5817 = vmatmul.mubr.bf16.gmra.mxu0 %v7550_v17  ;;  %v11643_v40 = vpop.f32.mrf.mxu0 }
 0x451   : > { %6028 = vmatpush2.bf16.msra.mxu1 %v4560_v27  ;;  %5826 = vmatprep.mubr.bf16.mxu0 %v7555_v42  ;;  %14099 = vst [vmem:[#allocation258_spill] sm:$0xff] %v11643_v40  ;;  %v7601_v42 = vld [vmem:[%s13192_s3 + $0x2e0] ss:$16 sps:$4 sm:$0xff]   ;;  %v7604_v27 = vld [vmem:[%s13192_s3 + $0xe8] ss:$16 sps:$4 sm:$0xff]  }
 0x452   : > { %6029 = vmatprep.subr.bf16.mxu1 %v4559_v36  ;;  %v11657_v30 = vpop.f32.mrf.mxu0  ;;  %v7609_v36 = vld [vmem:[%s13192_s3 + $0x304] ss:$16 sps:$4 sm:$0xff]   ;;  %v7673_v40 = vld [vmem:[%s13192_s3 + $0x2c8] ss:$16 sps:$4 sm:$0xff]  }
 0x453   : > { %14100 = vst [vmem:[#allocation260_spill] sm:$0xff] %v11657_v30  ;;  %v7669_v30 = vld [vmem:[%s13192_s3 + $0x28c] ss:$16 sps:$4 sm:$0xff]  }
 0x454   : > { %v11659_v24 = vpop.f32.mrf.mxu0 }
 0x455   : > { %6030 = vmatpush2.bf16.msra.mxu1 %v4558_v7  ;;  %14101 = vst [vmem:[#allocation25_spill] sm:$0xff] %v11659_v24  ;;  %v7612_v7 = vld [vmem:[%s13192_s3 + $0x10c] ss:$16 sps:$4 sm:$0xff]  }
 0x456   : > { %6031 = vmatprep.subr.bf16.mxu1 %v4557_v20  ;;  %v11673_v57 = vpop.f32.mrf.mxu0 }
 0x457   : > { %14102 = vst [vmem:[#allocation263_spill] sm:$0xff] %v11673_v57 }
 0x458   : > { %5827 = vmatmul.mubr.bf16.gmra.mxu0 %v7553_v28  ;;  %v11675_v63 = vpop.f32.mrf.mxu0 }
 0x459   : > { %6032 = vmatpush2.bf16.msra.mxu1 %v4556_v1  ;;  %5836 = vmatprep.mubr.bf16.mxu0 %v7558_v53  ;;  %14103 = vst [vmem:[#allocation10_spill] sm:$0xff] %v11675_v63  ;;  %v7607_v53 = vld [vmem:[%s13192_s3 + $0x300] ss:$16 sps:$4 sm:$0xff]   ;;  %v7610_v1 = vld [vmem:[%s13192_s3 + $0x108] ss:$16 sps:$4 sm:$0xff]  }
 0x45a   : > { %6033 = vmatprep.subr.bf16.mxu1 %v4555_v44  ;;  %v11689_v59 = vpop.f32.mrf.mxu0  ;;  %v7615_v44 = vld [vmem:[%s13192_s3 + $0x324] ss:$16 sps:$4 sm:$0xff]  }
 0x45b   : > { %14104 = vst [vmem:[#allocation267_spill] sm:$0xff] %v11689_v59  ;;  %v7670_v59 = vld [vmem:[%s13192_s3 + $0x2a8] ss:$16 sps:$4 sm:$0xff]  }
 0x45c   : > { %v11691_v56 = vpop.f32.mrf.mxu0 }
 0x45d   : > { %6034 = vmatpush2.bf16.msra.mxu1 %v4554_v25  ;;  %14105 = vst [vmem:[#allocation265_spill] sm:$0xff] %v11691_v56  ;;  %v7618_v25 = vld [vmem:[%s13192_s3 + $0x12c] ss:$16 sps:$4 sm:$0xff]  }
 0x45e   : > { %6035 = vmatprep.subr.bf16.mxu1 %v4553_v33  ;;  %v11705_v19 = vpop.f32.mrf.mxu0  ;;  %v7675_v56 = vld [vmem:[%s13192_s3 + $0x2cc] ss:$16 sps:$4 sm:$0xff]  }
 0x45f   : > { %14106 = vst [vmem:[#allocation270_spill] sm:$0xff] %v11705_v19 }
 0x460   : > { %5837 = vmatmul.mubr.bf16.gmra.mxu0 %v7556_v22  ;;  %v11707_v17 = vpop.f32.mrf.mxu0 }
 0x461   : > { %6036 = vmatpush2.bf16.msra.mxu1 %v4552_v48  ;;  %5846 = vmatprep.mubr.bf16.mxu0 %v7561_v35  ;;  %14107 = vst [vmem:[#allocation8_spill] sm:$0xff] %v11707_v17 }
 0x462   : > { %6037 = vmatprep.subr.bf16.mxu1 %v4551_v18  ;;  %v11721_v20 = vpop.f32.mrf.mxu0  ;;  %v7613_v18 = vld [vmem:[%s13192_s3 + $0x320] ss:$16 sps:$4 sm:$0xff]  }
 0x463   : > { %14108 = vst [vmem:[#allocation273_spill] sm:$0xff] %v11721_v20  ;;  %v7667_v20 = vld [vmem:[%s13192_s3 + $0x288] ss:$16 sps:$4 sm:$0xff]  }
 0x464   : > { %v11723_v28 = vpop.f32.mrf.mxu0 }
 0x465   : > { %6038 = vmatpush2.bf16.msra.mxu1 %v4550_v50  ;;  %14109 = vst [vmem:[#allocation26_spill] sm:$0xff] %v11723_v28  ;;  %v7616_v50 = vld [vmem:[%s13192_s3 + $0x128] ss:$16 sps:$4 sm:$0xff]   ;;  %v7672_v28 = vld [vmem:[%s13192_s3 + $0x2ac] ss:$16 sps:$4 sm:$0xff]  }
 0x466   : > { %v11737_v33 = vpop.f32.mrf.mxu0 }
 0x467   : > { %14110 = vst [vmem:[#allocation278_spill] sm:$0xff] %v11737_v33 }
 0x468   : > { %5847 = vmatmul.mubr.bf16.gmra.mxu0 %v7559_v47  ;;  %6040 = vmatmul.mubr.bf16.vlgmr.msra.gmra.mxu1 %v7562_v45  ;;  %v7621_v47 = vld [vmem:[%s13192_s3 + $0x344] ss:$16 sps:$4 sm:$0xff]   ;;  %v7624_v45 = vld [vmem:[%s13192_s3 + $0x14c] ss:$16 sps:$4 sm:$0xff]  }
 0x469   : > { %5856 = vmatprep.mubr.bf16.mxu0 %v7567_v10  ;;  %6049 = vmatprep.mubr.bf16.mxu1 %v7570_v34 }
 0x470   : > { %5857 = vmatmul.mubr.bf16.gmra.mxu0 %v7565_v61  ;;  %6050 = vmatmul.mubr.bf16.gmra.mxu1 %v7568_v29 }
 0x471   : > { %5866 = vmatprep.mubr.bf16.mxu0 %v7573_v16  ;;  %6059 = vmatprep.mubr.bf16.mxu1 %v7576_v41  ;;  %v7619_v16 = vld [vmem:[%s13192_s3 + $0x340] ss:$16 sps:$4 sm:$0xff]   ;;  %v7622_v41 = vld [vmem:[%s13192_s3 + $0x148] ss:$16 sps:$4 sm:$0xff]  }
 0x478   : > { %5867 = vmatmul.mubr.bf16.gmra.mxu0 %v7571_v39  ;;  %6060 = vmatmul.mubr.bf16.gmra.mxu1 %v7574_v9  ;;  %v7627_v39 = vld [vmem:[%s13192_s3 + $0x364] ss:$16 sps:$4 sm:$0xff]   ;;  %v7630_v9 = vld [vmem:[%s13192_s3 + $0x16c] ss:$16 sps:$4 sm:$0xff]  }
 0x479   : > { %5876 = vmatprep.mubr.bf16.mxu0 %v7579_v49  ;;  %6069 = vmatprep.mubr.bf16.mxu1 %v7582_v5 }
 0x480   : > { %5877 = vmatmul.mubr.bf16.gmra.mxu0 %v7577_v14  ;;  %6070 = vmatmul.mubr.bf16.gmra.mxu1 %v7580_v58 }
 0x481   : > { %5886 = vmatprep.mubr.bf16.mxu0 %v7585_v2  ;;  %6079 = vmatprep.mubr.bf16.mxu1 %v7588_v51  ;;  %v7625_v2 = vld [vmem:[%s13192_s3 + $0x360] ss:$16 sps:$4 sm:$0xff]   ;;  %v7628_v51 = vld [vmem:[%s13192_s3 + $0x168] ss:$16 sps:$4 sm:$0xff]  }
 0x488   : > { %5887 = vmatmul.mubr.bf16.gmra.mxu0 %v7583_v38  ;;  %6080 = vmatmul.mubr.bf16.gmra.mxu1 %v7586_v23  ;;  %v7633_v38 = vld [vmem:[%s13192_s3 + $0x384] ss:$16 sps:$4 sm:$0xff]   ;;  %v7636_v23 = vld [vmem:[%s13192_s3 + $0x18c] ss:$16 sps:$4 sm:$0xff]  }
 0x489   : > { %5896 = vmatprep.mubr.bf16.mxu0 %v7591_v11  ;;  %6089 = vmatprep.mubr.bf16.mxu1 %v7594_v21 }
 0x490   : > { %5897 = vmatmul.mubr.bf16.gmra.mxu0 %v7589_v43  ;;  %6090 = vmatmul.mubr.bf16.gmra.mxu1 %v7592_v37 }
 0x491   : > { %5906 = vmatprep.mubr.bf16.mxu0 %v7597_v31  ;;  %6099 = vmatprep.mubr.bf16.mxu1 %v7600_v3  ;;  %v7631_v31 = vld [vmem:[%s13192_s3 + $0x380] ss:$16 sps:$4 sm:$0xff]   ;;  %v7634_v3 = vld [vmem:[%s13192_s3 + $0x188] ss:$16 sps:$4 sm:$0xff]  }
 0x498   : > { %5907 = vmatmul.mubr.bf16.gmra.mxu0 %v7595_v8  ;;  %6100 = vmatmul.mubr.bf16.gmra.mxu1 %v7598_v6  ;;  %v7639_v8 = vld [vmem:[%s13192_s3 + $0x3a4] ss:$16 sps:$4 sm:$0xff]   ;;  %v7642_v6 = vld [vmem:[%s13192_s3 + $0x1ac] ss:$16 sps:$4 sm:$0xff]  }
 0x499   : > { %5916 = vmatprep.mubr.bf16.mxu0 %v7603_v12  ;;  %6109 = vmatprep.mubr.bf16.mxu1 %v7606_v26 }
 0x4a0   : > { %5917 = vmatmul.mubr.bf16.gmra.mxu0 %v7601_v42  ;;  %6110 = vmatmul.mubr.bf16.gmra.mxu1 %v7604_v27 }
 0x4a1   : > { %5926 = vmatprep.mubr.bf16.mxu0 %v7609_v36  ;;  %6119 = vmatprep.mubr.bf16.mxu1 %v7612_v7  ;;  %v7637_v36 = vld [vmem:[%s13192_s3 + $0x3a0] ss:$16 sps:$4 sm:$0xff]   ;;  %v7640_v7 = vld [vmem:[%s13192_s3 + $0x1a8] ss:$16 sps:$4 sm:$0xff]  }
 0x4a8   : > { %v11739_v22 = vpop.f32.mrf.mxu0  ;;  %5927 = vmatmul.mubr.bf16.gmra.mxu0 %v7607_v53  ;;  %6120 = vmatmul.mubr.bf16.gmra.mxu1 %v7610_v1  ;;  %v7645_v53 = vld [vmem:[%s13192_s3 + $0x3c4] ss:$16 sps:$4 sm:$0xff]   ;;  %v7648_v1 = vld [vmem:[%s13192_s3 + $0x1cc] ss:$16 sps:$4 sm:$0xff]  }
 0x4a9   : > { %5936 = vmatprep.mubr.bf16.mxu0 %v7615_v44  ;;  %6129 = vmatprep.mubr.bf16.mxu1 %v7618_v25 }
 0x4aa   : > { %v11741_v35 = vpop.f32.mrf.mxu0 }
 0x4ac   : > { %v11743_v48 = vpop.f32.mrf.mxu0 }
 0x4ae   : > { %v11757_v10 = vpop.f32.mrf.mxu0 }
 0x4b0   : > { %v11759_v34 = vpop.f32.mrf.mxu0  ;;  %5937 = vmatmul.mubr.bf16.gmra.mxu0 %v7613_v18  ;;  %6130 = vmatmul.mubr.bf16.gmra.mxu1 %v7616_v50 }
 0x4b1   : > { %5946 = vmatprep.mubr.bf16.mxu0 %v7621_v47  ;;  %6139 = vmatprep.mubr.bf16.mxu1 %v7624_v45  ;;  %v7643_v47 = vld [vmem:[%s13192_s3 + $0x3c0] ss:$16 sps:$4 sm:$0xff]   ;;  %v7646_v45 = vld [vmem:[%s13192_s3 + $0x1c8] ss:$16 sps:$4 sm:$0xff]  }
 0x4b2   : > { %v11761_v61 = vpop.f32.mrf.mxu0 }
 0x4b4   : > { %v11763_v29 = vpop.f32.mrf.mxu0 }
 0x4b6   : > { %v11777_v49 = vpop.f32.mrf.mxu0 }
 0x4b8   : > { %v11779_v5 = vpop.f32.mrf.mxu0  ;;  %5947 = vmatmul.mubr.bf16.gmra.mxu0 %v7619_v16  ;;  %6140 = vmatmul.mubr.bf16.gmra.mxu1 %v7622_v41  ;;  %v7651_v16 = vld [vmem:[%s13192_s3 + $0x3e4] ss:$16 sps:$4 sm:$0xff]   ;;  %v7654_v41 = vld [vmem:[%s13192_s3 + $0x1ec] ss:$16 sps:$4 sm:$0xff]  }
 0x4b9   : > { %5956 = vmatprep.mubr.bf16.mxu0 %v7627_v39  ;;  %6149 = vmatprep.mubr.bf16.mxu1 %v7630_v9 }
 0x4ba   : > { %v11781_v14 = vpop.f32.mrf.mxu0 }
 0x4bc   : > { %v11783_v58 = vpop.f32.mrf.mxu0 }
 0x4be   : > { %v11797_v11 = vpop.f32.mrf.mxu0 }
 0x4c0   : > { %v11799_v21 = vpop.f32.mrf.mxu0  ;;  %5957 = vmatmul.mubr.bf16.gmra.mxu0 %v7625_v2  ;;  %6150 = vmatmul.mubr.bf16.gmra.mxu1 %v7628_v51 }
 0x4c1   : > { %5966 = vmatprep.mubr.bf16.mxu0 %v7633_v38  ;;  %6159 = vmatprep.mubr.bf16.mxu1 %v7636_v23  ;;  %v7649_v38 = vld [vmem:[%s13192_s3 + $0x3e0] ss:$16 sps:$4 sm:$0xff]   ;;  %v7652_v23 = vld [vmem:[%s13192_s3 + $0x1e8] ss:$16 sps:$4 sm:$0xff]  }
 0x4c2   : > { %v11801_v43 = vpop.f32.mrf.mxu0 }
 0x4c4   : > { %v11803_v37 = vpop.f32.mrf.mxu0 }
 0x4c6   : > { %v11817_v12 = vpop.f32.mrf.mxu0 }
 0x4c8   : > { %v11819_v26 = vpop.f32.mrf.mxu0  ;;  %5967 = vmatmul.mubr.bf16.gmra.mxu0 %v7631_v31  ;;  %6160 = vmatmul.mubr.bf16.gmra.mxu1 %v7634_v3  ;;  %v7657_v31 = vld [vmem:[%s13192_s3 + $0x20c] ss:$16 sps:$4 sm:$0xff]  }
 0x4c9   : > { %5976 = vmatprep.mubr.bf16.mxu0 %v7639_v8  ;;  %6169 = vmatprep.mubr.bf16.mxu1 %v7642_v6 }
 0x4ca   : > { %v11821_v42 = vpop.f32.mrf.mxu0 }
 0x4cc   : > { %v11823_v27 = vpop.f32.mrf.mxu0 }
 0x4ce   : > { %v11837_v44 = vpop.f32.mrf.mxu0 }
 0x4d0   : > { %v11839_v25 = vpop.f32.mrf.mxu0  ;;  %5977 = vmatmul.mubr.bf16.gmra.mxu0 %v7637_v36  ;;  %6170 = vmatmul.mubr.bf16.gmra.mxu1 %v7640_v7  ;;  %v7655_v7 = vld [vmem:[%s13192_s3 + $0x208] ss:$16 sps:$4 sm:$0xff]  }
 0x4d1   : > { %5986 = vmatprep.mubr.bf16.mxu0 %v7645_v53  ;;  %6179 = vmatprep.mubr.bf16.mxu1 %v7648_v1  ;;  %v7660_v53 = vld [vmem:[%s13192_s3 + $0x22c] ss:$16 sps:$4 sm:$0xff]  }
 0x4d2   : > { %v11841_v18 = vpop.f32.mrf.mxu0 }
 0x4d4   : > { %v11843_v50 = vpop.f32.mrf.mxu0 }
 0x4d6   : > { %v11857_v39 = vpop.f32.mrf.mxu0 }
 0x4d8   : > { %v11859_v9 = vpop.f32.mrf.mxu0  ;;  %5987 = vmatmul.mubr.bf16.gmra.mxu0 %v7643_v47  ;;  %6180 = vmatmul.mubr.bf16.gmra.mxu1 %v7646_v45 }
 0x4d9   : > { %5996 = vmatprep.mubr.bf16.mxu0 %v7651_v16  ;;  %6189 = vmatprep.mubr.bf16.mxu1 %v7654_v41  ;;  %v7658_v41 = vld [vmem:[%s13192_s3 + $0x228] ss:$16 sps:$4 sm:$0xff]  }
 0x4da   : > { %v11861_v2 = vpop.f32.mrf.mxu0 }
 0x4dc   : > { %v11863_v51 = vpop.f32.mrf.mxu0 }
 0x4de   : > { %v11874_v3 = vpop.f32.mrf.mxu0 }
 0x4e0   : > { %v11876_v8 = vpop.f32.mrf.mxu0  ;;  %5997 = vmatmul.mubr.bf16.gmra.mxu0 %v7649_v38  ;;  %6190 = vmatmul.mubr.bf16.gmra.mxu1 %v7652_v23  ;;  %v7663_v38 = vld [vmem:[%s13192_s3 + $0x24c] ss:$16 sps:$4 sm:$0xff]  }
 0x4e1   : > { %6199 = vmatprep.mubr.bf16.mxu1 %v7657_v31 }
 0x4e2   : > { %v11878_v6 = vpop.f32.mrf.mxu0 }
 0x4e4   : > { %v11880_v36 = vpop.f32.mrf.mxu0 }
 0x4e6   : > { %v11888_v1 = vpop.f32.mrf.mxu0 }
 0x4e8   : > { %v11890_v47 = vpop.f32.mrf.mxu0  ;;  %6200 = vmatmul.mubr.bf16.gmra.mxu1 %v7655_v7 }
 0x4e9   : > { %6209 = vmatprep.mubr.bf16.mxu1 %v7660_v53 }
 0x4ea   : > { %v11892_v45 = vpop.f32.mrf.mxu0 }
 0x4ec   : > { %v11894_v16 = vpop.f32.mrf.mxu0 }
 0x4ee   : > { %v11902_v23 = vpop.f32.mrf.mxu0 }
 0x4f0   : > { %v11904_v31 = vpop.f32.mrf.mxu0  ;;  %6210 = vmatmul.mubr.bf16.gmra.mxu1 %v7658_v41 }
 0x4f1   : > { %6219 = vmatprep.mubr.bf16.mxu1 %v7663_v38 }
 0x4f2   : > { %v11906_v7 = vpop.f32.mrf.mxu0 }
 0x4f4   : > { %v11908_v53 = vpop.f32.mrf.mxu0 }
 0x4f6   : > { %v11916_v13 = vpop.f32.mrf.mxu0 }
 0x4f8   : > { %v11918_v52 = vpop.f32.mrf.mxu0  ;;  %6220 = vmatmul.mubr.bf16.gmra.mxu1 %v7661_v32 }
 0x4f9   : > { %6229 = vmatprep.mubr.bf16.mxu1 %v7666_v55 }
 0x4fa   : > { %v11920_v41 = vpop.f32.mrf.mxu0 }
 0x4fb   : > { %14111 = vst [vmem:[#allocation275_spill] sm:$0xff] %v11920_v41 }
 0x4fc   : > { %v11922_v38 = vpop.f32.mrf.mxu0 }
 0x4fe   : > { %v11930_v57 = vpop.f32.mrf.mxu0 }
 0x4ff   : > { %14112 = vst [vmem:[#allocation281_spill] sm:$0xff] %v11930_v57 }
 0x500   : > { %v11932_v33 = vpop.f32.mrf.mxu0  ;;  %6230 = vmatmul.mubr.bf16.gmra.mxu1 %v7664_v46 }
 0x501   : > { %14113 = vst [vmem:[#allocation5_spill] sm:$0xff] %v11932_v33  ;;  %6239 = vmatprep.mubr.bf16.mxu1 %v7669_v30 }
 0x502   : > { %v11934_v32 = vpop.f32.mrf.mxu0 }
 0x503   : > { %14114 = vst [vmem:[#allocation283_spill] sm:$0xff] %v11934_v32  ;;  %v7679_v32 = vld [vmem:[%s13192_s3 + $0x308] ss:$16 sps:$4 sm:$0xff]  }
 0x504   : > { %v11936_v55 = vpop.f32.mrf.mxu0 }
 0x505   : > { %14115 = vst [vmem:[#allocation4_spill] sm:$0xff] %v11936_v55  ;;  %v14210_v55 = vld [vmem:[#allocation150_spill] sm:$0xff] }
 0x506   : > { %v11944_v17 = vpop.f32.mrf.mxu0 }
 0x507   : > { %14116 = vst [vmem:[#allocation288_spill] sm:$0xff] %v11944_v17 }
 0x508   : > { %v11946_v19 = vpop.f32.mrf.mxu0  ;;  %6240 = vmatmul.mubr.bf16.gmra.mxu1 %v7667_v20 }
 0x509   : > { %14117 = vst [vmem:[#allocation286_spill] sm:$0xff] %v11946_v19  ;;  %6249 = vmatprep.mubr.bf16.mxu1 %v7672_v28  ;;  %v14201_v19 = vld [vmem:[#allocation12_spill] sm:$0xff] }
 0x50a   : > { %v11948_v46 = vpop.f32.mrf.mxu0 }
 0x50b   : > { %14118 = vst [vmem:[#allocation75_spill] sm:$0xff] %v11948_v46  ;;  %v7684_v46 = vld [vmem:[%s13192_s3 + $0x32c] ss:$16 sps:$4 sm:$0xff]  }
 0x50c   : > { %v11950_v30 = vpop.f32.mrf.mxu0 }
 0x50d   : > { %14119 = vst [vmem:[#allocation74_spill] sm:$0xff] %v11950_v30 }
 0x50e   : > { %v11958_v63 = vpop.f32.mrf.mxu0 }
 0x50f   : > { %14120 = vst [vmem:[#allocation295_spill] sm:$0xff] %v11958_v63 }
 0x510   : > { %v11960_v24 = vpop.f32.mrf.mxu0  ;;  %6250 = vmatmul.mubr.bf16.gmra.mxu1 %v7670_v59 }
 0x511   : > { %14121 = vst [vmem:[#allocation71_spill] sm:$0xff] %v11960_v24  ;;  %6259 = vmatprep.mubr.bf16.mxu1 %v7675_v56 }
 0x512   : > { %v11962_v20 = vpop.f32.mrf.mxu0 }
 0x513   : > { %14122 = vst [vmem:[#allocation296_spill] sm:$0xff] %v11962_v20  ;;  %v14133_v20 = vld [vmem:[#allocation164_spill] sm:$0xff] }
 0x514   : > { %v11964_v28 = vpop.f32.mrf.mxu0  ;;  %v5689_v41 = vadd.f32 %v11739_v22, %v14133_v20 }
 0x515   : > { %14123 = vst [vmem:[#allocation70_spill] sm:$0xff] %v11964_v28  ;;  %v14139_v28 = vld [vmem:[#allocation167_spill] sm:$0xff] }
 0x516   : > { %v11972_v4 = vpop.f32.mrf.mxu0  ;;  %v5693_v22 = vadd.f32 %v11743_v48, %v14139_v28 }
 0x517   : > { %14124 = vst [vmem:[#allocation298_spill] sm:$0xff] %v11972_v4 }
 0x518   : > { %v11974_v0 = vpop.f32.mrf.mxu0  ;;  %6260 = vmatmul.mubr.bf16.gmra.mxu1 %v7673_v40 }
 0x519   : > { %14125 = vst [vmem:[#allocation297_spill] sm:$0xff] %v11974_v0  ;;  %6269 = vmatprep.mubr.bf16.mxu1 %v7678_v62 }
 0x51a   : > { %v11976_v59 = vpop.f32.mrf.mxu0 }
 0x51b   : > { %14126 = vst [vmem:[#allocation299_spill] sm:$0xff] %v11976_v59  ;;  %v5691_v59 = vadd.f32 %v11741_v35, %v14133_v20  ;;  %v14141_v35 = vld [vmem:[#allocation82_spill] sm:$0xff]  ;;  %v5695_v20 = vadd.f32 %v11757_v10, %v14139_v28 }
 0x51c   : > { %v11978_v56 = vpop.f32.mrf.mxu0 }
 0x51d   : > { %14127 = vst [vmem:[#allocation67_spill] sm:$0xff] %v11978_v56 }
 0x51e   : > { %v11986_v57 = vpop.f32.mrf.mxu0 }
 0x51f   : > { %14128 = vst [vmem:[#allocation300_spill] sm:$0xff] %v11986_v57 }
 0x520   : > { %v11988_v17 = vpop.f32.mrf.mxu0  ;;  %6270 = vmatmul.mubr.bf16.gmra.mxu1 %v7676_v54  ;;  %v14135_v54 = vld [vmem:[#allocation83_spill] sm:$0xff] }
 0x521   : > { %14129 = vst [vmem:[#allocation66_spill] sm:$0xff] %v11988_v17  ;;  %6279 = vmatprep.mubr.bf16.mxu1 %v7681_v15 }
 0x522   : > { %v11990_v40 = vpop.f32.mrf.mxu0 }
 0x523   : > { %14130 = vst [vmem:[#allocation302_spill] sm:$0xff] %v11990_v40  ;;  %v14136_v40 = vld [vmem:[#allocation29_spill] sm:$0xff] }
 0x524   : > { %v11992_v62 = vpop.f32.mrf.mxu0 }
 0x525   : > { %14131 = vst [vmem:[#allocation301_spill] sm:$0xff] %v11992_v62  ;;  %v2198_v62 = vadd.f32 %v14136_v40, %v14135_v54  ;;  %v7682_v40 = vld [vmem:[%s13192_s3 + $0x328] ss:$16 sps:$4 sm:$0xff]  }
 0x526   : > { %v12000_v63 = vpop.f32.mrf.mxu0 }
 0x527   : > { %14132 = vst [vmem:[#allocation303_spill] sm:$0xff] %v12000_v63  ;;  %v14138_v63 = vld [vmem:[#allocation31_spill] sm:$0xff] }
 0x528   : > { %v12004_v4 = vpop.f32.mrf.mxu0  ;;  %v6041_v15 = vpop.f32.mrf.mxu1  ;;  %6280 = vmatmul.mubr.bf16.gmra.mxu1 %v7679_v32  ;;  %v2200_v0 = vadd.f32 %v14138_v63, %v14135_v54  ;;  %v14146_v54 = vld [vmem:[#allocation157_spill] sm:$0xff] }
 0x529   : > { %14134 = vst [vmem:[#allocation65_spill] sm:$0xff] %v12004_v4  ;;  %v6042_v17 = vadd.f32 %v6041_v15, %v5689_v41  ;;  %6289 = vmatprep.mubr.bf16.mxu1 %v7684_v46  ;;  %v14142_v41 = vld [vmem:[#allocation108_spill] sm:$0xff] }
 0x52a   : > { %v12010_v57 = vpop.f32.mrf.mxu0  ;;  %v6043_v56 = vpop.f32.mrf.mxu1  ;;  %v2202_v46 = vadd.f32 %v14142_v41, %v14141_v35 }
 0x52b   : > { %14137 = vst [vmem:[#allocation304_spill] sm:$0xff] %v12010_v57  ;;  %v12016_v4 = vadd.f32 %v6042_v17, %v2198_v62  ;;  %v6044_v32 = vadd.f32 %v6043_v56, %v5691_v59  ;;  %v7687_v17 = vld [vmem:[%s13192_s3 + $0x34c] ss:$16 sps:$4 sm:$0xff]   ;;  %v14145_v56 = vld [vmem:[#allocation34_spill] sm:$0xff]  ;;  %v5699_v57 = vadd.f32 %v11759_v34, %v14146_v54 }
 0x52c   : > { %v6045_v24 = vpop.f32.mrf.mxu1  ;;  %v12030_v48 = vpop.f32.mrf.mxu0  ;;  %v2204_v62 = vadd.f32 %v14145_v56, %v14141_v35  ;;  %v5701_v35 = vadd.f32 %v11761_v61, %v14146_v54  ;;  %v7685_v61 = vld [vmem:[%s13192_s3 + $0x348] ss:$16 sps:$4 sm:$0xff]   ;;  %v14156_v54 = vld [vmem:[#allocation112_spill] sm:$0xff] }
 0x52d   : > { %14140 = vst [vmem:[#allocation305_spill] sm:$0xff] %v12016_v4  ;;  %v12025_v15 = vadd.f32 %v6044_v32, %v2200_v0  ;;  %v6046_v63 = vadd.f32 %v6045_v24, %v5693_v22  ;;  %14144 = vst [vmem:[#allocation306_spill] sm:$0xff] %v12030_v48  ;;  %v14148_v0 = vld [vmem:[#allocation85_spill] sm:$0xff]  ;;  %v14149_v24 = vld [vmem:[#allocation110_spill] sm:$0xff] }
 0x52e   : > { %v6047_v59 = vpop.f32.mrf.mxu1  ;;  %v2208_v28 = vadd.f32 %v14149_v24, %v14148_v0  ;;  %v12046_v56 = vpop.f32.mrf.mxu0  ;;  %v14160_v22 = vld [vmem:[#allocation149_spill] sm:$0xff] }
 0x52f   : > { %14143 = vst [vmem:[#allocation64_spill] sm:$0xff] %v12025_v15  ;;  %v12036_v41 = vadd.f32 %v6046_v63, %v2202_v46  ;;  %v6048_v30 = vadd.f32 %v6047_v59, %v5695_v20  ;;  %14151 = vst [vmem:[#allocation308_spill] sm:$0xff] %v12046_v56  ;;  %v14152_v46 = vld [vmem:[#allocation156_spill] sm:$0xff]  ;;  %v14202_v15 = vld [vmem:[#allocation142_spill] sm:$0xff] }
 0x530   : > { %v6051_v10 = vpop.f32.mrf.mxu1  ;;  %6290 = vmatmul.mubr.bf16.gmra.mxu1 %v7682_v40  ;;  %v5703_v20 = vadd.f32 %v11763_v29, %v14152_v46  ;;  %v14154_v59 = vld [vmem:[#allocation36_spill] sm:$0xff]  ;;  %v5705_v29 = vadd.f32 %v11777_v49, %v14152_v46  ;;  %v5709_v40 = vadd.f32 %v11779_v5, %v14160_v22  ;;  %v14162_v46 = vld [vmem:[#allocation87_spill] sm:$0xff] }
 0x531   : > { %14147 = vst [vmem:[#allocation307_spill] sm:$0xff] %v12036_v41  ;;  %v12042_v32 = vadd.f32 %v6048_v30, %v2204_v62  ;;  %v6052_v48 = vadd.f32 %v6051_v10, %v5699_v57  ;;  %6299 = vmatprep.mubr.bf16.mxu1 %v7687_v17  ;;  %v2210_v30 = vadd.f32 %v14154_v59, %v14148_v0  ;;  %v14155_v17 = vld [vmem:[#allocation84_spill] sm:$0xff] }
 0x532   : > { %v6053_v34 = vpop.f32.mrf.mxu1  ;;  %v2212_v10 = vadd.f32 %v14156_v54, %v14155_v17 }
 0x533   : > { %14150 = vst [vmem:[#allocation63_spill] sm:$0xff] %v12042_v32  ;;  %v12052_v63 = vadd.f32 %v6052_v48, %v2208_v28  ;;  %v6054_v62 = vadd.f32 %v6053_v34, %v5701_v35  ;;  %v7690_v48 = vld [vmem:[%s13192_s3 + $0x36c] ss:$16 sps:$4 sm:$0xff]   ;;  %v12066_v28 = vpop.f32.mrf.mxu0  ;;  %v14159_v34 = vld [vmem:[#allocation38_spill] sm:$0xff] }
 0x534   : > { %v6055_v57 = vpop.f32.mrf.mxu1  ;;  %14157 = vst [vmem:[#allocation62_spill] sm:$0xff] %v12066_v28  ;;  %v2214_v59 = vadd.f32 %v14159_v34, %v14155_v17  ;;  %v5711_v17 = vadd.f32 %v11781_v14, %v14160_v22  ;;  %v7688_v14 = vld [vmem:[%s13192_s3 + $0x368] ss:$16 sps:$4 sm:$0xff]   ;;  %v14169_v22 = vld [vmem:[#allocation86_spill] sm:$0xff] }
 0x535   : > { %14153 = vst [vmem:[#allocation309_spill] sm:$0xff] %v12052_v63  ;;  %v6056_v24 = vadd.f32 %v6055_v57, %v5703_v20  ;;  %v12068_v0 = vadd.f32 %v6054_v62, %v2210_v30  ;;  %v14163_v20 = vld [vmem:[#allocation114_spill] sm:$0xff]  ;;  %v12084_v34 = vpop.f32.mrf.mxu0  ;;  %v14174_v28 = vld [vmem:[#allocation141_spill] sm:$0xff] }
 0x536   : > { %v6057_v35 = vpop.f32.mrf.mxu1  ;;  %v2218_v57 = vadd.f32 %v14163_v20, %v14162_v46  ;;  %14165 = vst [vmem:[#allocation312_spill] sm:$0xff] %v12084_v34 }
 0x537   : > { %14158 = vst [vmem:[#allocation310_spill] sm:$0xff] %v12068_v0  ;;  %v12074_v54 = vadd.f32 %v6056_v24, %v2212_v10  ;;  %v6058_v56 = vadd.f32 %v6057_v35, %v5705_v29  ;;  %v14166_v10 = vld [vmem:[#allocation148_spill] sm:$0xff]  ;;  %v14168_v35 = vld [vmem:[#allocation115_spill] sm:$0xff]  ;;  %v14206_v0 = vld [vmem:[#allocation117_spill] sm:$0xff] }
 0x538   : > { %v6061_v49 = vpop.f32.mrf.mxu1  ;;  %6300 = vmatmul.mubr.bf16.gmra.mxu1 %v7685_v61  ;;  %v5713_v29 = vadd.f32 %v11783_v58, %v14166_v10  ;;  %v5715_v58 = vadd.f32 %v11797_v11, %v14166_v10  ;;  %v5719_v61 = vadd.f32 %v11799_v21, %v14174_v28  ;;  %v14176_v10 = vld [vmem:[#allocation89_spill] sm:$0xff] }
 0x539   : > { %14161 = vst [vmem:[#allocation311_spill] sm:$0xff] %v12074_v54  ;;  %v12080_v30 = vadd.f32 %v6058_v56, %v2214_v59  ;;  %v6062_v62 = vadd.f32 %v6061_v49, %v5709_v40  ;;  %6309 = vmatprep.mubr.bf16.mxu1 %v7690_v48  ;;  %v2220_v56 = vadd.f32 %v14168_v35, %v14162_v46  ;;  %v14170_v48 = vld [vmem:[#allocation118_spill] sm:$0xff]  ;;  %v14204_v54 = vld [vmem:[#allocation113_spill] sm:$0xff] }
 0x53a   : > { %v6063_v5 = vpop.f32.mrf.mxu1  ;;  %v2222_v49 = vadd.f32 %v14170_v48, %v14169_v22 }
 0x53b   : > { %14164 = vst [vmem:[#allocation61_spill] sm:$0xff] %v12080_v30  ;;  %v12090_v24 = vadd.f32 %v6062_v62, %v2218_v57  ;;  %v6064_v59 = vadd.f32 %v6063_v5, %v5711_v17  ;;  %v7693_v57 = vld [vmem:[%s13192_s3 + $0x38c] ss:$16 sps:$4 sm:$0xff]   ;;  %v12104_v62 = vpop.f32.mrf.mxu0 }
 0x53c   : > { %v6065_v40 = vpop.f32.mrf.mxu1  ;;  %14171 = vst [vmem:[#allocation314_spill] sm:$0xff] %v12104_v62  ;;  %v14173_v5 = vld [vmem:[#allocation119_spill] sm:$0xff] }
 0x53d   : > { %14167 = vst [vmem:[#allocation60_spill] sm:$0xff] %v12090_v24  ;;  %v6066_v20 = vadd.f32 %v6065_v40, %v5713_v29  ;;  %v12106_v46 = vadd.f32 %v6064_v59, %v2220_v56  ;;  %v2224_v35 = vadd.f32 %v14173_v5, %v14169_v22  ;;  %v14177_v29 = vld [vmem:[#allocation122_spill] sm:$0xff]  ;;  %v5721_v22 = vadd.f32 %v11801_v43, %v14174_v28  ;;  %v12122_v5 = vpop.f32.mrf.mxu0  ;;  %v7691_v43 = vld [vmem:[%s13192_s3 + $0x388] ss:$16 sps:$4 sm:$0xff]   ;;  %v14183_v28 = vld [vmem:[#allocation88_spill] sm:$0xff] }
 0x53e   : > { %v6067_v17 = vpop.f32.mrf.mxu1  ;;  %v2228_v40 = vadd.f32 %v14177_v29, %v14176_v10  ;;  %14179 = vst [vmem:[#allocation316_spill] sm:$0xff] %v12122_v5  ;;  %v14188_v5 = vld [vmem:[#allocation133_spill] sm:$0xff] }
 0x53f   : > { %14172 = vst [vmem:[#allocation313_spill] sm:$0xff] %v12106_v46  ;;  %v12112_v48 = vadd.f32 %v6066_v20, %v2222_v49  ;;  %v6068_v34 = vadd.f32 %v6067_v17, %v5715_v58  ;;  %v14180_v49 = vld [vmem:[#allocation140_spill] sm:$0xff]  ;;  %v14182_v17 = vld [vmem:[#allocation123_spill] sm:$0xff] }
 0x540   : > { %v6071_v11 = vpop.f32.mrf.mxu1  ;;  %6310 = vmatmul.mubr.bf16.gmra.mxu1 %v7688_v14  ;;  %v5723_v58 = vadd.f32 %v11803_v37, %v14180_v49  ;;  %v5725_v37 = vadd.f32 %v11817_v12, %v14180_v49  ;;  %v5729_v12 = vadd.f32 %v11819_v26, %v14188_v5  ;;  %v7694_v26 = vld [vmem:[%s13192_s3 + $0x3a8] ss:$16 sps:$4 sm:$0xff]  }
 0x541   : > { %14175 = vst [vmem:[#allocation315_spill] sm:$0xff] %v12112_v48  ;;  %v12118_v56 = vadd.f32 %v6068_v34, %v2224_v35  ;;  %v6072_v59 = vadd.f32 %v6071_v11, %v5719_v61  ;;  %6319 = vmatprep.mubr.bf16.mxu1 %v7693_v57  ;;  %v2230_v34 = vadd.f32 %v14182_v17, %v14176_v10  ;;  %v14184_v57 = vld [vmem:[#allocation126_spill] sm:$0xff]  ;;  %v14212_v48 = vld [vmem:[#allocation32_spill] sm:$0xff] }
 0x542   : > { %v6073_v21 = vpop.f32.mrf.mxu1  ;;  %v2232_v11 = vadd.f32 %v14184_v57, %v14183_v28  ;;  %v5759_v33 = vadd.f32 %v11876_v8, %v14212_v48  ;;  %v5755_v8 = vadd.f32 %v11874_v3, %v14206_v0  ;;  %v5751_v3 = vadd.f32 %v11861_v2, %v14204_v54 }
 0x543   : > { %14178 = vst [vmem:[#allocation59_spill] sm:$0xff] %v12118_v56  ;;  %v12128_v20 = vadd.f32 %v6072_v59, %v2228_v40  ;;  %v6074_v35 = vadd.f32 %v6073_v21, %v5721_v22  ;;  %v7696_v40 = vld [vmem:[%s13192_s3 + $0x3ac] ss:$16 sps:$4 sm:$0xff]   ;;  %v12142_v59 = vpop.f32.mrf.mxu0 }
 0x544   : > { %v6075_v61 = vpop.f32.mrf.mxu1  ;;  %14185 = vst [vmem:[#allocation318_spill] sm:$0xff] %v12142_v59  ;;  %v14186_v21 = vld [vmem:[#allocation127_spill] sm:$0xff] }
 0x545   : > { %14181 = vst [vmem:[#allocation58_spill] sm:$0xff] %v12128_v20  ;;  %v6076_v29 = vadd.f32 %v6075_v61, %v5723_v58  ;;  %v12144_v10 = vadd.f32 %v6074_v35, %v2230_v34  ;;  %v2234_v17 = vadd.f32 %v14186_v21, %v14183_v28  ;;  %v12156_v34 = vpop.f32.mrf.mxu0  ;;  %v14190_v61 = vld [vmem:[#allocation132_spill] sm:$0xff]  ;;  %v14194_v21 = vld [vmem:[#allocation134_spill] sm:$0xff] }
 0x546   : > { %v6077_v22 = vpop.f32.mrf.mxu1  ;;  %14189 = vst [vmem:[#allocation319_spill] sm:$0xff] %v12156_v34  ;;  %v5733_v28 = vadd.f32 %v11823_v27, %v14190_v61  ;;  %v7699_v27 = vld [vmem:[%s13192_s3 + $0x3cc] ss:$16 sps:$4 sm:$0xff]  }
 0x547   : > { %v12148_v62 = vadd.f32 %v6076_v29, %v2232_v11  ;;  %v6078_v14 = vadd.f32 %v6077_v22, %v5725_v37  ;;  %v14191_v29 = vld [vmem:[#allocation91_spill] sm:$0xff] }
 0x548   : > { %v6081_v57 = vpop.f32.mrf.mxu1  ;;  %6320 = vmatmul.mubr.bf16.gmra.mxu1 %v7691_v43 }
 0x549   : > { %14187 = vst [vmem:[#allocation317_spill] sm:$0xff] %v12148_v62  ;;  %v12154_v58 = vadd.f32 %v6078_v14, %v2234_v17  ;;  %6329 = vmatprep.mubr.bf16.mxu1 %v7696_v40  ;;  %v6082_v43 = vadd.f32 %v6081_v57, %v5729_v12  ;;  %v14192_v14 = vld [vmem:[#allocation130_spill] sm:$0xff]  ;;  %v12177_v12 = vpop.f32.mrf.mxu0  ;;  %v4777_v62 = vpop.permute.xlu0 %4776 }
 0x54a   : > { %v12158_v35 = vpop.f32.mrf.mxu1  ;;  %v2238_v22 = vadd.f32 %v14192_v14, %v14191_v29  ;;  %v14193_v40 = vld [vmem:[#allocation90_spill] sm:$0xff]  ;;  %14195 = vst [vmem:[#allocation57_spill] sm:$0xff] %v12177_v12  ;;  %v14198_v12 = vld [vmem:[#allocation124_spill] sm:$0xff] }
 0x54b   : > { %v2242_v17 = vadd.f32 %v14194_v21, %v14193_v40  ;;  %v7705_v57 = vld [vmem:[%s13193_s4 + $0x4] ss:$16 sps:$4 sm:$0xff]   ;;  %v12189_v4 = vpop.f32.mrf.mxu0  ;;  %v2252_v21 = vadd.f32 %v14202_v15, %v14201_v19  ;;  %v5745_v2 = vadd.f32 %v11857_v39, %v14198_v12 }
 0x54c   : > { %v6085_v37 = vpop.f32.mrf.mxu1  ;;  %v12181_v34 = vadd.f32 %v6082_v43, %v2238_v22  ;;  %6682 = vmatprep.mubr.bf16.mxu0 %v7705_v57  ;;  %14197 = vst [vmem:[#allocation320_spill] sm:$0xff] %v12189_v4  ;;  %v5743_v43 = vadd.f32 %v11843_v50, %v14198_v12  ;;  %v14200_v57 = vld [vmem:[#allocation138_spill] sm:$0xff]  ;;  %v7702_v4 = vld [vmem:[%s13192_s3 + $0x3ec] ss:$16 sps:$4 sm:$0xff]  }
 0x54d   : > { %v6086_v49 = vadd.f32 %v6085_v37, %v5733_v28  ;;  %v14196_v28 = vld [vmem:[#allocation125_spill] sm:$0xff]  ;;  %v12205_v32 = vpop.f32.mrf.mxu0 }
 0x54e   : > { %v12179_v11 = vpop.f32.mrf.mxu1  ;;  %v5739_v37 = vadd.f32 %v11839_v25, %v14196_v28  ;;  %14203 = vst [vmem:[#allocation56_spill] sm:$0xff] %v12205_v32  ;;  %v5753_v32 = vadd.f32 %v11863_v51, %v14206_v0  ;;  %v14221_v0 = vld [vmem:[#allocation35_spill] sm:$0xff] }
 0x54f   : > { %v12183_v59 = vadd.f32 %v6086_v49, %v2242_v17  ;;  %v14199_v17 = vld [vmem:[#allocation14_spill] sm:$0xff] }
 0x550   : > { %v6091_v14 = vpop.f32.mrf.mxu1  ;;  %6330 = vmatmul.mubr.bf16.gmra.mxu1 %v7694_v26  ;;  %v7697_v26 = vld [vmem:[%s13192_s3 + $0x3c8] ss:$16 sps:$4 sm:$0xff]   ;;  %v2248_v25 = vadd.f32 %v14200_v57, %v14199_v17  ;;  %v5749_v57 = vadd.f32 %v11859_v9, %v14204_v54 }
 0x551   : > { %6339 = vmatprep.mubr.bf16.mxu1 %v7699_v27  ;;  %v6092_v22 = vadd.f32 %v6091_v14, %v5739_v37  ;;  %v14209_v9 = vld [vmem:[#allocation13_spill] sm:$0xff] }
 0x552   : > { %v12191_v41 = vpop.f32.mrf.mxu1  ;;  %v2262_v24 = vadd.f32 %v14210_v55, %v14209_v9 }
 0x553   : > { %v12207_v14 = vadd.f32 %v6092_v22, %v2248_v25  ;;  %v14208_v25 = vld [vmem:[#allocation146_spill] sm:$0xff] }
 0x554   : > { %v6095_v49 = vpop.f32.mrf.mxu1 }
 0x555   : > { %v6096_v27 = vadd.f32 %v6095_v49, %v5743_v43  ;;  %v12215_v43 = vpop.f32.mrf.mxu0 }
 0x556   : > { %v6097_v50 = vpop.f32.mrf.mxu1  ;;  %14205 = vst [vmem:[#allocation322_spill] sm:$0xff] %v12215_v43 }
 0x557   : > { %v12209_v37 = vadd.f32 %v6096_v27, %v2252_v21  ;;  %v7700_v21 = vld [vmem:[%s13192_s3 + $0x3e8] ss:$16 sps:$4 sm:$0xff]  }
 0x558   : > { %v6101_v63 = vpop.f32.mrf.mxu1  ;;  %6340 = vmatmul.mubr.bf16.gmra.mxu1 %v7697_v26  ;;  %v14207_v26 = vld [vmem:[#allocation15_spill] sm:$0xff] }
 0x559   : > { %6349 = vmatprep.mubr.bf16.mxu1 %v7702_v4  ;;  %v6102_v30 = vadd.f32 %v6101_v63, %v5749_v57  ;;  %v2258_v27 = vadd.f32 %v14208_v25, %v14207_v26  ;;  %v12226_v4 = vpop.f32.mrf.mxu0  ;;  %v14213_v57 = vld [vmem:[#allocation131_spill] sm:$0xff] }
 0x55a   : > { %v6103_v49 = vpop.f32.mrf.mxu1  ;;  %14211 = vst [vmem:[#allocation321_spill] sm:$0xff] %v12226_v4  ;;  %v12236_v46 = vadd.f32 %v14213_v57, %v14191_v29  ;;  %v14214_v25 = vld [vmem:[#allocation135_spill] sm:$0xff] }
 0x55b   : > { %v12230_v51 = vadd.f32 %v6102_v30, %v2258_v27  ;;  %v12240_v56 = vadd.f32 %v14214_v25, %v14193_v40  ;;  %v14218_v27 = vld [vmem:[#allocation143_spill] sm:$0xff]  ;;  %v14225_v30 = vld [vmem:[#allocation158_spill] sm:$0xff]  ;;  %v6104_v54 = vadd.f32 %v6103_v49, %v5751_v3 }
 0x55c   : > { %v6105_v22 = vpop.f32.mrf.mxu1  ;;  %v2254_v57 = vadd.f32 %v14218_v27, %v14201_v19  ;;  %v14219_v40 = vld [vmem:[#allocation147_spill] sm:$0xff] }
 0x55d   : > { %v6106_v15 = vadd.f32 %v6105_v22, %v5753_v32  ;;  %v14215_v32 = vld [vmem:[#allocation17_spill] sm:$0xff]  ;;  %v14216_v22 = vld [vmem:[#allocation154_spill] sm:$0xff]  ;;  %v2260_v25 = vadd.f32 %v14219_v40, %v14207_v26  ;;  %v14223_v27 = vld [vmem:[#allocation155_spill] sm:$0xff] }
 0x55e   : > { %v6107_v43 = vpop.f32.mrf.mxu1  ;;  %v2268_v4 = vadd.f32 %v14216_v22, %v14215_v32  ;;  %v12256_v22 = vpop.f32.mrf.mxu0  ;;  %v2270_v26 = vadd.f32 %v14223_v27, %v14215_v32  ;;  %v14224_v40 = vld [vmem:[#allocation16_spill] sm:$0xff]  ;;  %v5741_v32 = vadd.f32 %v11841_v18, %v14196_v28  ;;  %v14228_v27 = vld [vmem:[#allocation42_spill] sm:$0xff] }
 0x55f   : > { %v12232_v63 = vadd.f32 %v6106_v15, %v2262_v24  ;;  %v14217_v15 = vld [vmem:[#allocation139_spill] sm:$0xff]  ;;  %14220 = vst [vmem:[#allocation323_spill] sm:$0xff] %v12256_v22  ;;  %v4782_v28 = vpop.permute.xlu1 %4781 }
 0x560   : > { %v6111_v55 = vpop.f32.mrf.mxu1  ;;  %6350 = vmatmul.mubr.bf16.gmra.mxu1 %v7700_v21  ;;  %v2250_v29 = vadd.f32 %v14217_v15, %v14199_v17  ;;  %v5761_v21 = vadd.f32 %v11878_v6, %v14212_v48  ;;  %v14222_v15 = vld [vmem:[#allocation151_spill] sm:$0xff]  ;;  %v2272_v6 = vadd.f32 %v14225_v30, %v14224_v40  ;;  %v12277_v30 = vpop.f32.mrf.mxu0  ;;  %v6094_v18 = vadd.f32 %v12191_v41, %v5741_v32 }
 0x561   : > { %v6112_v24 = vadd.f32 %v6111_v55, %v5759_v33  ;;  %v5763_v33 = vadd.f32 %v11880_v36, %v14221_v0  ;;  %v6108_v55 = vadd.f32 %v6107_v43, %v5755_v8  ;;  %v2264_v19 = vadd.f32 %v14222_v15, %v14209_v9  ;;  %14227 = vst [vmem:[#allocation55_spill] sm:$0xff] %v12277_v30  ;;  %v14236_v32 = vld [vmem:[#allocation271_spill] sm:$0xff] }
 0x562   : > { %v6113_v20 = vpop.f32.mrf.mxu1  ;;  %v5765_v36 = vadd.f32 %v11888_v1, %v14221_v0  ;;  %v5769_v8 = vadd.f32 %v11890_v47, %v4777_v62  ;;  %v14229_v1 = vld [vmem:[#allocation161_spill] sm:$0xff]  ;;  %v5735_v0 = vadd.f32 %v11837_v44, %v14190_v61  ;;  %v14347_v30 = vld [vmem:[#allocation211_spill] sm:$0xff] }
 0x563   : > { %v6388_v17 = vadd.f32 %v6112_v24, %v2268_v4  ;;  %v6114_v48 = vadd.f32 %v6113_v20, %v5761_v21  ;;  %v14226_v4 = vld [vmem:[#allocation159_spill] sm:$0xff]  ;;  %v6098_v21 = vadd.f32 %v6097_v50, %v5745_v2  ;;  %v6387_v15 = vadd.f32 %v6108_v55, %v2264_v19 }
 0x564   : > { %v6115_v22 = vpop.f32.mrf.mxu1  ;;  %v2274_v9 = vadd.f32 %v14226_v4, %v14224_v40  ;;  %v2278_v49 = vadd.f32 %v14229_v1, %v14228_v27  ;;  %v5731_v55 = vadd.f32 %v11821_v42, %v14188_v5  ;;  %v5771_v19 = vadd.f32 %v11892_v45, %v4777_v62  ;;  %v14235_v4 = vld [vmem:[#allocation166_spill] sm:$0xff]  ;;  %v14241_v1 = vld [vmem:[#allocation168_spill] sm:$0xff] }
 0x565   : > { %v6116_v43 = vadd.f32 %v6115_v22, %v5763_v33  ;;  %v6389_v20 = vadd.f32 %v6114_v48, %v2270_v26  ;;  %v14230_v22 = vld [vmem:[#allocation163_spill] sm:$0xff]  ;;  %v6385_v33 = vadd.f32 %v6104_v54, %v2260_v25  ;;  %v12290_v48 = vpop.f32.mrf.mxu0  ;;  %v6088_v2 = vadd.f32 %v12179_v11, %v5735_v0 }
 0x566   : > { %v6117_v24 = vpop.f32.mrf.mxu1  ;;  %v2280_v3 = vadd.f32 %v14230_v22, %v14228_v27  ;;  %14231 = vst [vmem:[#allocation324_spill] sm:$0xff] %v12290_v48  ;;  %v6383_v61 = vadd.f32 %v6098_v21, %v2254_v57  ;;  %v14233_v25 = vld [vmem:[#allocation43_spill] sm:$0xff]  ;;  %v5775_v45 = vadd.f32 %v11902_v23, %v4782_v28  ;;  %v6084_v5 = vadd.f32 %v12158_v35, %v5731_v55 }
 0x567   : > { %v6390_v39 = vadd.f32 %v6116_v43, %v2272_v6  ;;  %v6118_v12 = vadd.f32 %v6117_v24, %v5765_v36  ;;  %v5773_v6 = vadd.f32 %v11894_v16, %v4782_v28  ;;  %v6501_v41 = vpack.c.bf16 %v6387_v15, %v6385_v33  ;;  %v14240_v27 = vld [vmem:[#allocation19_spill] sm:$0xff] }
 0x568   : > { %v6121_v47 = vpop.f32.mrf.mxu1  ;;  %v2284_v42 = vadd.f32 %v14235_v4, %v14233_v25  ;;  %v6379_v24 = vadd.f32 %v6088_v2, %v12240_v56  ;;  %v6377_v22 = vadd.f32 %v6084_v5, %v12236_v46  ;;  %v14252_v4 = vpack.c.bf16 %v12209_v37, %v12207_v14  ;;  %v14321_v14 = vld [vmem:[#allocation198_spill] sm:$0xff] }
 0x569   : > { %v6502_v26 = vpack.c.bf16 %v6390_v39, %v6388_v17  ;;  %v6391_v40 = vadd.f32 %v6118_v12, %v2274_v9  ;;  %v6122_v50 = vadd.f32 %v6121_v47, %v5769_v8  ;;  %v14234_v17 = vld [vmem:[#allocation165_spill] sm:$0xff]  ;;  %v6381_v9 = vadd.f32 %v6094_v18, %v2250_v29  ;;  %v14243_v47 = vld [vmem:[#allocation276_spill] sm:$0xff] }
 0x56a   : > { %v6123_v44 = vpop.f32.mrf.mxu1  ;;  %v2282_v54 = vadd.f32 %v14234_v17, %v14233_v25  ;;  %v5779_v8 = vadd.f32 %v11904_v31, %v14236_v32  ;;  %v6565_v29 = vmax.bf16 %v13501_v60, %v6501_v41  ;;  %v5781_v18 = vadd.f32 %v11906_v7, %v14236_v32  ;;  %v14247_v7 = vld [vmem:[#allocation170_spill] sm:$0xff]  ;;  %v14249_v41 = vld [vmem:[#allocation171_spill] sm:$0xff]  ;;  %v14250_v25 = vld [vmem:[#allocation173_spill] sm:$0xff] }
 0x56b   : > { %v6503_v36 = vpack.c.bf16 %v6391_v40, %v6389_v20  ;;  %v12293_v43 = vadd.f32 %v6122_v50, %v2278_v49  ;;  %v6124_v62 = vadd.f32 %v6123_v44, %v5771_v19  ;;  %v12304_v20 = vpop.f32.mrf.mxu0  ;;  %v6566_v21 = vmax.bf16 %v13501_v60, %v6502_v26  ;;  %v14256_v32 = vld [vmem:[#allocation21_spill] sm:$0xff] }
 0x56c   : > { %v6125_v16 = vpop.f32.mrf.mxu1  ;;  %14237 = vst [vmem:[#allocation326_spill] sm:$0xff] %v12304_v20  ;;  %v6499_v39 = vpack.c.bf16 %v6383_v61, %v6381_v9  ;;  %v2288_v49 = vadd.f32 %v14241_v1, %v14240_v27  ;;  %v5783_v28 = vadd.f32 %v11908_v53, %v14243_v47  ;;  %v14245_v26 = vpack.c.bf16 %v12232_v63, %v12230_v51  ;;  %v14248_v61 = vld [vmem:[#allocation18_spill] sm:$0xff] }
 0x56d   : > { %14232 = vst [vmem:[#allocation54_spill] sm:$0xff] %v12293_v43  ;;  %v6126_v11 = vadd.f32 %v6125_v16, %v5773_v6  ;;  %v6567_v57 = vmax.bf16 %v13501_v60, %v6503_v36  ;;  %v12308_v15 = vadd.f32 %v6124_v62, %v2280_v3  ;;  %v12324_v33 = vpop.f32.mrf.mxu0  ;;  %v6497_v50 = vpack.c.bf16 %v6379_v24, %v6377_v22  ;;  %v14254_v16 = vld [vmem:[#allocation249_spill] sm:$0xff]  ;;  %v14344_v43 = vld [vmem:[#allocation208_spill] sm:$0xff] }
 0x56e   : > { %v6127_v23 = vpop.f32.mrf.mxu1  ;;  %14244 = vst [vmem:[#allocation328_spill] sm:$0xff] %v12324_v33  ;;  %v6564_v46 = vmax.bf16 %v13501_v60, %v14245_v26  ;;  %v6563_v6 = vmax.bf16 %v13501_v60, %v6499_v39  ;;  %v2290_v2 = vadd.f32 %v14247_v7, %v14240_v27  ;;  %v2292_v51 = vadd.f32 %v14249_v41, %v14248_v61  ;;  %v14267_v26 = vld [vmem:[#allocation58_spill] sm:$0xff] }
 0x56f   : > { %14238 = vst [vmem:[#allocation325_spill] sm:$0xff] %v12308_v15  ;;  %v12310_v12 = vadd.f32 %v6126_v11, %v2282_v54  ;;  %v6128_v35 = vadd.f32 %v6127_v23, %v5775_v45  ;;  %6650 = vmatprep.subr.bf16.mxu0 %v6567_v57  ;;  %v5785_v63 = vadd.f32 %v11916_v13, %v14243_v47  ;;  %v12343_v54 = vpop.f32.mrf.mxu0 }
 0x570   : > { %v6131_v31 = vpop.f32.mrf.mxu1  ;;  %6651 = vmatpush1.bf16.msra.mxu0 %v6566_v21  ;;  %v2294_v17 = vadd.f32 %v14250_v25, %v14248_v61  ;;  %14251 = vst [vmem:[#allocation330_spill] sm:$0xff] %v12343_v54  ;;  %v5789_v5 = vadd.f32 %v11918_v52, %v14254_v16  ;;  %v6561_v11 = vmax.bf16 %v13501_v60, %v6497_v50  ;;  %v14275_v61 = vld [vmem:[#allocation5_spill] sm:$0xff]  ;;  %v14336_v54 = vld [vmem:[#allocation190_spill] sm:$0xff] }
 0x571   : > { %14239 = vst [vmem:[#allocation327_spill] sm:$0xff] %v12310_v12  ;;  %v12318_v3 = vadd.f32 %v6128_v35, %v2284_v42  ;;  %v6132_v0 = vadd.f32 %v6131_v31, %v5779_v8  ;;  %6652 = vmatprep.subr.bf16.mxu0 %v6565_v29  ;;  %v6562_v42 = vmax.bf16 %v13501_v60, %v14252_v4  ;;  %v14257_v8 = vld [vmem:[#allocation175_spill] sm:$0xff]  ;;  %v12366_v39 = vpop.f32.mrf.mxu0  ;;  %v14261_v29 = vld [vmem:[#allocation253_spill] sm:$0xff]  ;;  %v14346_v12 = vld [vmem:[#allocation96_spill] sm:$0xff] }
 0x572   : > { %v6133_v40 = vpop.f32.mrf.mxu1  ;;  %v2298_v24 = vadd.f32 %v14257_v8, %v14256_v32  ;;  %v14259_v52 = vpack.c.bf16 %v12183_v59, %v12181_v34  ;;  %14260 = vst [vmem:[#allocation332_spill] sm:$0xff] %v12366_v39  ;;  %v5793_v27 = vadd.f32 %v11922_v38, %v14261_v29  ;;  %v14263_v31 = vpack.c.bf16 %v12154_v58, %v12144_v10  ;;  %v14264_v34 = vld [vmem:[#allocation20_spill] sm:$0xff]  ;;  %v14271_v10 = vld [vmem:[#allocation59_spill] sm:$0xff]  ;;  %v14272_v58 = vld [vmem:[#allocation313_spill] sm:$0xff] }
 0x573   : > { %14242 = vst [vmem:[#allocation51_spill] sm:$0xff] %v12318_v3  ;;  %v12332_v19 = vadd.f32 %v6132_v0, %v2288_v49  ;;  %v6134_v53 = vadd.f32 %v6133_v40, %v5781_v18  ;;  %v14265_v0 = vld [vmem:[#allocation178_spill] sm:$0xff]  ;;  %v12386_v40 = vpop.f32.mrf.mxu0  ;;  %v14273_v7 = vpack.c.bf16 %v14271_v10, %v14272_v58  ;;  %v14325_v39 = vld [vmem:[#allocation189_spill] sm:$0xff]  ;;  %v2352_v15 = vadd.f32 %v14347_v30, %v14346_v12 }
 0x574   : > { %v6135_v44 = vpop.f32.mrf.mxu1  ;;  %6653 = vmatpush1.bf16.msra.mxu0 %v6564_v46  ;;  %v6560_v23 = vmax.bf16 %v13501_v60, %v14259_v52  ;;  %v6559_v22 = vmax.bf16 %v13501_v60, %v14263_v31  ;;  %v2302_v18 = vadd.f32 %v14265_v0, %v14264_v34  ;;  %14269 = vst [vmem:[#allocation334_spill] sm:$0xff] %v12386_v40  ;;  %v14283_v8 = vld [vmem:[#allocation310_spill] sm:$0xff] }
 0x575   : > { %14246 = vst [vmem:[#allocation50_spill] sm:$0xff] %v12332_v19  ;;  %v6136_v36 = vadd.f32 %v6135_v44, %v5783_v28  ;;  %6654 = vmatprep.subr.bf16.mxu0 %v6563_v6  ;;  %v12349_v45 = vadd.f32 %v6134_v53, %v2290_v2  ;;  %v14266_v28 = vld [vmem:[#allocation317_spill] sm:$0xff]  ;;  %v6557_v2 = vmax.bf16 %v13501_v60, %v14273_v7  ;;  %v14274_v44 = vld [vmem:[#allocation234_spill] sm:$0xff]  ;;  %v12404_v4 = vpop.f32.mrf.mxu0 }
 0x576   : > { %v6137_v62 = vpop.f32.mrf.mxu1  ;;  %v14268_v38 = vpack.c.bf16 %v14266_v28, %v14267_v26  ;;  %v5799_v41 = vadd.f32 %v14275_v61, %v14274_v44  ;;  %14279 = vst [vmem:[#allocation335_spill] sm:$0xff] %v12404_v4  ;;  %v14290_v28 = vld [vmem:[#allocation309_spill] sm:$0xff]  ;;  %v14355_v30 = vld [vmem:[#allocation98_spill] sm:$0xff] }
 0x577   : > { %14253 = vst [vmem:[#allocation329_spill] sm:$0xff] %v12349_v45  ;;  %v12353_v9 = vadd.f32 %v6136_v36, %v2292_v51  ;;  %v6138_v13 = vadd.f32 %v6137_v62, %v5785_v63  ;;  %v14276_v63 = vld [vmem:[#allocation315_spill] sm:$0xff]  ;;  %v14277_v36 = vld [vmem:[#allocation60_spill] sm:$0xff]  ;;  %v14280_v62 = vld [vmem:[#allocation237_spill] sm:$0xff] }
 0x578   : > { %v6141_v57 = vpop.f32.mrf.mxu1  ;;  %6655 = vmatpush1.bf16.msra.mxu0 %v6562_v42  ;;  %v6558_v46 = vmax.bf16 %v13501_v60, %v14268_v38  ;;  %v14278_v25 = vpack.c.bf16 %v14276_v63, %v14277_v36  ;;  %v14298_v36 = vld [vmem:[#allocation219_spill] sm:$0xff]  ;;  %v14326_v4 = vld [vmem:[#allocation297_spill] sm:$0xff]  ;;  %v14356_v19 = vld [vmem:[#allocation218_spill] sm:$0xff] }
 0x579   : > { %14255 = vst [vmem:[#allocation331_spill] sm:$0xff] %v12353_v9  ;;  %v12360_v37 = vadd.f32 %v6138_v13, %v2294_v17  ;;  %v6142_v21 = vadd.f32 %v6141_v57, %v5789_v5  ;;  %6656 = vmatprep.subr.bf16.mxu0 %v6561_v11  ;;  %v14281_v5 = vld [vmem:[#allocation4_spill] sm:$0xff]  ;;  %v14282_v57 = vld [vmem:[#allocation61_spill] sm:$0xff]  ;;  %v2362_v9 = vadd.f32 %v14356_v19, %v14355_v30 }
 0x57a   : > { %v12368_v35 = vpop.f32.mrf.mxu1  ;;  %v6556_v17 = vmax.bf16 %v13501_v60, %v14278_v25  ;;  %v5803_v13 = vadd.f32 %v14281_v5, %v14280_v62  ;;  %v14299_v25 = vld [vmem:[#allocation286_spill] sm:$0xff]  ;;  %v14364_v19 = vld [vmem:[#allocation221_spill] sm:$0xff] }
 0x57b   : > { %14258 = vst [vmem:[#allocation47_spill] sm:$0xff] %v12360_v37  ;;  %v12374_v49 = vadd.f32 %v6142_v21, %v2298_v24  ;;  %v14284_v24 = vpack.c.bf16 %v14282_v57, %v14283_v8  ;;  %v14301_v57 = vld [vmem:[#allocation305_spill] sm:$0xff] }
 0x57c   : > { %v6145_v59 = vpop.f32.mrf.mxu1  ;;  %6657 = vmatpush1.bf16.msra.mxu0 %v6560_v23  ;;  %v14285_v23 = vld [vmem:[#allocation40_spill] sm:$0xff]  ;;  %v14360_v37 = vld [vmem:[#allocation177_spill] sm:$0xff] }
 0x57d   : > { %14262 = vst [vmem:[#allocation46_spill] sm:$0xff] %v12374_v49  ;;  %v6146_v47 = vadd.f32 %v6145_v59, %v5793_v27  ;;  %6658 = vmatprep.subr.bf16.mxu0 %v6559_v22  ;;  %v6555_v21 = vmax.bf16 %v13501_v60, %v14284_v24  ;;  %v14286_v27 = vld [vmem:[#allocation181_spill] sm:$0xff] }
 0x57e   : > { %v12388_v50 = vpop.f32.mrf.mxu1  ;;  %v2308_v31 = vadd.f32 %v14286_v27, %v14285_v23  ;;  %v14287_v22 = vld [vmem:[#allocation41_spill] sm:$0xff]  ;;  %v14305_v27 = vld [vmem:[#allocation74_spill] sm:$0xff] }
 0x57f   : > { %v12390_v6 = vadd.f32 %v6146_v47, %v2302_v18  ;;  %v14288_v59 = vld [vmem:[#allocation185_spill] sm:$0xff]  ;;  %v14289_v47 = vld [vmem:[#allocation311_spill] sm:$0xff] }
 0x580   : > { %v6151_v53 = vpop.f32.mrf.mxu1  ;;  %6659 = vmatpush1.bf16.msra.mxu0 %v6558_v46  ;;  %v2312_v0 = vadd.f32 %v14288_v59, %v14287_v22  ;;  %v14291_v26 = vpack.c.bf16 %v14289_v47, %v14290_v28  ;;  %v12422_v46 = vpop.f32.mrf.mxu0  ;;  %v14307_v47 = vld [vmem:[#allocation188_spill] sm:$0xff] }
 0x581   : > { %14270 = vst [vmem:[#allocation333_spill] sm:$0xff] %v12390_v6  ;;  %6660 = vmatprep.subr.bf16.mxu0 %v6557_v2  ;;  %v6152_v11 = vadd.f32 %v6151_v53, %v5799_v41  ;;  %14292 = vst [vmem:[#allocation81_spill] sm:$0xff] %v12422_v46  ;;  %v14295_v2 = vld [vmem:[#allocation63_spill] sm:$0xff]  ;;  %v14296_v53 = vld [vmem:[#allocation64_spill] sm:$0xff] }
 0x582   : > { %v12406_v42 = vpop.f32.mrf.mxu1  ;;  %v6554_v38 = vmax.bf16 %v13501_v60, %v14291_v26  ;;  %v14297_v61 = vpack.c.bf16 %v14295_v2, %v14296_v53  ;;  %v12442_v24 = vpop.f32.mrf.mxu0  ;;  %v14308_v26 = vld [vmem:[#allocation22_spill] sm:$0xff] }
 0x583   : > { %v12426_v58 = vadd.f32 %v6152_v11, %v2308_v31  ;;  %14303 = vst [vmem:[#allocation80_spill] sm:$0xff] %v12442_v24  ;;  %v14328_v24 = vld [vmem:[#allocation192_spill] sm:$0xff] }
 0x584   : > { %v6155_v52 = vpop.f32.mrf.mxu1  ;;  %6661 = vmatpush1.bf16.msra.mxu0 %v6556_v17  ;;  %v6553_v41 = vmax.bf16 %v13501_v60, %v14297_v61  ;;  %v5809_v17 = vadd.f32 %v14299_v25, %v14298_v36  ;;  %v12452_v61 = vpop.f32.mrf.mxu0 }
 0x585   : > { %v6156_v18 = vadd.f32 %v6155_v52, %v5803_v13  ;;  %6662 = vmatprep.subr.bf16.mxu0 %v6555_v21  ;;  %14293 = vst [vmem:[#allocation336_spill] sm:$0xff] %v12426_v58  ;;  %v14300_v13 = vld [vmem:[#allocation307_spill] sm:$0xff]  ;;  %v14304_v52 = vld [vmem:[#allocation222_spill] sm:$0xff]  ;;  %14310 = vst [vmem:[#allocation338_spill] sm:$0xff] %v12452_v61 }
 0x586   : > { %v12424_v10 = vpop.f32.mrf.mxu1  ;;  %v14302_v11 = vpack.c.bf16 %v14300_v13, %v14301_v57  ;;  %v5813_v31 = vadd.f32 %v14305_v27, %v14304_v52  ;;  %v12464_v27 = vpop.f32.mrf.mxu0  ;;  %v14333_v61 = vld [vmem:[#allocation94_spill] sm:$0xff]  ;;  %v14362_v58 = vld [vmem:[#allocation220_spill] sm:$0xff] }
 0x587   : > { %v12428_v7 = vadd.f32 %v6156_v18, %v2312_v0  ;;  %v14306_v18 = vld [vmem:[#allocation23_spill] sm:$0xff]  ;;  %14315 = vst [vmem:[#allocation340_spill] sm:$0xff] %v12464_v27 }
 0x588   : > { %v6161_v63 = vpop.f32.mrf.mxu1  ;;  %6663 = vmatpush1.bf16.msra.mxu0 %v6554_v38  ;;  %v6552_v8 = vmax.bf16 %v13501_v60, %v14302_v11  ;;  %v2318_v28 = vadd.f32 %v14307_v47, %v14306_v18  ;;  %v14309_v38 = vld [vmem:[#allocation191_spill] sm:$0xff]  ;;  %v14313_v11 = vld [vmem:[#allocation204_spill] sm:$0xff] }
 0x589   : > { %14294 = vst [vmem:[#allocation337_spill] sm:$0xff] %v12428_v7  ;;  %6664 = vmatprep.subr.bf16.mxu0 %v6553_v41  ;;  %v6162_v59 = vadd.f32 %v6161_v63, %v5809_v17  ;;  %v2322_v2 = vadd.f32 %v14309_v38, %v14308_v26  ;;  %v14314_v63 = vld [vmem:[#allocation71_spill] sm:$0xff] }
 0x58a   : > { %v12444_v21 = vpop.f32.mrf.mxu1  ;;  %v5819_v17 = vadd.f32 %v14314_v63, %v14313_v11  ;;  %v12474_v63 = vpop.f32.mrf.mxu0 }
 0x58b   : > { %v12456_v25 = vadd.f32 %v6162_v59, %v2318_v28  ;;  %v14318_v59 = vld [vmem:[#allocation93_spill] sm:$0xff]  ;;  %v14319_v28 = vld [vmem:[#allocation195_spill] sm:$0xff]  ;;  %14322 = vst [vmem:[#allocation341_spill] sm:$0xff] %v12474_v63 }
 0x58c   : > { %v6165_v0 = vpop.f32.mrf.mxu1  ;;  %6665 = vmatpush1.bf16.msra.mxu0 %v6552_v8 }
 0x58d   : > { %v6166_v53 = vadd.f32 %v6165_v0, %v5813_v31  ;;  %14311 = vst [vmem:[#allocation339_spill] sm:$0xff] %v12456_v25  ;;  %v14316_v31 = vld [vmem:[#allocation207_spill] sm:$0xff]  ;;  %v14317_v0 = vld [vmem:[#allocation70_spill] sm:$0xff] }
 0x58e   : > { %v12454_v41 = vpop.f32.mrf.mxu1  ;;  %v5823_v38 = vadd.f32 %v14317_v0, %v14316_v31  ;;  %v5829_v0 = vadd.f32 %v14326_v4, %v14325_v39  ;;  %v14334_v4 = vld [vmem:[#allocation205_spill] sm:$0xff] }
 0x58f   : > { %v12458_v13 = vadd.f32 %v6166_v53, %v2322_v2  ;;  %v2328_v2 = vadd.f32 %v14319_v28, %v14318_v59  ;;  %v14320_v53 = vld [vmem:[#allocation92_spill] sm:$0xff]  ;;  %v2342_v46 = vadd.f32 %v14334_v4, %v14333_v61 }
 0x590   : > { %v6171_v57 = vpop.f32.mrf.mxu1  ;;  %v2332_v1 = vadd.f32 %v14321_v14, %v14320_v53  ;;  %v14329_v14 = vld [vmem:[#allocation67_spill] sm:$0xff] }
 0x591   : > { %14312 = vst [vmem:[#allocation79_spill] sm:$0xff] %v12458_v13  ;;  %v6172_v56 = vadd.f32 %v6171_v57, %v5819_v17  ;;  %v12484_v17 = vpop.f32.mrf.mxu0  ;;  %v14335_v57 = vld [vmem:[#allocation186_spill] sm:$0xff]  ;;  %v14370_v13 = vld [vmem:[#allocation169_spill] sm:$0xff] }
 0x592   : > { %v12466_v47 = vpop.f32.mrf.mxu1  ;;  %14327 = vst [vmem:[#allocation343_spill] sm:$0xff] %v12484_v17  ;;  %v12498_v17 = vadd.f32 %v14335_v57, %v14287_v22  ;;  %v14341_v22 = vld [vmem:[#allocation203_spill] sm:$0xff] }
 0x593   : > { %v12476_v8 = vadd.f32 %v6172_v56, %v2328_v2  ;;  %v14330_v56 = vld [vmem:[#allocation183_spill] sm:$0xff] }
 0x594   : > { %v6175_v55 = vpop.f32.mrf.mxu1  ;;  %v12490_v2 = vadd.f32 %v14330_v56, %v14285_v23  ;;  %v14338_v23 = vld [vmem:[#allocation196_spill] sm:$0xff] }
 0x595   : > { %v6176_v51 = vadd.f32 %v6175_v55, %v5823_v38  ;;  %14323 = vst [vmem:[#allocation78_spill] sm:$0xff] %v12476_v8  ;;  %v5833_v55 = vadd.f32 %v14329_v14, %v14328_v24  ;;  %v12502_v14 = vadd.f32 %v14336_v54, %v14306_v18  ;;  %v12510_v56 = vadd.f32 %v14338_v23, %v14318_v59  ;;  %v14342_v18 = vld [vmem:[#allocation206_spill] sm:$0xff] }
 0x596   : > { %v6177_v5 = vpop.f32.mrf.mxu1  ;;  %v14345_v23 = vld [vmem:[#allocation210_spill] sm:$0xff] }
 0x597   : > { %v12478_v48 = vadd.f32 %v6176_v51, %v2332_v1  ;;  %v14331_v1 = vld [vmem:[#allocation95_spill] sm:$0xff]  ;;  %v14332_v51 = vld [vmem:[#allocation201_spill] sm:$0xff] }
 0x598   : > { %v6181_v33 = vpop.f32.mrf.mxu1  ;;  %v2338_v27 = vadd.f32 %v14332_v51, %v14331_v1  ;;  %v12512_v51 = vpop.f32.mrf.mxu0  ;;  %v2340_v57 = vadd.f32 %v14341_v22, %v14331_v1 }
 0x599   : > { %14324 = vst [vmem:[#allocation342_spill] sm:$0xff] %v12478_v48  ;;  %v6182_v38 = vadd.f32 %v6181_v33, %v5829_v0  ;;  %v14337_v33 = vld [vmem:[#allocation193_spill] sm:$0xff]  ;;  %14339 = vst [vmem:[#allocation11_spill] sm:$0xff] %v12512_v51 }
 0x59a   : > { %v6183_v28 = vpop.f32.mrf.mxu1  ;;  %v12506_v0 = vadd.f32 %v14337_v33, %v14308_v26  ;;  %v2344_v26 = vadd.f32 %v14342_v18, %v14333_v61  ;;  %v14343_v33 = vld [vmem:[#allocation97_spill] sm:$0xff]  ;;  %v14353_v18 = vld [vmem:[#allocation215_spill] sm:$0xff]  ;;  %v12546_v45 = vpop.f32.mrf.mxu0 }
 0x59b   : > { %v12518_v20 = vadd.f32 %v6182_v38, %v2338_v27  ;;  %v2348_v59 = vadd.f32 %v14344_v43, %v14343_v33  ;;  %v2350_v51 = vadd.f32 %v14345_v23, %v14343_v33  ;;  %v14349_v27 = vld [vmem:[#allocation300_spill] sm:$0xff]  ;;  %v14351_v38 = vld [vmem:[#allocation66_spill] sm:$0xff]  ;;  %v14352_v43 = vld [vmem:[#allocation99_spill] sm:$0xff]  ;;  %14358 = vst [vmem:[#allocation344_spill] sm:$0xff] %v12546_v45 }
 0x59c   : > { %v6185_v63 = vpop.f32.mrf.mxu1  ;;  %v2358_v3 = vadd.f32 %v14353_v18, %v14352_v43  ;;  %v14354_v33 = vld [vmem:[#allocation216_spill] sm:$0xff]  ;;  %v14361_v61 = vld [vmem:[#allocation301_spill] sm:$0xff] }
 0x59d   : > { %v6186_v40 = vadd.f32 %v6185_v63, %v5833_v55  ;;  %v14340_v63 = vld [vmem:[#allocation200_spill] sm:$0xff]  ;;  %v2360_v23 = vadd.f32 %v14354_v33, %v14352_v43  ;;  %v5843_v49 = vadd.f32 %v14361_v61, %v14360_v37  ;;  %v12554_v43 = vadd.f32 %v14362_v58, %v14355_v30  ;;  %v14363_v33 = vld [vmem:[#allocation101_spill] sm:$0xff]  ;;  %v14368_v58 = vld [vmem:[#allocation275_spill] sm:$0xff] }
 0x59e   : > { %v6187_v4 = vpop.f32.mrf.mxu1  ;;  %v2334_v55 = vadd.f32 %v14340_v63, %v14320_v53  ;;  %v14348_v63 = vld [vmem:[#allocation213_spill] sm:$0xff]  ;;  %v12558_v7 = vadd.f32 %v14364_v19, %v14363_v33  ;;  %v12570_v61 = vadd.f32 %v14368_v58, %v14254_v16  ;;  %v14369_v30 = vld [vmem:[#allocation296_spill] sm:$0xff] }
 0x59f   : > { %v12520_v54 = vadd.f32 %v6186_v40, %v2342_v46  ;;  %v2354_v1 = vadd.f32 %v14348_v63, %v14346_v12  ;;  %v5835_v40 = vadd.f32 %v14349_v27, %v14328_v24  ;;  %v14350_v46 = vld [vmem:[#allocation174_spill] sm:$0xff]  ;;  %v14357_v12 = vld [vmem:[#allocation299_spill] sm:$0xff]  ;;  %v5821_v19 = vadd.f32 %v14369_v30, %v14313_v11  ;;  %v14374_v16 = vld [vmem:[#allocation304_spill] sm:$0xff] }
 0x5a0   : > { %v6191_v53 = vpop.f32.mrf.mxu1  ;;  %v5839_v22 = vadd.f32 %v14351_v38, %v14350_v46  ;;  %v5831_v63 = vadd.f32 %v14357_v12, %v14325_v39  ;;  %v14359_v27 = vld [vmem:[#allocation302_spill] sm:$0xff] }
 0x5a1   : > { %v5841_v38 = vadd.f32 %v14359_v27, %v14350_v46  ;;  %v6188_v6 = vadd.f32 %v6187_v4, %v5835_v40  ;;  %v14365_v39 = vld [vmem:[#allocation298_spill] sm:$0xff]  ;;  %v14366_v46 = vld [vmem:[#allocation223_spill] sm:$0xff] }
 0x5a2   : > { %v6193_v24 = vpop.f32.mrf.mxu1  ;;  %v6192_v18 = vadd.f32 %v6191_v53, %v5839_v22  ;;  %v5825_v12 = vadd.f32 %v14365_v39, %v14316_v31  ;;  %v6184_v45 = vadd.f32 %v6183_v28, %v5831_v63  ;;  %v12564_v27 = vadd.f32 %v14366_v46, %v14363_v33  ;;  %v14367_v4 = vld [vmem:[#allocation303_spill] sm:$0xff]  ;;  %v14371_v31 = vld [vmem:[#allocation65_spill] sm:$0xff]  ;;  %v12576_v63 = vpop.f32.mrf.mxu0 }
 0x5a3   : > { %v5845_v53 = vadd.f32 %v14367_v4, %v14360_v37  ;;  %v6194_v40 = vadd.f32 %v6193_v24, %v5841_v38  ;;  %v5849_v28 = vadd.f32 %v14371_v31, %v14370_v13  ;;  %14372 = vst [vmem:[#allocation24_spill] sm:$0xff] %v12576_v63  ;;  %v6419_v46 = vadd.f32 %v6188_v6, %v2344_v26  ;;  %v14376_v26 = vld [vmem:[#allocation172_spill] sm:$0xff] }
 0x5a4   : > { %v6195_v25 = vpop.f32.mrf.mxu1  ;;  %v6178_v39 = vadd.f32 %v6177_v5, %v5825_v12  ;;  %v6420_v8 = vadd.f32 %v6192_v18, %v2348_v59  ;;  %v5851_v24 = vadd.f32 %v14374_v16, %v14370_v13  ;;  %v6174_v38 = vadd.f32 %v12466_v47, %v5821_v19  ;;  %v14375_v5 = vld [vmem:[#allocation75_spill] sm:$0xff]  ;;  %v12587_v18 = vpop.f32.mrf.mxu0  ;;  %v14386_v16 = vld [vmem:[#allocation281_spill] sm:$0xff] }
 0x5a5   : > { %v6196_v22 = vadd.f32 %v6195_v25, %v5843_v49  ;;  %v14373_v49 = vld [vmem:[#allocation295_spill] sm:$0xff]  ;;  %v6417_v11 = vadd.f32 %v6184_v45, %v2340_v57  ;;  %v6421_v58 = vadd.f32 %v6194_v40, %v2350_v51  ;;  %v5811_v6 = vadd.f32 %v14375_v5, %v14298_v36  ;;  %v14380_v57 = vld [vmem:[#allocation288_spill] sm:$0xff] }
 0x5a6   : > { %v6197_v33 = vpop.f32.mrf.mxu1  ;;  %v5815_v25 = vadd.f32 %v14373_v49, %v14304_v52  ;;  %v6415_v12 = vadd.f32 %v6178_v39, %v2334_v55  ;;  %v5805_v36 = vadd.f32 %v14380_v57, %v14280_v62  ;;  %v14384_v39 = vld [vmem:[#allocation62_spill] sm:$0xff] }
 0x5a7   : > { %v6422_v48 = vadd.f32 %v6196_v22, %v2352_v15  ;;  %v6198_v37 = vadd.f32 %v6197_v33, %v5845_v53  ;;  %v14377_v15 = vld [vmem:[#allocation306_spill] sm:$0xff]  ;;  %v6517_v53 = vpack.c.bf16 %v6419_v46, %v6417_v11  ;;  %v6164_v22 = vadd.f32 %v12444_v21, %v5811_v6 }
 0x5a8   : > { %v6201_v4 = vpop.f32.mrf.mxu1  ;;  %v5853_v59 = vadd.f32 %v14377_v15, %v14376_v26  ;;  %v6168_v52 = vadd.f32 %v12454_v41, %v5815_v25  ;;  %v6413_v41 = vadd.f32 %v6174_v38, %v12510_v56  ;;  %v6158_v62 = vadd.f32 %v12424_v10, %v5805_v36  ;;  %v14387_v38 = vld [vmem:[#allocation312_spill] sm:$0xff]  ;;  %v14389_v10 = vld [vmem:[#allocation314_spill] sm:$0xff] }
 0x5a9   : > { %v6518_v30 = vpack.c.bf16 %v6422_v48, %v6420_v8  ;;  %v6423_v31 = vadd.f32 %v6198_v37, %v2354_v1  ;;  %v6202_v63 = vadd.f32 %v6201_v4, %v5849_v28  ;;  %v14379_v48 = vld [vmem:[#allocation283_spill] sm:$0xff]  ;;  %v14381_v1 = vld [vmem:[#allocation308_spill] sm:$0xff]  ;;  %v14388_v4 = vld [vmem:[#allocation162_spill] sm:$0xff] }
 0x5aa   : > { %v6203_v13 = vpop.f32.mrf.mxu1  ;;  %v5801_v8 = vadd.f32 %v14379_v48, %v14274_v44  ;;  %v5855_v40 = vadd.f32 %v14381_v1, %v14376_v26  ;;  %v12605_v44 = vpop.f32.mrf.mxu0  ;;  %v6411_v46 = vadd.f32 %v6168_v52, %v12506_v0  ;;  %v6515_v49 = vpack.c.bf16 %v6415_v12, %v6413_v41  ;;  %v14395_v48 = vld [vmem:[#allocation100_spill] sm:$0xff]  ;;  %v14401_v41 = vld [vmem:[#allocation318_spill] sm:$0xff]  ;;  %v14469_v12 = vld [vmem:[#allocation251_spill] sm:$0xff] }
 0x5ab   : > { %v6519_v47 = vpack.c.bf16 %v6423_v31, %v6421_v58  ;;  %v12590_v45 = vadd.f32 %v6202_v63, %v2358_v3  ;;  %v6204_v51 = vadd.f32 %v6203_v13, %v5851_v24  ;;  %v14383_v63 = vld [vmem:[#allocation160_spill] sm:$0xff]  ;;  %v6582_v37 = vmax.bf16 %v13501_v60, %v6518_v30 }
 0x5ac   : > { %v6205_v19 = vpop.f32.mrf.mxu1  ;;  %v5859_v33 = vadd.f32 %v14384_v39, %v14383_v63  ;;  %v5795_v24 = vadd.f32 %v14386_v16, %v14261_v29  ;;  %v5861_v11 = vadd.f32 %v14387_v38, %v14383_v63  ;;  %v5863_v58 = vadd.f32 %v14389_v10, %v14388_v4  ;;  %v12626_v29 = vpop.f32.mrf.mxu0  ;;  %v14402_v39 = vld [vmem:[#allocation342_spill] sm:$0xff]  ;;  %v14410_v10 = vld [vmem:[#allocation57_spill] sm:$0xff] }
 0x5ad   : > { %14378 = vst [vmem:[#allocation346_spill] sm:$0xff] %v12590_v45  ;;  %v12600_v55 = vadd.f32 %v6204_v51, %v2360_v23  ;;  %v6206_v28 = vadd.f32 %v6205_v19, %v5853_v59  ;;  %v6583_v3 = vmax.bf16 %v13501_v60, %v6519_v47  ;;  %v6581_v23 = vmax.bf16 %v13501_v60, %v6517_v53  ;;  %v14400_v19 = vld [vmem:[#allocation153_spill] sm:$0xff] }
 0x5ae   : > { %v6207_v21 = vpop.f32.mrf.mxu1  ;;  %v6409_v0 = vadd.f32 %v6164_v22, %v12502_v14  ;;  %v6148_v26 = vadd.f32 %v12388_v50, %v5795_v24  ;;  %v6407_v15 = vadd.f32 %v6158_v62, %v12498_v17  ;;  %v14391_v14 = vpack.c.bf16 %v12520_v54, %v12518_v20  ;;  %v14393_v50 = vld [vmem:[#allocation176_spill] sm:$0xff]  ;;  %v14396_v20 = vld [vmem:[#allocation225_spill] sm:$0xff] }
 0x5af   : > { %14382 = vst [vmem:[#allocation345_spill] sm:$0xff] %v12600_v55  ;;  %v12610_v25 = vadd.f32 %v6206_v28, %v2362_v9  ;;  %v6208_v56 = vadd.f32 %v6207_v21, %v5855_v40  ;;  %6666 = vmatprep.subr.bf16.mxu0 %v6583_v3  ;;  %v6154_v9 = vadd.f32 %v12406_v42, %v5801_v8  ;;  %v14394_v17 = vld [vmem:[#allocation180_spill] sm:$0xff]  ;;  %v12658_v3 = vpop.f32.mrf.mxu0  ;;  %v14406_v21 = vld [vmem:[#allocation103_spill] sm:$0xff]  ;;  %v14474_v45 = vld [vmem:[#allocation81_spill] sm:$0xff] }
 0x5b0   : > { %v6211_v30 = vpop.f32.mrf.mxu1  ;;  %6667 = vmatpush2.bf16.msra.mxu0 %v6582_v37  ;;  %v6513_v59 = vpack.c.bf16 %v6411_v46, %v6409_v0  ;;  %v6580_v42 = vmax.bf16 %v13501_v60, %v14391_v14  ;;  %v6579_v53 = vmax.bf16 %v13501_v60, %v6515_v49  ;;  %v2300_v47 = vadd.f32 %v14393_v50, %v14256_v32  ;;  %v14397_v8 = vld [vmem:[#allocation316_spill] sm:$0xff]  ;;  %v14417_v50 = vld [vmem:[#allocation231_spill] sm:$0xff] }
 0x5b1   : > { %14385 = vst [vmem:[#allocation347_spill] sm:$0xff] %v12610_v25  ;;  %v12624_v5 = vadd.f32 %v6208_v56, %v12554_v43  ;;  %v6212_v6 = vadd.f32 %v6211_v30, %v5859_v33  ;;  %6668 = vmatprep.subr.bf16.mxu0 %v6581_v23  ;;  %v2304_v51 = vadd.f32 %v14394_v17, %v14264_v34  ;;  %v14399_v34 = vld [vmem:[#allocation226_spill] sm:$0xff]  ;;  %v14407_v49 = vld [vmem:[#allocation228_spill] sm:$0xff]  ;;  %v12675_v0 = vpop.f32.mrf.mxu0  ;;  %v14411_v30 = vld [vmem:[#allocation79_spill] sm:$0xff]  ;;  %v4937_v25 = vpop.permute.xlu0 %4936 }
 0x5b2   : > { %v6213_v52 = vpop.f32.mrf.mxu1  ;;  %v2372_v54 = vadd.f32 %v14396_v20, %v14395_v48  ;;  %v5865_v57 = vadd.f32 %v14397_v8, %v14388_v4  ;;  %v6405_v1 = vadd.f32 %v6154_v9, %v12490_v2  ;;  %v2374_v22 = vadd.f32 %v14399_v34, %v14395_v48  ;;  %v14403_v33 = vld [vmem:[#allocation78_spill] sm:$0xff]  ;;  %v14409_v4 = vld [vmem:[#allocation152_spill] sm:$0xff]  ;;  %v14412_v9 = vld [vmem:[#allocation339_spill] sm:$0xff] }
 0x5b3   : > { %14390 = vst [vmem:[#allocation9_spill] sm:$0xff] %v12624_v5  ;;  %v12637_v43 = vadd.f32 %v6212_v6, %v12558_v7  ;;  %v6214_v13 = vadd.f32 %v6213_v52, %v5861_v11  ;;  %v6144_v7 = vadd.f32 %v12368_v35, %v12570_v61  ;;  %v5869_v28 = vadd.f32 %v14401_v41, %v14400_v19  ;;  %v14418_v48 = vld [vmem:[#allocation337_spill] sm:$0xff]  ;;  %v14419_v20 = vld [vmem:[#allocation336_spill] sm:$0xff] }
 0x5b4   : > { %v6215_v36 = vpop.f32.mrf.mxu1  ;;  %6669 = vmatpush2.bf16.msra.mxu0 %v6580_v42  ;;  %v6403_v63 = vadd.f32 %v6148_v26, %v2304_v51  ;;  %v14404_v62 = vpack.c.bf16 %v14402_v39, %v14403_v33  ;;  %v6511_v61 = vpack.c.bf16 %v6407_v15, %v6405_v1  ;;  %v6577_v37 = vmax.bf16 %v13501_v60, %v6513_v59  ;;  %v12690_v51 = vpop.f32.mrf.mxu0  ;;  %v14423_v34 = vld [vmem:[#allocation56_spill] sm:$0xff]  ;;  %v14426_v39 = vld [vmem:[#allocation46_spill] sm:$0xff] }
 0x5b5   : > { %14392 = vst [vmem:[#allocation348_spill] sm:$0xff] %v12637_v43  ;;  %v12652_v40 = vadd.f32 %v6214_v13, %v12564_v27  ;;  %v6216_v32 = vadd.f32 %v6215_v36, %v5863_v58  ;;  %6670 = vmatprep.subr.bf16.mxu0 %v6579_v53  ;;  %v2378_v56 = vadd.f32 %v14407_v49, %v14406_v21  ;;  %v14416_v53 = vld [vmem:[#allocation102_spill] sm:$0xff]  ;;  %v14430_v49 = vld [vmem:[#allocation47_spill] sm:$0xff]  ;;  %v14480_v43 = vld [vmem:[#allocation120_spill] sm:$0xff] }
 0x5b6   : > { %v6578_v35 = vmax.bf16 %v13501_v60, %v14404_v62  ;;  %v6217_v2 = vpop.f32.mrf.mxu1  ;;  %v6401_v16 = vadd.f32 %v6144_v7, %v2300_v47  ;;  %v5873_v58 = vadd.f32 %v14410_v10, %v14409_v4  ;;  %v14413_v6 = vpack.c.bf16 %v14411_v30, %v14412_v9  ;;  %v14433_v10 = vld [vmem:[#allocation105_spill] sm:$0xff]  ;;  %v14435_v9 = vld [vmem:[#allocation104_spill] sm:$0xff] }
 0x5b7   : > { %14398 = vst [vmem:[#allocation7_spill] sm:$0xff] %v12652_v40  ;;  %v12664_v27 = vadd.f32 %v6216_v32, %v2372_v54  ;;  %v6218_v46 = vadd.f32 %v6217_v2, %v5865_v57  ;;  %v6575_v52 = vmax.bf16 %v13501_v60, %v6511_v61  ;;  %v2382_v47 = vadd.f32 %v14417_v50, %v14416_v53  ;;  %v14422_v32 = vld [vmem:[#allocation145_spill] sm:$0xff]  ;;  %v14428_v2 = vld [vmem:[#allocation144_spill] sm:$0xff] }
 0x5b8   : > { %v6221_v23 = vpop.f32.mrf.mxu1  ;;  %6671 = vmatpush2.bf16.msra.mxu0 %v6578_v35  ;;  %v6576_v26 = vmax.bf16 %v13501_v60, %v14413_v6  ;;  %v6509_v59 = vpack.c.bf16 %v6403_v63, %v6401_v16  ;;  %v14420_v54 = vpack.c.bf16 %v14418_v48, %v14419_v20  ;;  %v14425_v63 = vld [vmem:[#allocation333_spill] sm:$0xff]  ;;  %v14436_v6 = vld [vmem:[#allocation238_spill] sm:$0xff] }
 0x5b9   : > { %14405 = vst [vmem:[#allocation350_spill] sm:$0xff] %v12664_v27  ;;  %v12671_v38 = vadd.f32 %v6218_v46, %v2374_v22  ;;  %v6222_v11 = vadd.f32 %v6221_v23, %v5869_v28  ;;  %6672 = vmatprep.subr.bf16.mxu0 %v6577_v37  ;;  %v5879_v22 = vadd.f32 %v14423_v34, %v14422_v32  ;;  %v12705_v28 = vpop.f32.mrf.mxu0  ;;  %v14429_v61 = vld [vmem:[#allocation321_spill] sm:$0xff]  ;;  %v14481_v27 = vld [vmem:[#allocation262_spill] sm:$0xff] }
 0x5ba   : > { %v12681_v15 = vpop.f32.mrf.mxu1  ;;  %v6574_v8 = vmax.bf16 %v13501_v60, %v14420_v54  ;;  %v6573_v7 = vmax.bf16 %v13501_v60, %v6509_v59  ;;  %14424 = vst [vmem:[#allocation6_spill] sm:$0xff] %v12705_v28  ;;  %v14427_v33 = vpack.c.bf16 %v14425_v63, %v14426_v39  ;;  %v5883_v46 = vadd.f32 %v14429_v61, %v14428_v2  ;;  %v14446_v63 = vld [vmem:[#allocation137_spill] sm:$0xff]  ;;  %v14447_v39 = vld [vmem:[#allocation55_spill] sm:$0xff]  ;;  %v14510_v28 = vld [vmem:[#allocation280_spill] sm:$0xff] }
 0x5bb   : > { %14408 = vst [vmem:[#allocation349_spill] sm:$0xff] %v12671_v38  ;;  %14414 = vst [vmem:[#allocation351_spill] sm:$0xff] %v12681_v15  ;;  %v12685_v42 = vadd.f32 %v6222_v11, %v2378_v56  ;;  %v14431_v56 = vld [vmem:[#allocation329_spill] sm:$0xff]  ;;  %v14448_v61 = vld [vmem:[#allocation327_spill] sm:$0xff] }
 0x5bc   : > { %v6225_v13 = vpop.f32.mrf.mxu1  ;;  %6673 = vmatpush2.bf16.msra.mxu0 %v6576_v26  ;;  %v6572_v62 = vmax.bf16 %v13501_v60, %v14427_v33  ;;  %v14432_v23 = vpack.c.bf16 %v14430_v49, %v14431_v56  ;;  %v2392_v26 = vadd.f32 %v14436_v6, %v14435_v9  ;;  %v5889_v33 = vadd.f32 %v14447_v39, %v14446_v63  ;;  %v7703_v6 = vld [vmem:[%s13193_s4] ss:$16 sps:$4 sm:$0xff]  }
 0x5bd   : > { %14415 = vst [vmem:[#allocation27_spill] sm:$0xff] %v12685_v42  ;;  %v6226_v17 = vadd.f32 %v6225_v13, %v5873_v58  ;;  %6674 = vmatprep.subr.bf16.mxu0 %v6575_v52  ;;  %v14434_v58 = vld [vmem:[#allocation235_spill] sm:$0xff]  ;;  %v14438_v13 = vld [vmem:[#allocation50_spill] sm:$0xff] }
 0x5be   : > { %v12696_v57 = vpop.f32.mrf.mxu1  ;;  %v6571_v16 = vmax.bf16 %v13501_v60, %v14432_v23  ;;  %v2388_v30 = vadd.f32 %v14434_v58, %v14433_v10  ;;  %v14437_v52 = vld [vmem:[#allocation331_spill] sm:$0xff] }
 0x5bf   : > { %v12698_v36 = vadd.f32 %v6226_v17, %v2382_v47  ;;  %v14439_v50 = vpack.c.bf16 %v14437_v52, %v14438_v13  ;;  %v12727_v17 = vpop.f32.mrf.mxu0  ;;  %v14454_v52 = vld [vmem:[#allocation107_spill] sm:$0xff]  ;;  %v14455_v13 = vld [vmem:[#allocation241_spill] sm:$0xff] }
 0x5c0   : > { %v6231_v1 = vpop.f32.mrf.mxu1  ;;  %6675 = vmatpush2.bf16.msra.mxu0 %v6574_v8  ;;  %14440 = vst [vmem:[#allocation354_spill] sm:$0xff] %v12727_v17  ;;  %v14443_v8 = vld [vmem:[#allocation51_spill] sm:$0xff]  ;;  %v14508_v17 = vld [vmem:[#allocation37_spill] sm:$0xff] }
 0x5c1   : > { %14421 = vst [vmem:[#allocation352_spill] sm:$0xff] %v12698_v36  ;;  %6676 = vmatprep.subr.bf16.mxu0 %v6573_v7  ;;  %v6232_v37 = vadd.f32 %v6231_v1, %v5879_v22  ;;  %v6570_v47 = vmax.bf16 %v13501_v60, %v14439_v50  ;;  %v14444_v7 = vld [vmem:[#allocation325_spill] sm:$0xff]  ;;  %v12747_v56 = vpop.f32.mrf.mxu0  ;;  %v2398_v50 = vadd.f32 %v14455_v13, %v14454_v52 }
 0x5c2   : > { %v12711_v35 = vpop.f32.mrf.mxu1  ;;  %v14445_v1 = vpack.c.bf16 %v14443_v8, %v14444_v7  ;;  %14451 = vst [vmem:[#allocation3_spill] sm:$0xff] %v12747_v56  ;;  %v14457_v8 = vld [vmem:[#allocation245_spill] sm:$0xff] }
 0x5c3   : > { %v12731_v20 = vadd.f32 %v6232_v37, %v2388_v30 }
 0x5c4   : > { %v6235_v11 = vpop.f32.mrf.mxu1  ;;  %6677 = vmatpush2.bf16.msra.mxu0 %v6572_v62  ;;  %v6569_v34 = vmax.bf16 %v13501_v60, %v14445_v1 }
 0x5c5   : > { %v6236_v59 = vadd.f32 %v6235_v11, %v5883_v46  ;;  %6678 = vmatprep.subr.bf16.mxu0 %v6571_v16  ;;  %14441 = vst [vmem:[#allocation353_spill] sm:$0xff] %v12731_v20  ;;  %v14449_v46 = vld [vmem:[#allocation54_spill] sm:$0xff]  ;;  %v14452_v16 = vld [vmem:[#allocation136_spill] sm:$0xff]  ;;  %v14495_v20 = vld [vmem:[#allocation111_spill] sm:$0xff] }
 0x5c6   : > { %v12729_v48 = vpop.f32.mrf.mxu1  ;;  %v14450_v37 = vpack.c.bf16 %v14448_v61, %v14449_v46  ;;  %v14453_v11 = vld [vmem:[#allocation326_spill] sm:$0xff]  ;;  %v14461_v46 = vld [vmem:[#allocation129_spill] sm:$0xff] }
 0x5c7   : > { %v12733_v54 = vadd.f32 %v6236_v59, %v2392_v26  ;;  %v5893_v58 = vadd.f32 %v14453_v11, %v14452_v16  ;;  %v7708_v59 = vld [vmem:[%s13193_s4 + $0xc] ss:$16 sps:$4 sm:$0xff]  }
 0x5c8   : > { %v6241_v22 = vpop.f32.mrf.mxu1  ;;  %6679 = vmatpush2.bf16.msra.mxu0 %v6570_v47  ;;  %v6568_v49 = vmax.bf16 %v13501_v60, %v14450_v37  ;;  %v14456_v47 = vld [vmem:[#allocation106_spill] sm:$0xff]  ;;  %6725 = vmatprep.mubr.bf16.mxu1 %v7708_v59 }
 0x5c9   : > { %14442 = vst [vmem:[#allocation355_spill] sm:$0xff] %v12733_v54  ;;  %6680 = vmatprep.subr.bf16.mxu0 %v6569_v34  ;;  %v6242_v30 = vadd.f32 %v6241_v22, %v5889_v33  ;;  %v2402_v7 = vadd.f32 %v14457_v8, %v14456_v47  ;;  %v12763_v34 = vpop.f32.mrf.mxu0  ;;  %v14462_v37 = vld [vmem:[#allocation330_spill] sm:$0xff] }
 0x5ca   : > { %v12749_v23 = vpop.f32.mrf.mxu1  ;;  %14458 = vst [vmem:[#allocation356_spill] sm:$0xff] %v12763_v34  ;;  %v14465_v8 = vld [vmem:[#allocation334_spill] sm:$0xff] }
 0x5cb   : > { %v12767_v39 = vadd.f32 %v6242_v30, %v2398_v50  ;;  %v12775_v13 = vpop.f32.mrf.mxu0  ;;  %v14466_v50 = vld [vmem:[#allocation30_spill] sm:$0xff] }
 0x5cc   : > { %v6245_v26 = vpop.f32.mrf.mxu1  ;;  %6681 = vmatpush2.bf16.msra.mxu0 %v6568_v49  ;;  %v5899_v49 = vadd.f32 %v14462_v37, %v14461_v46  ;;  %14463 = vst [vmem:[#allocation357_spill] sm:$0xff] %v12775_v13  ;;  %v14473_v13 = vld [vmem:[#allocation116_spill] sm:$0xff] }
 0x5cd   : > { %v6246_v1 = vadd.f32 %v6245_v26, %v5893_v58  ;;  %14459 = vst [vmem:[#allocation2_spill] sm:$0xff] %v12767_v39  ;;  %v14464_v26 = vld [vmem:[#allocation128_spill] sm:$0xff]  ;;  %v12785_v37 = vpop.f32.mrf.mxu0  ;;  %v1253_v39 = vpop.permute.xlu0 %1252 }
 0x5ce   : > { %v12765_v22 = vpop.f32.mrf.mxu1  ;;  %v5903_v31 = vadd.f32 %v14465_v8, %v14464_v26  ;;  %14470 = vst [vmem:[#allocation359_spill] sm:$0xff] %v12785_v37  ;;  %v5909_v8 = vadd.f32 %v14474_v45, %v14473_v13  ;;  %v2422_v45 = vadd.f32 %v14481_v27, %v14480_v43  ;;  %v2440_v53 = vadd.f32 %v14510_v28, %v1253_v39  ;;  %v14516_v28 = vld [vmem:[#allocation332_spill] sm:$0xff] }
 0x5cf   : > { %v12769_v33 = vadd.f32 %v6246_v1, %v2402_v7  ;;  %6683 = vmatmul.mubr.bf16.vlgmr.msra.gmra.mxu0 %v7703_v6  ;;  %v14467_v7 = vld [vmem:[#allocation248_spill] sm:$0xff] }
 0x5d0   : > { %v6251_v61 = vpop.f32.mrf.mxu1  ;;  %v2408_v1 = vadd.f32 %v14467_v7, %v14466_v50  ;;  %v14468_v6 = vld [vmem:[#allocation28_spill] sm:$0xff] }
 0x5d1   : > { %14460 = vst [vmem:[#allocation358_spill] sm:$0xff] %v12769_v33  ;;  %v6252_v59 = vadd.f32 %v6251_v61, %v5899_v49  ;;  %v2412_v24 = vadd.f32 %v14469_v12, %v14468_v6  ;;  %v12795_v49 = vpop.f32.mrf.mxu0  ;;  %v14476_v12 = vld [vmem:[#allocation121_spill] sm:$0xff]  ;;  %v14482_v61 = vld [vmem:[#allocation236_spill] sm:$0xff] }
 0x5d2   : > { %v12777_v58 = vpop.f32.mrf.mxu1  ;;  %14475 = vst [vmem:[#allocation72_spill] sm:$0xff] %v12795_v49  ;;  %v12807_v38 = vadd.f32 %v14482_v61, %v14433_v10  ;;  %v14484_v49 = vld [vmem:[#allocation240_spill] sm:$0xff]  ;;  %v14504_v33 = vld [vmem:[#allocation277_spill] sm:$0xff] }
 0x5d3   : > { %v12787_v62 = vadd.f32 %v6252_v59, %v2408_v1  ;;  %v12799_v59 = vpop.permute.xlu1 %4941  ;;  %v12811_v42 = vadd.f32 %v14484_v49, %v14435_v9  ;;  %v14492_v9 = vld [vmem:[#allocation254_spill] sm:$0xff]  ;;  %v2438_v34 = vadd.f32 %v14504_v33, %v1253_v39  ;;  %v14512_v33 = vld [vmem:[#allocation335_spill] sm:$0xff]  ;;  %v14517_v39 = vld [vmem:[#allocation24_spill] sm:$0xff] }
 0x5d4   : > { %v6255_v30 = vpop.f32.mrf.mxu1  ;;  %14483 = vst [vmem:[#allocation362_spill] sm:$0xff] %v12807_v38  ;;  %v2414_v49 = vadd.f32 %v14492_v9, %v14468_v6  ;;  %v14501_v9 = vld [vmem:[#allocation39_spill] sm:$0xff]  ;;  %v5905_v21 = vadd.f32 %v14512_v33, %v14464_v26 }
 0x5d5   : > { %v6256_v14 = vadd.f32 %v6255_v30, %v5903_v31  ;;  %14471 = vst [vmem:[#allocation73_spill] sm:$0xff] %v12787_v62  ;;  %v14477_v31 = vld [vmem:[#allocation338_spill] sm:$0xff]  ;;  %14485 = vst [vmem:[#allocation361_spill] sm:$0xff] %v12811_v42  ;;  %v14505_v62 = vld [vmem:[#allocation80_spill] sm:$0xff] }
 0x5d6   : > { %v6257_v41 = vpop.f32.mrf.mxu1  ;;  %v5913_v30 = vadd.f32 %v14477_v31, %v14476_v12  ;;  %v12817_v31 = vpop.f32.mrf.mxu0 }
 0x5d7   : > { %v12789_v11 = vadd.f32 %v6256_v14, %v2412_v24  ;;  %v14478_v24 = vld [vmem:[#allocation33_spill] sm:$0xff]  ;;  %14487 = vst [vmem:[#allocation363_spill] sm:$0xff] %v12817_v31  ;;  %v6258_v26 = vadd.f32 %v6257_v41, %v5905_v21  ;;  %v14519_v21 = vld [vmem:[#allocation324_spill] sm:$0xff] }
 0x5d8   : > { %v6261_v56 = vpop.f32.mrf.mxu1  ;;  %v14479_v14 = vld [vmem:[#allocation257_spill] sm:$0xff]  ;;  %v5891_v41 = vadd.f32 %v14519_v21, %v14446_v63 }
 0x5d9   : > { %14472 = vst [vmem:[#allocation360_spill] sm:$0xff] %v12789_v11  ;;  %v6262_v55 = vadd.f32 %v6261_v56, %v5909_v8  ;;  %v2418_v1 = vadd.f32 %v14479_v14, %v14478_v24  ;;  %v14486_v56 = vld [vmem:[#allocation243_spill] sm:$0xff]  ;;  %v14488_v14 = vld [vmem:[#allocation246_spill] sm:$0xff] }
 0x5da   : > { %v6263_v7 = vpop.f32.mrf.mxu1  ;;  %v12815_v8 = vadd.f32 %v14486_v56, %v14454_v52  ;;  %v12821_v37 = vadd.f32 %v14488_v14, %v14456_v47  ;;  %v14493_v52 = vld [vmem:[#allocation259_spill] sm:$0xff]  ;;  %v14494_v56 = vld [vmem:[#allocation264_spill] sm:$0xff]  ;;  %v14496_v47 = vld [vmem:[#allocation266_spill] sm:$0xff] }
 0x5db   : > { %v12827_v10 = vadd.f32 %v6262_v55, %v2418_v1  ;;  %v2424_v31 = vadd.f32 %v14494_v56, %v14480_v43  ;;  %v2428_v14 = vadd.f32 %v14496_v47, %v14495_v20  ;;  %v14503_v56 = vld [vmem:[#allocation274_spill] sm:$0xff] }
 0x5dc   : > { %v6265_v5 = vpop.f32.mrf.mxu1  ;;  %v2434_v47 = vadd.f32 %v14503_v56, %v14501_v9 }
 0x5dd   : > { %v6266_v40 = vadd.f32 %v6265_v5, %v5913_v30  ;;  %v14489_v5 = vld [vmem:[#allocation250_spill] sm:$0xff]  ;;  %14490 = vst [vmem:[#allocation69_spill] sm:$0xff] %v12827_v10  ;;  %v2420_v30 = vadd.f32 %v14493_v52, %v14478_v24  ;;  %v14502_v52 = vld [vmem:[#allocation272_spill] sm:$0xff]  ;;  %v14509_v24 = vld [vmem:[#allocation11_spill] sm:$0xff] }
 0x5de   : > { %v6267_v36 = vpop.f32.mrf.mxu1  ;;  %v12825_v27 = vadd.f32 %v14489_v5, %v14466_v50  ;;  %v14497_v50 = vld [vmem:[#allocation269_spill] sm:$0xff]  ;;  %v2432_v43 = vadd.f32 %v14502_v52, %v14501_v9  ;;  %v5923_v38 = vadd.f32 %v14509_v24, %v14508_v17  ;;  %v14511_v9 = vld [vmem:[#allocation282_spill] sm:$0xff]  ;;  %v14515_v24 = vld [vmem:[#allocation319_spill] sm:$0xff] }
 0x5df   : > { %v12829_v61 = vadd.f32 %v6266_v40, %v2422_v45  ;;  %v2430_v55 = vadd.f32 %v14497_v50, %v14495_v20  ;;  %v14498_v40 = vld [vmem:[#allocation340_spill] sm:$0xff]  ;;  %v14499_v45 = vld [vmem:[#allocation109_spill] sm:$0xff]  ;;  %v5911_v20 = vadd.f32 %v14505_v62, %v14473_v13  ;;  %v12854_v50 = vpop.f32.mrf.mxu0 }
 0x5e0   : > { %v6271_v54 = vpop.f32.mrf.mxu1  ;;  %v5915_v1 = vadd.f32 %v14498_v40, %v14476_v12  ;;  %v14500_v5 = vld [vmem:[#allocation341_spill] sm:$0xff]  ;;  %14506 = vst [vmem:[#allocation68_spill] sm:$0xff] %v12854_v50  ;;  %v1258_v40 = vpop.permute.xlu1 %1257 }
 0x5e1   : > { %14491 = vst [vmem:[#allocation364_spill] sm:$0xff] %v12829_v61  ;;  %v5919_v6 = vadd.f32 %v14500_v5, %v14499_v45  ;;  %v14507_v5 = vld [vmem:[#allocation343_spill] sm:$0xff]  ;;  %v2442_v56 = vadd.f32 %v14511_v9, %v1258_v40  ;;  %v6264_v62 = vadd.f32 %v6263_v7, %v5911_v20  ;;  %v14513_v50 = vld [vmem:[#allocation285_spill] sm:$0xff]  ;;  %v14514_v61 = vld [vmem:[#allocation344_spill] sm:$0xff] }
 0x5e2   : > { %v6273_v12 = vpop.f32.mrf.mxu1  ;;  %v5921_v11 = vadd.f32 %v14507_v5, %v14499_v45  ;;  %v6268_v15 = vadd.f32 %v6267_v36, %v5915_v1  ;;  %v2444_v10 = vadd.f32 %v14513_v50, %v1258_v40  ;;  %v5925_v42 = vadd.f32 %v14514_v61, %v14508_v17  ;;  %v14518_v17 = vld [vmem:[#allocation328_spill] sm:$0xff] }
 0x5e3   : > { %v6272_v52 = vadd.f32 %v6271_v54, %v5919_v6  ;;  %v12869_v36 = vadd.f32 %v14515_v24, %v14400_v19  ;;  %v5901_v54 = vadd.f32 %v14516_v28, %v14461_v46  ;;  %v5929_v1 = vadd.f32 %v14517_v39, %v4937_v25  ;;  %v12874_v6 = vpop.f32.mrf.mxu0 }
 0x5e4   : > { %v6275_v13 = vpop.f32.mrf.mxu1  ;;  %v6274_v45 = vadd.f32 %v6273_v12, %v5921_v11  ;;  %v6451_v20 = vadd.f32 %v6268_v15, %v2424_v31  ;;  %v5931_v11 = vadd.f32 %v12587_v18, %v4937_v25  ;;  %v6449_v61 = vadd.f32 %v6264_v62, %v2420_v30 }
 0x5e5   : > { %v6276_v5 = vadd.f32 %v6275_v13, %v5923_v38  ;;  %v6452_v50 = vadd.f32 %v6272_v52, %v2428_v14  ;;  %v5895_v38 = vadd.f32 %v14518_v17, %v14452_v16  ;;  %v6254_v19 = vadd.f32 %v12777_v58, %v5901_v54  ;;  %v14529_v17 = vld [vmem:[#allocation361_spill] sm:$0xff] }
 0x5e6   : > { %v6277_v7 = vpop.f32.mrf.mxu1  ;;  %v6453_v46 = vadd.f32 %v6274_v45, %v2430_v55  ;;  %v5933_v15 = vadd.f32 %v12605_v44, %v12799_v59  ;;  %v6447_v31 = vadd.f32 %v6258_v26, %v2414_v49  ;;  %v6533_v25 = vpack.c.bf16 %v6451_v20, %v6449_v61  ;;  %v14521_v55 = vld [vmem:[#allocation322_spill] sm:$0xff] }
 0x5e7   : > { %v6454_v40 = vadd.f32 %v6276_v5, %v2432_v43  ;;  %v6278_v9 = vadd.f32 %v6277_v7, %v5925_v42  ;;  %v12884_v42 = vpop.f32.mrf.mxu0  ;;  %v6248_v16 = vadd.f32 %v12765_v22, %v5895_v38  ;;  %v5881_v43 = vadd.f32 %v14521_v55, %v14422_v32  ;;  %v14524_v5 = vld [vmem:[#allocation279_spill] sm:$0xff]  ;;  %v14527_v7 = vld [vmem:[#allocation284_spill] sm:$0xff]  ;;  %v14541_v55 = vld [vmem:[#allocation362_spill] sm:$0xff] }
 0x5e8   : > { %v6281_v12 = vpop.f32.mrf.mxu1  ;;  %v5935_v44 = vadd.f32 %v12626_v29, %v12799_v59  ;;  %v6244_v52 = vadd.f32 %v12749_v23, %v5891_v41  ;;  %v6445_v22 = vadd.f32 %v6254_v19, %v12825_v27  ;;  %v5939_v28 = vadd.f32 %v12658_v3, %v14524_v5  ;;  %v14537_v41 = vld [vmem:[#allocation102_spill] sm:$0xff] }
 0x5e9   : > { %v6534_v33 = vpack.c.bf16 %v6454_v40, %v6452_v50  ;;  %v6455_v13 = vadd.f32 %v6278_v9, %v2434_v47  ;;  %v6282_v24 = vadd.f32 %v6281_v12, %v5929_v1  ;;  %v14522_v47 = vld [vmem:[#allocation323_spill] sm:$0xff]  ;;  %v12902_v32 = vpop.f32.mrf.mxu0  ;;  %v6443_v54 = vadd.f32 %v6248_v16, %v12821_v37  ;;  %v14526_v1 = vld [vmem:[#allocation320_spill] sm:$0xff] }
 0x5ea   : > { %v6283_v18 = vpop.f32.mrf.mxu1  ;;  %v5885_v63 = vadd.f32 %v14522_v47, %v14428_v2  ;;  %v6531_v59 = vpack.c.bf16 %v6447_v31, %v6445_v22  ;;  %v6597_v27 = vmax.bf16 %v13501_v60, %v6533_v25  ;;  %v5875_v26 = vadd.f32 %v14526_v1, %v14409_v4  ;;  %v14539_v31 = vld [vmem:[#allocation6_spill] sm:$0xff]  ;;  %v14542_v47 = vld [vmem:[#allocation289_spill] sm:$0xff] }
 0x5eb   : > { %v6535_v58 = vpack.c.bf16 %v6455_v13, %v6453_v46  ;;  %v12887_v30 = vadd.f32 %v6282_v24, %v2438_v34  ;;  %v6284_v14 = vadd.f32 %v6283_v18, %v5931_v11  ;;  %v6598_v29 = vmax.bf16 %v13501_v60, %v6534_v33  ;;  %v12922_v4 = vpop.f32.mrf.mxu0  ;;  %v14530_v11 = vld [vmem:[#allocation364_spill] sm:$0xff]  ;;  %v14535_v24 = vld [vmem:[#allocation103_spill] sm:$0xff] }
 0x5ec   : > { %v6285_v62 = vpop.f32.mrf.mxu1  ;;  %v6238_v2 = vadd.f32 %v12729_v48, %v5885_v63  ;;  %v5941_v3 = vadd.f32 %v12675_v0, %v14524_v5  ;;  %v5943_v48 = vadd.f32 %v12690_v51, %v14527_v7  ;;  %v6441_v37 = vadd.f32 %v6244_v52, %v12815_v8  ;;  %v14531_v8 = vld [vmem:[#allocation69_spill] sm:$0xff]  ;;  %v14544_v52 = vld [vmem:[#allocation290_spill] sm:$0xff] }
 0x5ed   : > { %14520 = vst [vmem:[#allocation366_spill] sm:$0xff] %v12887_v30  ;;  %v12897_v49 = vadd.f32 %v6284_v14, %v2440_v53  ;;  %v6286_v45 = vadd.f32 %v6285_v62, %v5933_v15  ;;  %v6599_v34 = vmax.bf16 %v13501_v60, %v6535_v58  ;;  %v6228_v0 = vadd.f32 %v12696_v57, %v5875_v26  ;;  %v14536_v57 = vld [vmem:[#allocation230_spill] sm:$0xff]  ;;  %v14538_v15 = vld [vmem:[#allocation233_spill] sm:$0xff]  ;;  %v14540_v58 = vld [vmem:[#allocation351_spill] sm:$0xff] }
 0x5ee   : > { %v6287_v23 = vpop.f32.mrf.mxu1  ;;  %v6439_v38 = vadd.f32 %v6238_v2, %v14529_v17  ;;  %v6529_v51 = vpack.c.bf16 %v6443_v54, %v6441_v37  ;;  %v14532_v19 = vpack.c.bf16 %v14530_v11, %v14531_v8  ;;  %v6595_v13 = vmax.bf16 %v13501_v60, %v6531_v59  ;;  %v14545_v62 = vld [vmem:[#allocation292_spill] sm:$0xff]  ;;  %v14556_v11 = vld [vmem:[#allocation358_spill] sm:$0xff] }
 0x5ef   : > { %14523 = vst [vmem:[#allocation365_spill] sm:$0xff] %v12897_v49  ;;  %v12907_v39 = vadd.f32 %v6286_v45, %v2442_v56  ;;  %v6288_v53 = vadd.f32 %v6287_v23, %v5935_v44  ;;  %6693 = vmatprep.subr.bf16.mxu1 %v6599_v34  ;;  %v6234_v56 = vadd.f32 %v12711_v35, %v5881_v43  ;;  %v14546_v45 = vld [vmem:[#allocation256_spill] sm:$0xff]  ;;  %v14547_v34 = vld [vmem:[#allocation354_spill] sm:$0xff] }
 0x5f0   : > { %v6291_v20 = vpop.f32.mrf.mxu1  ;;  %6694 = vmatpush1.bf16.msra.mxu1 %v6598_v29  ;;  %v6596_v61 = vmax.bf16 %v13501_v60, %v14532_v19  ;;  %v2380_v21 = vadd.f32 %v14536_v57, %v14535_v24  ;;  %v2384_v16 = vadd.f32 %v14538_v15, %v14537_v41  ;;  %v5945_v18 = vadd.f32 %v14539_v31, %v14527_v7  ;;  %v14548_v54 = vld [vmem:[#allocation360_spill] sm:$0xff]  ;;  %v14549_v29 = vld [vmem:[#allocation73_spill] sm:$0xff]  ;;  %v14557_v8 = vld [vmem:[#allocation2_spill] sm:$0xff] }
 0x5f1   : > { %14525 = vst [vmem:[#allocation367_spill] sm:$0xff] %v12907_v39  ;;  %v12920_v40 = vadd.f32 %v6288_v53, %v2444_v10  ;;  %v6292_v9 = vadd.f32 %v6291_v20, %v5939_v28  ;;  %6695 = vmatprep.subr.bf16.mxu1 %v6597_v27  ;;  %v14533_v10 = vld [vmem:[#allocation287_spill] sm:$0xff]  ;;  %v6224_v14 = vadd.f32 %v14540_v58, %v12869_v36  ;;  %v12952_v28 = vpop.f32.mrf.mxu0  ;;  %v14562_v41 = vld [vmem:[#allocation53_spill] sm:$0xff]  ;;  %v14607_v49 = vld [vmem:[#allocation202_spill] sm:$0xff] }
 0x5f2   : > { %v6293_v35 = vpop.f32.mrf.mxu1  ;;  %v6437_v43 = vadd.f32 %v6234_v56, %v14541_v55  ;;  %v2454_v22 = vadd.f32 %v14545_v62, %v14544_v52  ;;  %v5949_v5 = vadd.f32 %v14547_v34, %v14546_v45  ;;  %v6435_v2 = vadd.f32 %v6228_v0, %v2384_v16  ;;  %v14551_v27 = vld [vmem:[#allocation291_spill] sm:$0xff]  ;;  %v14555_v0 = vld [vmem:[#allocation356_spill] sm:$0xff]  ;;  %v14603_v34 = vld [vmem:[#allocation194_spill] sm:$0xff] }
 0x5f3   : > { %14528 = vst [vmem:[#allocation164_spill] sm:$0xff] %v12920_v40  ;;  %v12933_v46 = vadd.f32 %v6292_v9, %v14533_v10  ;;  %v6294_v33 = vadd.f32 %v6293_v35, %v5941_v3  ;;  %v14550_v23 = vpack.c.bf16 %v14548_v54, %v14549_v29  ;;  %v6593_v3 = vmax.bf16 %v13501_v60, %v6529_v51  ;;  %v14554_v9 = vld [vmem:[#allocation261_spill] sm:$0xff]  ;;  %v14567_v52 = vld [vmem:[#allocation239_spill] sm:$0xff] }
 0x5f4   : > { %v6295_v25 = vpop.f32.mrf.mxu1  ;;  %6696 = vmatpush1.bf16.msra.mxu1 %v6596_v61  ;;  %v6527_v53 = vpack.c.bf16 %v6439_v38, %v6437_v43  ;;  %v5953_v17 = vadd.f32 %v14555_v0, %v14554_v9  ;;  %v12968_v38 = vpop.f32.mrf.mxu0  ;;  %v14558_v19 = vpack.c.bf16 %v14556_v11, %v14557_v8  ;;  %v14568_v62 = vld [vmem:[#allocation359_spill] sm:$0xff]  ;;  %v14578_v11 = vld [vmem:[#allocation49_spill] sm:$0xff] }
 0x5f5   : > { %14534 = vst [vmem:[#allocation83_spill] sm:$0xff] %v12933_v46  ;;  %v12946_v63 = vadd.f32 %v6294_v33, %v14542_v47  ;;  %v6296_v44 = vadd.f32 %v6295_v25, %v5943_v48  ;;  %6697 = vmatprep.subr.bf16.mxu1 %v6595_v13  ;;  %v6594_v36 = vmax.bf16 %v13501_v60, %v14550_v23  ;;  %v14559_v33 = vld [vmem:[#allocation293_spill] sm:$0xff]  ;;  %v14570_v54 = vld [vmem:[#allocation27_spill] sm:$0xff] }
 0x5f6   : > { %v6297_v59 = vpop.f32.mrf.mxu1  ;;  %v6433_v48 = vadd.f32 %v6224_v14, %v2380_v21  ;;  %v6592_v51 = vmax.bf16 %v13501_v60, %v14558_v19  ;;  %v6591_v24 = vmax.bf16 %v13501_v60, %v6527_v53  ;;  %v14561_v21 = vld [vmem:[#allocation268_spill] sm:$0xff]  ;;  %v5982_v31 = vpop.f32.mrf.mxu0  ;;  %v14564_v25 = vld [vmem:[#allocation353_spill] sm:$0xff]  ;;  %v14573_v53 = vld [vmem:[#allocation363_spill] sm:$0xff] }
 0x5f7   : > { %14543 = vst [vmem:[#allocation29_spill] sm:$0xff] %v12946_v63  ;;  %v12959_v1 = vadd.f32 %v6296_v44, %v14551_v27  ;;  %v6298_v26 = vadd.f32 %v6297_v59, %v5945_v18  ;;  %v2462_v15 = vadd.f32 %v14562_v41, %v14561_v21  ;;  %v14563_v18 = vld [vmem:[#allocation355_spill] sm:$0xff]  ;;  %v14572_v59 = vld [vmem:[#allocation242_spill] sm:$0xff]  ;;  %v14582_v41 = vld [vmem:[#allocation348_spill] sm:$0xff] }
 0x5f8   : > { %v6301_v7 = vpop.f32.mrf.mxu1  ;;  %6698 = vmatpush1.bf16.msra.mxu1 %v6594_v36  ;;  %v6525_v35 = vpack.c.bf16 %v6435_v2, %v6433_v48  ;;  %v14565_v58 = vpack.c.bf16 %v14563_v18, %v14564_v25  ;;  %v14569_v2 = vld [vmem:[#allocation352_spill] sm:$0xff]  ;;  %v5963_v27 = vadd.f32 %v14573_v53, %v14572_v59  ;;  %v14579_v19 = vld [vmem:[#allocation247_spill] sm:$0xff] }
 0x5f9   : > { %14552 = vst [vmem:[#allocation31_spill] sm:$0xff] %v12959_v1  ;;  %v12964_v20 = vadd.f32 %v6298_v26, %v2454_v22  ;;  %v6302_v56 = vadd.f32 %v6301_v7, %v5949_v5  ;;  %6699 = vmatprep.subr.bf16.mxu1 %v6593_v3  ;;  %v5959_v22 = vadd.f32 %v14568_v62, %v14567_v52  ;;  %v12997_v5 = vpop.f32.mrf.mxu0  ;;  %v14574_v3 = vld [vmem:[#allocation349_spill] sm:$0xff]  ;;  %v14575_v7 = vld [vmem:[#allocation7_spill] sm:$0xff] }
 0x5fa   : > { %v12974_v61 = vpop.f32.mrf.mxu1  ;;  %v6590_v14 = vmax.bf16 %v13501_v60, %v14565_v58  ;;  %v6589_v47 = vmax.bf16 %v13501_v60, %v6525_v35  ;;  %v14571_v29 = vpack.c.bf16 %v14569_v2, %v14570_v54  ;;  %v14576_v48 = vpack.c.bf16 %v14574_v3, %v14575_v7  ;;  %v14588_v2 = vld [vmem:[#allocation224_spill] sm:$0xff]  ;;  %v14589_v53 = vld [vmem:[#allocation347_spill] sm:$0xff] }
 0x5fb   : > { %14553 = vst [vmem:[#allocation167_spill] sm:$0xff] %v12964_v20  ;;  %v12979_v13 = vadd.f32 %v6302_v56, %v14559_v33  ;;  %v5969_v54 = vadd.f32 %v12874_v6, %v14588_v2  ;;  %v14594_v6 = vld [vmem:[#allocation77_spill] sm:$0xff]  ;;  %v14609_v63 = vld [vmem:[#allocation179_spill] sm:$0xff] }
 0x5fc   : > { %v6305_v57 = vpop.f32.mrf.mxu1  ;;  %6700 = vmatpush1.bf16.msra.mxu1 %v6592_v51  ;;  %v6588_v23 = vmax.bf16 %v13501_v60, %v14571_v29  ;;  %v6587_v56 = vmax.bf16 %v13501_v60, %v14576_v48  ;;  %v14580_v51 = vld [vmem:[#allocation45_spill] sm:$0xff]  ;;  %v14592_v48 = vld [vmem:[#allocation227_spill] sm:$0xff] }
 0x5fd   : > { %14560 = vst [vmem:[#allocation82_spill] sm:$0xff] %v12979_v13  ;;  %v6306_v16 = vadd.f32 %v6305_v57, %v5953_v17  ;;  %6701 = vmatprep.subr.bf16.mxu1 %v6591_v24  ;;  %v14577_v17 = vld [vmem:[#allocation244_spill] sm:$0xff]  ;;  %v2472_v35 = vadd.f32 %v14580_v51, %v14579_v19  ;;  %v5988_v24 = vpop.f32.mrf.mxu0  ;;  %v14581_v57 = vld [vmem:[#allocation350_spill] sm:$0xff] }
 0x5fe   : > { %v12988_v55 = vpop.f32.mrf.mxu1  ;;  %v2468_v8 = vadd.f32 %v14578_v11, %v14577_v17  ;;  %v5989_v29 = vadd.f32 %v5988_v24, %v14603_v34  ;;  %v14614_v13 = vld [vmem:[#allocation8_spill] sm:$0xff] }
 0x5ff   : > { %v12990_v43 = vadd.f32 %v6306_v16, %v2462_v15  ;;  %v14583_v15 = vpack.c.bf16 %v14581_v57, %v14582_v41 }
 0x600   : > { %v6311_v44 = vpop.f32.mrf.mxu1  ;;  %6702 = vmatpush1.bf16.msra.mxu1 %v6590_v14  ;;  %v14585_v14 = vld [vmem:[#allocation9_spill] sm:$0xff] }
 0x601   : > { %14566 = vst [vmem:[#allocation108_spill] sm:$0xff] %v12990_v43  ;;  %6703 = vmatprep.subr.bf16.mxu1 %v6589_v47  ;;  %v6312_v26 = vadd.f32 %v6311_v44, %v5959_v22  ;;  %v6586_v16 = vmax.bf16 %v13501_v60, %v14583_v15  ;;  %v14586_v47 = vld [vmem:[#allocation345_spill] sm:$0xff] }
 0x602   : > { %v13003_v36 = vpop.f32.mrf.mxu1  ;;  %v14587_v44 = vpack.c.bf16 %v14585_v14, %v14586_v47 }
 0x603   : > { %v13021_v25 = vadd.f32 %v6312_v26, %v2468_v8  ;;  %v14593_v8 = vld [vmem:[#allocation229_spill] sm:$0xff] }
 0x604   : > { %v6315_v0 = vpop.f32.mrf.mxu1  ;;  %6704 = vmatpush1.bf16.msra.mxu1 %v6588_v23  ;;  %v6585_v62 = vmax.bf16 %v13501_v60, %v14587_v44  ;;  %v5990_v23 = vpop.f32.mrf.mxu0  ;;  %v2478_v51 = vadd.f32 %v14594_v6, %v14593_v8  ;;  %v14600_v6 = vld [vmem:[#allocation258_spill] sm:$0xff] }
 0x605   : > { %v6316_v33 = vadd.f32 %v6315_v0, %v5963_v27  ;;  %6705 = vmatprep.subr.bf16.mxu1 %v6587_v56  ;;  %14584 = vst [vmem:[#allocation34_spill] sm:$0xff] %v13021_v25  ;;  %v14590_v27 = vld [vmem:[#allocation346_spill] sm:$0xff]  ;;  %v5973_v56 = vadd.f32 %v12902_v32, %v14592_v48 }
 0x606   : > { %v13019_v18 = vpop.f32.mrf.mxu1  ;;  %v14591_v26 = vpack.c.bf16 %v14589_v53, %v14590_v27  ;;  %v5992_v15 = vpop.f32.mrf.mxu0  ;;  %v14598_v27 = vld [vmem:[#allocation212_spill] sm:$0xff] }
 0x607   : > { %v13023_v58 = vadd.f32 %v6316_v33, %v2472_v35  ;;  %v14595_v35 = vld [vmem:[#allocation232_spill] sm:$0xff]  ;;  %v14596_v33 = vld [vmem:[#allocation255_spill] sm:$0xff] }
 0x608   : > { %v6321_v22 = vpop.f32.mrf.mxu1  ;;  %6706 = vmatpush1.bf16.msra.mxu1 %v6586_v16  ;;  %v6584_v3 = vmax.bf16 %v13501_v60, %v14591_v26  ;;  %v2482_v57 = vadd.f32 %v14596_v33, %v14595_v35  ;;  %v5983_v26 = vadd.f32 %v5982_v31, %v14598_v27 }
 0x609   : > { %6707 = vmatprep.subr.bf16.mxu1 %v6585_v62  ;;  %v6322_v0 = vadd.f32 %v6321_v22, %v5969_v54  ;;  %v14597_v62 = vld [vmem:[#allocation209_spill] sm:$0xff]  ;;  %v5994_v54 = vpop.f32.mrf.mxu0 }
 0x60a   : > { %v13037_v7 = vpop.f32.mrf.mxu1  ;;  %v5979_v32 = vadd.f32 %v12952_v28, %v14597_v62  ;;  %v14604_v22 = vld [vmem:[#allocation197_spill] sm:$0xff] }
 0x60b   : > { %v13047_v14 = vadd.f32 %v6322_v0, %v2478_v51  ;;  %v14601_v0 = vld [vmem:[#allocation217_spill] sm:$0xff]  ;;  %v5998_v50 = vpop.f32.mrf.mxu0  ;;  %v5995_v1 = vadd.f32 %v5994_v54, %v14604_v22 }
 0x60c   : > { %v6325_v11 = vpop.f32.mrf.mxu1  ;;  %6708 = vmatpush1.bf16.msra.mxu1 %v6584_v3  ;;  %v14602_v51 = vld [vmem:[#allocation25_spill] sm:$0xff] }
 0x60d   : > { %v6326_v41 = vadd.f32 %v6325_v11, %v5973_v56  ;;  %v14599_v11 = vld [vmem:[#allocation214_spill] sm:$0xff] }
 0x60e   : > { %v13045_v16 = vpop.f32.mrf.mxu1  ;;  %v2488_v33 = vadd.f32 %v14600_v6, %v14599_v11  ;;  %v5993_v6 = vadd.f32 %v5992_v15, %v14604_v22  ;;  %v5999_v15 = vadd.f32 %v5998_v50, %v14609_v63  ;;  %v14612_v22 = vld [vmem:[#allocation270_spill] sm:$0xff]  ;;  %v14613_v50 = vld [vmem:[#allocation184_spill] sm:$0xff] }
 0x60f   : > { %v13049_v47 = vadd.f32 %v6326_v41, %v2482_v57  ;;  %v2492_v57 = vadd.f32 %v14602_v51, %v14601_v0  ;;  %v14605_v51 = vld [vmem:[#allocation199_spill] sm:$0xff]  ;;  %v2504_v54 = vadd.f32 %v14612_v22, %v14607_v49  ;;  %v2508_v43 = vadd.f32 %v14614_v13, %v14613_v50 }
 0x610   : > { %v6331_v44 = vpop.f32.mrf.mxu1  ;;  %v5981_v13 = vadd.f32 %v12968_v38, %v14597_v62 }
 0x611   : > { %v6332_v3 = vadd.f32 %v6331_v44, %v5979_v32  ;;  %v6000_v44 = vpop.f32.mrf.mxu0 }
 0x612   : > { %v6333_v53 = vpop.f32.mrf.mxu1 }
 0x613   : > { %v13060_v37 = vadd.f32 %v6332_v3, %v2488_v33  ;;  %v14608_v3 = vld [vmem:[#allocation265_spill] sm:$0xff] }
 0x614   : > { %v6335_v56 = vpop.f32.mrf.mxu1  ;;  %v2502_v33 = vadd.f32 %v14608_v3, %v14607_v49  ;;  %v5991_v3 = vadd.f32 %v5990_v23, %v14603_v34  ;;  %v5985_v34 = vadd.f32 %v12997_v5, %v14598_v27  ;;  %v14618_v49 = vld [vmem:[#allocation278_spill] sm:$0xff] }
 0x615   : > { %v6336_v41 = vadd.f32 %v6335_v56, %v5983_v26  ;;  %v14606_v26 = vld [vmem:[#allocation10_spill] sm:$0xff] }
 0x616   : > { %v6337_v12 = vpop.f32.mrf.mxu1  ;;  %v2498_v56 = vadd.f32 %v14606_v26, %v14605_v51 }
 0x617   : > { %v13062_v28 = vadd.f32 %v6336_v41, %v2492_v57  ;;  %v6002_v41 = vpop.f32.mrf.mxu0 }
 0x618   : > { %v6341_v10 = vpop.f32.mrf.mxu1 }
 0x619   : > { %v6342_v30 = vadd.f32 %v6341_v10, %v5989_v29  ;;  %v14610_v29 = vld [vmem:[#allocation267_spill] sm:$0xff] }
 0x61a   : > { %v6343_v32 = vpop.f32.mrf.mxu1  ;;  %v2500_v26 = vadd.f32 %v14610_v29, %v14605_v51 }
 0x61b   : > { %v13072_v46 = vadd.f32 %v6342_v30, %v2498_v56  ;;  %v6001_v30 = vadd.f32 %v6000_v44, %v14609_v63  ;;  %v14611_v56 = vld [vmem:[#allocation182_spill] sm:$0xff]  ;;  %v6344_v63 = vadd.f32 %v6343_v32, %v5991_v3  ;;  %v5975_v3 = vadd.f32 %v12922_v4, %v14592_v48  ;;  %v14622_v4 = vld [vmem:[#allocation68_spill] sm:$0xff] }
 0x61c   : > { %v6345_v39 = vpop.f32.mrf.mxu1  ;;  %v5965_v48 = vadd.f32 %v14622_v4, %v14572_v59 }
 0x61d   : > { %v6346_v57 = vadd.f32 %v6345_v39, %v5993_v6  ;;  %v6004_v39 = vpop.f32.mrf.mxu0 }
 0x61e   : > { %v6347_v40 = vpop.f32.mrf.mxu1  ;;  %v6005_v51 = vadd.f32 %v6004_v39, %v14611_v56  ;;  %v14619_v39 = vld [vmem:[#allocation263_spill] sm:$0xff] }
 0x61f   : > { %v13074_v24 = vadd.f32 %v6346_v57, %v2502_v33  ;;  %v6003_v33 = vadd.f32 %v6002_v41, %v14611_v56  ;;  %v6348_v57 = vadd.f32 %v6347_v40, %v5995_v1  ;;  %v14617_v40 = vld [vmem:[#allocation273_spill] sm:$0xff]  ;;  %v2494_v32 = vadd.f32 %v14619_v39, %v14601_v0  ;;  %v14621_v0 = vld [vmem:[#allocation76_spill] sm:$0xff] }
 0x620   : > { %v6351_v31 = vpop.f32.mrf.mxu1  ;;  %v2510_v1 = vadd.f32 %v14617_v40, %v14613_v50 }
 0x621   : > { %v6548_v10 = vpack.c.bf16 %v13074_v24, %v13072_v46  ;;  %v6352_v20 = vadd.f32 %v6351_v31, %v5999_v15  ;;  %v14615_v46 = vld [vmem:[#allocation187_spill] sm:$0xff]  ;;  %v14616_v24 = vld [vmem:[#allocation26_spill] sm:$0xff]  ;;  %v6338_v15 = vadd.f32 %v6337_v12, %v5985_v34  ;;  %v6483_v22 = vadd.f32 %v6348_v57, %v2504_v54 }
 0x622   : > { %v6353_v6 = vpop.f32.mrf.mxu1  ;;  %v2512_v25 = vadd.f32 %v14616_v24, %v14615_v46  ;;  %v2514_v31 = vadd.f32 %v14618_v49, %v14615_v46  ;;  %v14620_v46 = vld [vmem:[#allocation260_spill] sm:$0xff]  ;;  %v5971_v12 = vadd.f32 %v12884_v42, %v14588_v2  ;;  %v2484_v57 = vadd.f32 %v14621_v0, %v14595_v35  ;;  %v14645_v0 = vld [vmem:[#allocation365_spill] sm:$0xff] }
 0x623   : > { %v6354_v44 = vadd.f32 %v6353_v6, %v6001_v30  ;;  %v6484_v24 = vadd.f32 %v6352_v20, %v2508_v43  ;;  %v6334_v6 = vadd.f32 %v6333_v53, %v5981_v13  ;;  %v6481_v30 = vadd.f32 %v6344_v63, %v2500_v26  ;;  %v14624_v42 = vld [vmem:[#allocation72_spill] sm:$0xff] }
 0x624   : > { %v6355_v23 = vpop.f32.mrf.mxu1  ;;  %v2490_v38 = vadd.f32 %v14620_v46, %v14599_v11  ;;  %v6328_v20 = vadd.f32 %v13045_v16, %v5975_v3  ;;  %v6479_v43 = vadd.f32 %v6338_v15, %v2494_v32  ;;  %v6324_v53 = vadd.f32 %v13037_v7, %v5971_v12  ;;  %v14623_v11 = vld [vmem:[#allocation252_spill] sm:$0xff]  ;;  %v14639_v46 = vld [vmem:[#allocation29_spill] sm:$0xff] }
 0x625   : > { %v6356_v41 = vadd.f32 %v6355_v23, %v6003_v33  ;;  %v6485_v56 = vadd.f32 %v6354_v44, %v2510_v1  ;;  %v2480_v34 = vadd.f32 %v14623_v11, %v14593_v8  ;;  %v5961_v2 = vadd.f32 %v14624_v42, %v14567_v52  ;;  %v14625_v7 = vld [vmem:[#allocation44_spill] sm:$0xff]  ;;  %v14626_v44 = vld [vmem:[#allocation357_spill] sm:$0xff] }
 0x626   : > { %v6357_v29 = vpop.f32.mrf.mxu1  ;;  %v6477_v26 = vadd.f32 %v6334_v6, %v2490_v38  ;;  %v6318_v23 = vadd.f32 %v13019_v18, %v5965_v48  ;;  %v2474_v63 = vadd.f32 %v14625_v7, %v14579_v19  ;;  %v14627_v52 = vld [vmem:[#allocation48_spill] sm:$0xff]  ;;  %v14628_v18 = vld [vmem:[#allocation3_spill] sm:$0xff] }
 0x627   : > { %v6486_v5 = vadd.f32 %v6356_v41, %v2512_v25  ;;  %v6358_v27 = vadd.f32 %v6357_v29, %v6005_v51  ;;  %v6549_v25 = vpack.c.bf16 %v6483_v22, %v6481_v30  ;;  %v6475_v51 = vadd.f32 %v6328_v20, %v2484_v57  ;;  %v14642_v20 = vld [vmem:[#allocation83_spill] sm:$0xff] }
 0x628   : > { %v6547_v35 = vpack.c.bf16 %v6479_v43, %v6477_v26  ;;  %v5955_v41 = vadd.f32 %v14626_v44, %v14554_v9  ;;  %v6314_v8 = vadd.f32 %v13003_v36, %v5961_v2  ;;  %v6473_v40 = vadd.f32 %v6324_v53, %v2480_v34  ;;  %v14629_v9 = vld [vmem:[#allocation52_spill] sm:$0xff]  ;;  %v14647_v48 = vld [vmem:[#allocation367_spill] sm:$0xff]  ;;  %v14648_v53 = vld [vmem:[#allocation366_spill] sm:$0xff]  ;;  %v6623_v2 = vpop.permute.xlu0 %6622 }
 0x629   : > { %v6550_v33 = vpack.c.bf16 %v6486_v5, %v6484_v24  ;;  %v6487_v50 = vadd.f32 %v6358_v27, %v2514_v31  ;;  %v6613_v59 = vmax.bf16 %v13501_v60, %v6549_v25  ;;  %v2470_v1 = vadd.f32 %v14627_v52, %v14577_v17  ;;  %v14631_v27 = vld [vmem:[#allocation294_spill] sm:$0xff]  ;;  %v7706_v11 = vld [vmem:[%s13193_s4 + $0x8] ss:$16 sps:$4 sm:$0xff]  }
 0x62a   : > { %v5951_v49 = vadd.f32 %v14628_v18, %v14546_v45  ;;  %v6612_v31 = vmax.bf16 %v13501_v60, %v6548_v10  ;;  %v6308_v13 = vadd.f32 %v12988_v55, %v5955_v41  ;;  %v6471_v15 = vadd.f32 %v6318_v23, %v2474_v63 }
 0x62b   : > { %v6551_v62 = vpack.c.bf16 %v6487_v50, %v6485_v56  ;;  %v6614_v16 = vmax.bf16 %v13501_v60, %v6550_v33  ;;  %v6545_v29 = vpack.c.bf16 %v6475_v51, %v6473_v40  ;;  %v6611_v19 = vmax.bf16 %v13501_v60, %v6547_v35  ;;  %v14635_v56 = vld [vmem:[#allocation108_spill] sm:$0xff]  ;;  %v14636_v33 = vld [vmem:[#allocation82_spill] sm:$0xff]  ;;  %v14638_v50 = vld [vmem:[#allocation167_spill] sm:$0xff]  ;;  %v6628_v35 = vpop.permute.xlu1 %6627 }
 0x62c   : > { %v2464_v36 = vadd.f32 %v14629_v9, %v14561_v21  ;;  %v6304_v22 = vadd.f32 %v12974_v61, %v5951_v49  ;;  %v6469_v24 = vadd.f32 %v6314_v8, %v2470_v1  ;;  %v14630_v17 = vpack.c.bf16 %v13062_v28, %v13060_v37  ;;  %v14633_v37 = vld [vmem:[#allocation34_spill] sm:$0xff] }
 0x62d   : > { %v6615_v54 = vmax.bf16 %v13501_v60, %v6551_v62  ;;  %v6609_v55 = vmax.bf16 %v13501_v60, %v6545_v29  ;;  %v14632_v21 = vpack.c.bf16 %v13049_v47, %v13047_v14  ;;  %v14634_v28 = vpack.c.bf16 %v13023_v58, %v14633_v37  ;;  %v14641_v58 = vld [vmem:[#allocation31_spill] sm:$0xff]  ;;  %v14644_v62 = vld [vmem:[#allocation164_spill] sm:$0xff] }
 0x62e   : > { %v6610_v45 = vmax.bf16 %v13501_v60, %v14630_v17  ;;  %v6467_v10 = vadd.f32 %v6308_v13, %v2464_v36  ;;  %v6543_v5 = vpack.c.bf16 %v6471_v15, %v6469_v24  ;;  %v6465_v39 = vadd.f32 %v6304_v22, %v14631_v27 }
 0x62f   : > { %6709 = vmatprep.subr.bf16.mxu1 %v6615_v54  ;;  %v6608_v61 = vmax.bf16 %v13501_v60, %v14632_v21  ;;  %v6606_v6 = vmax.bf16 %v13501_v60, %v14634_v28  ;;  %v14637_v14 = vpack.c.bf16 %v14635_v56, %v14636_v33  ;;  %v14640_v38 = vpack.c.bf16 %v14638_v50, %v14639_v46 }
 0x630   : > { %6710 = vmatpush2.bf16.msra.mxu1 %v6614_v16  ;;  %v6541_v32 = vpack.c.bf16 %v6467_v10, %v6465_v39  ;;  %v6607_v3 = vmax.bf16 %v13501_v60, %v6543_v5  ;;  %v14643_v43 = vpack.c.bf16 %v14641_v58, %v14642_v20  ;;  %v14646_v57 = vpack.c.bf16 %v14644_v62, %v14645_v0 }
 0x631   : > { %6711 = vmatprep.subr.bf16.mxu1 %v6613_v59  ;;  %v6604_v47 = vmax.bf16 %v13501_v60, %v14637_v14  ;;  %v6603_v12 = vmax.bf16 %v13501_v60, %v14640_v38  ;;  %v14649_v26 = vpack.c.bf16 %v14647_v48, %v14648_v53 }
 0x632   : > { %v6605_v30 = vmax.bf16 %v13501_v60, %v6541_v32  ;;  %v6602_v25 = vmax.bf16 %v13501_v60, %v14643_v43  ;;  %v6601_v4 = vmax.bf16 %v13501_v60, %v14646_v57 }
 0x633   : > { %v6600_v54 = vmax.bf16 %v13501_v60, %v14649_v26 }
 0x634   : > { %6712 = vmatpush2.bf16.msra.mxu1 %v6612_v31 }
 0x635   : > { %6713 = vmatprep.subr.bf16.mxu1 %v6611_v19 }
 0x638   : > { %6714 = vmatpush2.bf16.msra.mxu1 %v6610_v45 }
 0x639   : > { %6715 = vmatprep.subr.bf16.mxu1 %v6609_v55 }
 0x63c   : > { %6716 = vmatpush2.bf16.msra.mxu1 %v6608_v61 }
 0x63d   : > { %6717 = vmatprep.subr.bf16.mxu1 %v6607_v3 }
 0x640   : > { %6718 = vmatpush2.bf16.msra.mxu1 %v6606_v6 }
 0x641   : > { %6719 = vmatprep.subr.bf16.mxu1 %v6605_v30 }
 0x644   : > { %6720 = vmatpush2.bf16.msra.mxu1 %v6604_v47 }
 0x645   : > { %6721 = vmatprep.subr.bf16.mxu1 %v6603_v12 }
 0x648   : > { %6722 = vmatpush2.bf16.msra.mxu1 %v6602_v25 }
 0x649   : > { %6723 = vmatprep.subr.bf16.mxu1 %v6601_v4 }
 0x64c   : > { %6724 = vmatpush2.bf16.msra.mxu1 %v6600_v54 }
 0x64f   : > { %6726 = vmatmul.mubr.bf16.vlgmr.msra.gmra.mxu1 %v7706_v11 }
 0x68f   : > { %v6684_v34 = vpop.f32.mrf.mxu0 }
 0x690   : > { %v6685_v23 = vadd.f32 %v6684_v34, %v6623_v2 }
 0x691   : > { %v6686_v42 = vpop.f32.mrf.mxu0 }
 0x692   : > { %v6687_v59 = vadd.f32 %v6686_v42, %v6623_v2 }
 0x693   : > { %v6688_v16 = vpop.f32.mrf.mxu0 }
 0x694   : > { %v6689_v44 = vadd.f32 %v6688_v16, %v6628_v35 }
 0x695   : > { %v6690_v7 = vpop.f32.mrf.mxu0 }
 0x696   : > { %v6691_v40 = vadd.f32 %v6690_v7, %v6628_v35 }
 0x70f   : > { %v6727_v51 = vpop.f32.mrf.mxu1 }
 0x710   : > { %v6728_v60 = vadd.f32 %v6727_v51, %v6685_v23 }
 0x711   : > { %v6729_v63 = vpop.f32.mrf.mxu1 }
 0x712   : > { %6736 = vst [vmem:[%s289_s12] sm:$0xff] %v6728_v60  ;;  %v6730_v41 = vadd.f32 %v6729_v63, %v6687_v59 }
 0x713   : > { %v6731_v8 = vpop.f32.mrf.mxu1 }
 0x714   : > { %6737 = vst [vmem:[%s289_s12 + $0x8] sm:$0xff] %v6730_v41  ;;  %v6732_v52 = vadd.f32 %v6731_v8, %v6689_v44 }
 0x715   : > { %v6733_v1 = vpop.f32.mrf.mxu1 }
 0x716   : > { %6738 = vst [vmem:[%s289_s12 + $0x10] sm:$0xff] %v6732_v52  ;;  %v6734_v18 = vadd.f32 %v6733_v1, %v6691_v40 }
 0x718   : > { %6739 = vst [vmem:[%s289_s12 + $0x18] sm:$0xff] %v6734_v18 }
 0x719 PF: > { %s16_s23 = sadd.s32 1, %s7731_s23   ;;  %s14650_s21 = smov %s7727_s22 }
 0x71a   : > { %p13_p5 = scmp.ge.s32.totalorder %s16_s23, 4   ;;  %s14651_s22 = smov %s14653_s24 }
 0x71c   :  { %15 = sbr.rel (!%p13_p5) target bundleno = 2 (0x2), region = 74 }

</bundles_post_ra>
